<compile_context>
chip_gen: v7x
topology: tpu7x:2x2x1
jax: 0.10.0
libtpu: 0.0.40
codegen_flags: <defaults>
</compile_context>

<pallas_src>
import functools

import jax
import jax.numpy as jnp
import numpy as np
from jax.experimental import pallas as pl
from jax.experimental.pallas import tpu as pltpu


def cnn_kernel(*refs, num_rest, monotone):
    if monotone:
        (x_ref, w1_ref, b1_ref, cm_ref, cb_ref, w3_ref, b3_ref,
         msel_ref, bias_ref, o_ref) = refs
    else:
        (x_ref, w1_ref, b1_ref, cm_ref, cb_ref, w3_ref, b3_ref, o_ref) = refs

    f32 = jnp.float32

    def celu(h):
        # CELU(alpha=1); exp only ever sees non-positive args (no transient inf).
        return jnp.where(h > 0.0, h, jnp.exp(jnp.minimum(h, 0.0)) - 1.0)

    # dense1 folded into conv layer 0 (wrapper-side): (BT,H) @ (H,WP) + (1,WP).
    h = jnp.dot(x_ref[...], w1_ref[...], preferred_element_type=f32) + b1_ref[...]
    h = celu(h)

    # Remaining Conv1d ('same', 1 channel) layers as banded-Toeplitz matmuls on
    # full 128-lane tiles, each + scalar bias (SMEM) + CELU.  Padded lanes never
    # flow back into real columns (padded weight rows are zero).
    for l in range(num_rest):
        h = jnp.dot(h, cm_ref[l], preferred_element_type=f32) + cb_ref[l]
        h = celu(h)

    if monotone:
        # dense3 + relu, then cumsum & concat-with-flip folded into one (H,E) matrix.
        t = jnp.dot(h, w3_ref[...], preferred_element_type=f32) + b3_ref[...]
        t = jnp.maximum(t, 0.0)
        y = jnp.dot(t, msel_ref[...], preferred_element_type=f32) + bias_ref[0]
    else:
        # dense3, flip-concat selection and the uniform +bias all pre-folded.
        y = jnp.dot(h, w3_ref[...], preferred_element_type=f32) + b3_ref[...]

    # softmax over the element axis (lanes).
    zmax = jnp.max(y, axis=1, keepdims=True)
    e = jnp.exp(y - zmax)
    o_ref[...] = e / jnp.sum(e, axis=1, keepdims=True)


def _conv_band_matrix(w, width, pad):
    """Banded matrix M such that (h @ M)[:, j] == Conv1d(h, w, 'same' zero pad)."""
    K = w.shape[0]
    i = jnp.arange(width)[:, None]
    j = jnp.arange(width)[None, :]
    k = i - j + pad
    valid = (k >= 0) & (k < K)
    return jnp.where(valid, w[jnp.clip(k, 0, K - 1)], 0.0).astype(jnp.float32)


def _pad_to(a, shape):
    return jnp.pad(a, [(0, t - s) for s, t in zip(a.shape, shape)])


def _pick_batch_tile(batch):
    """v5e/v6e: single grid step (1 TensorCore).  v7x: one tile per TensorCore."""
    try:
        kind = jax.devices()[0].device_kind.lower()
    except Exception:  # pragma: no cover
        kind = ""
    if "v7" in kind and batch % 2 == 0 and (batch // 2) % 8 == 0:
        return batch // 2
    return batch


@functools.partial(jax.jit, static_argnames=("monotone", "batch_tile"))
def cnn_forward(x, w1, b1, conv_w, conv_b, w3, b3, bias,
                *, monotone=False, batch_tile=None):
    """Batched CNNModel.forward.  x: (B, element_size) -> (B, element_size)."""
    B, E = x.shape
    H = E // 2
    W = w1.shape[1]
    NC, K = conv_w.shape
    assert NC >= 2
    pad = (K - 1) // 2
    WP = ((W + 127) // 128) * 128          # hidden width padded to full lanes

    f32 = jnp.float32
    w1 = w1.astype(f32); b1 = b1.astype(f32)
    conv_w = conv_w.astype(f32); conv_b = conv_b.astype(f32)
    w3 = w3.astype(f32); b3 = b3.astype(f32)
    # torch stores this bias as float64; 1e-30 is a normal f32 value and acts as
    # a uniform pre-softmax shift, so f32 is exact for the forward pass.
    bias = jnp.asarray(bias, f32)

    # Banded Toeplitz matrix per Conv1d layer (cheap traced JAX, done once).
    cmats = [_conv_band_matrix(conv_w[l], W, pad) for l in range(NC)]

    # Fold dense1 into conv layer 0.
    w1f = _pad_to(w1 @ cmats[0], (H, WP))                              # (H, WP)
    b1f = _pad_to((b1 @ cmats[0] + conv_b[0]).reshape(1, W), (1, WP))  # (1, WP)

    # Remaining conv layers (padded); their scalar biases stay in SMEM.
    crest = _pad_to(jnp.stack(cmats[1:]), (NC - 1, WP, WP))
    cb_rest = conv_b[1:]

    # concat(t, flip(t)) selection matrix (H, E).
    jj = jnp.arange(E)
    src = jnp.where(jj < H, jj, (E - 1) - jj)
    sel = (jnp.arange(H)[:, None] == src[None, :]).astype(f32)

    if monotone:
        tri = (jnp.arange(H)[:, None] <= jnp.arange(H)[None, :]).astype(f32)
        w3f = _pad_to(w3, (WP, H))
        b3f = b3.reshape(1, H)
        msel = tri @ sel                                               # (H, E)
    else:
        # Fold dense3, the flip-concat selection, and the uniform +bias.
        w3f = _pad_to(w3 @ sel, (WP, E))                               # (WP, E)
        b3f = (b3 @ sel + bias).reshape(1, E)

    if batch_tile is None:
        batch_tile = _pick_batch_tile(B)
    BT = min(batch_tile, B)
    assert B % BT == 0, "batch must be divisible by the batch tile"
    # TODO(synk): general B would need pl.cdiv plus a masked tail tile.

    kernel = functools.partial(cnn_kernel, num_rest=NC - 1, monotone=monotone)

    in_specs = [
        pl.BlockSpec((BT, H), lambda i: (i, 0)),                 # x (first half)
        pl.BlockSpec((H, WP), lambda i: (0, 0)),                 # folded dense1·conv0
        pl.BlockSpec((1, WP), lambda i: (0, 0)),                 # folded bias row
        pl.BlockSpec((NC - 1, WP, WP), lambda i: (0, 0, 0)),     # conv band matrices
        pl.BlockSpec(memory_space=pltpu.MemorySpace.SMEM),       # conv biases (NC-1,)
    ]
    args = [x[:, :H].astype(f32), w1f, b1f, crest, cb_rest]
    if monotone:
        in_specs += [
            pl.BlockSpec((WP, H), lambda i: (0, 0)),             # dense3 weight^T
            pl.BlockSpec((1, H), lambda i: (0, 0)),              # dense3 bias
            pl.BlockSpec((H, E), lambda i: (0, 0)),              # cumsum·flip-concat
            pl.BlockSpec(memory_space=pltpu.MemorySpace.SMEM),   # additive bias (1,)
        ]
        args += [w3f, b3f, msel, bias.reshape((1,))]
    else:
        in_specs += [
            pl.BlockSpec((WP, E), lambda i: (0, 0)),             # folded dense3·Sel
            pl.BlockSpec((1, E), lambda i: (0, 0)),              # folded bias row
        ]
        args += [w3f, b3f]

    return pl.pallas_call(
        kernel,
        out_shape=jax.ShapeDtypeStruct((B, E), f32),
        grid=(B // BT,),
        in_specs=in_specs,
        out_specs=pl.BlockSpec((BT, E), lambda i: (i, 0)),
        compiler_params=pltpu.CompilerParams(
            # "parallel" lets v7x shard the (usually 2-step) grid across its two
            # TensorCores; on single-TC chips the grid is one step anyway.
            # TODO(synk): switch to pltpu.CORE_PARALLEL if v7x profiling shows
            # the hint does not actually split the grid across cores.
            dimension_semantics=("parallel",)),
    )(*args)


def reference(x, w1, b1, conv_w, conv_b, w3, b3, bias, *, monotone=False):
    """Pure-JAX mirror of the torch forward (float32), batched over rows of x."""
    B, E = x.shape
    H = E // 2
    W = w1.shape[1]
    NC, K = conv_w.shape
    pad = (K - 1) // 2
    h = x[:, :H] @ w1 + b1[None, :]
    for l in range(NC):
        hp = jnp.pad(h, ((0, 0), (pad, pad)))
        out = jnp.zeros_like(h)
        for k in range(K):
            out = out + conv_w[l, k] * hp[:, k:k + W]
        h = out + conv_b[l]
        h = jnp.where(h > 0.0, h, jnp.exp(jnp.minimum(h, 0.0)) - 1.0)  # CELU(1)
    t = h @ w3 + b3[None, :]
    if monotone:
        t = jnp.maximum(t, 0.0)
        t = jnp.cumsum(t, axis=1)
    y = jnp.concatenate([t, t[:, ::-1]], axis=1)
    return jax.nn.softmax(y + bias, axis=1)


if __name__ == "__main__":
    jax.config.update("jax_default_matmul_precision", "highest")

    # Module hyper-params: element_size=16 (half=8), network_width=100,
    # kernel_size=15, channels=1, args.cnns=2 -> 3 Conv1d+CELU layers,
    # args.monotone=False, bias parameter = 1e-30.
    E = 16
    H = E // 2
    W = 100
    K = 15
    CNNS = 2
    NC = CNNS + 1
    MONOTONE = False
    B = 256            # batch of independent instances (amortizes launch/DMA)

    key = jax.random.PRNGKey(0)
    ks = jax.random.split(key, 8)

    def trunc_init(k, shape, scale=0.1, threshold=2.0):
        # Stand-in for scipy truncnorm init: clipped normal with the same scaling.
        s = scale / np.sqrt(np.prod(shape))
        return jnp.clip(jax.random.normal(k, shape, jnp.float32),
                        -threshold, threshold) * s

    w1 = trunc_init(ks[0], (H, W))         # dense1 weight, stored (in, out)
    b1 = trunc_init(ks[1], (W,))
    conv_w = trunc_init(ks[2], (NC, K))    # 1-in/1-out channel Conv1d taps
    conv_b = trunc_init(ks[3], (NC,))
    w3 = trunc_init(ks[4], (W, H))         # dense3 weight, stored (in, out)
    b3 = trunc_init(ks[5], (H,))
    bias = jnp.float32(1e-30)

    x = jax.random.uniform(ks[6], (B, E), jnp.float32, minval=0.0, maxval=float(E))

    out = cnn_forward(x, w1, b1, conv_w, conv_b, w3, b3, bias, monotone=MONOTONE)
    out = jax.block_until_ready(out)

    ref = reference(x, w1, b1, conv_w, conv_b, w3, b3, bias, monotone=MONOTONE)
    assert out.shape == (B, E)
    assert bool(jnp.all(jnp.isfinite(out)))
    assert bool(jnp.allclose(jnp.sum(out, axis=1), 1.0, atol=1e-5))
    assert bool(jnp.allclose(out, ref, rtol=1e-3, atol=1e-5)), \
        float(jnp.max(jnp.abs(out - ref)))
    print("KERNEL_OK")
</pallas_src>

<mosaic_0001>
module attributes {stable_mosaic.version = 11 : i64} {
  func.func @cnn_kernel(%arg0: i32, %arg1: memref<256x8xf32, #tpu.memory_space<vmem>>, %arg2: memref<8x128xf32, #tpu.memory_space<vmem>>, %arg3: memref<1x128xf32, #tpu.memory_space<vmem>>, %arg4: memref<2x128x128xf32, #tpu.memory_space<vmem>>, %arg5: memref<2xf32, #tpu.memory_space<smem>>, %arg6: memref<128x16xf32, #tpu.memory_space<vmem>>, %arg7: memref<1x16xf32, #tpu.memory_space<vmem>>, %arg8: memref<256x16xf32, #tpu.memory_space<vmem>>) attributes {dimension_semantics = [#tpu.dimension_semantics<parallel>], iteration_bounds = array<i64: 1>, scalar_prefetch = 0 : i64, scratch_operands = 0 : i64, tpu.core_type = #tpu.core_type<tc>, window_params = [{transform_indices = @transform_0, window_bounds = array<i64: 256, 8>}, {pipeline_mode = #tpu.pipeline_mode<synchronous>, transform_indices = @transform_1, window_bounds = array<i64: 8, 128>}, {pipeline_mode = #tpu.pipeline_mode<synchronous>, transform_indices = @transform_2, window_bounds = array<i64: 1, 128>}, {pipeline_mode = #tpu.pipeline_mode<synchronous>, transform_indices = @transform_3, window_bounds = array<i64: 2, 128, 128>}, {transform_indices = @transform_4, window_bounds = array<i64: 2>}, {pipeline_mode = #tpu.pipeline_mode<synchronous>, transform_indices = @transform_5, window_bounds = array<i64: 128, 16>}, {pipeline_mode = #tpu.pipeline_mode<synchronous>, transform_indices = @transform_6, window_bounds = array<i64: 1, 16>}, {transform_indices = @transform_7, window_bounds = array<i64: 256, 16>}]} {
    %c0 = arith.constant 0 : index
    %c0_0 = arith.constant 0 : index
    %0 = vector.load %arg1[%c0, %c0_0] : memref<256x8xf32, #tpu.memory_space<vmem>>, vector<256x8xf32>
    %c0_1 = arith.constant 0 : index
    %c0_2 = arith.constant 0 : index
    %1 = vector.load %arg2[%c0_1, %c0_2] : memref<8x128xf32, #tpu.memory_space<vmem>>, vector<8x128xf32>
    %cst = arith.constant dense<0.000000e+00> : vector<256x128xf32>
    %2 = tpu.matmul %0, %1, %cst {dimension_numbers = #tpu.dot_dimension_numbers<[1], [0], [0], [1], [0, 0, 1, 1], [], []>, precision = #tpu.contract_precision<fp32>} : vector<256x8xf32>, vector<8x128xf32>, vector<256x128xf32> -> vector<256x128xf32>
    %c0_3 = arith.constant 0 : index
    %c0_4 = arith.constant 0 : index
    %3 = vector.load %arg3[%c0_3, %c0_4] : memref<1x128xf32, #tpu.memory_space<vmem>>, vector<1x128xf32>
    %4 = vector.broadcast %3 : vector<1x128xf32> to vector<256x128xf32>
    %5 = arith.addf %2, %4 : vector<256x128xf32>
    %cst_5 = arith.constant 0.000000e+00 : f32
    %6 = vector.broadcast %cst_5 : f32 to vector<256x128xf32>
    %7 = arith.cmpf ogt, %5, %6 : vector<256x128xf32>
    %cst_6 = arith.constant 0.000000e+00 : f32
    %8 = vector.broadcast %cst_6 : f32 to vector<256x128xf32>
    %9 = arith.minimumf %5, %8 : vector<256x128xf32>
    %10 = math.exp %9 : vector<256x128xf32>
    %cst_7 = arith.constant 1.000000e+00 : f32
    %11 = vector.broadcast %cst_7 : f32 to vector<256x128xf32>
    %12 = arith.subf %10, %11 : vector<256x128xf32>
    %13 = arith.select %7, %5, %12 : vector<256x128xi1>, vector<256x128xf32>
    %c0_8 = arith.constant 0 : index
    %c0_9 = arith.constant 0 : index
    %c0_10 = arith.constant 0 : index
    %14 = vector.load %arg4[%c0_8, %c0_9, %c0_10] : memref<2x128x128xf32, #tpu.memory_space<vmem>>, vector<1x128x128xf32>
    %15 = vector.shape_cast %14 : vector<1x128x128xf32> to vector<128x128xf32>
    %cst_11 = arith.constant dense<0.000000e+00> : vector<256x128xf32>
    %16 = tpu.matmul %13, %15, %cst_11 {dimension_numbers = #tpu.dot_dimension_numbers<[1], [0], [0], [1], [0, 0, 1, 1], [], []>, precision = #tpu.contract_precision<fp32>} : vector<256x128xf32>, vector<128x128xf32>, vector<256x128xf32> -> vector<256x128xf32>
    %c0_12 = arith.constant 0 : index
    %17 = memref.load %arg5[%c0_12] : memref<2xf32, #tpu.memory_space<smem>>
    %18 = vector.broadcast %17 : f32 to vector<256x128xf32>
    %19 = arith.addf %16, %18 : vector<256x128xf32>
    %cst_13 = arith.constant 0.000000e+00 : f32
    %20 = vector.broadcast %cst_13 : f32 to vector<256x128xf32>
    %21 = arith.cmpf ogt, %19, %20 : vector<256x128xf32>
    %cst_14 = arith.constant 0.000000e+00 : f32
    %22 = vector.broadcast %cst_14 : f32 to vector<256x128xf32>
    %23 = arith.minimumf %19, %22 : vector<256x128xf32>
    %24 = math.exp %23 : vector<256x128xf32>
    %cst_15 = arith.constant 1.000000e+00 : f32
    %25 = vector.broadcast %cst_15 : f32 to vector<256x128xf32>
    %26 = arith.subf %24, %25 : vector<256x128xf32>
    %27 = arith.select %21, %19, %26 : vector<256x128xi1>, vector<256x128xf32>
    %c1 = arith.constant 1 : index
    %c0_16 = arith.constant 0 : index
    %c0_17 = arith.constant 0 : index
    %28 = vector.load %arg4[%c1, %c0_16, %c0_17] : memref<2x128x128xf32, #tpu.memory_space<vmem>>, vector<1x128x128xf32>
    %29 = vector.shape_cast %28 : vector<1x128x128xf32> to vector<128x128xf32>
    %cst_18 = arith.constant dense<0.000000e+00> : vector<256x128xf32>
    %30 = tpu.matmul %27, %29, %cst_18 {dimension_numbers = #tpu.dot_dimension_numbers<[1], [0], [0], [1], [0, 0, 1, 1], [], []>, precision = #tpu.contract_precision<fp32>} : vector<256x128xf32>, vector<128x128xf32>, vector<256x128xf32> -> vector<256x128xf32>
    %c1_19 = arith.constant 1 : index
    %31 = memref.load %arg5[%c1_19] : memref<2xf32, #tpu.memory_space<smem>>
    %32 = vector.broadcast %31 : f32 to vector<256x128xf32>
    %33 = arith.addf %30, %32 : vector<256x128xf32>
    %cst_20 = arith.constant 0.000000e+00 : f32
    %34 = vector.broadcast %cst_20 : f32 to vector<256x128xf32>
    %35 = arith.cmpf ogt, %33, %34 : vector<256x128xf32>
    %cst_21 = arith.constant 0.000000e+00 : f32
    %36 = vector.broadcast %cst_21 : f32 to vector<256x128xf32>
    %37 = arith.minimumf %33, %36 : vector<256x128xf32>
    %38 = math.exp %37 : vector<256x128xf32>
    %cst_22 = arith.constant 1.000000e+00 : f32
    %39 = vector.broadcast %cst_22 : f32 to vector<256x128xf32>
    %40 = arith.subf %38, %39 : vector<256x128xf32>
    %41 = arith.select %35, %33, %40 : vector<256x128xi1>, vector<256x128xf32>
    %c0_23 = arith.constant 0 : index
    %c0_24 = arith.constant 0 : index
    %42 = vector.load %arg6[%c0_23, %c0_24] : memref<128x16xf32, #tpu.memory_space<vmem>>, vector<128x16xf32>
    %cst_25 = arith.constant dense<0.000000e+00> : vector<256x16xf32>
    %43 = tpu.matmul %41, %42, %cst_25 {dimension_numbers = #tpu.dot_dimension_numbers<[1], [0], [0], [1], [0, 0, 1, 1], [], []>, precision = #tpu.contract_precision<fp32>} : vector<256x128xf32>, vector<128x16xf32>, vector<256x16xf32> -> vector<256x16xf32>
    %c0_26 = arith.constant 0 : index
    %c0_27 = arith.constant 0 : index
    %44 = vector.load %arg7[%c0_26, %c0_27] : memref<1x16xf32, #tpu.memory_space<vmem>>, vector<1x16xf32>
    %45 = vector.broadcast %44 : vector<1x16xf32> to vector<256x16xf32>
    %46 = arith.addf %43, %45 : vector<256x16xf32>
    %cst_28 = arith.constant dense<0xFF800000> : vector<256xf32>
    %47 = vector.multi_reduction <maximumf>, %46, %cst_28 [1] : vector<256x16xf32> to vector<256xf32>
    %48 = vector.shape_cast %47 : vector<256xf32> to vector<256x1xf32>
    %49 = vector.broadcast %48 : vector<256x1xf32> to vector<256x16xf32>
    %50 = arith.subf %46, %49 : vector<256x16xf32>
    %51 = math.exp %50 : vector<256x16xf32>
    %cst_29 = arith.constant dense<0.000000e+00> : vector<256xf32>
    %52 = vector.multi_reduction <add>, %51, %cst_29 [1] : vector<256x16xf32> to vector<256xf32>
    %53 = vector.shape_cast %52 : vector<256xf32> to vector<256x1xf32>
    %54 = vector.broadcast %53 : vector<256x1xf32> to vector<256x16xf32>
    %55 = arith.divf %51, %54 : vector<256x16xf32>
    %c0_30 = arith.constant 0 : index
    %c0_31 = arith.constant 0 : index
    %56 = vector.load %arg8[%c0_30, %c0_31] : memref<256x16xf32, #tpu.memory_space<vmem>>, vector<256x16xf32>
    tpu.vector_store %arg8[%c0_30, %c0_31], %55 {strides = array<i32>} : memref<256x16xf32, #tpu.memory_space<vmem>>, vector<256x16xf32>,
    return
  }
  func.func @transform_0(%arg0: i32) -> (i32, i32) {
    %c0_i32 = arith.constant 0 : i32
    %c0_i32_0 = arith.constant 0 : i32
    return %arg0, %c0_i32 : i32, i32
  }
  func.func @transform_1(%arg0: i32) -> (i32, i32) {
    %c0_i32 = arith.constant 0 : i32
    %c0_i32_0 = arith.constant 0 : i32
    %c0_i32_1 = arith.constant 0 : i32
    return %c0_i32, %c0_i32_0 : i32, i32
  }
  func.func @transform_2(%arg0: i32) -> (i32, i32) {
    %c0_i32 = arith.constant 0 : i32
    %c0_i32_0 = arith.constant 0 : i32
    %c0_i32_1 = arith.constant 0 : i32
    return %c0_i32, %c0_i32_0 : i32, i32
  }
  func.func @transform_3(%arg0: i32) -> (i32, i32, i32) {
    %c0_i32 = arith.constant 0 : i32
    %c0_i32_0 = arith.constant 0 : i32
    %c0_i32_1 = arith.constant 0 : i32
    %c0_i32_2 = arith.constant 0 : i32
    return %c0_i32, %c0_i32_0, %c0_i32_1 : i32, i32, i32
  }
  func.func @transform_4(%arg0: i32) -> i32 {
    %c0_i32 = arith.constant 0 : i32
    %c0_i32_0 = arith.constant 0 : i32
    return %c0_i32 : i32
  }
  func.func @transform_5(%arg0: i32) -> (i32, i32) {
    %c0_i32 = arith.constant 0 : i32
    %c0_i32_0 = arith.constant 0 : i32
    %c0_i32_1 = arith.constant 0 : i32
    return %c0_i32, %c0_i32_0 : i32, i32
  }
  func.func @transform_6(%arg0: i32) -> (i32, i32) {
    %c0_i32 = arith.constant 0 : i32
    %c0_i32_0 = arith.constant 0 : i32
    %c0_i32_1 = arith.constant 0 : i32
    return %c0_i32, %c0_i32_0 : i32, i32
  }
  func.func @transform_7(%arg0: i32) -> (i32, i32) {
    %c0_i32 = arith.constant 0 : i32
    %c0_i32_0 = arith.constant 0 : i32
    return %arg0, %c0_i32 : i32, i32
  }
}

</mosaic_0001>

<bundles_post_ra>
// kernel: cnn_forward.1
= control target key start
LH: loop header
LB: loop body
LE: loop exit
PB: predicated region body
PF: predicated region fallthrough
CT: control target
= control target key end

     0   :  { %12 = vsyncpa [#allocation3], 0  ;;  %s18249_s0 = inlined_call_operand.vmem [shape: f32[256,8], index: 0, kind: input, shape index: {}]   ;;  %s18250_s1 = inlined_call_operand.vmem [shape: f32[8,128], index: 1, kind: input, shape index: {}]   ;;  %s18251_s2 = inlined_call_operand.vmem [shape: f32[1,128], index: 2, kind: input, shape index: {}]   ;;  %s18252_s3 = inlined_call_operand.vmem [shape: f32[2,128,128], index: 3, kind: input, shape index: {}]   ;;  %s18253_s4 = inlined_call_operand.vmem [shape: f32[2], index: 4, kind: input, shape index: {}]   ;;  %s18254_s5 = inlined_call_operand.vmem [shape: f32[128,16], index: 5, kind: input, shape index: {}]   ;;  %s18255_s6 = inlined_call_operand.vmem [shape: f32[1,16], index: 6, kind: input, shape index: {}]   ;;  %s18256_s7 = inlined_call_operand.vmem [shape: f32[256,16], index: 7, kind: output, shape index: {}]  }
   0x1   :  { %s27_s26 = sshll.u32 %s18253_s4, 4  ;;  %s28_s26 = int_to_ptr.vmem [resolvable:$true] %s27_s26 }
   0x2   :  { %s13501_s27 = scalar_lea.vmem %s28_s26, 16  ;;  %p13506_p1 = scmp.lt.s32.totalorder %s28_s26, %s28_s26 }
   0x3   :  { %p13502_p0 = scmp.ne.s32.totalorder %s28_s26, %s13501_s27  ;;  %p13507_p2 = scmp.lt.s32.totalorder %s13501_s27, %s13501_s27 }
   0x5   :  { %p13508_p3 = por %p13507_p2, %p13506_p1 }
   0x7   :  { %p13509_p4 = pnand %p13508_p3, %p13502_p0 }
   0x9   :  { %13512 = shalt.err (!%p13509_p4)
}
   0xa   :  { %s13515_s28 = smov [#allocation2]  }
   0xb   :  { %30 = dma.vmem_to_smem %s28_s26, 16, %s13515_s28, [#allocation3]  }
   0xc   :  { %13513 = dma.done.wait [#allocation3], 16  }
   0xd   :  { %13514 = vsyncadd [#allocation3], 4294967280 }
   0xe   :  { %38 = sfence }
   0xf   :  { %v71_v0 = vld [vmem:[%s18250_s1] sm:$0xff]  ;;  %vm79_vm0 = vcmask 64512   ;;  %v40_v2 = vld [vmem:[%s18249_s0 + $0x8] sm:$0xff]  ;;  %v41_v6 = vld [vmem:[%s18249_s0 + $0x10] sm:$0xff] }
  0x10   :  { %v39_v1 = vld [vmem:[%s18249_s0] sm:$0xff]  ;;  %v13568_v3 = vand.u32 4294901760, %v71_v0  ;;  %v84_v5 = vsel %vm79_vm0, %v40_v2, 0  ;;  %v42_v7 = vld [vmem:[%s18249_s0 + $0x18] sm:$0xff]  ;;  %v87_v11 = vsel %vm79_vm0, %v41_v6, 0  ;;  %v44_v13 = vld [vmem:[%s18249_s0 + $0x28] sm:$0xff] }
  0x11   :  { %v81_v4 = vsel %vm79_vm0, %v39_v1, 0  ;;  %v43_v8 = vld [vmem:[%s18249_s0 + $0x20] sm:$0xff]  ;;  %v13583_v10 = vand.u32 4294901760, %v84_v5  ;;  %v90_v12 = vsel %vm79_vm0, %v42_v7, 0  ;;  %v13594_v15 = vand.u32 4294901760, %v87_v11  ;;  %v45_v18 = vld [vmem:[%s18249_s0 + $0x30] sm:$0xff] }
  0x12   :  { %v13581_v9 = vand.u32 4294901760, %v81_v4  ;;  %10080 = vmatprep.subr.mxu0 %v13568_v3  ;;  %v13592_v14 = vsub.f32 %v71_v0, %v13568_v3  ;;  %v13596_v16 = vand.u32 4294901760, %v90_v12  ;;  %v93_v17 = vsel %vm79_vm0, %v43_v8, 0  ;;  %v46_v39 = vld [vmem:[%s18249_s0 + $0x38] sm:$0xff]  ;;  %v47_v44 = vld [vmem:[%s18249_s0 + $0x40] sm:$0xff]  ;;  %v48_v49 = vld [vmem:[%s18249_s0 + $0x48] sm:$0xff] }
  0x13   :  { %10081 = vmatpush3.msra.mxu0 %v13568_v3  ;;  %v13607_v20 = vsub.f32 %v84_v5, %v13583_v10  ;;  %v13609_v21 = vand.u32 4294901760, %v93_v17  ;;  %v96_v22 = vsel %vm79_vm0, %v44_v13, 0  ;;  %v13616_v24 = vsub.f32 %v87_v11, %v13594_v15  ;;  %v49_v50 = vld [vmem:[%s18249_s0 + $0x50] sm:$0xff]  ;;  %v50_v55 = vld [vmem:[%s18249_s0 + $0x58] sm:$0xff]  ;;  %v51_v60 = vld [vmem:[%s18249_s0 + $0x60] sm:$0xff] }
  0x14   :  { %v13604_v19 = vsub.f32 %v81_v4, %v13581_v9  ;;  %v13613_v23 = vand.u32 4294901760, %v13592_v14  ;;  %v13619_v25 = vsub.f32 %v90_v12, %v13596_v16  ;;  %v13621_v26 = vand.u32 4294901760, %v96_v22  ;;  %v52_v61 = vld [vmem:[%s18249_s0 + $0x68] sm:$0xff]  ;;  %v53_v13 = vld [vmem:[%s18249_s0 + $0x70] sm:$0xff] }
  0x15   :  { %v18270_v28 = vand.u32 4294901760, %v13607_v20  ;;  %v13626_v29 = vsub.f32 %v93_v17, %v13609_v21  ;;  %v99_v30 = vsel %vm79_vm0, %v45_v18, 0  ;;  %v18269_v32 = vand.u32 4294901760, %v13616_v24 }
  0x16   :  { %v18272_v27 = vand.u32 4294901760, %v13604_v19  ;;  %v566_v31 = vsub.f32 %v13592_v14, %v13613_v23  ;;  %v18267_v33 = vand.u32 4294901760, %v13619_v25  ;;  %v13634_v34 = vsub.f32 %v96_v22, %v13621_v26 }
  0x17   :  { %v255_v36 = vsub.f32 %v13607_v20, %v18270_v28  ;;  %v18265_v37 = vand.u32 4294901760, %v13626_v29  ;;  %v13643_v38 = vand.u32 4294901760, %v99_v30  ;;  %v265_v41 = vsub.f32 %v13616_v24, %v18269_v32 }
  0x18   :  { %v245_v35 = vsub.f32 %v13604_v19, %v18272_v27  ;;  %v567_v40 = vand.u32 4294901760, %v566_v31  ;;  %v275_v42 = vsub.f32 %v13619_v25, %v18267_v33  ;;  %v18264_v43 = vand.u32 4294901760, %v13634_v34 }
  0x19   :  { %v256_v46 = vand.u32 4294901760, %v255_v36  ;;  %v285_v47 = vsub.f32 %v13626_v29, %v18265_v37  ;;  %v13662_v48 = vsub.f32 %v99_v30, %v13643_v38  ;;  %v266_v51 = vand.u32 4294901760, %v265_v41 }
  0x1a   :  { %v246_v45 = vand.u32 4294901760, %v245_v35  ;;  %10130 = vmatprep.subr.mxu0 %v567_v40  ;;  %v276_v52 = vand.u32 4294901760, %v275_v42  ;;  %v295_v53 = vsub.f32 %v13634_v34, %v18264_v43  ;;  %v102_v54 = vsel %vm79_vm0, %v46_v39, 0 }
  0x1b   :  { %v286_v56 = vand.u32 4294901760, %v285_v47  ;;  %v18263_v57 = vand.u32 4294901760, %v13662_v48  ;;  %v13678_v58 = vand.u32 4294901760, %v102_v54  ;;  %v105_v59 = vsel %vm79_vm0, %v47_v44, 0 }
  0x1c   :  { %10082 = vmatprep.mubr.f32.mxu0 %v246_v45  ;;  %v296_v62 = vand.u32 4294901760, %v295_v53  ;;  %v13687_v63 = vand.u32 4294901760, %v105_v59  ;;  %v108_v0 = vsel %vm79_vm0, %v48_v49, 0  ;;  %v111_v1 = vsel %vm79_vm0, %v49_v50, 0  ;;  %v54_v50 = vld [vmem:[%s18249_s0 + $0x78] sm:$0xff] }
  0x1d   :  { %10083 = vmatmul.mubr.f32.vlgmr.msra.gmra.mrb[0].mxu0 %v256_v46  ;;  %v305_v2 = vsub.f32 %v13662_v48, %v18263_v57  ;;  %v13695_v4 = vsub.f32 %v102_v54, %v13678_v58  ;;  %v13697_v5 = vand.u32 4294901760, %v108_v0  ;;  %v13699_v6 = vand.u32 4294901760, %v111_v1 }
  0x1e   :  { %10131 = vmatpush3.msra.mxu0 %v567_v40  ;;  %10085 = vmatprep.mubr.f32.mxu0 %v266_v51  ;;  %v13702_v7 = vsub.f32 %v105_v59, %v13687_v63  ;;  %v114_v8 = vsel %vm79_vm0, %v50_v55, 0  ;;  %v117_v11 = vsel %vm79_vm0, %v51_v60, 0  ;;  %v120_v12 = vsel %vm79_vm0, %v52_v61, 0  ;;  %v55_v59 = vld [vmem:[%s18249_s0 + $0x80] sm:$0xff]  ;;  %v56_v60 = vld [vmem:[%s18249_s0 + $0x88] sm:$0xff]  ;;  %v57_v61 = vld [vmem:[%s18249_s0 + $0x90] sm:$0xff] }
  0x1f   :  { %10180 = vmatprep.subr.mxu0 %v13592_v14  ;;  %v306_v17 = vand.u32 4294901760, %v305_v2  ;;  %v18262_v18 = vand.u32 4294901760, %v13695_v4  ;;  %v13713_v22 = vsub.f32 %v108_v0, %v13697_v5  ;;  %v13716_v30 = vsub.f32 %v111_v1, %v13699_v6 }
  0x20   :  { %v18261_v31 = vand.u32 4294901760, %v13702_v7  ;;  %v13719_v35 = vand.u32 4294901760, %v114_v8  ;;  %v13721_v36 = vand.u32 4294901760, %v117_v11  ;;  %v13723_v39 = vand.u32 4294901760, %v120_v12 }
  0x21   :  { %18831 = vst [vmem:[#allocation5_spill] sm:$0xff] %v13713_v22  ;;  %18832 = vst [vmem:[#allocation6_spill] sm:$0xff] %v13716_v30  ;;  %10086 = vmatmul.mubr.f32.gmra.mrb[2].mxu0 %v276_v52  ;;  %v315_v40 = vsub.f32 %v13695_v4, %v18262_v18  ;;  %v18259_v41 = vand.u32 4294901760, %v13713_v22  ;;  %v18258_v42 = vand.u32 4294901760, %v13716_v30  ;;  %v123_v44 = vsel %vm79_vm0, %v53_v13, 0 }
  0x22   :  { %10088 = vmatprep.mubr.f32.mxu0 %v286_v56  ;;  %v325_v45 = vsub.f32 %v13702_v7, %v18261_v31  ;;  %v13735_v46 = vsub.f32 %v114_v8, %v13719_v35  ;;  %v13738_v47 = vsub.f32 %v117_v11, %v13721_v36  ;;  %v13741_v49 = vsub.f32 %v120_v12, %v13723_v39 }
  0x23   :  { %v316_v51 = vand.u32 4294901760, %v315_v40  ;;  %v13746_v52 = vand.u32 4294901760, %v123_v44  ;;  %v335_v53 = vsub.f32 %v13713_v22, %v18259_v41  ;;  %v345_v54 = vsub.f32 %v13716_v30, %v18258_v42  ;;  %v58_v40 = vld [vmem:[%s18249_s0 + $0x98] sm:$0xff] }
  0x24   :  { %18833 = vst [vmem:[#allocation7_spill] sm:$0xff] %v13735_v46  ;;  %18834 = vst [vmem:[#allocation8_spill] sm:$0xff] %v13738_v47  ;;  %v18257_v55 = vand.u32 4294901760, %v13735_v46  ;;  %v18260_v56 = vand.u32 4294901760, %v13738_v47  ;;  %v126_v1 = vsel %vm79_vm0, %v54_v50, 0  ;;  %v18266_v2 = vand.u32 4294901760, %v13741_v49 }
  0x25   :  { %18835 = vst [vmem:[#allocation9_spill] sm:$0xff] %v13741_v49  ;;  %10089 = vmatmul.mubr.f32.gmra.mrb[4].mxu0 %v296_v62  ;;  %v326_v62 = vand.u32 4294901760, %v325_v45  ;;  %v13766_v0 = vsub.f32 %v123_v44, %v13746_v52  ;;  %v13770_v8 = vand.u32 4294901760, %v126_v1  ;;  %v129_v12 = vsel %vm79_vm0, %v55_v59, 0  ;;  %v59_v44 = vld [vmem:[%s18249_s0 + $0xa0] sm:$0xff] }
  0x26   :  { %10091 = vmatprep.mubr.f32.mxu0 %v306_v17  ;;  %v355_v11 = vsub.f32 %v13735_v46, %v18257_v55  ;;  %v132_v13 = vsel %vm79_vm0, %v56_v60, 0  ;;  %v135_v17 = vsel %vm79_vm0, %v57_v61, 0  ;;  %v336_v45 = vand.u32 4294901760, %v335_v53 }
  0x27   :  { %18836 = vst [vmem:[#allocation10_spill] sm:$0xff] %v13766_v0  ;;  %v346_v50 = vand.u32 4294901760, %v345_v54  ;;  %v365_v55 = vsub.f32 %v13738_v47, %v18260_v56  ;;  %v13788_v59 = vsub.f32 %v126_v1, %v13770_v8  ;;  %v18268_v60 = vand.u32 4294901760, %v13766_v0 }
  0x28   :  { %v13791_v61 = vand.u32 4294901760, %v129_v12  ;;  %v13793_v42 = vand.u32 4294901760, %v132_v13  ;;  %v13795_v41 = vand.u32 4294901760, %v135_v17  ;;  %v138_v54 = vsel %vm79_vm0, %v58_v40, 0 }
  0x29   :  { %10092 = vmatmul.mubr.f32.gmra.mrb[6].mxu0 %v316_v51  ;;  %18837 = vst [vmem:[#allocation11_spill] sm:$0xff] %v13788_v59  ;;  %v60_v51 = vld [vmem:[%s18249_s0 + $0xa8] sm:$0xff]  ;;  %v18271_v53 = vand.u32 4294901760, %v13788_v59  ;;  %v141_v1 = vsel %vm79_vm0, %v59_v44, 0  ;;  %v356_v56 = vand.u32 4294901760, %v355_v11  ;;  %v375_v31 = vsub.f32 %v13741_v49, %v18266_v2 }
  0x2a   :  { %10094 = vmatprep.mubr.f32.mxu0 %v326_v62  ;;  %v61_v62 = vld [vmem:[%s18249_s0 + $0xb0] sm:$0xff]  ;;  %v13810_v18 = vsub.f32 %v129_v12, %v13791_v61  ;;  %v13813_v57 = vsub.f32 %v132_v13, %v13793_v42  ;;  %v13816_v40 = vsub.f32 %v135_v17, %v13795_v41  ;;  %v13818_v44 = vand.u32 4294901760, %v138_v54  ;;  %v62_v17 = vld [vmem:[%s18249_s0 + $0xb8] sm:$0xff] }
  0x2b   :  { %v13820_v43 = vand.u32 4294901760, %v141_v1  ;;  %v144_v11 = vsel %vm79_vm0, %v60_v51, 0  ;;  %v366_v37 = vand.u32 4294901760, %v365_v55  ;;  %v385_v12 = vsub.f32 %v13766_v0, %v18268_v60 }
  0x2c   :  { %18838 = vst [vmem:[#allocation12_spill] sm:$0xff] %v13810_v18  ;;  %18839 = vst [vmem:[#allocation13_spill] sm:$0xff] %v13813_v57  ;;  %v18273_v2 = vand.u32 4294901760, %v13810_v18  ;;  %v147_v13 = vsel %vm79_vm0, %v61_v62, 0  ;;  %v376_v33 = vand.u32 4294901760, %v375_v31  ;;  %v13835_v55 = vand.u32 4294901760, %v144_v11 }
  0x2d   :  { %10095 = vmatmul.mubr.f32.gmra.mrb[8].mxu0 %v336_v45  ;;  %18840 = vst [vmem:[#allocation14_spill] sm:$0xff] %v13816_v40  ;;  %v395_v45 = vsub.f32 %v13788_v59, %v18271_v53  ;;  %v13837_v51 = vand.u32 4294901760, %v147_v13  ;;  %v13841_v62 = vsub.f32 %v138_v54, %v13818_v44  ;;  %v13844_v32 = vsub.f32 %v141_v1, %v13820_v43  ;;  %v63_v31 = vld [vmem:[%s18249_s0 + $0xc0] sm:$0xff]  ;;  %v64_v54 = vld [vmem:[%s18249_s0 + $0xc8] sm:$0xff]  ;;  %v65_v1 = vld [vmem:[%s18249_s0 + $0xd0] sm:$0xff] }
  0x2e   :  { %10097 = vmatprep.mubr.f32.mxu0 %v346_v50  ;;  %v18282_v50 = vand.u32 4294901760, %v13813_v57  ;;  %v150_v28 = vsel %vm79_vm0, %v62_v17, 0  ;;  %v386_v53 = vand.u32 4294901760, %v385_v12  ;;  %v13860_v17 = vsub.f32 %v144_v11, %v13835_v55 }
  0x2f   :  { %18841 = vst [vmem:[#allocation15_spill] sm:$0xff] %v13841_v62  ;;  %18842 = vst [vmem:[#allocation16_spill] sm:$0xff] %v13844_v32  ;;  %v396_v27 = vand.u32 4294901760, %v395_v45  ;;  %v13863_v60 = vsub.f32 %v147_v13, %v13837_v51  ;;  %v153_v12 = vsel %vm79_vm0, %v63_v31, 0  ;;  %v156_v49 = vsel %vm79_vm0, %v64_v54, 0  ;;  %v66_v31 = vld [vmem:[%s18249_s0 + $0xd8] sm:$0xff] }
  0x30   :  { %18843 = vst [vmem:[#allocation17_spill] sm:$0xff] %v13860_v17  ;;  %v415_v45 = vsub.f32 %v13813_v57, %v18282_v50  ;;  %v13876_v0 = vand.u32 4294901760, %v153_v12  ;;  %v18848_v54 = vand.u32 4294901760, %v13841_v62  ;;  %v13894_v11 = vand.u32 4294901760, %v156_v49 }
  0x31   :  { %10098 = vmatmul.mubr.f32.gmra.mrb[10].mxu0 %v356_v56  ;;  %v405_v56 = vsub.f32 %v13810_v18, %v18273_v2  ;;  %18844 = vst [vmem:[#allocation18_spill] sm:$0xff] %v13863_v60  ;;  %v18845_v2 = vand.u32 4294901760, %v13816_v40 }
  0x32   :  { %10100 = vmatprep.mubr.f32.mxu0 %v366_v37  ;;  %v13865_v37 = vand.u32 4294901760, %v150_v28  ;;  %18846 = vst [vmem:[#allocation19_spill] sm:$0xff] %v13876_v0  ;;  %18849 = vst [vmem:[#allocation21_spill] sm:$0xff] %v13894_v11  ;;  %v13902_v57 = vsub.f32 %v153_v12, %v13876_v0  ;;  %v69_v12 = vld [vmem:[%s18249_s0 + $0xf0] sm:$0xff] }
  0x33   :  { %v425_v18 = vsub.f32 %v13816_v40, %v18845_v2  ;;  %v406_v13 = vand.u32 4294901760, %v405_v56  ;;  %v416_v56 = vand.u32 4294901760, %v415_v45  ;;  %v18851_v2 = vand.u32 4294901760, %v13844_v32 }
  0x34   :  { %v13886_v59 = vsub.f32 %v150_v28, %v13865_v37  ;;  %18852 = vst [vmem:[#allocation23_spill] sm:$0xff] %v13902_v57 }
  0x35   :  { %10101 = vmatmul.mubr.f32.gmra.mrb[12].mxu0 %v376_v33  ;;  %v159_v33 = vsel %vm79_vm0, %v65_v1, 0  ;;  %v435_v1 = vsub.f32 %v13841_v62, %v18848_v54  ;;  %v426_v50 = vand.u32 4294901760, %v425_v18  ;;  %v445_v28 = vsub.f32 %v13844_v32, %v18851_v2  ;;  %v68_v54 = vld [vmem:[%s18249_s0 + $0xe8] sm:$0xff] }
  0x36   :  { %10103 = vmatprep.mubr.f32.mxu0 %v386_v53  ;;  %18847 = vst [vmem:[#allocation20_spill] sm:$0xff] %v13886_v59  ;;  %v67_v53 = vld [vmem:[%s18249_s0 + $0xe0] sm:$0xff]  ;;  %v13896_v40 = vand.u32 4294901760, %v159_v33  ;;  %v18853_v62 = vand.u32 4294901760, %v13860_v17  ;;  %v18854_v18 = vand.u32 4294901760, %v13863_v60  ;;  %v168_v2 = vsel %vm79_vm0, %v68_v54, 0 }
  0x37   :  { %v165_v45 = vsel %vm79_vm0, %v67_v53, 0  ;;  %v13920_v53 = vsub.f32 %v156_v49, %v13894_v11  ;;  %v70_v49 = vld [vmem:[%s18249_s0 + $0xf8] sm:$0xff]  ;;  %v13943_v54 = vand.u32 4294901760, %v168_v2 }
  0x38   :  { %18850 = vst [vmem:[#allocation22_spill] sm:$0xff] %v13896_v40  ;;  %v465_v47 = vsub.f32 %v13863_v60, %v18854_v18  ;;  %v13923_v32 = vsub.f32 %v159_v33, %v13896_v40  ;;  %v13928_v60 = vand.u32 4294901760, %v165_v45  ;;  %v18857_v33 = vand.u32 4294901760, %v13886_v59 }
  0x39   :  { %10104 = vmatmul.mubr.f32.gmra.mrb[14].mxu0 %v396_v27  ;;  %v162_v27 = vsel %vm79_vm0, %v66_v31, 0  ;;  %v436_v31 = vand.u32 4294901760, %v435_v1  ;;  %18859 = vst [vmem:[#allocation27_spill] sm:$0xff] %v13943_v54 }
  0x3a   :  { %10106 = vmatprep.mubr.f32.mxu0 %v406_v13  ;;  %v455_v13 = vsub.f32 %v13860_v17, %v18853_v62  ;;  %v13925_v46 = vand.u32 4294901760, %v162_v27  ;;  %v446_v62 = vand.u32 4294901760, %v445_v28  ;;  %18856 = vst [vmem:[#allocation25_spill] sm:$0xff] %v13928_v60  ;;  %v171_v17 = vsel %vm79_vm0, %v69_v12, 0 }
  0x3b   :  { %v466_v1 = vand.u32 4294901760, %v465_v47  ;;  %v475_v30 = vsub.f32 %v13886_v59, %v18857_v33  ;;  %v18860_v12 = vand.u32 4294901760, %v13902_v57  ;;  %v13949_v47 = vsub.f32 %v165_v45, %v13928_v60 }
  0x3c   :  { %18855 = vst [vmem:[#allocation24_spill] sm:$0xff] %v13925_v46  ;;  %v13941_v18 = vsub.f32 %v162_v27, %v13925_v46  ;;  %v13951_v22 = vand.u32 4294901760, %v171_v17 }
  0x3d   :  { %10107 = vmatmul.mubr.f32.gmra.mrb[16].mxu0 %v416_v56  ;;  %v456_v56 = vand.u32 4294901760, %v455_v13  ;;  %v485_v13 = vsub.f32 %v13902_v57, %v18860_v12  ;;  %v476_v33 = vand.u32 4294901760, %v475_v30  ;;  %v18863_v12 = vand.u32 4294901760, %v13923_v32 }
  0x3e   :  { %10109 = vmatprep.mubr.f32.mxu0 %v426_v50  ;;  %v18307_v50 = vand.u32 4294901760, %v13920_v53  ;;  %18858 = vst [vmem:[#allocation26_spill] sm:$0xff] %v13941_v18  ;;  %18861 = vst [vmem:[#allocation28_spill] sm:$0xff] %v13951_v22  ;;  %v18308_v28 = vand.u32 4294901760, %v13941_v18  ;;  %v18314_v30 = vand.u32 4294901760, %v13949_v47 }
  0x3f   :  { %v486_v45 = vand.u32 4294901760, %v485_v13  ;;  %v505_v57 = vsub.f32 %v13923_v32, %v18863_v12 }
  0x40   :  { %v495_v27 = vsub.f32 %v13920_v53, %v18307_v50  ;;  %v525_v12 = vsub.f32 %v13949_v47, %v18314_v30  ;;  %v18878_v30 = vld [vmem:[#allocation20_spill] sm:$0xff] }
  0x41   :  { %10110 = vmatmul.mubr.f32.gmra.mrb[18].mxu0 %v436_v31  ;;  %v174_v31 = vsel %vm79_vm0, %v70_v49, 0  ;;  %v13968_v49 = vsub.f32 %v171_v17, %v13951_v22  ;;  %v506_v13 = vand.u32 4294901760, %v505_v57 }
  0x42   :  { %10112 = vmatprep.mubr.f32.mxu0 %v446_v62  ;;  %v13959_v62 = vsub.f32 %v168_v2, %v13943_v54  ;;  %v13961_v59 = vand.u32 4294901760, %v174_v31  ;;  %v515_v2 = vsub.f32 %v13941_v18, %v18308_v28  ;;  %v526_v18 = vand.u32 4294901760, %v525_v12  ;;  %v18867_v12 = vld [vmem:[#allocation8_spill] sm:$0xff] }
  0x43   :  { %v18312_v17 = vand.u32 4294901760, %v13968_v49 }
  0x44   :  { %18862 = vst [vmem:[#allocation29_spill] sm:$0xff] %v13961_v59  ;;  %v18313_v50 = vand.u32 4294901760, %v13959_v62 }
  0x45   :  { %10113 = vmatmul.mubr.f32.gmra.mrb[20].mxu0 %v456_v56  ;;  %v496_v56 = vand.u32 4294901760, %v495_v27  ;;  %v545_v57 = vsub.f32 %v13968_v49, %v18312_v17  ;;  %v18876_v17 = vld [vmem:[#allocation17_spill] sm:$0xff] }
  0x46   :  { %10115 = vmatprep.mubr.f32.mxu0 %v466_v1  ;;  %v13975_v1 = vsub.f32 %v174_v31, %v13961_v59  ;;  %v535_v27 = vsub.f32 %v13959_v62, %v18313_v50  ;;  %v18877_v50 = vld [vmem:[#allocation18_spill] sm:$0xff] }
  0x48   :  { %v18311_v28 = vand.u32 4294901760, %v13975_v1  ;;  %v536_v31 = vand.u32 4294901760, %v535_v27  ;;  %v18869_v27 = vld [vmem:[#allocation10_spill] sm:$0xff] }
  0x49   :  { %10116 = vmatmul.mubr.f32.gmra.mrb[22].mxu0 %v476_v33  ;;  %v516_v33 = vand.u32 4294901760, %v515_v2 }
  0x4a   :  { %10118 = vmatprep.mubr.f32.mxu0 %v486_v45  ;;  %v555_v45 = vsub.f32 %v13975_v1, %v18311_v28  ;;  %v18875_v28 = vld [vmem:[#allocation16_spill] sm:$0xff] }
  0x4c   :  { %v556_v2 = vand.u32 4294901760, %v555_v45  ;;  %v18872_v45 = vld [vmem:[#allocation13_spill] sm:$0xff] }
  0x4d   :  { %10119 = vmatmul.mubr.f32.gmra.mrb[24].mxu0 %v496_v56  ;;  %v546_v56 = vand.u32 4294901760, %v545_v57  ;;  %v18870_v57 = vld [vmem:[#allocation11_spill] sm:$0xff] }
  0x4e   :  { %10121 = vmatprep.mubr.f32.mxu0 %v506_v13  ;;  %v18866_v13 = vld [vmem:[#allocation7_spill] sm:$0xff] }
  0x51   :  { %10122 = vmatmul.mubr.f32.gmra.mrb[26].mxu0 %v516_v33  ;;  %v18868_v33 = vld [vmem:[#allocation9_spill] sm:$0xff] }
  0x52   :  { %10124 = vmatprep.mubr.f32.mxu0 %v526_v18  ;;  %v18865_v18 = vld [vmem:[#allocation6_spill] sm:$0xff] }
  0x55   :  { %10125 = vmatmul.mubr.f32.gmra.mrb[28].mxu0 %v536_v31  ;;  %v18871_v31 = vld [vmem:[#allocation12_spill] sm:$0xff] }
  0x56   :  { %10127 = vmatprep.mubr.f32.mxu0 %v546_v56  ;;  %v18873_v56 = vld [vmem:[#allocation14_spill] sm:$0xff] }
  0x59   :  { %10128 = vmatmul.mubr.f32.gmra.mrb[30].mxu0 %v556_v2  ;;  %v18874_v2 = vld [vmem:[#allocation15_spill] sm:$0xff] }
  0x5a   :  { %10132 = vmatprep.mubr.f32.mxu0 %v13581_v9 }
  0x5d   :  { %10133 = vmatmul.mubr.f32.vlgmr.msra.gmra.mrb[0].mxu0 %v13583_v10 }
  0x5e   :  { %10181 = vmatpush3.msra.mxu0 %v13592_v14  ;;  %10135 = vmatprep.mubr.f32.mxu0 %v13594_v15  ;;  %v18864_v14 = vld [vmem:[#allocation5_spill] sm:$0xff] }
  0x5f   :  { %10230 = vmatprep.subr.mxu0 %v13568_v3 }
  0x61   :  { %10136 = vmatmul.mubr.f32.gmra.mrb[2].mxu0 %v13596_v16 }
  0x62   :  { %10138 = vmatprep.mubr.f32.mxu0 %v13609_v21 }
  0x65   :  { %10139 = vmatmul.mubr.f32.gmra.mrb[4].mxu0 %v13621_v26 }
  0x66   :  { %10141 = vmatprep.mubr.f32.mxu0 %v13643_v38 }
  0x69   :  { %10142 = vmatmul.mubr.f32.gmra.mrb[6].mxu0 %v13678_v58 }
  0x6a   :  { %10144 = vmatprep.mubr.f32.mxu0 %v13687_v63 }
  0x6d   :  { %10145 = vmatmul.mubr.f32.gmra.mrb[8].mxu0 %v13697_v5 }
  0x6e   :  { %10147 = vmatprep.mubr.f32.mxu0 %v13699_v6 }
  0x71   :  { %10148 = vmatmul.mubr.f32.gmra.mrb[10].mxu0 %v13719_v35 }
  0x72   :  { %10150 = vmatprep.mubr.f32.mxu0 %v13721_v36 }
  0x75   :  { %10151 = vmatmul.mubr.f32.gmra.mrb[12].mxu0 %v13723_v39 }
  0x76   :  { %10153 = vmatprep.mubr.f32.mxu0 %v13746_v52 }
  0x79   :  { %10154 = vmatmul.mubr.f32.gmra.mrb[14].mxu0 %v13770_v8 }
  0x7a   :  { %10156 = vmatprep.mubr.f32.mxu0 %v13791_v61 }
  0x7d   :  { %10157 = vmatmul.mubr.f32.gmra.mrb[16].mxu0 %v13793_v42 }
  0x7e   :  { %10159 = vmatprep.mubr.f32.mxu0 %v13795_v41 }
  0x81   :  { %10160 = vmatmul.mubr.f32.gmra.mrb[18].mxu0 %v13818_v44 }
  0x82   :  { %10162 = vmatprep.mubr.f32.mxu0 %v13820_v43 }
  0x85   :  { %10163 = vmatmul.mubr.f32.gmra.mrb[20].mxu0 %v13835_v55 }
  0x86   :  { %10165 = vmatprep.mubr.f32.mxu0 %v13837_v51 }
  0x89   :  { %10166 = vmatmul.mubr.f32.gmra.mrb[22].mxu0 %v13865_v37 }
  0x8a   :  { %10168 = vmatprep.mubr.f32.mxu0 %v13876_v0  ;;  %v18886_v0 = vand.u32 4294901760, %v13634_v34 }
  0x8d   :  { %10169 = vmatmul.mubr.f32.gmra.mrb[24].mxu0 %v13894_v11  ;;  %v18885_v11 = vand.u32 4294901760, %v13626_v29 }
  0x8e   :  { %10171 = vmatprep.mubr.f32.mxu0 %v13896_v40  ;;  %v18884_v40 = vand.u32 4294901760, %v13619_v25 }
  0x91   :  { %10172 = vmatmul.mubr.f32.gmra.mrb[26].mxu0 %v13925_v46  ;;  %v18883_v46 = vand.u32 4294901760, %v13616_v24 }
  0x92   :  { %10174 = vmatprep.mubr.f32.mxu0 %v13928_v60  ;;  %v18882_v60 = vand.u32 4294901760, %v13607_v20 }
  0x95   :  { %10175 = vmatmul.mubr.f32.gmra.mrb[28].mxu0 %v13943_v54  ;;  %v18881_v54 = vand.u32 4294901760, %v13604_v19 }
  0x96   :  { %10177 = vmatprep.mubr.f32.mxu0 %v13951_v22  ;;  %v18880_v22 = vld [vmem:[#allocation26_spill] sm:$0xff] }
  0x99   :  { %10178 = vmatmul.mubr.f32.gmra.mrb[30].mxu0 %v13961_v59  ;;  %v18879_v59 = vld [vmem:[#allocation23_spill] sm:$0xff] }
  0x9a   :  { %10182 = vmatprep.mubr.f32.mxu0 %v13604_v19  ;;  %v18887_v19 = vand.u32 4294901760, %v13662_v48 }
  0x9d   :  { %10183 = vmatmul.mubr.f32.vlgmr.msra.gmra.mrb[0].mxu0 %v13607_v20  ;;  %v18888_v20 = vand.u32 4294901760, %v13695_v4 }
  0x9e   :  { %10231 = vmatpush3.msra.mxu0 %v13568_v3  ;;  %10185 = vmatprep.mubr.f32.mxu0 %v13616_v24  ;;  %v18890_v24 = vand.u32 4294901760, %v18864_v14 }
  0x9f   :  { %10280 = vmatprep.subr.mxu0 %v13613_v23 }
  0xa1   :  { %10186 = vmatmul.mubr.f32.gmra.mrb[2].mxu0 %v13619_v25  ;;  %v18891_v25 = vand.u32 4294901760, %v18865_v18 }
  0xa2   :  { %10188 = vmatprep.mubr.f32.mxu0 %v13626_v29  ;;  %v18892_v29 = vand.u32 4294901760, %v18866_v13 }
  0xa5   :  { %10189 = vmatmul.mubr.f32.gmra.mrb[4].mxu0 %v13634_v34  ;;  %v18893_v34 = vand.u32 4294901760, %v18867_v12 }
  0xa6   :  { %10191 = vmatprep.mubr.f32.mxu0 %v13662_v48  ;;  %v18894_v48 = vand.u32 4294901760, %v18868_v33 }
  0xa9   :  { %10192 = vmatmul.mubr.f32.gmra.mrb[6].mxu0 %v13695_v4  ;;  %v18895_v4 = vand.u32 4294901760, %v18869_v27 }
  0xaa   :  { %10194 = vmatprep.mubr.f32.mxu0 %v13702_v7 }
  0xad   :  { %10195 = vmatmul.mubr.f32.gmra.mrb[8].mxu0 %v18864_v14  ;;  %v18903_v14 = vand.u32 4294901760, %v18877_v50 }
  0xae   :  { %10197 = vmatprep.mubr.f32.mxu0 %v18865_v18  ;;  %v18904_v18 = vand.u32 4294901760, %v18878_v30 }
  0xb1   :  { %10198 = vmatmul.mubr.f32.gmra.mrb[10].mxu0 %v18866_v13  ;;  %v18905_v13 = vand.u32 4294901760, %v18879_v59 }
  0xb2   :  { %10200 = vmatprep.mubr.f32.mxu0 %v18867_v12  ;;  %v18906_v12 = vand.u32 4294901760, %v13920_v53 }
  0xb5   :  { %10201 = vmatmul.mubr.f32.gmra.mrb[12].mxu0 %v18868_v33  ;;  %v18907_v33 = vand.u32 4294901760, %v13923_v32 }
  0xb6   :  { %10203 = vmatprep.mubr.f32.mxu0 %v18869_v27 }
  0xb9   :  { %10204 = vmatmul.mubr.f32.gmra.mrb[14].mxu0 %v18870_v57 }
  0xba   :  { %10206 = vmatprep.mubr.f32.mxu0 %v18871_v31 }
  0xbd   :  { %10207 = vmatmul.mubr.f32.gmra.mrb[16].mxu0 %v18872_v45 }
  0xbe   :  { %10209 = vmatprep.mubr.f32.mxu0 %v18873_v56 }
  0xc1   :  { %10210 = vmatmul.mubr.f32.gmra.mrb[18].mxu0 %v18874_v2 }
  0xc2   :  { %10212 = vmatprep.mubr.f32.mxu0 %v18875_v28 }
  0xc5   :  { %10213 = vmatmul.mubr.f32.gmra.mrb[20].mxu0 %v18876_v17 }
  0xc6   :  { %10215 = vmatprep.mubr.f32.mxu0 %v18877_v50  ;;  %v18910_v50 = vand.u32 4294901760, %v13959_v62 }
  0xc9   :  { %10216 = vmatmul.mubr.f32.gmra.mrb[22].mxu0 %v18878_v30  ;;  %v18911_v30 = vand.u32 4294901760, %v13968_v49 }
  0xca   :  { %10218 = vmatprep.mubr.f32.mxu0 %v18879_v59  ;;  %v18912_v59 = vand.u32 4294901760, %v13975_v1 }
  0xcd   :  { %10219 = vmatmul.mubr.f32.gmra.mrb[24].mxu0 %v13920_v53  ;;  %v18916_v53 = vld [vmem:[#allocation24_spill] sm:$0xff] }
  0xce   :  { %10221 = vmatprep.mubr.f32.mxu0 %v13923_v32  ;;  %v18914_v32 = vld [vmem:[#allocation21_spill] sm:$0xff] }
  0xd1   :  { %10222 = vmatmul.mubr.f32.gmra.mrb[26].mxu0 %v18880_v22 }
  0xd2   :  { %10224 = vmatprep.mubr.f32.mxu0 %v13949_v47 }
  0xd5   :  { %10225 = vmatmul.mubr.f32.gmra.mrb[28].mxu0 %v13959_v62  ;;  %v18918_v62 = vld [vmem:[#allocation27_spill] sm:$0xff] }
  0xd6   :  { %10227 = vmatprep.mubr.f32.mxu0 %v13968_v49  ;;  %v18919_v49 = vld [vmem:[#allocation28_spill] sm:$0xff] }
  0xd9   :  { %10228 = vmatmul.mubr.f32.gmra.mrb[30].mxu0 %v13975_v1  ;;  %v18920_v1 = vld [vmem:[#allocation29_spill] sm:$0xff] }
  0xda   :  { %10232 = vmatprep.mubr.f32.mxu0 %v18881_v54  ;;  %v18902_v54 = vand.u32 4294901760, %v18876_v17  ;;  %v18909_v17 = vand.u32 4294901760, %v13949_v47  ;;  %v18917_v47 = vld [vmem:[#allocation25_spill] sm:$0xff] }
  0xdd   :  { %10233 = vmatmul.mubr.f32.vlgmr.msra.gmra.mrb[0].mxu0 %v18882_v60  ;;  %v18899_v60 = vand.u32 4294901760, %v18873_v56 }
  0xde   :  { %10281 = vmatpush3.msra.mxu0 %v13613_v23  ;;  %10235 = vmatprep.mubr.f32.mxu0 %v18883_v46  ;;  %v18889_v23 = vand.u32 4294901760, %v13702_v7  ;;  %v18896_v7 = vand.u32 4294901760, %v18870_v57  ;;  %v18897_v46 = vand.u32 4294901760, %v18871_v31  ;;  %v14242_v57 = vld [vmem:[%s18252_s3 + $0x50] sm:$0xff]  ;;  %v14247_v31 = vld [vmem:[%s18252_s3 + $0x58] sm:$0xff] }
  0xdf   :  { %10330 = vmatprep.subr.mxu0 %v13568_v3  ;;  %v2199_v56 = vand.u32 4294901760, %v14247_v31 }
  0xe1   :  { %10236 = vmatmul.mubr.f32.gmra.mrb[2].mxu0 %v18884_v40  ;;  %v18900_v40 = vand.u32 4294901760, %v18874_v2 }
  0xe2   :  { %10238 = vmatprep.mubr.f32.mxu0 %v18885_v11  ;;  %v18901_v11 = vand.u32 4294901760, %v18875_v28  ;;  %v18908_v28 = vand.u32 4294901760, %v18880_v22  ;;  %v18915_v22 = vld [vmem:[#allocation22_spill] sm:$0xff] }
  0xe5   :  { %10239 = vmatmul.mubr.f32.gmra.mrb[4].mxu0 %v18886_v0  ;;  %v18898_v0 = vand.u32 4294901760, %v18872_v45  ;;  %v2196_v45 = vand.u32 4294901760, %v14242_v57 }
  0xe6   :  { %10241 = vmatprep.mubr.f32.mxu0 %v18887_v19  ;;  %v2159_v19 = vld [vmem:[%s18252_s3 + $0x60] sm:$0xff] }
  0xe7   :  { %v14256_v2 = vpack.c.bf16 %v2199_v56, %v2196_v45 }
  0xe9   :  { %10242 = vmatmul.mubr.f32.gmra.mrb[6].mxu0 %v18888_v20  ;;  %18926 = vst [vmem:[#allocation10_spill] sm:$0xff] %v14256_v2  ;;  %v14264_v20 = vld [vmem:[%s18252_s3 + $0x68] sm:$0xff] }
  0xea   :  { %10244 = vmatprep.mubr.f32.mxu0 %v18889_v23  ;;  %v2202_v23 = vand.u32 4294901760, %v2159_v19 }
  0xed   :  { %10245 = vmatmul.mubr.f32.gmra.mrb[8].mxu0 %v18890_v24  ;;  %v2205_v24 = vand.u32 4294901760, %v14264_v20 }
  0xee   :  { %10247 = vmatprep.mubr.f32.mxu0 %v18891_v25 }
  0xef   :  { %v14271_v25 = vpack.c.bf16 %v2205_v24, %v2202_v23 }
  0xf1   :  { %10248 = vmatmul.mubr.f32.gmra.mrb[10].mxu0 %v18892_v29  ;;  %18927 = vst [vmem:[#allocation11_spill] sm:$0xff] %v14271_v25  ;;  %v14277_v29 = vld [vmem:[%s18252_s3 + $0x70] sm:$0xff] }
  0xf2   :  { %10250 = vmatprep.mubr.f32.mxu0 %v18893_v34  ;;  %v14282_v34 = vld [vmem:[%s18252_s3 + $0x78] sm:$0xff] }
  0xf5   :  { %10251 = vmatmul.mubr.f32.gmra.mrb[12].mxu0 %v18894_v48  ;;  %v2208_v48 = vand.u32 4294901760, %v14277_v29 }
  0xf6   :  { %10253 = vmatprep.mubr.f32.mxu0 %v18895_v4  ;;  %v2211_v4 = vand.u32 4294901760, %v14282_v34 }
  0xf9   :  { %10254 = vmatmul.mubr.f32.gmra.mrb[14].mxu0 %v18896_v7  ;;  %v14289_v7 = vpack.c.bf16 %v2211_v4, %v2208_v48 }
  0xfa   :  { %10256 = vmatprep.mubr.f32.mxu0 %v18897_v46 }
  0xfb   :  { %18928 = vst [vmem:[#allocation12_spill] sm:$0xff] %v14289_v7 }
  0xfd   :  { %10257 = vmatmul.mubr.f32.gmra.mrb[16].mxu0 %v18898_v0 }
  0xfe   :  { %10259 = vmatprep.mubr.f32.mxu0 %v18899_v60 }
 0x101   :  { %10260 = vmatmul.mubr.f32.gmra.mrb[18].mxu0 %v18900_v40 }
 0x102   :  { %10262 = vmatprep.mubr.f32.mxu0 %v18901_v11 }
 0x105   :  { %10263 = vmatmul.mubr.f32.gmra.mrb[20].mxu0 %v18902_v54 }
 0x106   :  { %10265 = vmatprep.mubr.f32.mxu0 %v18903_v14 }
 0x109   :  { %10266 = vmatmul.mubr.f32.gmra.mrb[22].mxu0 %v18904_v18 }
 0x10a   :  { %10268 = vmatprep.mubr.f32.mxu0 %v18905_v13 }
 0x10d   :  { %10269 = vmatmul.mubr.f32.gmra.mrb[24].mxu0 %v18906_v12 }
 0x10e   :  { %10271 = vmatprep.mubr.f32.mxu0 %v18907_v33 }
 0x111   :  { %10272 = vmatmul.mubr.f32.gmra.mrb[26].mxu0 %v18908_v28 }
 0x112   :  { %10274 = vmatprep.mubr.f32.mxu0 %v18909_v17 }
 0x115   :  { %10275 = vmatmul.mubr.f32.gmra.mrb[28].mxu0 %v18910_v50 }
 0x116   :  { %10277 = vmatprep.mubr.f32.mxu0 %v18911_v30 }
 0x119   :  { %10278 = vmatmul.mubr.f32.gmra.mrb[30].mxu0 %v18912_v59 }
 0x11a   :  { %10282 = vmatprep.mubr.f32.mxu0 %v13581_v9 }
 0x11d   :  { %10283 = vmatmul.mubr.f32.vlgmr.msra.gmra.mrb[0].mxu0 %v13583_v10 }
 0x11e   :  { %10331 = vmatpush3.msra.mxu0 %v13568_v3  ;;  %10285 = vmatprep.mubr.f32.mxu0 %v13594_v15  ;;  %v18913_v3 = vld [vmem:[#allocation19_spill] sm:$0xff] }
 0x121   :  { %10286 = vmatmul.mubr.f32.gmra.mrb[2].mxu0 %v13596_v16 }
 0x122   :  { %10288 = vmatprep.mubr.f32.mxu0 %v13609_v21 }
 0x125   :  { %10289 = vmatmul.mubr.f32.gmra.mrb[4].mxu0 %v13621_v26 }
 0x126   :  { %10291 = vmatprep.mubr.f32.mxu0 %v13643_v38 }
 0x129   :  { %10292 = vmatmul.mubr.f32.gmra.mrb[6].mxu0 %v13678_v58 }
 0x12a   :  { %10294 = vmatprep.mubr.f32.mxu0 %v13687_v63 }
 0x12d   :  { %10295 = vmatmul.mubr.f32.gmra.mrb[8].mxu0 %v13697_v5 }
 0x12e   :  { %10297 = vmatprep.mubr.f32.mxu0 %v13699_v6 }
 0x131   :  { %10298 = vmatmul.mubr.f32.gmra.mrb[10].mxu0 %v13719_v35 }
 0x132   :  { %10300 = vmatprep.mubr.f32.mxu0 %v13721_v36 }
 0x135   :  { %10301 = vmatmul.mubr.f32.gmra.mrb[12].mxu0 %v13723_v39 }
 0x136   :  { %10303 = vmatprep.mubr.f32.mxu0 %v13746_v52 }
 0x139   :  { %10304 = vmatmul.mubr.f32.gmra.mrb[14].mxu0 %v13770_v8 }
 0x13a   :  { %10306 = vmatprep.mubr.f32.mxu0 %v13791_v61 }
 0x13d   :  { %10307 = vmatmul.mubr.f32.gmra.mrb[16].mxu0 %v13793_v42 }
 0x13e   :  { %10309 = vmatprep.mubr.f32.mxu0 %v13795_v41 }
 0x141   :  { %10310 = vmatmul.mubr.f32.gmra.mrb[18].mxu0 %v13818_v44 }
 0x142   :  { %10312 = vmatprep.mubr.f32.mxu0 %v13820_v43 }
 0x145   :  { %10313 = vmatmul.mubr.f32.gmra.mrb[20].mxu0 %v13835_v55 }
 0x146   :  { %10315 = vmatprep.mubr.f32.mxu0 %v13837_v51 }
 0x149   :  { %10316 = vmatmul.mubr.f32.gmra.mrb[22].mxu0 %v13865_v37 }
 0x14a   :  { %10318 = vmatprep.mubr.f32.mxu0 %v18913_v3 }
 0x14d   :  { %10319 = vmatmul.mubr.f32.gmra.mrb[24].mxu0 %v18914_v32 }
 0x14e   :  { %10321 = vmatprep.mubr.f32.mxu0 %v18915_v22 }
 0x151   :  { %10322 = vmatmul.mubr.f32.gmra.mrb[26].mxu0 %v18916_v53 }
 0x152   :  { %10324 = vmatprep.mubr.f32.mxu0 %v18917_v47 }
 0x155   :  { %10325 = vmatmul.mubr.f32.gmra.mrb[28].mxu0 %v18918_v62 }
 0x156   :  { %10327 = vmatprep.mubr.f32.mxu0 %v18919_v49 }
 0x159   :  { %10328 = vmatmul.mubr.f32.gmra.mrb[30].mxu0 %v18920_v1 }
 0x15a   :  { %10332 = vmatprep.mubr.f32.mxu0 %v13581_v9  ;;  %v2147_v9 = vld [vmem:[%s18252_s3] sm:$0xff] }
 0x15d   :  { %10333 = vmatmul.mubr.f32.vlgmr.msra.gmra.mrb[0].mxu0 %v13583_v10  ;;  %v2148_v10 = vld [vmem:[%s18252_s3 + $0x8] sm:$0xff] }
 0x15e   :  { %10335 = vmatprep.mubr.f32.mxu0 %v13594_v15  ;;  %v2166_v15 = vand.u32 4294901760, %v2147_v9 }
 0x160   :  { %v14293_v46 = vsub.f32 %v2147_v9, %v2166_v15 }
 0x161   :  { %10336 = vmatmul.mubr.f32.gmra.mrb[2].mxu0 %v13596_v16  ;;  %v2169_v16 = vand.u32 4294901760, %v2148_v10 }
 0x162   :  { %10338 = vmatprep.mubr.f32.mxu0 %v13609_v21  ;;  %18929 = vst [vmem:[#allocation13_spill] sm:$0xff] %v14293_v46  ;;  %v18340_v60 = vand.u32 4294901760, %v14293_v46 }
 0x163   :  { %v14196_v21 = vpack.c.bf16 %v2169_v16, %v2166_v15  ;;  %v14295_v0 = vsub.f32 %v2148_v10, %v2169_v16 }
 0x164   :  { %v2570_v11 = vsub.f32 %v14293_v46, %v18340_v60 }
 0x165   :  { %10339 = vmatmul.mubr.f32.gmra.mrb[4].mxu0 %v13621_v26  ;;  %18921 = vst [vmem:[#allocation5_spill] sm:$0xff] %v14196_v21  ;;  %v2149_v26 = vld [vmem:[%s18252_s3 + $0x10] sm:$0xff]  ;;  %11821 = vmatprep.subr.bf16.mxu1 %v14196_v21  ;;  %18930 = vst [vmem:[#allocation14_spill] sm:$0xff] %v14295_v0  ;;  %v18339_v40 = vand.u32 4294901760, %v14295_v0 }
 0x166   :  { %10341 = vmatprep.mubr.f32.mxu0 %v13643_v38  ;;  %v2150_v38 = vld [vmem:[%s18252_s3 + $0x18] sm:$0xff]  ;;  %11823 = vmatpush3.bf16.msra.mxu1 %v14196_v21  ;;  %v2571_v14 = vand.u32 4294901760, %v2570_v11  ;;  %v14385_v11 = vsub.f32 %v14247_v31, %v2199_v56 }
 0x167   :  { %v2577_v54 = vsub.f32 %v14295_v0, %v18339_v40 }
 0x168   :  { %18937 = vst [vmem:[#allocation26_spill] sm:$0xff] %v14385_v11 }
 0x169   :  { %10342 = vmatmul.mubr.f32.gmra.mrb[6].mxu0 %v13678_v58  ;;  %v2175_v58 = vand.u32 4294901760, %v2150_v38  ;;  %v2578_v18 = vand.u32 4294901760, %v2577_v54  ;;  %v14387_v54 = vsub.f32 %v2159_v19, %v2202_v23  ;;  %v14411_v19 = vsub.f32 %v14277_v29, %v2208_v48 }
 0x16a   :  { %10344 = vmatprep.mubr.f32.mxu0 %v13687_v63 }
 0x16b   :  { %v14305_v13 = vpack.c.bf16 %v2578_v18, %v2571_v14  ;;  %v14310_v33 = vsub.f32 %v2150_v38, %v2175_v58  ;;  %18938 = vst [vmem:[#allocation19_spill] sm:$0xff] %v14387_v54  ;;  %18940 = vst [vmem:[#allocation22_spill] sm:$0xff] %v14411_v19 }
 0x16d   :  { %10345 = vmatmul.mubr.f32.gmra.mrb[8].mxu0 %v13697_v5  ;;  %v2151_v5 = vld [vmem:[%s18252_s3 + $0x20] sm:$0xff]  ;;  %18932 = vst [vmem:[#allocation16_spill] sm:$0xff] %v14310_v33  ;;  %v18337_v30 = vand.u32 4294901760, %v14310_v33 }
 0x16e   :  { %10347 = vmatprep.mubr.f32.mxu0 %v13699_v6  ;;  %v2152_v6 = vld [vmem:[%s18252_s3 + $0x28] sm:$0xff] }
 0x171   :  { %10348 = vmatmul.mubr.f32.gmra.mrb[10].mxu0 %v13719_v35  ;;  %v2178_v35 = vand.u32 4294901760, %v2151_v5 }
 0x172   :  { %10350 = vmatprep.mubr.f32.mxu0 %v13721_v36  ;;  %v2181_v36 = vand.u32 4294901760, %v2152_v6 }
 0x173   :  { %v14312_v28 = vsub.f32 %v2151_v5, %v2178_v35 }
 0x174   :  { %v14314_v17 = vsub.f32 %v2152_v6, %v2181_v36 }
 0x175   :  { %10351 = vmatmul.mubr.f32.gmra.mrb[12].mxu0 %v13723_v39  ;;  %v14216_v39 = vpack.c.bf16 %v2181_v36, %v2178_v35  ;;  %18933 = vst [vmem:[#allocation17_spill] sm:$0xff] %v14312_v28  ;;  %v18336_v59 = vand.u32 4294901760, %v14312_v28 }
 0x176   :  { %10353 = vmatprep.mubr.f32.mxu0 %v13746_v52  ;;  %18934 = vst [vmem:[#allocation18_spill] sm:$0xff] %v14314_v17 }
 0x177   :  { %18923 = vst [vmem:[#allocation7_spill] sm:$0xff] %v14216_v39 }
 0x179   :  { %10354 = vmatmul.mubr.f32.gmra.mrb[14].mxu0 %v13770_v8 }
 0x17a   :  { %10356 = vmatprep.mubr.f32.mxu0 %v13791_v61 }
 0x17d   :  { %10357 = vmatmul.mubr.f32.gmra.mrb[16].mxu0 %v13793_v42  ;;  %v2154_v42 = vld [vmem:[%s18252_s3 + $0x38] sm:$0xff] }
 0x17e   :  { %10359 = vmatprep.mubr.f32.mxu0 %v13795_v41  ;;  %v2153_v41 = vld [vmem:[%s18252_s3 + $0x30] sm:$0xff]  ;;  %v2187_v8 = vand.u32 4294901760, %v2154_v42 }
 0x17f   :  { %v2184_v52 = vand.u32 4294901760, %v2153_v41 }
 0x180   :  { %v14351_v9 = vsub.f32 %v2154_v42, %v2187_v8 }
 0x181   :  { %10360 = vmatmul.mubr.f32.gmra.mrb[18].mxu0 %v13818_v44  ;;  %v14226_v61 = vpack.c.bf16 %v2187_v8, %v2184_v52  ;;  %v2155_v44 = vld [vmem:[%s18252_s3 + $0x40] sm:$0xff] }
 0x182   :  { %10362 = vmatprep.mubr.f32.mxu0 %v13820_v43  ;;  %v2172_v43 = vand.u32 4294901760, %v2149_v26 }
 0x183   :  { %18924 = vst [vmem:[#allocation8_spill] sm:$0xff] %v14226_v61 }
 0x184   :  { %v14206_v63 = vpack.c.bf16 %v2175_v58, %v2172_v43  ;;  %v14308_v12 = vsub.f32 %v2149_v26, %v2172_v43 }
 0x185   :  { %10363 = vmatmul.mubr.f32.gmra.mrb[20].mxu0 %v13835_v55  ;;  %v2156_v55 = vld [vmem:[%s18252_s3 + $0x48] sm:$0xff] }
 0x186   :  { %10365 = vmatprep.mubr.f32.mxu0 %v13837_v51  ;;  %18922 = vst [vmem:[#allocation6_spill] sm:$0xff] %v14206_v63  ;;  %11825 = vmatprep.subr.bf16.mxu1 %v14206_v63  ;;  %v2190_v51 = vand.u32 4294901760, %v2155_v44  ;;  %18931 = vst [vmem:[#allocation15_spill] sm:$0xff] %v14308_v12  ;;  %v18338_v50 = vand.u32 4294901760, %v14308_v12 }
 0x187   :  { %11827 = vmatpush3.bf16.msra.mxu1 %v14206_v63 }
 0x188   :  { %11829 = vmatprep.subr.bf16.mxu1 %v14216_v39  ;;  %v14353_v10 = vsub.f32 %v2155_v44, %v2190_v51  ;;  %v14374_v44 = vpack.c.bf16 %v14310_v33, %v14308_v12 }
 0x189   :  { %10366 = vmatmul.mubr.f32.gmra.mrb[22].mxu0 %v13865_v37  ;;  %v2193_v37 = vand.u32 4294901760, %v2156_v55 }
 0x18a   :  { %10368 = vmatprep.mubr.f32.mxu0 %v18913_v3  ;;  %v18335_v3 = vand.u32 4294901760, %v14314_v17 }
 0x18b   :  { %11831 = vmatpush3.bf16.msra.mxu1 %v14216_v39  ;;  %v14236_v27 = vpack.c.bf16 %v2193_v37, %v2190_v51  ;;  %v14355_v15 = vsub.f32 %v2156_v55, %v2193_v37  ;;  %v14380_v37 = vsub.f32 %v14242_v57, %v2196_v45  ;;  %v14400_v57 = vsub.f32 %v14264_v20, %v2205_v24 }
 0x18c   :  { %11833 = vmatprep.subr.bf16.mxu1 %v14226_v61  ;;  %v14427_v24 = vsub.f32 %v14282_v34, %v2211_v4 }
 0x18d   :  { %10369 = vmatmul.mubr.f32.gmra.mrb[24].mxu0 %v18914_v32  ;;  %18925 = vst [vmem:[#allocation9_spill] sm:$0xff] %v14236_v27  ;;  %v14322_v32 = vpack.c.bf16 %v14295_v0, %v14293_v46  ;;  %18935 = vst [vmem:[#allocation20_spill] sm:$0xff] %v14355_v15  ;;  %v18333_v8 = vand.u32 4294901760, %v14355_v15 }
 0x18e   :  { %10371 = vmatprep.mubr.f32.mxu0 %v18915_v22  ;;  %v14327_v22 = vsub.f32 %v14308_v12, %v18338_v50  ;;  %18936 = vst [vmem:[#allocation23_spill] sm:$0xff] %v14380_v37  ;;  %18939 = vst [vmem:[#allocation21_spill] sm:$0xff] %v14400_v57 }
 0x18f   :  { %11835 = vmatpush3.bf16.msra.mxu1 %v14226_v61  ;;  %v14422_v20 = vsub.f32 %v14355_v15, %v18333_v8  ;;  %18941 = vst [vmem:[#allocation24_spill] sm:$0xff] %v14427_v24 }
 0x190   :  { %11837 = vmatprep.subr.bf16.mxu1 %v14236_v27 }
 0x191   :  { %10372 = vmatmul.mubr.f32.gmra.mrb[26].mxu0 %v18916_v53  ;;  %v14332_v53 = vsub.f32 %v14310_v33, %v18337_v30  ;;  %v18348_v30 = vand.u32 4294901760, %v14427_v24 }
 0x192   :  { %10374 = vmatprep.mubr.f32.mxu0 %v18917_v47  ;;  %v14334_v47 = vsub.f32 %v2153_v41, %v2184_v52  ;;  %v18332_v41 = vand.u32 4294901760, %v14351_v9  ;;  %v18331_v52 = vand.u32 4294901760, %v14353_v10 }
 0x193   :  { %11839 = vmatpush3.bf16.msra.mxu1 %v14236_v27 }
 0x194   :  { %11841 = vmatprep.subr.bf16.mxu1 %v14256_v2  ;;  %v18334_v5 = vand.u32 4294901760, %v14334_v47  ;;  %v14408_v56 = vsub.f32 %v14351_v9, %v18332_v41 }
 0x195   :  { %10375 = vmatmul.mubr.f32.gmra.mrb[28].mxu0 %v18918_v62  ;;  %v14339_v62 = vld [vmem:[%s18251_s2] ss:$0 sm:$0xff] }
 0x196   :  { %10377 = vmatprep.mubr.f32.mxu0 %v18919_v49  ;;  %v14344_v49 = vsub.f32 %v14312_v28, %v18336_v59 }
 0x197   :  { %11843 = vmatpush3.bf16.msra.mxu1 %v14256_v2 }
 0x198   :  { %11845 = vmatprep.subr.bf16.mxu1 %v14271_v25 }
 0x199   :  { %10378 = vmatmul.mubr.f32.gmra.mrb[30].mxu0 %v18920_v1  ;;  %v14349_v1 = vsub.f32 %v14314_v17, %v18335_v3  ;;  %v18346_v3 = vand.u32 4294901760, %v14411_v19 }
 0x19b   :  { %11847 = vmatpush3.bf16.msra.mxu1 %v14271_v25 }
 0x19c   :  { %11849 = vmatprep.subr.bf16.mxu1 %v14289_v7 }
 0x19f   :  { %11851 = vmatpush3.bf16.msra.mxu1 %v14289_v7 }
 0x1a0   :  { %11853 = vmatprep.subr.bf16.mxu1 %v14305_v13 }
 0x230   :  { %v10334_v16 = vpop.f32.mrb[0].mxu0 }
 0x231   :  { %v14358_v26 = vadd.f32 %v10334_v16, %v14339_v62  ;;  %v1765_v38 = vpop.f32.mrb[1].mxu0 }
 0x232   :  { %v14364_v6 = vadd.f32 %v14339_v62, %v1765_v38  ;;  %v14395_v38 = vsub.f32 %v14334_v47, %v18334_v5  ;;  %v18344_v5 = vand.u32 4294901760, %v14400_v57 }
 0x233   :  { %v1988_v42 = vmin.f32 %v14358_v26, 0.0  ;;  %vm1956_vm1 = vcmp.gt.f32.partialorder %v14358_v26, 0.0 }
 0x234   :  { %v1987_v55 = vmin.f32 %v14364_v6, 0.0  ;;  %v10337_v51 = vpop.f32.mrb[2].mxu0  ;;  %v2613_v40 = vand.u32 4294901760, %v14395_v38  ;;  %v2668_v38 = vsub.f32 %v14411_v19, %v18346_v3  ;;  %vm1955_vm2 = vcmp.gt.f32.partialorder %v14364_v6, 0.0 }
 0x235   :  { %v2021_v14 = vmul.f32 1.442695, %v1988_v42  ;;  %v14390_v18 = vadd.f32 %v10337_v51, %v14339_v62  ;;  %v1777_v16 = vpop.f32.mrb[3].mxu0  ;;  %v14417_v42 = vsub.f32 %v14353_v10, %v18331_v52  ;;  %v18342_v51 = vand.u32 4294901760, %v14385_v11 }
 0x236   :  { %v2019_v45 = vmul.f32 1.442695, %v1987_v55  ;;  %v14403_v31 = vadd.f32 %v14339_v62, %v1777_v16  ;;  %v18341_v55 = vand.u32 4294901760, %v14380_v37  ;;  %v18343_v16 = vand.u32 4294901760, %v14387_v54 }
 0x237   :  { %v1990_v23 = vmin.f32 %v14390_v18, 0.0  ;;  %13181 = vpow2.f32 %v2021_v14  ;;  %v14445_v14 = vpack.c.bf16 %v14314_v17, %v14312_v28  ;;  %vm1958_vm3 = vcmp.gt.f32.partialorder %v14390_v18, 0.0 }
 0x238   :  { %v1989_v29 = vmin.f32 %v14403_v31, 0.0  ;;  %v10340_v48 = vpop.f32.mrb[4].mxu0  ;;  %13183 = vpow2.f32 %v2019_v45  ;;  %vm1957_vm4 = vcmp.gt.f32.partialorder %v14403_v31, 0.0 }
 0x239   :  { %v2025_v52 = vmul.f32 1.442695, %v1990_v23  ;;  %v14434_v41 = vadd.f32 %v10340_v48, %v14339_v62  ;;  %v1789_v8 = vpop.f32.mrb[5].mxu0 }
 0x23a   :  { %v2023_v34 = vmul.f32 1.442695, %v1989_v29  ;;  %v14438_v4 = vadd.f32 %v14339_v62, %v1789_v8  ;;  %v2640_v8 = vsub.f32 %v14380_v37, %v18341_v55  ;;  %v2620_v55 = vand.u32 4294901760, %v14408_v56 }
 0x23b   :  { %13185 = vpow2.f32 %v2025_v52  ;;  %v1992_v59 = vmin.f32 %v14434_v41, 0.0  ;;  %v2647_v52 = vsub.f32 %v14385_v11, %v18342_v51  ;;  %v2627_v51 = vand.u32 4294901760, %v14417_v42 }
 0x23c   :  { %13187 = vpow2.f32 %v2023_v34  ;;  %v1991_v23 = vmin.f32 %v14438_v4, 0.0  ;;  %v10343_v48 = vpop.f32.mrb[6].mxu0  ;;  %v2654_v34 = vsub.f32 %v14387_v54, %v18343_v16  ;;  %v2634_v56 = vand.u32 4294901760, %v14422_v20 }
 0x23d   :  { %v2029_v45 = vmul.f32 1.442695, %v1992_v59  ;;  %v14455_v29 = vadd.f32 %v10343_v48, %v14339_v62  ;;  %v1801_v50 = vpop.f32.mrb[7].mxu0  ;;  %v2661_v59 = vsub.f32 %v14400_v57, %v18344_v5  ;;  %v2641_v35 = vand.u32 4294901760, %v2640_v8 }
 0x23e   :  { %v2027_v60 = vmul.f32 1.442695, %v1991_v23  ;;  %v14462_v36 = vadd.f32 %v14339_v62, %v1801_v50  ;;  %v2675_v23 = vsub.f32 %v14427_v24, %v18348_v30  ;;  %v2648_v58 = vand.u32 4294901760, %v2647_v52 }
 0x23f   :  { %v1994_v48 = vmin.f32 %v14455_v29, 0.0  ;;  %13189 = vpow2.f32 %v2029_v45  ;;  %v2655_v17 = vand.u32 4294901760, %v2654_v34  ;;  %v2662_v30 = vand.u32 4294901760, %v2661_v59 }
 0x240   :  { %v1993_v50 = vmin.f32 %v14462_v36, 0.0  ;;  %v10346_v16 = vpop.f32.mrb[8].mxu0  ;;  %13191 = vpow2.f32 %v2027_v60  ;;  %v2669_v20 = vand.u32 4294901760, %v2668_v38  ;;  %v2676_v8 = vand.u32 4294901760, %v2675_v23 }
 0x241   :  { %v2033_v5 = vmul.f32 1.442695, %v1994_v48  ;;  %v14479_v43 = vadd.f32 %v10346_v16, %v14339_v62  ;;  %v1813_v42 = vpop.f32.mrb[9].mxu0  ;;  %v13182_v33 = vpop.eup %13181  ;;  %v18942_v48 = vand.u32 4294901760, %v14327_v22  ;;  %v18943_v60 = vand.u32 4294901760, %v14332_v53 }
 0x242   :  { %v2031_v3 = vmul.f32 1.442695, %v1993_v50  ;;  %v14482_v28 = vadd.f32 %v14339_v62, %v1813_v42  ;;  %v13184_v52 = vpop.eup %13183  ;;  %v18944_v38 = vand.u32 4294901760, %v14344_v49  ;;  %v18945_v23 = vand.u32 4294901760, %v14349_v1 }
 0x243   :  { %13193 = vpow2.f32 %v2033_v5  ;;  %v1996_v12 = vmin.f32 %v14479_v43, 0.0  ;;  %v14490_v34 = vpack.c.bf16 %v18943_v60, %v18942_v48  ;;  %v14501_v0 = vpack.c.bf16 %v2620_v55, %v2613_v40 }
 0x244   :  { %13195 = vpow2.f32 %v2031_v3  ;;  %v1995_v45 = vmin.f32 %v14482_v28, 0.0  ;;  %v10349_v16 = vpop.f32.mrb[10].mxu0  ;;  %v14499_v3 = vpack.c.bf16 %v18945_v23, %v18944_v38  ;;  %v14506_v48 = vpack.c.bf16 %v2634_v56, %v2627_v51 }
 0x245   :  { %v13186_v50 = vpop.eup %13185  ;;  %v2037_v42 = vmul.f32 1.442695, %v1996_v12  ;;  %v14493_v59 = vadd.f32 %v10349_v16, %v14339_v62  ;;  %v1825_v5 = vpop.f32.mrb[11].mxu0  ;;  %v14508_v12 = vpack.c.bf16 %v2648_v58, %v2641_v35  ;;  %v8905_v16 = vadd.f32 -1.0, %v13182_v33 }
 0x246   :  { %v13188_v46 = vpop.eup %13187  ;;  %v2035_v22 = vmul.f32 1.442695, %v1995_v45  ;;  %v14504_v53 = vadd.f32 %v14339_v62, %v1825_v5  ;;  %v14511_v60 = vpack.c.bf16 %v2662_v30, %v2655_v17  ;;  %v14513_v49 = vpack.c.bf16 %v2676_v8, %v2669_v20 }
 0x247   :  { %v8904_v40 = vadd.f32 -1.0, %v13184_v52  ;;  %v8907_v1 = vadd.f32 -1.0, %v13186_v50  ;;  %v1998_v55 = vmin.f32 %v14493_v59, 0.0  ;;  %v8906_v5 = vadd.f32 -1.0, %v13188_v46 }
 0x248   :  { %v10352_v45 = vpop.f32.mrb[12].mxu0  ;;  %13197 = vpow2.f32 %v2037_v42  ;;  %v1997_v51 = vmin.f32 %v14504_v53, 0.0  ;;  %v2116_v56 = vsel %vm1956_vm1, %v14358_v26, %v8905_v16  ;;  %vm1960_vm5 = vcmp.gt.f32.partialorder %v14434_v41, 0.0 }
 0x249   :  { %v14519_v58 = vadd.f32 %v10352_v45, %v14339_v62  ;;  %v1837_v35 = vpop.f32.mrb[13].mxu0  ;;  %13199 = vpow2.f32 %v2035_v22  ;;  %v2041_v33 = vmul.f32 1.442695, %v1998_v55  ;;  %v13190_v30 = vpop.eup %13189  ;;  %v2115_v8 = vsel %vm1955_vm2, %v14364_v6, %v8904_v40 }
 0x24a   :  { %v14523_v17 = vadd.f32 %v14339_v62, %v1837_v35  ;;  %v2039_v46 = vmul.f32 1.442695, %v1997_v51  ;;  %v13192_v20 = vpop.eup %13191  ;;  %v2118_v52 = vsel %vm1958_vm3, %v14390_v18, %v8907_v1  ;;  %v2117_v23 = vsel %vm1957_vm4, %v14403_v31, %v8906_v5 }
 0x24b   :  { %13201 = vpow2.f32 %v2041_v33  ;;  %v2000_v50 = vmin.f32 %v14519_v58, 0.0  ;;  %vm1959_vm6 = vcmp.gt.f32.partialorder %v14438_v4, 0.0  ;;  %vm1962_vm7 = vcmp.gt.f32.partialorder %v14455_v29, 0.0 }
 0x24c   :  { %v10355_v42 = vpop.f32.mrb[14].mxu0  ;;  %vm1961_vm8 = vcmp.gt.f32.partialorder %v14462_v36, 0.0  ;;  %v14539_v16 = vand.u32 4294901760, %v2116_v56  ;;  %13203 = vpow2.f32 %v2039_v46  ;;  %v1999_v18 = vmin.f32 %v14523_v17, 0.0 }
 0x24d   :  { %v13194_v38 = vpop.eup %13193  ;;  %v1849_v26 = vpop.f32.mrb[15].mxu0  ;;  %v2045_v6 = vmul.f32 1.442695, %v2000_v50  ;;  %v14542_v40 = vand.u32 4294901760, %v2115_v8  ;;  %v14544_v1 = vand.u32 4294901760, %v2118_v52  ;;  %v14547_v31 = vadd.f32 %v10355_v42, %v14339_v62 }
 0x24e   :  { %v13196_v22 = vpop.eup %13195  ;;  %v14550_v55 = vadd.f32 %v14339_v62, %v1849_v26  ;;  %v14552_v45 = vand.u32 4294901760, %v2117_v23  ;;  %v8909_v5 = vadd.f32 -1.0, %v13190_v30  ;;  %v8908_v51 = vadd.f32 -1.0, %v13192_v20 }
 0x24f   :  { %v2043_v35 = vmul.f32 1.442695, %v1999_v18  ;;  %v8911_v46 = vadd.f32 -1.0, %v13194_v38  ;;  %v8910_v50 = vadd.f32 -1.0, %v13196_v22  ;;  %13205 = vpow2.f32 %v2045_v6 }
 0x250   :  { %v10358_v33 = vpop.f32.mrb[16].mxu0  ;;  %v2002_v7 = vmin.f32 %v14547_v31, 0.0  ;;  %v14556_v2 = vsub.f32 %v2116_v56, %v14539_v16  ;;  %vm1964_vm9 = vcmp.gt.f32.partialorder %v14479_v43, 0.0  ;;  %vm1963_vm10 = vcmp.gt.f32.partialorder %v14482_v28, 0.0 }
 0x251   :  { %v1861_v25 = vpop.f32.mrb[17].mxu0  ;;  %vm1966_vm11 = vcmp.gt.f32.partialorder %v14493_v59, 0.0  ;;  %v14562_v30 = vsub.f32 %v2118_v52, %v14544_v1  ;;  %13207 = vpow2.f32 %v2043_v35  ;;  %v2001_v38 = vmin.f32 %v14550_v55, 0.0 }
 0x252   :  { %18946 = vst [vmem:[#allocation25_spill] sm:$0xff] %v14556_v2  ;;  %v13198_v42 = vpop.eup %13197  ;;  %v2049_v20 = vmul.f32 1.442695, %v2002_v7  ;;  %v14566_v22 = vsub.f32 %v2117_v23, %v14552_v45  ;;  %v2120_v56 = vsel %vm1960_vm5, %v14434_v41, %v8909_v5  ;;  %v14572_v6 = vadd.f32 %v10358_v33, %v14339_v62 }
 0x253   :  { %18947 = vst [vmem:[#allocation27_spill] sm:$0xff] %v14562_v30  ;;  %v13200_v26 = vpop.eup %13199  ;;  %v14575_v18 = vsub.f32 %v2115_v8, %v14542_v40  ;;  %v2119_v7 = vsel %vm1959_vm6, %v14438_v4, %v8908_v51  ;;  %v2122_v23 = vsel %vm1962_vm7, %v14455_v29, %v8911_v46  ;;  %v2121_v35 = vsel %vm1961_vm8, %v14462_v36, %v8910_v50 }
 0x254   :  { %18948 = vst [vmem:[#allocation28_spill] sm:$0xff] %v14566_v22  ;;  %v10361_v52 = vpop.f32.mrb[18].mxu0  ;;  %v2047_v41 = vmul.f32 1.442695, %v2001_v38  ;;  %v8913_v27 = vadd.f32 -1.0, %v13198_v42  ;;  %13209 = vpow2.f32 %v2049_v20  ;;  %v2004_v8 = vmin.f32 %v14572_v6, 0.0 }
 0x255   :  { %18949 = vst [vmem:[#allocation29_spill] sm:$0xff] %v14575_v18  ;;  %v1873_v5 = vpop.f32.mrb[19].mxu0  ;;  %v13202_v33 = vpop.eup %13201  ;;  %v18371_v61 = vand.u32 4294901760, %v14575_v18  ;;  %v14588_v39 = vand.u32 4294901760, %v2120_v56  ;;  %v8912_v4 = vadd.f32 -1.0, %v13200_v26  ;;  %vm1965_vm12 = vcmp.gt.f32.partialorder %v14504_v53, 0.0 }
 0x256   :  { %v8915_v51 = vadd.f32 -1.0, %v13202_v33  ;;  %v14592_v29 = vadd.f32 %v14339_v62, %v1861_v25  ;;  %v13204_v46 = vpop.eup %13203  ;;  %v14594_v36 = vand.u32 4294901760, %v2119_v7  ;;  %v14596_v50 = vand.u32 4294901760, %v2122_v23 }
 0x257   :  { %18950 = vst [vmem:[#allocation30_spill] sm:$0xff] %v14588_v39  ;;  %v2053_v42 = vmul.f32 1.442695, %v2004_v8  ;;  %v2249_v20 = vsub.f32 %v14575_v18, %v18371_v61  ;;  %v14601_v63 = vand.u32 4294901760, %v2121_v35  ;;  %13211 = vpow2.f32 %v2047_v41 }
 0x258   :  { %18951 = vst [vmem:[#allocation31_spill] sm:$0xff] %v14596_v50  ;;  %v10364_v38 = vpop.f32.mrb[20].mxu0  ;;  %v2003_v26 = vmin.f32 %v14592_v29, 0.0  ;;  %v18376_v33 = vand.u32 4294901760, %v14556_v2  ;;  %v2124_v21 = vsel %vm1964_vm9, %v14479_v43, %v8913_v27  ;;  %vm1968_vm13 = vcmp.gt.f32.partialorder %v14519_v58, 0.0 }
 0x259   :  { %18952 = vst [vmem:[#allocation32_spill] sm:$0xff] %v14601_v63  ;;  %v1885_v25 = vpop.f32.mrb[21].mxu0  ;;  %13213 = vpow2.f32 %v2053_v42  ;;  %v2250_v8 = vand.u32 4294901760, %v2249_v20  ;;  %v13206_v24 = vpop.eup %13205  ;;  %v2123_v61 = vsel %vm1963_vm10, %v14482_v28, %v8912_v4  ;;  %v2126_v41 = vsel %vm1966_vm11, %v14493_v59, %v8915_v51 }
 0x25a   :  { %v8914_v18 = vadd.f32 -1.0, %v13204_v46  ;;  %v2259_v19 = vsub.f32 %v14556_v2, %v18376_v33  ;;  %vm1967_vm14 = vcmp.gt.f32.partialorder %v14523_v17, 0.0  ;;  %v2051_v27 = vmul.f32 1.442695, %v2003_v26 }
 0x25b   :  { %10412 = vmatprep.mubr.f32.mxu1 %v2250_v8  ;;  %v14620_v43 = vadd.f32 %v10361_v52, %v14339_v62  ;;  %v14624_v28 = vadd.f32 %v14339_v62, %v1873_v5  ;;  %v13208_v20 = vpop.eup %13207  ;;  %v14627_v59 = vsub.f32 %v2120_v56, %v14588_v39  ;;  %v14630_v51 = vsub.f32 %v2119_v7, %v14594_v36 }
 0x25c   :  { %v10367_v4 = vpop.f32.mrb[22].mxu0  ;;  %v14633_v46 = vsub.f32 %v2122_v23, %v14596_v50  ;;  %v14636_v26 = vsub.f32 %v2121_v35, %v14601_v63  ;;  %v14640_v8 = vand.u32 4294901760, %v2124_v21  ;;  %v8917_v5 = vadd.f32 -1.0, %v13206_v24 }
 0x25d   :  { %18953 = vst [vmem:[#allocation33_spill] sm:$0xff] %v14627_v59  ;;  %18954 = vst [vmem:[#allocation34_spill] sm:$0xff] %v14630_v51  ;;  %v14638_v52 = vpop.f32.mrb[23].mxu0  ;;  %vm1970_vm15 = vcmp.gt.f32.partialorder %v14547_v31, 0.0  ;;  %v2260_v33 = vand.u32 4294901760, %v2259_v19  ;;  %v2006_v56 = vmin.f32 %v14620_v43, 0.0  ;;  %v2125_v24 = vsel %vm1965_vm12, %v14504_v53, %v8914_v18 }
 0x25e   :  { %18955 = vst [vmem:[#allocation35_spill] sm:$0xff] %v14636_v26  ;;  %18956 = vst [vmem:[#allocation36_spill] sm:$0xff] %v14640_v8  ;;  %v14644_v42 = vand.u32 4294901760, %v2123_v61  ;;  %v14646_v7 = vand.u32 4294901760, %v2126_v41  ;;  %v18959_v23 = vand.u32 4294901760, %v14566_v22  ;;  %v2005_v35 = vmin.f32 %v14624_v28, 0.0  ;;  %v13210_v57 = vpop.eup %13209 }
 0x25f   :  { %v8916_v54 = vadd.f32 -1.0, %v13208_v20  ;;  %13215 = vpow2.f32 %v2051_v27  ;;  %10413 = vmatmul.mubr.f32.vlgmr.msra.gmra.mrb[0].mxu1 %v2260_v33  ;;  %v2057_v19 = vmul.f32 1.442695, %v2006_v56  ;;  %vm1969_vm0 = vcmp.gt.f32.partialorder %v14550_v55, 0.0 }
 0x260   :  { %18957 = vst [vmem:[#allocation37_spill] sm:$0xff] %v14644_v42  ;;  %18958 = vst [vmem:[#allocation38_spill] sm:$0xff] %v14646_v7  ;;  %v2269_v2 = vsub.f32 %v14566_v22, %v18959_v23  ;;  %v14655_v11 = vpop.f32.mrb[24].mxu0  ;;  %11855 = vmatpush3.bf16.msra.mxu1 %v14305_v13  ;;  %v2055_v50 = vmul.f32 1.442695, %v2005_v35  ;;  %v18393_v23 = vand.u32 4294901760, %v14562_v30  ;;  %v14661_v22 = vadd.f32 %v10364_v38, %v14339_v62 }
 0x261   :  { %v14663_v15 = vpop.f32.mrb[25].mxu0  ;;  %v14666_v53 = vsub.f32 %v2124_v21, %v14640_v8  ;;  %v2128_v18 = vsel %vm1968_vm13, %v14519_v58, %v8917_v5  ;;  %vm1972_vm1 = vcmp.gt.f32.partialorder %v14572_v6, 0.0  ;;  %13217 = vpow2.f32 %v2057_v19  ;;  %11857 = vmatprep.subr.bf16.mxu1 %v14490_v34 }
 0x262   :  { %v2270_v37 = vand.u32 4294901760, %v2269_v2  ;;  %v13212_v2 = vpop.eup %13211  ;;  %v14674_v13 = vsub.f32 %v2123_v61, %v14644_v42  ;;  %v8919_v38 = vadd.f32 -1.0, %v13210_v57  ;;  %13219 = vpow2.f32 %v2055_v50 }
 0x263   :  { %v2279_v21 = vsub.f32 %v14562_v30, %v18393_v23  ;;  %v13214_v33 = vpop.eup %13213  ;;  %v14679_v27 = vand.u32 4294901760, %v2125_v24  ;;  %v2008_v58 = vmin.f32 %v14661_v22, 0.0  ;;  %v18396_v20 = vand.u32 4294901760, %v14630_v51 }
 0x264   :  { %10415 = vmatprep.mubr.f32.mxu1 %v2270_v37  ;;  %v14684_v5 = vadd.f32 %v14339_v62, %v1885_v25  ;;  %v14686_v56 = vpop.f32.mrb[26].mxu0  ;;  %v14689_v61 = vsub.f32 %v2126_v41, %v14646_v7  ;;  %v14691_v37 = vand.u32 4294901760, %v2128_v18  ;;  %v2127_v57 = vsel %vm1967_vm14, %v14523_v17, %v8916_v54  ;;  %11859 = vmatpush3.bf16.msra.mxu1 %v14490_v34 }
 0x265   :  { %18960 = vst [vmem:[#allocation39_spill] sm:$0xff] %v14679_v27  ;;  %v2280_v50 = vand.u32 4294901760, %v2279_v21  ;;  %v14697_v35 = vpop.f32.mrb[27].mxu0  ;;  %v8918_v19 = vadd.f32 -1.0, %v13212_v2  ;;  %v2061_v23 = vmul.f32 1.442695, %v2008_v58  ;;  %v2289_v25 = vsub.f32 %v14630_v51, %v18396_v20  ;;  %11861 = vmatprep.subr.bf16.mxu1 %v14499_v3 }
 0x266   :  { %18961 = vst [vmem:[#allocation40_spill] sm:$0xff] %v14689_v61  ;;  %18962 = vst [vmem:[#allocation41_spill] sm:$0xff] %v14691_v37  ;;  %v2007_v41 = vmin.f32 %v14684_v5, 0.0  ;;  %v2130_v30 = vsel %vm1970_vm15, %v14547_v31, %v8919_v38  ;;  %v8921_v54 = vadd.f32 -1.0, %v13214_v33  ;;  %v18399_v34 = vand.u32 4294901760, %v14627_v59 }
 0x267   :  { %10416 = vmatmul.mubr.f32.gmra.mrb[2].mxu1 %v2280_v50  ;;  %v14709_v17 = vadd.f32 %v10367_v4, %v14339_v62  ;;  %v14712_v2 = vsub.f32 %v2125_v24, %v14679_v27  ;;  %v14714_v21 = vand.u32 4294901760, %v2127_v57  ;;  %13221 = vpow2.f32 %v2061_v23 }
 0x268   :  { %v2290_v58 = vand.u32 4294901760, %v2289_v25  ;;  %v14716_v20 = vpop.f32.mrb[28].mxu0  ;;  %v14719_v51 = vsub.f32 %v2128_v18, %v14691_v37  ;;  %v2059_v31 = vmul.f32 1.442695, %v2007_v41  ;;  %v2299_v38 = vsub.f32 %v14627_v59, %v18399_v34  ;;  %11863 = vmatpush3.bf16.msra.mxu1 %v14499_v3 }
 0x269   :  { %18963 = vst [vmem:[#allocation42_spill] sm:$0xff] %v14714_v21  ;;  %v2010_v4 = vmin.f32 %v14709_v17, 0.0  ;;  %v14726_v24 = vpop.f32.mrb[29].mxu0  ;;  %v13216_v33 = vpop.eup %13215  ;;  %v14728_v50 = vand.u32 4294901760, %v2130_v30  ;;  %v2129_v23 = vsel %vm1969_vm0, %v14550_v55, %v8918_v19  ;;  %vm1971_vm2 = vcmp.gt.f32.partialorder %v14592_v29, 0.0  ;;  %11865 = vmatprep.subr.bf16.mxu1 %v14501_v0 }
 0x26a   :  { %10418 = vmatprep.mubr.f32.mxu1 %v2290_v58  ;;  %v18404_v18 = vand.u32 4294901760, %v14636_v26  ;;  %v14737_v25 = vadd.f32 %v14339_v62, %v14638_v52  ;;  %v2132_v3 = vsel %vm1972_vm1, %v14572_v6, %v8921_v54  ;;  %vm1974_vm3 = vcmp.gt.f32.partialorder %v14620_v43, 0.0 }
 0x26b   :  { %18964 = vst [vmem:[#allocation43_spill] sm:$0xff] %v14728_v50  ;;  %vm1973_vm4 = vcmp.gt.f32.partialorder %v14624_v28, 0.0  ;;  %13223 = vpow2.f32 %v2059_v31  ;;  %v2300_v55 = vand.u32 4294901760, %v2299_v38  ;;  %v2065_v19 = vmul.f32 1.442695, %v2010_v4  ;;  %v13218_v41 = vpop.eup %13217 }
 0x26c   :  { %v14746_v58 = vsub.f32 %v2127_v57, %v14714_v21  ;;  %v2309_v52 = vsub.f32 %v14636_v26, %v18404_v18  ;;  %v2009_v34 = vmin.f32 %v14737_v25, 0.0  ;;  %v18413_v59 = vand.u32 4294901760, %v14633_v46  ;;  %v14753_v6 = vpop.f32.mrb[30].mxu0  ;;  %v13220_v54 = vpop.eup %13219  ;;  %11867 = vmatpush3.bf16.msra.mxu1 %v14501_v0 }
 0x26d   :  { %v14755_v37 = vand.u32 4294901760, %v2129_v23  ;;  %vm1976_vm5 = vcmp.gt.f32.partialorder %v14661_v22, 0.0  ;;  %10419 = vmatmul.mubr.f32.gmra.mrb[4].mxu1 %v2300_v55  ;;  %13225 = vpow2.f32 %v2065_v19  ;;  %v14760_v57 = vadd.f32 %v14655_v11, %v14339_v62  ;;  %v14762_v31 = vpop.f32.mrb[31].mxu0  ;;  %11869 = vmatprep.subr.bf16.mxu1 %v14506_v48 }
 0x26e   :  { %18965 = vst [vmem:[#allocation44_spill] sm:$0xff] %v14746_v58  ;;  %v14764_v38 = vand.u32 4294901760, %v2132_v3  ;;  %v2310_v4 = vand.u32 4294901760, %v2309_v52  ;;  %v2063_v18 = vmul.f32 1.442695, %v2009_v34  ;;  %v2319_v26 = vsub.f32 %v14633_v46, %v18413_v59 }
 0x26f   :  { %18966 = vst [vmem:[#allocation45_spill] sm:$0xff] %v14755_v37  ;;  %v14771_v21 = vsub.f32 %v2130_v30, %v14728_v50  ;;  %v8920_v55 = vadd.f32 -1.0, %v13216_v33  ;;  %v2012_v19 = vmin.f32 %v14760_v57, 0.0  ;;  %v18415_v11 = vand.u32 4294901760, %v14674_v13 }
 0x270   :  { %18967 = vst [vmem:[#allocation46_spill] sm:$0xff] %v14764_v38  ;;  %v8923_v7 = vadd.f32 -1.0, %v13218_v41  ;;  %v8922_v27 = vadd.f32 -1.0, %v13220_v54  ;;  %vm1975_vm6 = vcmp.gt.f32.partialorder %v14684_v5, 0.0  ;;  %10421 = vmatprep.mubr.f32.mxu1 %v2310_v4  ;;  %13227 = vpow2.f32 %v2063_v18  ;;  %11871 = vmatpush3.bf16.msra.mxu1 %v14506_v48 }
 0x271   :  { %v2320_v34 = vand.u32 4294901760, %v2319_v26  ;;  %v14778_v52 = vsub.f32 %v2129_v23, %v14755_v37  ;;  %v2069_v0 = vmul.f32 1.442695, %v2012_v19  ;;  %v2329_v30 = vsub.f32 %v14674_v13, %v18415_v11  ;;  %v13222_v59 = vpop.eup %13221  ;;  %11873 = vmatprep.subr.bf16.mxu1 %v14508_v12 }
 0x272   :  { %v14785_v33 = vadd.f32 %v14339_v62, %v14663_v15  ;;  %v14788_v41 = vsub.f32 %v2132_v3, %v14764_v38  ;;  %v18414_v18 = vand.u32 4294901760, %v14666_v53  ;;  %v14793_v26 = vadd.f32 %v14686_v56, %v14339_v62 }
 0x273   :  { %18968 = vst [vmem:[#allocation47_spill] sm:$0xff] %v14778_v52  ;;  %10422 = vmatmul.mubr.f32.gmra.mrb[6].mxu1 %v2320_v34  ;;  %v18416_v23 = vand.u32 4294901760, %v14712_v2  ;;  %v2131_v54 = vsel %vm1971_vm2, %v14592_v29, %v8920_v55  ;;  %v8925_v4 = vadd.f32 -1.0, %v13222_v59  ;;  %13229 = vpow2.f32 %v2069_v0 }
 0x274   :  { %v2330_v15 = vand.u32 4294901760, %v2329_v30  ;;  %v2134_v3 = vsel %vm1974_vm3, %v14620_v43, %v8923_v7  ;;  %v2133_v56 = vsel %vm1973_vm4, %v14624_v28, %v8922_v27  ;;  %v2011_v19 = vmin.f32 %v14785_v33, 0.0  ;;  %11875 = vmatpush3.bf16.msra.mxu1 %v14508_v12 }
 0x275   :  { %v2339_v34 = vsub.f32 %v14666_v53, %v18414_v18  ;;  %v13224_v29 = vpop.eup %13223  ;;  %v2136_v48 = vsel %vm1976_vm5, %v14661_v22, %v8925_v4  ;;  %vm1978_vm7 = vcmp.gt.f32.partialorder %v14709_v17, 0.0  ;;  %v2014_v43 = vmin.f32 %v14793_v26, 0.0  ;;  %11877 = vmatprep.subr.bf16.mxu1 %v14511_v60 }
 0x276   :  { %10424 = vmatprep.mubr.f32.mxu1 %v2330_v15  ;;  %v2349_v28 = vsub.f32 %v14712_v2, %v18416_v23  ;;  %v14821_v59 = vadd.f32 %v14339_v62, %v14697_v35  ;;  %v14823_v7 = vand.u32 4294901760, %v2131_v54  ;;  %v8924_v27 = vadd.f32 -1.0, %v13224_v29 }
 0x277   :  { %v2067_v55 = vmul.f32 1.442695, %v2011_v19  ;;  %v2340_v0 = vand.u32 4294901760, %v2339_v34  ;;  %v13226_v30 = vpop.eup %13225  ;;  %v14825_v22 = vand.u32 4294901760, %v2134_v3  ;;  %v2073_v4 = vmul.f32 1.442695, %v2014_v43 }
 0x278   :  { %18969 = vst [vmem:[#allocation48_spill] sm:$0xff] %v14823_v7  ;;  %v2350_v15 = vand.u32 4294901760, %v2349_v28  ;;  %v2013_v18 = vmin.f32 %v14821_v59, 0.0  ;;  %v14829_v11 = vand.u32 4294901760, %v2133_v56  ;;  %v14831_v23 = vand.u32 4294901760, %v2136_v48  ;;  %11879 = vmatpush3.bf16.msra.mxu1 %v14511_v60 }
 0x279   :  { %18970 = vst [vmem:[#allocation49_spill] sm:$0xff] %v14825_v22  ;;  %vm1977_vm8 = vcmp.gt.f32.partialorder %v14737_v25, 0.0  ;;  %13231 = vpow2.f32 %v2067_v55  ;;  %10425 = vmatmul.mubr.f32.gmra.mrb[8].mxu1 %v2340_v0  ;;  %v2135_v35 = vsel %vm1975_vm6, %v14684_v5, %v8924_v27  ;;  %v18418_v34 = vand.u32 4294901760, %v14689_v61  ;;  %11881 = vmatprep.subr.bf16.mxu1 %v14513_v49 }
 0x27a   :  { %18971 = vst [vmem:[#allocation50_spill] sm:$0xff] %v14829_v11  ;;  %18972 = vst [vmem:[#allocation51_spill] sm:$0xff] %v14831_v23  ;;  %13233 = vpow2.f32 %v2073_v4  ;;  %10427 = vmatprep.mubr.f32.mxu1 %v2350_v15  ;;  %v2071_v19 = vmul.f32 1.442695, %v2013_v18  ;;  %v13228_v12 = vpop.eup %13227  ;;  %v8927_v29 = vadd.f32 -1.0, %v13226_v30  ;;  %v14841_v43 = vadd.f32 %v14716_v20, %v14339_v62 }
 0x27b   :  { %v18417_v28 = vand.u32 4294901760, %v14746_v58  ;;  %v14846_v55 = vadd.f32 %v14339_v62, %v14726_v24  ;;  %v14849_v0 = vsub.f32 %v2131_v54, %v14823_v7  ;;  %v14852_v5 = vsub.f32 %v2134_v3, %v14825_v22 }
 0x27c   :  { %vm1980_vm9 = vcmp.gt.f32.partialorder %v14760_v57, 0.0  ;;  %13235 = vpow2.f32 %v2071_v19  ;;  %v8926_v18 = vadd.f32 -1.0, %v13228_v12  ;;  %v2359_v20 = vsub.f32 %v14689_v61, %v18418_v34  ;;  %11883 = vmatpush3.bf16.msra.mxu1 %v14513_v49 }
 0x27d   :  { %18973 = vst [vmem:[#allocation52_spill] sm:$0xff] %v14849_v0  ;;  %18974 = vst [vmem:[#allocation53_spill] sm:$0xff] %v14852_v5  ;;  %v2016_v27 = vmin.f32 %v14841_v43, 0.0  ;;  %v2369_v24 = vsub.f32 %v14746_v58, %v18417_v28  ;;  %v13230_v54 = vpop.eup %13229  ;;  %v14865_v3 = vsub.f32 %v2133_v56, %v14829_v11  ;;  %v14867_v30 = vand.u32 4294901760, %v2135_v35  ;;  %11885 = vmatprep.subr.bf16.mxu1 %v14322_v32 }
 0x27e   :  { %vm1979_vm10 = vcmp.gt.f32.partialorder %v14785_v33, 0.0  ;;  %v2015_v60 = vmin.f32 %v14846_v55, 0.0  ;;  %v14872_v4 = vsub.f32 %v2136_v48, %v14831_v23  ;;  %v2138_v15 = vsel %vm1978_vm7, %v14709_v17, %v8927_v29 }
 0x27f   :  { %18975 = vst [vmem:[#allocation54_spill] sm:$0xff] %v14867_v30  ;;  %v2360_v19 = vand.u32 4294901760, %v2359_v20  ;;  %v2077_v12 = vmul.f32 1.442695, %v2016_v27  ;;  %vm1981_vm11 = vcmp.gt.f32.partialorder %v14821_v59, 0.0  ;;  %v2370_v28 = vand.u32 4294901760, %v2369_v24 }
 0x280   :  { %18976 = vst [vmem:[#allocation55_spill] sm:$0xff] %v14872_v4  ;;  %v2075_v56 = vmul.f32 1.442695, %v2015_v60  ;;  %v18423_v34 = vand.u32 4294901760, %v14719_v51  ;;  %v14881_v58 = vadd.f32 %v14753_v6, %v14339_v62  ;;  %v2137_v48 = vsel %vm1977_vm8, %v14737_v25, %v8926_v18 }
 0x281   :  { %v8929_v61 = vadd.f32 -1.0, %v13230_v54  ;;  %vm1982_vm12 = vcmp.gt.f32.partialorder %v14793_v26, 0.0  ;;  %10428 = vmatmul.mubr.f32.gmra.mrb[10].mxu1 %v2360_v19  ;;  %13237 = vpow2.f32 %v2077_v12  ;;  %v18424_v17 = vand.u32 4294901760, %v14778_v52 }
 0x282   :  { %v14891_v29 = vsub.f32 %v2135_v35, %v14867_v30  ;;  %v14893_v6 = vand.u32 4294901760, %v2138_v15  ;;  %10430 = vmatprep.mubr.f32.mxu1 %v2370_v28  ;;  %13239 = vpow2.f32 %v2075_v56  ;;  %v2379_v49 = vsub.f32 %v14719_v51, %v18423_v34 }
 0x283   :  { %v13232_v25 = vpop.eup %13231  ;;  %v2018_v18 = vmin.f32 %v14881_v58, 0.0  ;;  %v2389_v20 = vsub.f32 %v14778_v52, %v18424_v17  ;;  %v14904_v27 = vadd.f32 %v14339_v62, %v14762_v31  ;;  %v18428_v35 = vand.u32 4294901760, %v14771_v21 }
 0x284   :  { %18977 = vst [vmem:[#allocation56_spill] sm:$0xff] %v14891_v29  ;;  %18978 = vst [vmem:[#allocation57_spill] sm:$0xff] %v14893_v6  ;;  %v13234_v24 = vpop.eup %13233  ;;  %v14907_v28 = vand.u32 4294901760, %v2137_v48  ;;  %v8928_v54 = vadd.f32 -1.0, %v13232_v25  ;;  %v2380_v60 = vand.u32 4294901760, %v2379_v49  ;;  %v18427_v19 = vand.u32 4294901760, %v14849_v0 }
 0x285   :  { %v2140_v12 = vsel %vm1980_vm9, %v14760_v57, %v8929_v61  ;;  %v8931_v56 = vadd.f32 -1.0, %v13234_v24  ;;  %v2081_v34 = vmul.f32 1.442695, %v2018_v18  ;;  %v2390_v17 = vand.u32 4294901760, %v2389_v20 }
 0x286   :  { %18979 = vst [vmem:[#allocation58_spill] sm:$0xff] %v14907_v28  ;;  %v13236_v52 = vpop.eup %13235  ;;  %v2139_v62 = vsel %vm1979_vm10, %v14785_v33, %v8928_v54  ;;  %10431 = vmatmul.mubr.f32.gmra.mrb[12].mxu1 %v2380_v60  ;;  %v2017_v31 = vmin.f32 %v14904_v27, 0.0  ;;  %v2399_v49 = vsub.f32 %v14771_v21, %v18428_v35  ;;  %v2409_v25 = vsub.f32 %v14849_v0, %v18427_v19 }
 0x287   :  { %v14924_v61 = vsub.f32 %v2138_v15, %v14893_v6  ;;  %v14926_v57 = vand.u32 4294901760, %v2139_v62  ;;  %v8930_v18 = vadd.f32 -1.0, %v13236_v52  ;;  %13241 = vpow2.f32 %v2081_v34  ;;  %10433 = vmatprep.mubr.f32.mxu1 %v2390_v17 }
 0x288   :  { %v14929_v33 = vsub.f32 %v2137_v48, %v14907_v28  ;;  %v2079_v20 = vmul.f32 1.442695, %v2017_v31  ;;  %v2400_v24 = vand.u32 4294901760, %v2399_v49  ;;  %v2410_v54 = vand.u32 4294901760, %v2409_v25 }
 0x289   :  { %18980 = vst [vmem:[#allocation59_spill] sm:$0xff] %v14926_v57  ;;  %v14931_v60 = vand.u32 4294901760, %v2140_v12  ;;  %v2141_v19 = vsel %vm1981_vm11, %v14821_v59, %v8930_v18  ;;  %v18431_v15 = vand.u32 4294901760, %v14788_v41  ;;  %v18432_v35 = vand.u32 4294901760, %v14865_v3 }
 0x28a   :  { %18981 = vst [vmem:[#allocation60_spill] sm:$0xff] %v14929_v33  ;;  %v14939_v52 = vsub.f32 %v2139_v62, %v14926_v57  ;;  %v2142_v34 = vsel %vm1982_vm12, %v14793_v26, %v8931_v56  ;;  %13243 = vpow2.f32 %v2079_v20  ;;  %10434 = vmatmul.mubr.f32.gmra.mrb[14].mxu1 %v2400_v24  ;;  %v18433_v48 = vand.u32 4294901760, %v14852_v5 }
 0x28b   :  { %18982 = vst [vmem:[#allocation61_spill] sm:$0xff] %v14931_v60  ;;  %v13238_v17 = vpop.eup %13237  ;;  %v14945_v31 = vand.u32 4294901760, %v2141_v19  ;;  %10436 = vmatprep.mubr.f32.mxu1 %v2410_v54  ;;  %v2419_v59 = vsub.f32 %v14788_v41, %v18431_v15  ;;  %v2429_v62 = vsub.f32 %v14865_v3, %v18432_v35  ;;  %v18434_v49 = vand.u32 4294901760, %v14891_v29 }
 0x28c   :  { %v13240_v25 = vpop.eup %13239  ;;  %v8933_v26 = vadd.f32 -1.0, %v13238_v17  ;;  %v2439_v56 = vsub.f32 %v14852_v5, %v18433_v48  ;;  %v18439_v20 = vand.u32 4294901760, %v14929_v33  ;;  %vm1984_vm13 = vcmp.gt.f32.partialorder %v14841_v43, 0.0 }
 0x28d   :  { %18983 = vst [vmem:[#allocation62_spill] sm:$0xff] %v14945_v31  ;;  %v8932_v24 = vadd.f32 -1.0, %v13240_v25  ;;  %v2420_v54 = vand.u32 4294901760, %v2419_v59  ;;  %v2430_v0 = vand.u32 4294901760, %v2429_v62  ;;  %v2449_v15 = vsub.f32 %v14891_v29, %v18434_v49 }
 0x28e   :  { %vm1983_vm14 = vcmp.gt.f32.partialorder %v14846_v55, 0.0  ;;  %v14964_v17 = vand.u32 4294901760, %v2142_v34  ;;  %v14967_v35 = vsub.f32 %v2141_v19, %v14945_v31  ;;  %v2144_v48 = vsel %vm1984_vm13, %v14841_v43, %v8933_v26 }
 0x28f   :  { %v2143_v18 = vsel %vm1983_vm14, %v14846_v55, %v8932_v24  ;;  %10437 = vmatmul.mubr.f32.gmra.mrb[16].mxu1 %v2420_v54  ;;  %v2450_v62 = vand.u32 4294901760, %v2449_v15  ;;  %v2469_v25 = vsub.f32 %v14929_v33, %v18439_v20  ;;  %v18444_v49 = vand.u32 4294901760, %v14939_v52 }
 0x290   :  { %18984 = vst [vmem:[#allocation63_spill] sm:$0xff] %v14964_v17  ;;  %v14971_v59 = vand.u32 4294901760, %v2143_v18  ;;  %10439 = vmatprep.mubr.f32.mxu1 %v2430_v0  ;;  %v14978_v5 = vsub.f32 %v2140_v12, %v14931_v60  ;;  %v2440_v19 = vand.u32 4294901760, %v2439_v56  ;;  %v18986_v43 = vand.u32 4294901760, %v14872_v4 }
 0x291   :  { %v13242_v29 = vpop.eup %13241  ;;  %v18445_v26 = vand.u32 4294901760, %v14924_v61  ;;  %v14985_v0 = vsub.f32 %v2142_v34, %v14964_v17  ;;  %v14987_v15 = vand.u32 4294901760, %v2144_v48  ;;  %vm1986_vm15 = vcmp.gt.f32.partialorder %v14881_v58, 0.0 }
 0x292   :  { %18985 = vst [vmem:[#allocation64_spill] sm:$0xff] %v14971_v59  ;;  %v2459_v55 = vsub.f32 %v14872_v4, %v18986_v43  ;;  %v8935_v24 = vadd.f32 -1.0, %v13242_v29  ;;  %v14991_v12 = vsub.f32 %v2143_v18, %v14971_v59  ;;  %v2470_v56 = vand.u32 4294901760, %v2469_v25 }
 0x293   :  { %18987 = vst [vmem:[#allocation65_spill] sm:$0xff] %v14987_v15  ;;  %10440 = vmatmul.mubr.f32.gmra.mrb[18].mxu1 %v2440_v19  ;;  %v2489_v43 = vsub.f32 %v14939_v52, %v18444_v49  ;;  %v18446_v29 = vand.u32 4294901760, %v14967_v35  ;;  %v2479_v33 = vsub.f32 %v14924_v61, %v18445_v26  ;;  %v18452_v19 = vand.u32 4294901760, %v14978_v5 }
 0x294   :  { %v13244_v54 = vpop.eup %13243  ;;  %10442 = vmatprep.mubr.f32.mxu1 %v2450_v62  ;;  %v2460_v34 = vand.u32 4294901760, %v2459_v55  ;;  %v2146_v4 = vsel %vm1986_vm15, %v14881_v58, %v8935_v24  ;;  %vm1985_vm0 = vcmp.gt.f32.partialorder %v14904_v27, 0.0  ;;  %v15004_v18 = vsub.f32 %v2144_v48, %v14987_v15 }
 0x295   :  { %v8934_v20 = vadd.f32 -1.0, %v13244_v54  ;;  %v2490_v55 = vand.u32 4294901760, %v2489_v43  ;;  %v2509_v54 = vsub.f32 %v14967_v35, %v18446_v29  ;;  %v18447_v49 = vand.u32 4294901760, %v14991_v12 }
 0x296   :  { %v15013_v26 = vand.u32 4294901760, %v2146_v4  ;;  %v2480_v58 = vand.u32 4294901760, %v2479_v33  ;;  %v2499_v48 = vsub.f32 %v14978_v5, %v18452_v19  ;;  %v19006_v19 = vld [vmem:[#allocation6_spill] sm:$0xff] }
 0x297   :  { %v2145_v62 = vsel %vm1985_vm0, %v14904_v27, %v8934_v20  ;;  %10443 = vmatmul.mubr.f32.gmra.mrb[20].mxu1 %v2460_v34  ;;  %v18448_v27 = vand.u32 4294901760, %v14985_v0  ;;  %v2510_v24 = vand.u32 4294901760, %v2509_v54 }
 0x298   :  { %v15007_v25 = vand.u32 4294901760, %v2145_v62  ;;  %10445 = vmatprep.mubr.f32.mxu1 %v2470_v56  ;;  %18989 = vst [vmem:[#allocation67_spill] sm:$0xff] %v15013_v26  ;;  %v2529_v56 = vsub.f32 %v14991_v12, %v18447_v49  ;;  %v15027_v33 = vsub.f32 %v2146_v4, %v15013_v26  ;;  %v2500_v34 = vand.u32 4294901760, %v2499_v48 }
 0x299   :  { %v2519_v29 = vsub.f32 %v14985_v0, %v18448_v27 }
 0x29a   :  { %18988 = vst [vmem:[#allocation66_spill] sm:$0xff] %v15007_v25  ;;  %v15020_v20 = vsub.f32 %v2145_v62, %v15007_v25  ;;  %v18451_v62 = vand.u32 4294901760, %v15004_v18  ;;  %v18449_v48 = vand.u32 4294901760, %v15027_v33 }
 0x29b   :  { %10446 = vmatmul.mubr.f32.gmra.mrb[22].mxu1 %v2480_v58  ;;  %v2520_v58 = vand.u32 4294901760, %v2519_v29 }
 0x29c   :  { %10448 = vmatprep.mubr.f32.mxu1 %v2490_v55  ;;  %v18450_v43 = vand.u32 4294901760, %v15020_v20  ;;  %v2530_v55 = vand.u32 4294901760, %v2529_v56  ;;  %v2539_v4 = vsub.f32 %v15004_v18, %v18451_v62  ;;  %v19001_v62 = vld [vmem:[#allocation41_spill] sm:$0xff] }
 0x29e   :  { %v2549_v54 = vsub.f32 %v15020_v20, %v18450_v43  ;;  %v2540_v27 = vand.u32 4294901760, %v2539_v4 }
 0x29f   :  { %10449 = vmatmul.mubr.f32.gmra.mrb[24].mxu1 %v2500_v34  ;;  %v18993_v34 = vld [vmem:[#allocation26_spill] sm:$0xff] }
 0x2a0   :  { %10451 = vmatprep.mubr.f32.mxu1 %v2510_v24  ;;  %v2550_v49 = vand.u32 4294901760, %v2549_v54  ;;  %v2559_v24 = vsub.f32 %v15027_v33, %v18449_v48  ;;  %v18994_v54 = vld [vmem:[#allocation39_spill] sm:$0xff]  ;;  %v19000_v48 = vld [vmem:[#allocation24_spill] sm:$0xff] }
 0x2a2   :  { %v2560_v56 = vand.u32 4294901760, %v2559_v24  ;;  %v18997_v24 = vld [vmem:[#allocation38_spill] sm:$0xff] }
 0x2a3   :  { %10452 = vmatmul.mubr.f32.gmra.mrb[26].mxu1 %v2520_v58  ;;  %v18996_v58 = vld [vmem:[#allocation21_spill] sm:$0xff] }
 0x2a4   :  { %10454 = vmatprep.mubr.f32.mxu1 %v2530_v55 }
 0x2a7   :  { %10455 = vmatmul.mubr.f32.gmra.mrb[28].mxu1 %v2540_v27  ;;  %v18991_v27 = vld [vmem:[#allocation31_spill] sm:$0xff] }
 0x2a8   :  { %10457 = vmatprep.mubr.f32.mxu1 %v2550_v49  ;;  %v11896_v49 = vpack.c.bf16 %v14351_v9, %v14334_v47 }
 0x2ab   :  { %10458 = vmatmul.mubr.f32.gmra.mrb[30].mxu1 %v2560_v56  ;;  %v18998_v56 = vld [vmem:[#allocation42_spill] sm:$0xff] }
 0x2ac   :  { %10492 = vmatprep.mubr.f32.mxu1 %v14542_v40 }
 0x2af   :  { %10493 = vmatmul.mubr.f32.vlgmr.msra.gmra.mrb[0].mxu1 %v14539_v16 }
 0x2b0   :  { %11887 = vmatpush3.bf16.msra.mxu1 %v14322_v32  ;;  %10495 = vmatprep.mubr.f32.mxu1 %v14552_v45  ;;  %v18990_v32 = vld [vmem:[#allocation20_spill] sm:$0xff] }
 0x2b1   :  { %11889 = vmatprep.subr.bf16.mxu1 %v14374_v44  ;;  %v11900_v29 = vpack.c.bf16 %v18990_v32, %v14353_v10 }
 0x2b3   :  { %10496 = vmatmul.mubr.f32.gmra.mrb[2].mxu1 %v14544_v1 }
 0x2b4   :  { %10498 = vmatprep.mubr.f32.mxu1 %v14594_v36  ;;  %11891 = vmatpush3.bf16.msra.mxu1 %v14374_v44  ;;  %v18992_v44 = vld [vmem:[#allocation23_spill] sm:$0xff] }
 0x2b5   :  { %11893 = vmatprep.subr.bf16.mxu1 %v14445_v14  ;;  %v11904_v55 = vpack.c.bf16 %v18993_v34, %v18992_v44 }
 0x2b7   :  { %10499 = vmatmul.mubr.f32.gmra.mrb[4].mxu1 %v14588_v39 }
 0x2b8   :  { %10501 = vmatprep.mubr.f32.mxu1 %v14601_v63  ;;  %11895 = vmatpush3.bf16.msra.mxu1 %v14445_v14  ;;  %v18995_v14 = vld [vmem:[#allocation19_spill] sm:$0xff] }
 0x2b9   :  { %11897 = vmatprep.subr.bf16.mxu1 %v11896_v49  ;;  %v11908_v4 = vpack.c.bf16 %v18996_v58, %v18995_v14 }
 0x2bb   :  { %10502 = vmatmul.mubr.f32.gmra.mrb[6].mxu1 %v18991_v27 }
 0x2bc   :  { %10504 = vmatprep.mubr.f32.mxu1 %v14644_v42  ;;  %11899 = vmatpush3.bf16.msra.mxu1 %v11896_v49  ;;  %v18999_v49 = vld [vmem:[#allocation22_spill] sm:$0xff]  ;;  %v19036_v42 = vld [vmem:[#allocation17_spill] sm:$0xff] }
 0x2bd   :  { %11901 = vmatprep.subr.bf16.mxu1 %v11900_v29  ;;  %v11912_v43 = vpack.c.bf16 %v19000_v48, %v18999_v49  ;;  %v19037_v27 = vand.u32 4294901760, %v19036_v42 }
 0x2bf   :  { %10505 = vmatmul.mubr.f32.gmra.mrb[8].mxu1 %v14640_v8 }
 0x2c0   :  { %10507 = vmatprep.mubr.f32.mxu1 %v18994_v54  ;;  %11903 = vmatpush3.bf16.msra.mxu1 %v11900_v29  ;;  %v19002_v29 = vld [vmem:[#allocation5_spill] sm:$0xff] }
 0x2c1   :  { %11905 = vmatprep.subr.bf16.mxu1 %v11904_v55 }
 0x2c3   :  { %10508 = vmatmul.mubr.f32.gmra.mrb[10].mxu1 %v18997_v24  ;;  %v19027_v24 = vld [vmem:[#allocation55_spill] sm:$0xff] }
 0x2c4   :  { %10510 = vmatprep.mubr.f32.mxu1 %v18998_v56  ;;  %11907 = vmatpush3.bf16.msra.mxu1 %v11904_v55  ;;  %v19004_v55 = vld [vmem:[#allocation25_spill] sm:$0xff] }
 0x2c5   :  { %11909 = vmatprep.subr.bf16.mxu1 %v11908_v4  ;;  %v19025_v56 = vld [vmem:[#allocation53_spill] sm:$0xff]  ;;  %v19034_v8 = vand.u32 4294901760, %v19004_v55 }
 0x2c7   :  { %10511 = vmatmul.mubr.f32.gmra.mrb[12].mxu1 %v19001_v62  ;;  %v19024_v62 = vld [vmem:[#allocation52_spill] sm:$0xff] }
 0x2c8   :  { %10513 = vmatprep.mubr.f32.mxu1 %v14755_v37  ;;  %11911 = vmatpush3.bf16.msra.mxu1 %v11908_v4  ;;  %v19005_v4 = vld [vmem:[#allocation28_spill] sm:$0xff] }
 0x2c9   :  { %11913 = vmatprep.subr.bf16.mxu1 %v11912_v43 }
 0x2cb   :  { %10514 = vmatmul.mubr.f32.gmra.mrb[14].mxu1 %v14728_v50 }
 0x2cc   :  { %10516 = vmatprep.mubr.f32.mxu1 %v14823_v7  ;;  %11915 = vmatpush3.bf16.msra.mxu1 %v11912_v43  ;;  %v19003_v43 = vld [vmem:[#allocation29_spill] sm:$0xff]  ;;  %v19022_v7 = vld [vmem:[#allocation14_spill] sm:$0xff] }
 0x2cd   :  { %11917 = vmatprep.subr.bf16.mxu1 %v19002_v29  ;;  %v19023_v50 = vand.u32 4294901760, %v19022_v7 }
 0x2cf   :  { %10517 = vmatmul.mubr.f32.gmra.mrb[16].mxu1 %v14764_v38 }
 0x2d0   :  { %10519 = vmatprep.mubr.f32.mxu1 %v14829_v11  ;;  %v19020_v11 = vld [vmem:[#allocation13_spill] sm:$0xff] }
 0x2d1   :  { %v19021_v38 = vand.u32 4294901760, %v19020_v11  ;;  %v19028_v11 = vld [vmem:[#allocation60_spill] sm:$0xff] }
 0x2d3   :  { %10520 = vmatmul.mubr.f32.gmra.mrb[18].mxu1 %v14825_v22  ;;  %v19019_v22 = vld [vmem:[#allocation12_spill] sm:$0xff]  ;;  %v11948_v37 = vpack.c.bf16 %v19023_v50, %v19021_v38  ;;  %v19029_v50 = vand.u32 4294901760, %v19003_v43  ;;  %v19030_v38 = vld [vmem:[#allocation15_spill] sm:$0xff] }
 0x2d4   :  { %10522 = vmatprep.mubr.f32.mxu1 %v14867_v30  ;;  %v19018_v30 = vld [vmem:[#allocation47_spill] sm:$0xff]  ;;  %v19031_v7 = vand.u32 4294901760, %v19030_v38 }
 0x2d7   :  { %10523 = vmatmul.mubr.f32.gmra.mrb[20].mxu1 %v14831_v23  ;;  %v19017_v23 = vld [vmem:[#allocation11_spill] sm:$0xff] }
 0x2d8   :  { %10525 = vmatprep.mubr.f32.mxu1 %v14907_v28  ;;  %v19016_v28 = vld [vmem:[#allocation44_spill] sm:$0xff] }
 0x2db   :  { %10526 = vmatmul.mubr.f32.gmra.mrb[22].mxu1 %v14893_v6  ;;  %v19015_v6 = vld [vmem:[#allocation40_spill] sm:$0xff] }
 0x2dc   :  { %10528 = vmatprep.mubr.f32.mxu1 %v14926_v57  ;;  %v19014_v57 = vld [vmem:[#allocation10_spill] sm:$0xff] }
 0x2df   :  { %10529 = vmatmul.mubr.f32.gmra.mrb[24].mxu1 %v14931_v60  ;;  %v19013_v60 = vld [vmem:[#allocation9_spill] sm:$0xff] }
 0x2e0   :  { %10531 = vmatprep.mubr.f32.mxu1 %v14945_v31  ;;  %v19007_v31 = vld [vmem:[#allocation27_spill] sm:$0xff] }
 0x2e3   :  { %10532 = vmatmul.mubr.f32.gmra.mrb[26].mxu1 %v14964_v17  ;;  %v19008_v17 = vld [vmem:[#allocation34_spill] sm:$0xff] }
 0x2e4   :  { %10534 = vmatprep.mubr.f32.mxu1 %v14971_v59  ;;  %v19012_v59 = vld [vmem:[#allocation8_spill] sm:$0xff] }
 0x2e7   :  { %10535 = vmatmul.mubr.f32.gmra.mrb[28].mxu1 %v14987_v15  ;;  %v19009_v15 = vld [vmem:[#allocation7_spill] sm:$0xff] }
 0x2e8   :  { %10537 = vmatprep.mubr.f32.mxu1 %v15007_v25  ;;  %v19010_v25 = vld [vmem:[#allocation33_spill] sm:$0xff] }
 0x2eb   :  { %10538 = vmatmul.mubr.f32.gmra.mrb[30].mxu1 %v15013_v26  ;;  %v19011_v26 = vld [vmem:[#allocation35_spill] sm:$0xff] }
 0x2ec   :  { %10572 = vmatprep.mubr.f32.mxu1 %v19003_v43  ;;  %v19040_v43 = vand.u32 4294901760, %v19007_v31  ;;  %v19045_v42 = vand.u32 4294901760, %v19011_v26 }
 0x2ef   :  { %10573 = vmatmul.mubr.f32.vlgmr.msra.gmra.mrb[0].mxu1 %v19004_v55  ;;  %v15262_v55 = vld [vmem:[%s18252_s3 + $0xa0] sm:$0xff] }
 0x2f0   :  { %11919 = vmatpush3.bf16.msra.mxu1 %v19002_v29  ;;  %10575 = vmatprep.mubr.f32.mxu1 %v19005_v4 }
 0x2f1   :  { %11921 = vmatprep.subr.bf16.mxu1 %v19006_v19 }
 0x2f3   :  { %10576 = vmatmul.mubr.f32.gmra.mrb[2].mxu1 %v19007_v31 }
 0x2f4   :  { %10578 = vmatprep.mubr.f32.mxu1 %v19008_v17  ;;  %11923 = vmatpush3.bf16.msra.mxu1 %v19006_v19 }
 0x2f5   :  { %11925 = vmatprep.subr.bf16.mxu1 %v19009_v15 }
 0x2f7   :  { %10579 = vmatmul.mubr.f32.gmra.mrb[4].mxu1 %v19010_v25 }
 0x2f8   :  { %10581 = vmatprep.mubr.f32.mxu1 %v19011_v26  ;;  %11927 = vmatpush3.bf16.msra.mxu1 %v19009_v15 }
 0x2f9   :  { %11929 = vmatprep.subr.bf16.mxu1 %v19012_v59 }
 0x2fb   :  { %10582 = vmatmul.mubr.f32.gmra.mrb[6].mxu1 %v14633_v46 }
 0x2fc   :  { %10584 = vmatprep.mubr.f32.mxu1 %v14674_v13  ;;  %11931 = vmatpush3.bf16.msra.mxu1 %v19012_v59  ;;  %v19038_v59 = vld [vmem:[#allocation18_spill] sm:$0xff] }
 0x2fd   :  { %11933 = vmatprep.subr.bf16.mxu1 %v19013_v60  ;;  %v19039_v63 = vand.u32 4294901760, %v19038_v59  ;;  %v19051_v59 = vand.u32 4294901760, %v18993_v34  ;;  %v19060_v34 = vand.u32 4294901760, %v14719_v51 }
 0x2ff   :  { %10585 = vmatmul.mubr.f32.gmra.mrb[8].mxu1 %v14666_v53  ;;  %v11956_v39 = vpack.c.bf16 %v19039_v63, %v19037_v27  ;;  %v19046_v63 = vand.u32 4294901760, %v14353_v10  ;;  %v19053_v10 = vand.u32 4294901760, %v14712_v2  ;;  %v19057_v27 = vand.u32 4294901760, %v19016_v28 }
 0x300   :  { %10587 = vmatprep.mubr.f32.mxu1 %v14712_v2  ;;  %11935 = vmatpush3.bf16.msra.mxu1 %v19013_v60  ;;  %v19035_v60 = vand.u32 4294901760, %v19005_v4  ;;  %v19059_v2 = vand.u32 4294901760, %v19000_v48  ;;  %v19064_v48 = vand.u32 4294901760, %v14788_v41  ;;  %v15267_v4 = vld [vmem:[%s18252_s3 + $0xa8] sm:$0xff] }
 0x301   :  { %11937 = vmatprep.subr.bf16.mxu1 %v19014_v57 }
 0x303   :  { %10588 = vmatmul.mubr.f32.gmra.mrb[10].mxu1 %v19015_v6 }
 0x304   :  { %10590 = vmatprep.mubr.f32.mxu1 %v19016_v28  ;;  %11939 = vmatpush3.bf16.msra.mxu1 %v19014_v57  ;;  %v19063_v28 = vand.u32 4294901760, %v19024_v62 }
 0x305   :  { %11941 = vmatprep.subr.bf16.mxu1 %v19017_v23 }
 0x307   :  { %10591 = vmatmul.mubr.f32.gmra.mrb[12].mxu1 %v14719_v51  ;;  %v19065_v51 = vand.u32 4294901760, %v14865_v3 }
 0x308   :  { %10593 = vmatprep.mubr.f32.mxu1 %v19018_v30  ;;  %11943 = vmatpush3.bf16.msra.mxu1 %v19017_v23  ;;  %v19026_v23 = vld [vmem:[#allocation56_spill] sm:$0xff] }
 0x309   :  { %11945 = vmatprep.subr.bf16.mxu1 %v19019_v22 }
 0x30b   :  { %10594 = vmatmul.mubr.f32.gmra.mrb[14].mxu1 %v14771_v21 }
 0x30c   :  { %10596 = vmatprep.mubr.f32.mxu1 %v19024_v62  ;;  %11947 = vmatpush3.bf16.msra.mxu1 %v19019_v22  ;;  %v19032_v22 = vld [vmem:[#allocation16_spill] sm:$0xff]  ;;  %v19069_v62 = vand.u32 4294901760, %v19028_v11 }
 0x30d   :  { %11949 = vmatprep.subr.bf16.mxu1 %v11948_v37  ;;  %v19033_v57 = vand.u32 4294901760, %v19032_v22 }
 0x30f   :  { %10597 = vmatmul.mubr.f32.gmra.mrb[16].mxu1 %v14788_v41  ;;  %v11952_v54 = vpack.c.bf16 %v19033_v57, %v19031_v7  ;;  %v19044_v57 = vand.u32 4294901760, %v19010_v25  ;;  %v19071_v41 = vand.u32 4294901760, %v14939_v52 }
 0x310   :  { %10599 = vmatprep.mubr.f32.mxu1 %v14865_v3  ;;  %v19072_v3 = vand.u32 4294901760, %v14978_v5 }
 0x313   :  { %10600 = vmatmul.mubr.f32.gmra.mrb[18].mxu1 %v19025_v56 }
 0x314   :  { %10602 = vmatprep.mubr.f32.mxu1 %v19026_v23 }
 0x317   :  { %10603 = vmatmul.mubr.f32.gmra.mrb[20].mxu1 %v19027_v24 }
 0x318   :  { %10605 = vmatprep.mubr.f32.mxu1 %v19028_v11 }
 0x31b   :  { %10606 = vmatmul.mubr.f32.gmra.mrb[22].mxu1 %v14924_v61 }
 0x31c   :  { %10608 = vmatprep.mubr.f32.mxu1 %v14939_v52  ;;  %v19078_v52 = vand.u32 4294901760, %v15027_v33 }
 0x31f   :  { %10609 = vmatmul.mubr.f32.gmra.mrb[24].mxu1 %v14978_v5  ;;  %v15238_v5 = vld [vmem:[%s18252_s3 + $0x80] sm:$0xff] }
 0x320   :  { %10611 = vmatprep.mubr.f32.mxu1 %v14967_v35 }
 0x323   :  { %10612 = vmatmul.mubr.f32.gmra.mrb[26].mxu1 %v14985_v0 }
 0x324   :  { %10614 = vmatprep.mubr.f32.mxu1 %v14991_v12 }
 0x327   :  { %10615 = vmatmul.mubr.f32.gmra.mrb[28].mxu1 %v15004_v18 }
 0x328   :  { %10617 = vmatprep.mubr.f32.mxu1 %v15020_v20 }
 0x32b   :  { %10618 = vmatmul.mubr.f32.gmra.mrb[30].mxu1 %v15027_v33 }
 0x32c   :  { %10652 = vmatprep.mubr.f32.mxu1 %v19029_v50  ;;  %v19041_v50 = vand.u32 4294901760, %v19008_v17  ;;  %v19048_v17 = vand.u32 4294901760, %v14633_v46  ;;  %v19054_v46 = vand.u32 4294901760, %v18995_v14  ;;  %v19067_v14 = vand.u32 4294901760, %v19026_v23 }
 0x32d   :  { %v19074_v23 = vand.u32 4294901760, %v14985_v0  ;;  %v15248_v0 = vld [vmem:[%s18252_s3 + $0x90] sm:$0xff] }
 0x32e   :  { %v4357_v33 = vand.u32 4294901760, %v15248_v0 }
 0x32f   :  { %10653 = vmatmul.mubr.f32.vlgmr.msra.gmra.mrb[0].mxu1 %v19034_v8  ;;  %v19042_v8 = vand.u32 4294901760, %v14334_v47  ;;  %v19049_v47 = vand.u32 4294901760, %v14674_v13  ;;  %v19055_v13 = vand.u32 4294901760, %v18996_v58  ;;  %v19070_v58 = vand.u32 4294901760, %v14924_v61 }
 0x330   :  { %11951 = vmatpush3.bf16.msra.mxu1 %v11948_v37  ;;  %10655 = vmatprep.mubr.f32.mxu1 %v19035_v60  ;;  %v19043_v37 = vand.u32 4294901760, %v14351_v9  ;;  %v19047_v60 = vand.u32 4294901760, %v18990_v32  ;;  %v19050_v9 = vand.u32 4294901760, %v18992_v44  ;;  %v19056_v32 = vand.u32 4294901760, %v19015_v6 }
 0x331   :  { %11953 = vmatprep.subr.bf16.mxu1 %v11952_v54  ;;  %v11972_v25 = vpack.c.bf16 %v19055_v13, %v19054_v46  ;;  %v19062_v6 = vand.u32 4294901760, %v14771_v21  ;;  %v19068_v21 = vand.u32 4294901760, %v19027_v24  ;;  %v19075_v24 = vand.u32 4294901760, %v14991_v12  ;;  %v19095_v46 = vld [vmem:[#allocation41_spill] sm:$0xff] }
 0x332   :  { %v11960_v22 = vpack.c.bf16 %v19043_v37, %v19042_v8  ;;  %v11964_v31 = vpack.c.bf16 %v19047_v60, %v19046_v63  ;;  %v11968_v26 = vpack.c.bf16 %v19051_v59, %v19050_v9  ;;  %v19077_v61 = vand.u32 4294901760, %v15020_v20  ;;  %v15256_v20 = vld [vmem:[%s18252_s3 + $0x98] sm:$0xff]  ;;  %v15290_v8 = vld [vmem:[%s18252_s3 + $0xb0] sm:$0xff]  ;;  %v19096_v13 = vld [vmem:[#allocation45_spill] sm:$0xff] }
 0x333   :  { %10656 = vmatmul.mubr.f32.gmra.mrb[2].mxu1 %v19040_v43  ;;  %v4351_v12 = vand.u32 4294901760, %v15238_v5  ;;  %v4360_v11 = vand.u32 4294901760, %v15256_v20  ;;  %v4363_v43 = vand.u32 4294901760, %v15262_v55  ;;  %v15295_v37 = vld [vmem:[%s18252_s3 + $0xb8] sm:$0xff]  ;;  %v19090_v59 = vld [vmem:[#allocation39_spill] sm:$0xff] }
 0x334   :  { %10658 = vmatprep.mubr.f32.mxu1 %v19041_v50  ;;  %11955 = vmatpush3.bf16.msra.mxu1 %v11952_v54  ;;  %v19061_v54 = vand.u32 4294901760, %v19018_v30  ;;  %v19066_v30 = vand.u32 4294901760, %v19025_v56  ;;  %v19073_v56 = vand.u32 4294901760, %v14967_v35  ;;  %v15243_v35 = vld [vmem:[%s18252_s3 + $0x88] sm:$0xff]  ;;  %v4366_v50 = vand.u32 4294901760, %v15267_v4  ;;  %v19084_v60 = vld [vmem:[#allocation32_spill] sm:$0xff] }
 0x335   :  { %11957 = vmatprep.subr.bf16.mxu1 %v11956_v39  ;;  %v15281_v7 = vpack.c.bf16 %v4360_v11, %v4357_v33  ;;  %v19089_v9 = vld [vmem:[#allocation36_spill] sm:$0xff] }
 0x337   :  { %10659 = vmatmul.mubr.f32.gmra.mrb[4].mxu1 %v19044_v57  ;;  %19080 = vst [vmem:[#allocation23_spill] sm:$0xff] %v15281_v7  ;;  %v4372_v57 = vand.u32 4294901760, %v15295_v37 }
 0x338   :  { %10661 = vmatprep.mubr.f32.mxu1 %v19045_v42  ;;  %11959 = vmatpush3.bf16.msra.mxu1 %v11956_v39  ;;  %v19052_v39 = vand.u32 4294901760, %v14666_v53  ;;  %v19058_v53 = vand.u32 4294901760, %v18999_v49  ;;  %v19076_v49 = vand.u32 4294901760, %v15004_v18  ;;  %v4354_v18 = vand.u32 4294901760, %v15243_v35  ;;  %v19082_v42 = vld [vmem:[#allocation30_spill] sm:$0xff] }
 0x339   :  { %11961 = vmatprep.subr.bf16.mxu1 %v11960_v22 }
 0x33a   :  { %v11976_v44 = vpack.c.bf16 %v19059_v2, %v19058_v53  ;;  %v15274_v38 = vpack.c.bf16 %v4354_v18, %v4351_v12  ;;  %v19100_v53 = vld [vmem:[#allocation46_spill] sm:$0xff] }
 0x33b   :  { %10662 = vmatmul.mubr.f32.gmra.mrb[6].mxu1 %v19048_v17  ;;  %v19087_v17 = vld [vmem:[#allocation37_spill] sm:$0xff]  ;;  %v19101_v2 = vld [vmem:[#allocation50_spill] sm:$0xff] }
 0x33c   :  { %10664 = vmatprep.mubr.f32.mxu1 %v19049_v47  ;;  %11963 = vmatpush3.bf16.msra.mxu1 %v11960_v22  ;;  %19079 = vst [vmem:[#allocation20_spill] sm:$0xff] %v15274_v38  ;;  %v4369_v22 = vand.u32 4294901760, %v15290_v8  ;;  %v19088_v47 = vld [vmem:[#allocation9_spill] sm:$0xff] }
 0x33d   :  { %11965 = vmatprep.subr.bf16.mxu1 %v11964_v31  ;;  %12013 = vmatprep.subr.bf16.mxu0 %v15274_v38 }
 0x33e   :  { %12015 = vmatpush3.bf16.msra.mxu0 %v15274_v38  ;;  %v15320_v63 = vpack.c.bf16 %v4372_v57, %v4369_v22 }
 0x33f   :  { %10665 = vmatmul.mubr.f32.gmra.mrb[8].mxu1 %v19052_v39  ;;  %12017 = vmatprep.subr.bf16.mxu0 %v15281_v7  ;;  %v19093_v39 = vld [vmem:[#allocation42_spill] sm:$0xff] }
 0x340   :  { %10667 = vmatprep.mubr.f32.mxu1 %v19053_v10  ;;  %11967 = vmatpush3.bf16.msra.mxu1 %v11964_v31  ;;  %19083 = vst [vmem:[#allocation19_spill] sm:$0xff] %v15320_v63  ;;  %v19085_v31 = vld [vmem:[#allocation8_spill] sm:$0xff]  ;;  %v19094_v10 = vld [vmem:[#allocation11_spill] sm:$0xff] }
 0x341   :  { %11969 = vmatprep.subr.bf16.mxu1 %v11968_v26 }
 0x342   :  { %12019 = vmatpush3.bf16.msra.mxu0 %v15281_v7 }
 0x343   :  { %10668 = vmatmul.mubr.f32.gmra.mrb[10].mxu1 %v19056_v32  ;;  %v19098_v32 = vld [vmem:[#allocation43_spill] sm:$0xff] }
 0x344   :  { %10670 = vmatprep.mubr.f32.mxu1 %v19057_v27  ;;  %11971 = vmatpush3.bf16.msra.mxu1 %v11968_v26  ;;  %v19092_v26 = vld [vmem:[#allocation38_spill] sm:$0xff]  ;;  %v19099_v27 = vld [vmem:[#allocation48_spill] sm:$0xff] }
 0x345   :  { %11973 = vmatprep.subr.bf16.mxu1 %v11972_v25 }
 0x347   :  { %10671 = vmatmul.mubr.f32.gmra.mrb[12].mxu1 %v19060_v34  ;;  %v19103_v34 = vld [vmem:[#allocation54_spill] sm:$0xff] }
 0x348   :  { %10673 = vmatprep.mubr.f32.mxu1 %v19061_v54  ;;  %11975 = vmatpush3.bf16.msra.mxu1 %v11972_v25  ;;  %v19097_v25 = vld [vmem:[#allocation12_spill] sm:$0xff]  ;;  %v19104_v54 = vld [vmem:[#allocation51_spill] sm:$0xff] }
 0x349   :  { %11977 = vmatprep.subr.bf16.mxu1 %v11976_v44 }
 0x34b   :  { %10674 = vmatmul.mubr.f32.gmra.mrb[14].mxu1 %v19062_v6  ;;  %v19105_v6 = vld [vmem:[#allocation58_spill] sm:$0xff] }
 0x34c   :  { %10676 = vmatprep.mubr.f32.mxu1 %v19063_v28  ;;  %11979 = vmatpush3.bf16.msra.mxu1 %v11976_v44  ;;  %v19102_v44 = vld [vmem:[#allocation49_spill] sm:$0xff] }
 0x34d   :  { %11981 = vmatprep.subr.bf16.mxu1 %v19002_v29  ;;  %v19106_v28 = vld [vmem:[#allocation57_spill] sm:$0xff] }
 0x34f   :  { %10677 = vmatmul.mubr.f32.gmra.mrb[16].mxu1 %v19064_v48  ;;  %v19107_v48 = vld [vmem:[#allocation59_spill] sm:$0xff] }
 0x350   :  { %10679 = vmatprep.mubr.f32.mxu1 %v19065_v51  ;;  %v19108_v51 = vld [vmem:[#allocation61_spill] sm:$0xff] }
 0x353   :  { %10680 = vmatmul.mubr.f32.gmra.mrb[18].mxu1 %v19066_v30  ;;  %v19109_v30 = vld [vmem:[#allocation62_spill] sm:$0xff] }
 0x354   :  { %10682 = vmatprep.mubr.f32.mxu1 %v19067_v14  ;;  %v19110_v14 = vld [vmem:[#allocation63_spill] sm:$0xff] }
 0x357   :  { %10683 = vmatmul.mubr.f32.gmra.mrb[20].mxu1 %v19068_v21  ;;  %v19111_v21 = vld [vmem:[#allocation64_spill] sm:$0xff] }
 0x358   :  { %10685 = vmatprep.mubr.f32.mxu1 %v19069_v62  ;;  %v19112_v62 = vld [vmem:[#allocation65_spill] sm:$0xff] }
 0x35b   :  { %10686 = vmatmul.mubr.f32.gmra.mrb[22].mxu1 %v19070_v58  ;;  %v19113_v58 = vld [vmem:[#allocation66_spill] sm:$0xff] }
 0x35c   :  { %10688 = vmatprep.mubr.f32.mxu1 %v19071_v41  ;;  %v19114_v41 = vld [vmem:[#allocation67_spill] sm:$0xff] }
 0x35f   :  { %10689 = vmatmul.mubr.f32.gmra.mrb[24].mxu1 %v19072_v3  ;;  %v15405_v3 = vld [vmem:[%s18252_s3 + $0xd0] sm:$0xff] }
 0x360   :  { %10691 = vmatprep.mubr.f32.mxu1 %v19073_v56  ;;  %v15410_v56 = vld [vmem:[%s18252_s3 + $0xd8] sm:$0xff] }
 0x363   :  { %10692 = vmatmul.mubr.f32.gmra.mrb[26].mxu1 %v19074_v23  ;;  %v4381_v23 = vand.u32 4294901760, %v15405_v3 }
 0x364   :  { %10694 = vmatprep.mubr.f32.mxu1 %v19075_v24  ;;  %v4384_v24 = vand.u32 4294901760, %v15410_v56 }
 0x367   :  { %10695 = vmatmul.mubr.f32.gmra.mrb[28].mxu1 %v19076_v49  ;;  %v15420_v49 = vpack.c.bf16 %v4384_v24, %v4381_v23 }
 0x368   :  { %10697 = vmatprep.mubr.f32.mxu1 %v19077_v61  ;;  %v15425_v61 = vld [vmem:[%s18252_s3 + $0xe0] sm:$0xff] }
 0x369   :  { %19116 = vst [vmem:[#allocation22_spill] sm:$0xff] %v15420_v49 }
 0x36b   :  { %10698 = vmatmul.mubr.f32.gmra.mrb[30].mxu1 %v19078_v52  ;;  %v15430_v52 = vld [vmem:[%s18252_s3 + $0xe8] sm:$0xff] }
 0x36c   :  { %10732 = vmatprep.mubr.f32.mxu1 %v14542_v40 }
 0x36f   :  { %10733 = vmatmul.mubr.f32.vlgmr.msra.gmra.mrb[0].mxu1 %v14539_v16 }
 0x370   :  { %11983 = vmatpush3.bf16.msra.mxu1 %v19002_v29  ;;  %10735 = vmatprep.mubr.f32.mxu1 %v14552_v45  ;;  %v15306_v29 = vpack.c.bf16 %v4366_v50, %v4363_v43 }
 0x371   :  { %11985 = vmatprep.subr.bf16.mxu1 %v19006_v19 }
 0x372   :  { %19081 = vst [vmem:[#allocation26_spill] sm:$0xff] %v15306_v29  ;;  %12021 = vmatprep.subr.bf16.mxu0 %v15306_v29 }
 0x373   :  { %10736 = vmatmul.mubr.f32.gmra.mrb[2].mxu1 %v14544_v1  ;;  %12023 = vmatpush3.bf16.msra.mxu0 %v15306_v29 }
 0x374   :  { %10738 = vmatprep.mubr.f32.mxu1 %v14594_v36  ;;  %11987 = vmatpush3.bf16.msra.mxu1 %v19006_v19  ;;  %v19086_v19 = vld [vmem:[#allocation31_spill] sm:$0xff] }
 0x375   :  { %11989 = vmatprep.subr.bf16.mxu1 %v19009_v15  ;;  %12025 = vmatprep.subr.bf16.mxu0 %v15320_v63 }
 0x377   :  { %10739 = vmatmul.mubr.f32.gmra.mrb[4].mxu1 %v19082_v42  ;;  %12027 = vmatpush3.bf16.msra.mxu0 %v15320_v63 }
 0x378   :  { %10741 = vmatprep.mubr.f32.mxu1 %v19084_v60  ;;  %11991 = vmatpush3.bf16.msra.mxu1 %v19009_v15  ;;  %v19091_v15 = vld [vmem:[#allocation10_spill] sm:$0xff] }
 0x379   :  { %11993 = vmatprep.subr.bf16.mxu1 %v19085_v31 }
 0x37b   :  { %10742 = vmatmul.mubr.f32.gmra.mrb[6].mxu1 %v19086_v19 }
 0x37c   :  { %10744 = vmatprep.mubr.f32.mxu1 %v19087_v17  ;;  %11995 = vmatpush3.bf16.msra.mxu1 %v19085_v31 }
 0x37d   :  { %11997 = vmatprep.subr.bf16.mxu1 %v19088_v47 }
 0x37f   :  { %10745 = vmatmul.mubr.f32.gmra.mrb[8].mxu1 %v19089_v9 }
 0x380   :  { %10747 = vmatprep.mubr.f32.mxu1 %v19090_v59  ;;  %11999 = vmatpush3.bf16.msra.mxu1 %v19088_v47 }
 0x381   :  { %12001 = vmatprep.subr.bf16.mxu1 %v19091_v15 }
 0x383   :  { %10748 = vmatmul.mubr.f32.gmra.mrb[10].mxu1 %v19092_v26 }
 0x384   :  { %10750 = vmatprep.mubr.f32.mxu1 %v19093_v39  ;;  %12003 = vmatpush3.bf16.msra.mxu1 %v19091_v15  ;;  %v15467_v15 = vsub.f32 %v15238_v5, %v4351_v12 }
 0x385   :  { %12005 = vmatprep.subr.bf16.mxu1 %v19094_v10 }
 0x386   :  { %19119 = vst [vmem:[#allocation29_spill] sm:$0xff] %v15467_v15 }
 0x387   :  { %10751 = vmatmul.mubr.f32.gmra.mrb[12].mxu1 %v19095_v46 }
 0x388   :  { %10753 = vmatprep.mubr.f32.mxu1 %v19096_v13  ;;  %12007 = vmatpush3.bf16.msra.mxu1 %v19094_v10 }
 0x389   :  { %12009 = vmatprep.subr.bf16.mxu1 %v19097_v25 }
 0x38b   :  { %10754 = vmatmul.mubr.f32.gmra.mrb[14].mxu1 %v19098_v32 }
 0x38c   :  { %10756 = vmatprep.mubr.f32.mxu1 %v19099_v27  ;;  %12011 = vmatpush3.bf16.msra.mxu1 %v19097_v25 }
 0x38f   :  { %10757 = vmatmul.mubr.f32.gmra.mrb[16].mxu1 %v19100_v53 }
 0x390   :  { %10759 = vmatprep.mubr.f32.mxu1 %v19101_v2 }
 0x393   :  { %10760 = vmatmul.mubr.f32.gmra.mrb[18].mxu1 %v19102_v44 }
 0x394   :  { %10762 = vmatprep.mubr.f32.mxu1 %v19103_v34 }
 0x397   :  { %10763 = vmatmul.mubr.f32.gmra.mrb[20].mxu1 %v19104_v54 }
 0x398   :  { %10765 = vmatprep.mubr.f32.mxu1 %v19105_v6 }
 0x39b   :  { %10766 = vmatmul.mubr.f32.gmra.mrb[22].mxu1 %v19106_v28 }
 0x39c   :  { %10768 = vmatprep.mubr.f32.mxu1 %v19107_v48 }
 0x39f   :  { %10769 = vmatmul.mubr.f32.gmra.mrb[24].mxu1 %v19108_v51 }
 0x3a0   :  { %10771 = vmatprep.mubr.f32.mxu1 %v19109_v30 }
 0x3a3   :  { %10772 = vmatmul.mubr.f32.gmra.mrb[26].mxu1 %v19110_v14 }
 0x3a4   :  { %10774 = vmatprep.mubr.f32.mxu1 %v19111_v21 }
 0x3a7   :  { %10775 = vmatmul.mubr.f32.gmra.mrb[28].mxu1 %v19112_v62 }
 0x3a8   :  { %10777 = vmatprep.mubr.f32.mxu1 %v19113_v58 }
 0x3ab   :  { %10778 = vmatmul.mubr.f32.gmra.mrb[30].mxu1 %v19114_v41 }
 0x3ac   :  { %10812 = vmatprep.mubr.f32.mxu1 %v14542_v40  ;;  %v8977_v40 = vld [vmem:[%s18252_s3 + $0xc8] sm:$0xff] }
 0x3af   :  { %10813 = vmatmul.mubr.f32.vlgmr.msra.gmra.mrb[0].mxu1 %v14539_v16  ;;  %v8976_v16 = vld [vmem:[%s18252_s3 + $0xc0] sm:$0xff] }
 0x3b0   :  { %10815 = vmatprep.mubr.f32.mxu1 %v14552_v45  ;;  %v4378_v45 = vand.u32 4294901760, %v8977_v40 }
 0x3b3   :  { %10816 = vmatmul.mubr.f32.gmra.mrb[2].mxu1 %v14544_v1  ;;  %v4375_v1 = vand.u32 4294901760, %v8976_v16 }
 0x3b4   :  { %10818 = vmatprep.mubr.f32.mxu1 %v14594_v36 }
 0x3b5   :  { %v15400_v36 = vpack.c.bf16 %v4378_v45, %v4375_v1 }
 0x3b7   :  { %10819 = vmatmul.mubr.f32.gmra.mrb[4].mxu1 %v19082_v42  ;;  %19115 = vst [vmem:[#allocation21_spill] sm:$0xff] %v15400_v36  ;;  %12029 = vmatprep.subr.bf16.mxu0 %v15400_v36  ;;  %v4387_v42 = vand.u32 4294901760, %v15425_v61 }
 0x3b8   :  { %10821 = vmatprep.mubr.f32.mxu1 %v19084_v60  ;;  %12031 = vmatpush3.bf16.msra.mxu0 %v15400_v36  ;;  %v4390_v60 = vand.u32 4294901760, %v15430_v52 }
 0x3b9   :  { %12033 = vmatprep.subr.bf16.mxu0 %v15420_v49 }
 0x3ba   :  { %v15440_v31 = vpack.c.bf16 %v4390_v60, %v4387_v42 }
 0x3bb   :  { %10822 = vmatmul.mubr.f32.gmra.mrb[6].mxu1 %v19086_v19  ;;  %v15446_v19 = vld [vmem:[%s18252_s3 + $0xf0] sm:$0xff] }
 0x3bc   :  { %10824 = vmatprep.mubr.f32.mxu1 %v19087_v17  ;;  %12035 = vmatpush3.bf16.msra.mxu0 %v15420_v49  ;;  %19117 = vst [vmem:[#allocation24_spill] sm:$0xff] %v15440_v31  ;;  %v15451_v17 = vld [vmem:[%s18252_s3 + $0xf8] sm:$0xff]  ;;  %v4393_v47 = vand.u32 4294901760, %v15446_v19  ;;  %s2163_s3 = sld [smem:[#allocation2]] }
 0x3bd   :  { %12037 = vmatprep.subr.bf16.mxu0 %v15440_v31 }
 0x3bf   :  { %10825 = vmatmul.mubr.f32.gmra.mrb[8].mxu1 %v19089_v9  ;;  %v4396_v9 = vand.u32 4294901760, %v15451_v17 }
 0x3c0   :  { %10827 = vmatprep.mubr.f32.mxu1 %v19090_v59  ;;  %12039 = vmatpush3.bf16.msra.mxu0 %v15440_v31 }
 0x3c1   :  { %v15460_v59 = vpack.c.bf16 %v4396_v9, %v4393_v47 }
 0x3c3   :  { %10828 = vmatmul.mubr.f32.gmra.mrb[10].mxu1 %v19092_v26  ;;  %19118 = vst [vmem:[#allocation5_spill] sm:$0xff] %v15460_v59  ;;  %12041 = vmatprep.subr.bf16.mxu0 %v15460_v59  ;;  %v15472_v26 = vsub.f32 %v15243_v35, %v4354_v18  ;;  %v15488_v35 = vsub.f32 %v15248_v0, %v4357_v33 }
 0x3c4   :  { %10830 = vmatprep.mubr.f32.mxu1 %v19093_v39  ;;  %12043 = vmatpush3.bf16.msra.mxu0 %v15460_v59  ;;  %v18511_v39 = vand.u32 4294901760, %v15467_v15  ;;  %v15493_v18 = vsub.f32 %v15256_v20, %v4360_v11  ;;  %v15508_v0 = vsub.f32 %v15290_v8, %v4369_v22  ;;  %v15515_v11 = vsub.f32 %v15295_v37, %v4372_v57 }
 0x3c5   :  { %19120 = vst [vmem:[#allocation25_spill] sm:$0xff] %v15472_v26  ;;  %v18510_v10 = vand.u32 4294901760, %v15472_v26  ;;  %19121 = vst [vmem:[#allocation28_spill] sm:$0xff] %v15488_v35  ;;  %v18509_v33 = vand.u32 4294901760, %v15488_v35  ;;  %v15524_v8 = vstv %s2163_s3 }
 0x3c6   :  { %19122 = vst [vmem:[#allocation6_spill] sm:$0xff] %v15493_v18  ;;  %v18508_v20 = vand.u32 4294901760, %v15493_v18  ;;  %v18502_v57 = vand.u32 4294901760, %v15515_v11 }
 0x3c7   :  { %10831 = vmatmul.mubr.f32.gmra.mrb[12].mxu1 %v19095_v46  ;;  %v4755_v46 = vsub.f32 %v15467_v15, %v18511_v39  ;;  %v15529_v22 = vsub.f32 %v15488_v35, %v18509_v33 }
 0x3c8   :  { %10833 = vmatprep.mubr.f32.mxu1 %v19096_v13  ;;  %v4762_v13 = vsub.f32 %v15472_v26, %v18510_v10  ;;  %v15534_v37 = vsub.f32 %v15493_v18, %v18508_v20 }
 0x3c9   :  { %v4756_v25 = vand.u32 4294901760, %v4755_v46 }
 0x3ca   :  { %v4763_v5 = vand.u32 4294901760, %v4762_v13 }
 0x3cb   :  { %10834 = vmatmul.mubr.f32.gmra.mrb[14].mxu1 %v19098_v32  ;;  %v15498_v32 = vsub.f32 %v15262_v55, %v4363_v43  ;;  %v15519_v55 = vpack.c.bf16 %v15472_v26, %v15467_v15 }
 0x3cc   :  { %10836 = vmatprep.mubr.f32.mxu1 %v19099_v27  ;;  %v15482_v12 = vpack.c.bf16 %v4763_v5, %v4756_v25  ;;  %v15503_v27 = vsub.f32 %v15267_v4, %v4366_v50  ;;  %v18503_v50 = vand.u32 4294901760, %v15508_v0 }
 0x3cd   :  { %19123 = vst [vmem:[#allocation27_spill] sm:$0xff] %v15498_v32  ;;  %v18505_v4 = vand.u32 4294901760, %v15498_v32 }
 0x3ce   :  { %12045 = vmatprep.subr.bf16.mxu0 %v15482_v12  ;;  %19124 = vst [vmem:[#allocation34_spill] sm:$0xff] %v15503_v27  ;;  %v18504_v43 = vand.u32 4294901760, %v15503_v27 }
 0x3cf   :  { %10837 = vmatmul.mubr.f32.gmra.mrb[16].mxu1 %v19100_v53 }
 0x3d0   :  { %10839 = vmatprep.mubr.f32.mxu1 %v19101_v2  ;;  %v15540_v2 = vsub.f32 %v15498_v32, %v18505_v4 }
 0x3d3   :  { %10840 = vmatmul.mubr.f32.gmra.mrb[18].mxu1 %v19102_v44  ;;  %v15545_v44 = vsub.f32 %v15503_v27, %v18504_v43 }
 0x3d4   :  { %10842 = vmatprep.mubr.f32.mxu1 %v19103_v34  ;;  %v15547_v34 = vsub.f32 %v8976_v16, %v4375_v1 }
 0x3d7   :  { %10843 = vmatmul.mubr.f32.gmra.mrb[20].mxu1 %v19104_v54 }
 0x3d8   :  { %10845 = vmatprep.mubr.f32.mxu1 %v19105_v6 }
 0x3db   :  { %10846 = vmatmul.mubr.f32.gmra.mrb[22].mxu1 %v19106_v28  ;;  %v15555_v28 = vsub.f32 %v15508_v0, %v18503_v50  ;;  %v15589_v50 = vsub.f32 %v15405_v3, %v4381_v23  ;;  %v15617_v23 = vsub.f32 %v15446_v19, %v4393_v47 }
 0x3dc   :  { %10848 = vmatprep.mubr.f32.mxu1 %v19107_v48  ;;  %v15557_v48 = vsub.f32 %v8977_v40, %v4378_v45  ;;  %v18506_v45 = vand.u32 4294901760, %v15547_v34 }
 0x3dd   :  { %19125 = vst [vmem:[#allocation7_spill] sm:$0xff] %v15589_v50  ;;  %19129 = vst [vmem:[#allocation44_spill] sm:$0xff] %v15617_v23 }
 0x3de   :  { %v15607_v3 = vsub.f32 %v15547_v34, %v18506_v45 }
 0x3df   :  { %10849 = vmatmul.mubr.f32.gmra.mrb[24].mxu1 %v19108_v51 }
 0x3e0   :  { %10851 = vmatprep.mubr.f32.mxu1 %v19109_v30  ;;  %v4812_v10 = vand.u32 4294901760, %v15607_v3 }
 0x3e3   :  { %10852 = vmatmul.mubr.f32.gmra.mrb[26].mxu1 %v19110_v14 }
 0x3e4   :  { %10854 = vmatprep.mubr.f32.mxu1 %v19111_v21 }
 0x3e7   :  { %10855 = vmatmul.mubr.f32.gmra.mrb[28].mxu1 %v19112_v62  ;;  %v15568_v62 = vsub.f32 %v15515_v11, %v18502_v57 }
 0x3e8   :  { %10857 = vmatprep.mubr.f32.mxu1 %v19113_v58  ;;  %v15572_v58 = vpack.c.bf16 %v15493_v18, %v15488_v35 }
 0x3eb   :  { %10858 = vmatmul.mubr.f32.gmra.mrb[30].mxu1 %v19114_v41 }
 0x482   :  { %v10814_v53 = vpop.f32.mrb[0].mxu1 }
 0x483   :  { %v15550_v54 = vadd.f32 %v10814_v53, %v15524_v8  ;;  %v3949_v6 = vpop.f32.mrb[1].mxu1  ;;  %v18507_v53 = vand.u32 4294901760, %v15557_v48 }
 0x484   :  { %v15560_v51 = vadd.f32 %v3949_v6, %v15524_v8 }
 0x485   :  { %v4172_v14 = vmin.f32 %v15550_v54, 0.0  ;;  %vm4140_vm1 = vcmp.gt.f32.partialorder %v15550_v54, 0.0 }
 0x486   :  { %v4171_v41 = vmin.f32 %v15560_v51, 0.0  ;;  %v10817_v16 = vpop.f32.mrb[2].mxu1  ;;  %vm4139_vm2 = vcmp.gt.f32.partialorder %v15560_v51, 0.0 }
 0x487   :  { %v4205_v46 = vmul.f32 1.442695, %v4172_v14  ;;  %v15579_v13 = vadd.f32 %v10817_v16, %v15524_v8  ;;  %v3961_v25 = vpop.f32.mrb[3].mxu1  ;;  %v15594_v14 = vsub.f32 %v15410_v56, %v4384_v24  ;;  %v15612_v56 = vsub.f32 %v15430_v52, %v4390_v60 }
 0x488   :  { %v4203_v6 = vmul.f32 1.442695, %v4171_v41  ;;  %v15584_v57 = vadd.f32 %v3961_v25, %v15524_v8  ;;  %v15601_v41 = vsub.f32 %v15425_v61, %v4387_v42  ;;  %v15633_v52 = vsub.f32 %v15557_v48, %v18507_v53 }
 0x489   :  { %19126 = vst [vmem:[#allocation33_spill] sm:$0xff] %v15594_v14  ;;  %13245 = vpow2.f32 %v4205_v46  ;;  %v4174_v16 = vmin.f32 %v15579_v13, 0.0  ;;  %19128 = vst [vmem:[#allocation40_spill] sm:$0xff] %v15612_v56  ;;  %v15625_v46 = vsub.f32 %v15451_v17, %v4396_v9  ;;  %v18512_v60 = vand.u32 4294901760, %v15589_v50 }
 0x48a   :  { %19127 = vst [vmem:[#allocation35_spill] sm:$0xff] %v15601_v41  ;;  %v4173_v25 = vmin.f32 %v15584_v57, 0.0  ;;  %v10820_v4 = vpop.f32.mrb[4].mxu1  ;;  %13247 = vpow2.f32 %v4203_v6  ;;  %v18513_v19 = vand.u32 4294901760, %v15594_v14  ;;  %v18514_v6 = vand.u32 4294901760, %v15601_v41 }
 0x48b   :  { %v4209_v24 = vmul.f32 1.442695, %v4174_v16  ;;  %v15620_v61 = vadd.f32 %v10820_v4, %v15524_v8  ;;  %v3973_v42 = vpop.f32.mrb[5].mxu1  ;;  %19130 = vst [vmem:[#allocation47_spill] sm:$0xff] %v15625_v46  ;;  %v15641_v17 = vpack.c.bf16 %v15503_v27, %v15498_v32  ;;  %v18518_v53 = vand.u32 4294901760, %v15617_v23 }
 0x48c   :  { %v15628_v45 = vadd.f32 %v3973_v42, %v15524_v8  ;;  %v4207_v47 = vmul.f32 1.442695, %v4173_v25  ;;  %v18516_v42 = vand.u32 4294901760, %v15612_v56  ;;  %v18521_v39 = vand.u32 4294901760, %v15625_v46 }
 0x48d   :  { %v4176_v4 = vmin.f32 %v15620_v61, 0.0  ;;  %13249 = vpow2.f32 %v4209_v24  ;;  %v4819_v24 = vand.u32 4294901760, %v15633_v52  ;;  %v4825_v1 = vsub.f32 %v15589_v50, %v18512_v60 }
 0x48e   :  { %v4175_v9 = vmin.f32 %v15628_v45, 0.0  ;;  %v10823_v16 = vpop.f32.mrb[6].mxu1  ;;  %13251 = vpow2.f32 %v4207_v47  ;;  %v4839_v3 = vsub.f32 %v15601_v41, %v18514_v6  ;;  %v4846_v52 = vsub.f32 %v15612_v56, %v18516_v42 }
 0x48f   :  { %v4213_v20 = vmul.f32 1.442695, %v4176_v4  ;;  %v15647_v33 = vadd.f32 %v10823_v16, %v15524_v8  ;;  %v3985_v25 = vpop.f32.mrb[7].mxu1  ;;  %v4832_v16 = vsub.f32 %v15594_v14, %v18513_v19  ;;  %v4853_v47 = vsub.f32 %v15617_v23, %v18518_v53 }
 0x490   :  { %v4211_v43 = vmul.f32 1.442695, %v4175_v9  ;;  %v15652_v5 = vadd.f32 %v3985_v25, %v15524_v8  ;;  %v4826_v42 = vand.u32 4294901760, %v4825_v1  ;;  %v4840_v53 = vand.u32 4294901760, %v4839_v3 }
 0x491   :  { %v4178_v4 = vmin.f32 %v15647_v33, 0.0  ;;  %13253 = vpow2.f32 %v4213_v20  ;;  %v4860_v20 = vsub.f32 %v15625_v46, %v18521_v39  ;;  %v4847_v39 = vand.u32 4294901760, %v4846_v52 }
 0x492   :  { %v4177_v9 = vmin.f32 %v15652_v5, 0.0  ;;  %v10826_v25 = vpop.f32.mrb[8].mxu1  ;;  %13255 = vpow2.f32 %v4211_v43  ;;  %v4854_v1 = vand.u32 4294901760, %v4853_v47  ;;  %v19134_v52 = vand.u32 4294901760, %v15545_v44 }
 0x493   :  { %v13246_v60 = vpop.eup %13245  ;;  %v4217_v40 = vmul.f32 1.442695, %v4178_v4  ;;  %v15673_v19 = vadd.f32 %v10826_v25, %v15524_v8  ;;  %v3997_v21 = vpop.f32.mrb[9].mxu1  ;;  %v4833_v4 = vand.u32 4294901760, %v4832_v16  ;;  %vm4142_vm3 = vcmp.gt.f32.partialorder %v15579_v13, 0.0 }
 0x494   :  { %v8937_v6 = vadd.f32 -1.0, %v13246_v60  ;;  %v4215_v30 = vmul.f32 1.442695, %v4177_v9  ;;  %v15679_v27 = vadd.f32 %v3997_v21, %v15524_v8  ;;  %v13248_v32 = vpop.eup %13247  ;;  %v4861_v9 = vand.u32 4294901760, %v4860_v20 }
 0x495   :  { %v4180_v43 = vmin.f32 %v15673_v19, 0.0  ;;  %13257 = vpow2.f32 %v4217_v40  ;;  %v8936_v15 = vadd.f32 -1.0, %v13248_v32  ;;  %v19131_v40 = vand.u32 4294901760, %v15529_v22 }
 0x496   :  { %v4300_v25 = vsel %vm4140_vm1, %v15550_v54, %v8937_v6  ;;  %v4179_v18 = vmin.f32 %v15679_v27, 0.0  ;;  %v10829_v35 = vpop.f32.mrb[10].mxu1  ;;  %13259 = vpow2.f32 %v4215_v30  ;;  %v19132_v6 = vand.u32 4294901760, %v15534_v37 }
 0x497   :  { %v15686_v60 = vadd.f32 %v10829_v35, %v15524_v8  ;;  %v4009_v21 = vpop.f32.mrb[11].mxu1  ;;  %v13250_v26 = vpop.eup %13249  ;;  %v4221_v59 = vmul.f32 1.442695, %v4180_v43  ;;  %v15691_v3 = vand.u32 4294901760, %v4300_v25  ;;  %v19133_v35 = vand.u32 4294901760, %v15540_v2 }
 0x498   :  { %v15689_v16 = vadd.f32 %v4009_v21, %v15524_v8  ;;  %v4219_v54 = vmul.f32 1.442695, %v4179_v18  ;;  %v15697_v30 = vpack.c.bf16 %v19132_v6, %v19131_v40  ;;  %v19135_v43 = vand.u32 4294901760, %v15555_v28  ;;  %v13252_v40 = vpop.eup %13251 }
 0x499   :  { %v15703_v47 = vpack.c.bf16 %v19134_v52, %v19133_v35  ;;  %v4182_v32 = vmin.f32 %v15686_v60, 0.0  ;;  %v19136_v21 = vand.u32 4294901760, %v15568_v62  ;;  %v15712_v22 = vpack.c.bf16 %v4819_v24, %v4812_v10 }
 0x49a   :  { %v10832_v20 = vpop.f32.mrb[12].mxu1  ;;  %v15714_v37 = vpack.c.bf16 %v4833_v4, %v4826_v42  ;;  %v8939_v2 = vadd.f32 -1.0, %v13250_v26  ;;  %v15717_v6 = vpack.c.bf16 %v4847_v39, %v4840_v53  ;;  %v15719_v35 = vpack.c.bf16 %v4861_v9, %v4854_v1 }
 0x49b   :  { %v15710_v18 = vpack.c.bf16 %v19136_v21, %v19135_v43  ;;  %v4021_v44 = vpop.f32.mrb[13].mxu1  ;;  %v13254_v52 = vpop.eup %13253  ;;  %v4299_v28 = vsel %vm4139_vm2, %v15560_v51, %v8936_v15  ;;  %13261 = vpow2.f32 %v4221_v59  ;;  %v4181_v10 = vmin.f32 %v15689_v16, 0.0 }
 0x49c   :  { %v13256_v62 = vpop.eup %13255  ;;  %v15725_v42 = vsub.f32 %v4300_v25, %v15691_v3  ;;  %13263 = vpow2.f32 %v4219_v54  ;;  %v4225_v24 = vmul.f32 1.442695, %v4182_v32  ;;  %v15728_v26 = vadd.f32 %v10832_v20, %v15524_v8 }
 0x49d   :  { %vm4141_vm4 = vcmp.gt.f32.partialorder %v15584_v57, 0.0  ;;  %v8938_v39 = vadd.f32 -1.0, %v13252_v40  ;;  %vm4144_vm5 = vcmp.gt.f32.partialorder %v15620_v61, 0.0  ;;  %vm4143_vm6 = vcmp.gt.f32.partialorder %v15628_v45, 0.0 }
 0x49e   :  { %19137 = vst [vmem:[#allocation13_spill] sm:$0xff] %v15725_v42  ;;  %v10835_v15 = vpop.f32.mrb[14].mxu1  ;;  %v4302_v59 = vsel %vm4142_vm3, %v15579_v13, %v8939_v2  ;;  %v8941_v51 = vadd.f32 -1.0, %v13254_v52  ;;  %vm4146_vm7 = vcmp.gt.f32.partialorder %v15647_v33, 0.0  ;;  %v4223_v53 = vmul.f32 1.442695, %v4181_v10 }
 0x49f   :  { %v4033_v4 = vpop.f32.mrb[15].mxu1  ;;  %v13258_v25 = vpop.eup %13257  ;;  %v15735_v1 = vand.u32 4294901760, %v4299_v28  ;;  %v8940_v9 = vadd.f32 -1.0, %v13256_v62  ;;  %vm4145_vm8 = vcmp.gt.f32.partialorder %v15652_v5, 0.0  ;;  %v4184_v54 = vmin.f32 %v15728_v26, 0.0 }
 0x4a0   :  { %v13260_v32 = vpop.eup %13259  ;;  %13265 = vpow2.f32 %v4225_v24  ;;  %v15741_v43 = vadd.f32 %v4021_v44, %v15524_v8  ;;  %v15744_v13 = vadd.f32 %v10835_v15, %v15524_v8  ;;  %v15746_v21 = vand.u32 4294901760, %v4302_v59 }
 0x4a1   :  { %v4301_v40 = vsel %vm4141_vm4, %v15584_v57, %v8938_v39  ;;  %v4229_v2 = vmul.f32 1.442695, %v4184_v54  ;;  %v15752_v52 = vadd.f32 %v4033_v4, %v15524_v8  ;;  %v4304_v62 = vsel %vm4144_vm5, %v15620_v61, %v8941_v51 }
 0x4a2   :  { %v10838_v10 = vpop.f32.mrb[16].mxu1  ;;  %v8943_v44 = vadd.f32 -1.0, %v13258_v25  ;;  %13267 = vpow2.f32 %v4223_v53  ;;  %v4183_v24 = vmin.f32 %v15741_v43, 0.0  ;;  %v15759_v20 = vsub.f32 %v4299_v28, %v15735_v1 }
 0x4a3   :  { %v4045_v15 = vpop.f32.mrb[17].mxu1  ;;  %v4303_v57 = vsel %vm4143_vm6, %v15628_v45, %v8940_v9  ;;  %v8942_v39 = vadd.f32 -1.0, %v13260_v32  ;;  %vm4148_vm9 = vcmp.gt.f32.partialorder %v15673_v19, 0.0  ;;  %v15765_v4 = vand.u32 4294901760, %v4301_v40 }
 0x4a4   :  { %19138 = vst [vmem:[#allocation14_spill] sm:$0xff] %v15759_v20  ;;  %vm4147_vm10 = vcmp.gt.f32.partialorder %v15679_v27, 0.0  ;;  %13269 = vpow2.f32 %v4229_v2  ;;  %v4227_v61 = vmul.f32 1.442695, %v4183_v24  ;;  %v4186_v51 = vmin.f32 %v15744_v13, 0.0 }
 0x4a5   :  { %v13262_v53 = vpop.eup %13261  ;;  %v19139_v25 = vand.u32 4294901760, %v15725_v42  ;;  %v15773_v54 = vsub.f32 %v4302_v59, %v15746_v21  ;;  %v15775_v45 = vand.u32 4294901760, %v4304_v62  ;;  %v4185_v9 = vmin.f32 %v15752_v52, 0.0 }
 0x4a6   :  { %v10841_v32 = vpop.f32.mrb[18].mxu1  ;;  %v13264_v31 = vpop.eup %13263  ;;  %v15778_v49 = vand.u32 4294901760, %v4303_v57  ;;  %v4306_v2 = vsel %vm4146_vm7, %v15647_v33, %v8943_v44  ;;  %13271 = vpow2.f32 %v4227_v61  ;;  %v4233_v24 = vmul.f32 1.442695, %v4186_v51 }
 0x4a7   :  { %v4444_v28 = vsub.f32 %v15725_v42, %v19139_v25  ;;  %19140 = vst [vmem:[#allocation52_spill] sm:$0xff] %v15773_v54  ;;  %19141 = vst [vmem:[#allocation53_spill] sm:$0xff] %v15775_v45  ;;  %v4057_v36 = vpop.f32.mrb[19].mxu1  ;;  %v4305_v59 = vsel %vm4145_vm8, %v15652_v5, %v8942_v39  ;;  %v4231_v25 = vmul.f32 1.442695, %v4185_v9  ;;  %v15787_v63 = vadd.f32 %v10838_v10, %v15524_v8 }
 0x4a8   :  { %v18548_v29 = vand.u32 4294901760, %v15759_v20  ;;  %v15791_v7 = vsub.f32 %v4301_v40, %v15765_v4  ;;  %v8945_v42 = vadd.f32 -1.0, %v13262_v53  ;;  %vm4150_vm11 = vcmp.gt.f32.partialorder %v15686_v60, 0.0 }
 0x4a9   :  { %13273 = vpow2.f32 %v4233_v24  ;;  %v15795_v33 = vadd.f32 %v4045_v15, %v15524_v8  ;;  %v4445_v44 = vand.u32 4294901760, %v4444_v28  ;;  %v15798_v61 = vsub.f32 %v4304_v62, %v15775_v45 }
 0x4aa   :  { %19142 = vst [vmem:[#allocation56_spill] sm:$0xff] %v15791_v7  ;;  %v8944_v5 = vadd.f32 -1.0, %v13264_v31  ;;  %v4188_v10 = vmin.f32 %v15787_v63, 0.0  ;;  %v10844_v39 = vpop.f32.mrb[20].mxu1  ;;  %v13266_v51 = vpop.eup %13265  ;;  %v15802_v9 = vsub.f32 %v4303_v57, %v15778_v49  ;;  %v15804_v40 = vand.u32 4294901760, %v4306_v2 }
 0x4ab   :  { %19143 = vst [vmem:[#allocation55_spill] sm:$0xff] %v15798_v61  ;;  %v15806_v53 = vand.u32 4294901760, %v4305_v59  ;;  %vm4149_vm12 = vcmp.gt.f32.partialorder %v15689_v16, 0.0  ;;  %v4434_v15 = vsub.f32 %v15759_v20, %v18548_v29  ;;  %v4069_v62 = vpop.f32.mrb[21].mxu1  ;;  %13275 = vpow2.f32 %v4231_v25 }
 0x4ac   :  { %19144 = vst [vmem:[#allocation60_spill] sm:$0xff] %v15802_v9  ;;  %19145 = vst [vmem:[#allocation15_spill] sm:$0xff] %v15804_v40  ;;  %v4237_v31 = vmul.f32 1.442695, %v4188_v10  ;;  %v4187_v28 = vmin.f32 %v15795_v33, 0.0  ;;  %v15814_v24 = vadd.f32 %v10841_v32, %v15524_v8  ;;  %v13268_v57 = vpop.eup %13267  ;;  %v4308_v38 = vsel %vm4148_vm9, %v15673_v19, %v8945_v42 }
 0x4ad   :  { %19146 = vst [vmem:[#allocation16_spill] sm:$0xff] %v15806_v53  ;;  %v4435_v46 = vand.u32 4294901760, %v4434_v15  ;;  %v18551_v23 = vand.u32 4294901760, %v15791_v7  ;;  %v15821_v56 = vadd.f32 %v4057_v36, %v15524_v8  ;;  %v4307_v25 = vsel %vm4147_vm10, %v15679_v27, %v8944_v5 }
 0x4ae   :  { %v8947_v10 = vadd.f32 -1.0, %v13266_v51  ;;  %vm4152_vm13 = vcmp.gt.f32.partialorder %v15728_v26, 0.0  ;;  %13277 = vpow2.f32 %v4237_v31  ;;  %v4235_v32 = vmul.f32 1.442695, %v4187_v28  ;;  %v15827_v29 = vpop.f32.mrb[22].mxu1  ;;  %v13270_v20 = vpop.eup %13269 }
 0x4af   :  { %v15830_v19 = vsub.f32 %v4306_v2, %v15804_v40  ;;  %vm4151_vm14 = vcmp.gt.f32.partialorder %v15741_v43, 0.0  ;;  %10892 = vmatprep.mubr.f32.mxu0 %v4435_v46  ;;  %v4190_v36 = vmin.f32 %v15814_v24, 0.0  ;;  %v4454_v27 = vsub.f32 %v15791_v7, %v18551_v23  ;;  %v15837_v42 = vpop.f32.mrb[23].mxu1 }
 0x4b0   :  { %v15840_v5 = vsub.f32 %v4305_v59, %v15806_v53  ;;  %v15842_v51 = vand.u32 4294901760, %v4308_v38  ;;  %v8946_v15 = vadd.f32 -1.0, %v13268_v57  ;;  %vm4154_vm15 = vcmp.gt.f32.partialorder %v15744_v13, 0.0  ;;  %10893 = vmatmul.mubr.f32.vlgmr.msra.gmra.mrb[32].mxu0 %v4445_v44  ;;  %v13272_v46 = vpop.eup %13271 }
 0x4b1   :  { %v4189_v2 = vmin.f32 %v15821_v56, 0.0  ;;  %v15846_v31 = vand.u32 4294901760, %v4307_v25  ;;  %12047 = vmatpush3.bf16.msra.mxu0 %v15482_v12  ;;  %v4241_v28 = vmul.f32 1.442695, %v4190_v36  ;;  %v4455_v23 = vand.u32 4294901760, %v4454_v27 }
 0x4b2   :  { %19147 = vst [vmem:[#allocation17_spill] sm:$0xff] %v15840_v5  ;;  %19148 = vst [vmem:[#allocation18_spill] sm:$0xff] %v15842_v51  ;;  %v18558_v7 = vand.u32 4294901760, %v15773_v54  ;;  %v4310_v59 = vsel %vm4150_vm11, %v15686_v60, %v8947_v10  ;;  %v8949_v41 = vadd.f32 -1.0, %v13270_v20  ;;  %13279 = vpow2.f32 %v4235_v32  ;;  %12049 = vmatprep.subr.bf16.mxu0 %v15697_v30  ;;  %v15857_v44 = vpop.f32.mrb[24].mxu1 }
 0x4b3   :  { %19149 = vst [vmem:[#allocation30_spill] sm:$0xff] %v15846_v31  ;;  %v15854_v57 = vadd.f32 %v10844_v39, %v15524_v8  ;;  %v13274_v14 = vpop.eup %13273  ;;  %10895 = vmatprep.mubr.f32.mxu0 %v4455_v23  ;;  %v4239_v12 = vmul.f32 1.442695, %v4189_v2  ;;  %v15864_v60 = vadd.f32 %v4069_v62, %v15524_v8  ;;  %v15866_v20 = vpop.f32.mrb[25].mxu1  ;;  %v4309_v39 = vsel %vm4149_vm12, %v15689_v16, %v8946_v15 }
 0x4b4   :  { %v4464_v36 = vsub.f32 %v15773_v54, %v18558_v7  ;;  %v8948_v10 = vadd.f32 -1.0, %v13272_v46  ;;  %vm4153_vm0 = vcmp.gt.f32.partialorder %v15752_v52, 0.0  ;;  %13281 = vpow2.f32 %v4241_v28 }
 0x4b5   :  { %v15873_v23 = vsub.f32 %v4308_v38, %v15842_v51  ;;  %v15876_v32 = vsub.f32 %v4307_v25, %v15846_v31  ;;  %v8951_v2 = vadd.f32 -1.0, %v13274_v14  ;;  %12051 = vmatpush3.bf16.msra.mxu0 %v15697_v30  ;;  %v13276_v62 = vpop.eup %13275  ;;  %v15879_v27 = vand.u32 4294901760, %v4310_v59 }
 0x4b6   :  { %v4465_v7 = vand.u32 4294901760, %v4464_v36  ;;  %vm4156_vm1 = vcmp.gt.f32.partialorder %v15787_v63, 0.0  ;;  %v4192_v16 = vmin.f32 %v15854_v57, 0.0  ;;  %v19152_v15 = vand.u32 4294901760, %v15802_v9  ;;  %12053 = vmatprep.subr.bf16.mxu0 %v15703_v47  ;;  %v15887_v38 = vpop.f32.mrb[26].mxu1 }
 0x4b7   :  { %19150 = vst [vmem:[#allocation32_spill] sm:$0xff] %v15876_v32  ;;  %19151 = vst [vmem:[#allocation8_spill] sm:$0xff] %v15879_v27  ;;  %v15889_v25 = vand.u32 4294901760, %v4309_v39  ;;  %v4312_v14 = vsel %vm4152_vm13, %v15728_v26, %v8949_v41  ;;  %13283 = vpow2.f32 %v4239_v12  ;;  %v4191_v30 = vmin.f32 %v15864_v60, 0.0  ;;  %v15895_v28 = vpop.f32.mrb[27].mxu1 }
 0x4b8   :  { %v4474_v46 = vsub.f32 %v15802_v9, %v19152_v15  ;;  %10896 = vmatmul.mubr.f32.gmra.mrb[34].mxu0 %v4465_v7  ;;  %v13278_v36 = vpop.eup %13277  ;;  %v4311_v15 = vsel %vm4151_vm14, %v15741_v43, %v8948_v10  ;;  %v4245_v9 = vmul.f32 1.442695, %v4192_v16  ;;  %v18567_v51 = vand.u32 4294901760, %v15798_v61 }
 0x4b9   :  { %19153 = vst [vmem:[#allocation31_spill] sm:$0xff] %v15889_v25  ;;  %v4314_v50 = vsel %vm4154_vm15, %v15744_v13, %v8951_v2  ;;  %v8950_v41 = vadd.f32 -1.0, %v13276_v62  ;;  %v4243_v26 = vmul.f32 1.442695, %v4191_v30  ;;  %v15906_v7 = vadd.f32 %v15827_v29, %v15524_v8  ;;  %12055 = vmatpush3.bf16.msra.mxu0 %v15703_v47 }
 0x4ba   :  { %v4475_v54 = vand.u32 4294901760, %v4474_v46  ;;  %v8953_v12 = vadd.f32 -1.0, %v13278_v36  ;;  %13285 = vpow2.f32 %v4245_v9  ;;  %v4484_v43 = vsub.f32 %v15798_v61, %v18567_v51  ;;  %v15913_v16 = vpop.f32.mrb[28].mxu1  ;;  %12057 = vmatprep.subr.bf16.mxu0 %v15710_v18 }
 0x4bb   :  { %v18570_v10 = vand.u32 4294901760, %v15840_v5  ;;  %v15917_v13 = vsub.f32 %v4310_v59, %v15879_v27  ;;  %v15919_v29 = vand.u32 4294901760, %v4312_v14  ;;  %v15921_v2 = vand.u32 4294901760, %v4311_v15  ;;  %v15924_v47 = vpop.f32.mrb[29].mxu1 }
 0x4bc   :  { %10898 = vmatprep.mubr.f32.mxu0 %v4475_v54  ;;  %vm4155_vm2 = vcmp.gt.f32.partialorder %v15795_v33, 0.0  ;;  %v13280_v54 = vpop.eup %13279  ;;  %v15926_v9 = vand.u32 4294901760, %v4314_v50  ;;  %v4485_v62 = vand.u32 4294901760, %v4484_v43  ;;  %v4194_v46 = vmin.f32 %v15906_v7, 0.0 }
 0x4bd   :  { %19154 = vst [vmem:[#allocation37_spill] sm:$0xff] %v15917_v13  ;;  %19155 = vst [vmem:[#allocation9_spill] sm:$0xff] %v15919_v29  ;;  %v4494_v30 = vsub.f32 %v15840_v5, %v18570_v10  ;;  %v4313_v59 = vsel %vm4153_vm0, %v15752_v52, %v8950_v41  ;;  %vm4158_vm3 = vcmp.gt.f32.partialorder %v15814_v24, 0.0  ;;  %13287 = vpow2.f32 %v4243_v26  ;;  %12059 = vmatpush3.bf16.msra.mxu0 %v15710_v18 }
 0x4be   :  { %19156 = vst [vmem:[#allocation36_spill] sm:$0xff] %v15921_v2  ;;  %19157 = vst [vmem:[#allocation39_spill] sm:$0xff] %v15926_v9  ;;  %v15938_v36 = vadd.f32 %v15837_v42, %v15524_v8  ;;  %v13282_v43 = vpop.eup %13281  ;;  %v15943_v61 = vsub.f32 %v4309_v39, %v15889_v25  ;;  %v4316_v10 = vsel %vm4156_vm1, %v15787_v63, %v8953_v12  ;;  %10899 = vmatmul.mubr.f32.gmra.mrb[36].mxu0 %v4485_v62  ;;  %v15952_v42 = vpop.f32.mrb[30].mxu1 }
 0x4bf   :  { %v4249_v52 = vmul.f32 1.442695, %v4194_v46  ;;  %v15950_v41 = vadd.f32 %v15857_v44, %v15524_v8  ;;  %12061 = vmatprep.subr.bf16.mxu0 %v15712_v22  ;;  %v8952_v26 = vadd.f32 -1.0, %v13280_v54  ;;  %vm4157_vm4 = vcmp.gt.f32.partialorder %v15821_v56, 0.0  ;;  %v15957_v51 = vpop.f32.mrb[31].mxu1 }
 0x4c0   :  { %v4495_v18 = vand.u32 4294901760, %v4494_v30  ;;  %v4193_v39 = vmin.f32 %v15938_v36, 0.0  ;;  %v15960_v63 = vsub.f32 %v4312_v14, %v15919_v29  ;;  %v15963_v12 = vsub.f32 %v4311_v15, %v15921_v2 }
 0x4c1   :  { %v15965_v44 = vand.u32 4294901760, %v4313_v59  ;;  %v19161_v62 = vand.u32 4294901760, %v15830_v19  ;;  %v13284_v54 = vpop.eup %13283  ;;  %v15971_v5 = vsub.f32 %v4314_v50, %v15926_v9  ;;  %v15973_v30 = vand.u32 4294901760, %v4316_v10  ;;  %12063 = vmatpush3.bf16.msra.mxu0 %v15712_v22 }
 0x4c2   :  { %19158 = vst [vmem:[#allocation10_spill] sm:$0xff] %v15960_v63  ;;  %19159 = vst [vmem:[#allocation38_spill] sm:$0xff] %v15963_v12  ;;  %v8955_v27 = vadd.f32 -1.0, %v13282_v43  ;;  %10901 = vmatprep.mubr.f32.mxu0 %v4495_v18  ;;  %v4247_v25 = vmul.f32 1.442695, %v4193_v39  ;;  %vm4160_vm5 = vcmp.gt.f32.partialorder %v15854_v57, 0.0  ;;  %13289 = vpow2.f32 %v4249_v52  ;;  %12065 = vmatprep.subr.bf16.mxu0 %v15714_v37 }
 0x4c3   :  { %19160 = vst [vmem:[#allocation42_spill] sm:$0xff] %v15965_v44  ;;  %v4504_v46 = vsub.f32 %v15830_v19, %v19161_v62  ;;  %19162 = vst [vmem:[#allocation11_spill] sm:$0xff] %v15973_v30  ;;  %v4196_v15 = vmin.f32 %v15950_v41, 0.0  ;;  %v18579_v29 = vand.u32 4294901760, %v15876_v32  ;;  %v4315_v50 = vsel %vm4155_vm2, %v15795_v33, %v8952_v26 }
 0x4c4   :  { %13291 = vpow2.f32 %v4247_v25  ;;  %v15985_v43 = vadd.f32 %v15866_v20, %v15524_v8  ;;  %v18582_v22 = vand.u32 4294901760, %v15873_v23  ;;  %v13286_v18 = vpop.eup %13285  ;;  %v8954_v52 = vadd.f32 -1.0, %v13284_v54 }
 0x4c5   :  { %v4505_v14 = vand.u32 4294901760, %v4504_v46  ;;  %v4253_v39 = vmul.f32 1.442695, %v4196_v15  ;;  %v4514_v62 = vsub.f32 %v15876_v32, %v18579_v29  ;;  %v15993_v46 = vadd.f32 %v15887_v38, %v15524_v8  ;;  %12067 = vmatpush3.bf16.msra.mxu0 %v15714_v37 }
 0x4c6   :  { %v15996_v33 = vsub.f32 %v4313_v59, %v15965_v44  ;;  %v15999_v20 = vsub.f32 %v4316_v10, %v15973_v30  ;;  %vm4159_vm6 = vcmp.gt.f32.partialorder %v15864_v60, 0.0  ;;  %v4195_v25 = vmin.f32 %v15985_v43, 0.0  ;;  %12069 = vmatprep.subr.bf16.mxu0 %v15717_v6 }
 0x4c7   :  { %10902 = vmatmul.mubr.f32.gmra.mrb[38].mxu0 %v4505_v14  ;;  %v4524_v26 = vsub.f32 %v15873_v23, %v18582_v22  ;;  %v16007_v54 = vand.u32 4294901760, %v4315_v50  ;;  %v4318_v38 = vsel %vm4158_vm3, %v15814_v24, %v8955_v27  ;;  %v8957_v59 = vadd.f32 -1.0, %v13286_v18  ;;  %v13288_v10 = vpop.eup %13287 }
 0x4c8   :  { %19163 = vst [vmem:[#allocation41_spill] sm:$0xff] %v15996_v33  ;;  %19164 = vst [vmem:[#allocation45_spill] sm:$0xff] %v15999_v20  ;;  %v4515_v14 = vand.u32 4294901760, %v4514_v62  ;;  %13293 = vpow2.f32 %v4253_v39  ;;  %v4251_v15 = vmul.f32 1.442695, %v4195_v25  ;;  %v4198_v32 = vmin.f32 %v15993_v46, 0.0 }
 0x4c9   :  { %19165 = vst [vmem:[#allocation12_spill] sm:$0xff] %v16007_v54  ;;  %v4525_v29 = vand.u32 4294901760, %v4524_v26  ;;  %v4317_v37 = vsel %vm4157_vm4, %v15821_v56, %v8954_v52  ;;  %vm4161_vm7 = vcmp.gt.f32.partialorder %v15938_v36, 0.0  ;;  %v18583_v22 = vand.u32 4294901760, %v15943_v61  ;;  %12071 = vmatpush3.bf16.msra.mxu0 %v15717_v6 }
 0x4ca   :  { %10904 = vmatprep.mubr.f32.mxu0 %v4515_v14  ;;  %v16021_v24 = vadd.f32 %v15895_v28, %v15524_v8  ;;  %v16023_v27 = vand.u32 4294901760, %v4318_v38  ;;  %13295 = vpow2.f32 %v4251_v15  ;;  %v4257_v18 = vmul.f32 1.442695, %v4198_v32  ;;  %12073 = vmatprep.subr.bf16.mxu0 %v15719_v35 }
 0x4cb   :  { %10905 = vmatmul.mubr.f32.gmra.mrb[40].mxu0 %v4525_v29  ;;  %v18584_v39 = vand.u32 4294901760, %v15917_v13  ;;  %v16027_v62 = vsub.f32 %v4315_v50, %v16007_v54  ;;  %v8956_v56 = vadd.f32 -1.0, %v13288_v10  ;;  %vm4162_vm8 = vcmp.gt.f32.partialorder %v15906_v7, 0.0 }
 0x4cc   :  { %19166 = vst [vmem:[#allocation43_spill] sm:$0xff] %v16023_v27  ;;  %v4534_v52 = vsub.f32 %v15943_v61, %v18583_v22  ;;  %v4197_v28 = vmin.f32 %v16021_v24, 0.0  ;;  %v16035_v25 = vand.u32 4294901760, %v4317_v37  ;;  %v4320_v32 = vsel %vm4160_vm5, %v15854_v57, %v8957_v59  ;;  %v13290_v50 = vpop.eup %13289 }
 0x4cd   :  { %13297 = vpow2.f32 %v4257_v18  ;;  %v4544_v29 = vsub.f32 %v15917_v13, %v18584_v39  ;;  %v16046_v10 = vadd.f32 %v15913_v16, %v15524_v8  ;;  %v18585_v6 = vand.u32 4294901760, %v15963_v12  ;;  %12075 = vmatpush3.bf16.msra.mxu0 %v15719_v35 }
 0x4ce   :  { %19167 = vst [vmem:[#allocation48_spill] sm:$0xff] %v16035_v25  ;;  %v4535_v26 = vand.u32 4294901760, %v4534_v52  ;;  %v4255_v14 = vmul.f32 1.442695, %v4197_v28  ;;  %v13292_v15 = vpop.eup %13291  ;;  %v16050_v22 = vsub.f32 %v4318_v38, %v16023_v27  ;;  %v16054_v59 = vadd.f32 %v15924_v47, %v15524_v8  ;;  %12077 = vmatprep.subr.bf16.mxu0 %v15519_v55 }
 0x4cf   :  { %v4545_v57 = vand.u32 4294901760, %v4544_v29  ;;  %v18588_v18 = vand.u32 4294901760, %v15960_v63  ;;  %v16057_v39 = vand.u32 4294901760, %v4320_v32  ;;  %v4319_v16 = vsel %vm4159_vm6, %v15864_v60, %v8956_v56 }
 0x4d0   :  { %v8958_v52 = vadd.f32 -1.0, %v13292_v15  ;;  %10907 = vmatprep.mubr.f32.mxu0 %v4535_v26  ;;  %13299 = vpow2.f32 %v4255_v14  ;;  %v8959_v38 = vadd.f32 -1.0, %v13290_v50  ;;  %vm4164_vm9 = vcmp.gt.f32.partialorder %v15950_v41, 0.0 }
 0x4d1   :  { %19168 = vst [vmem:[#allocation46_spill] sm:$0xff] %v16057_v39  ;;  %10908 = vmatmul.mubr.f32.gmra.mrb[42].mxu0 %v4545_v57  ;;  %v4200_v47 = vmin.f32 %v16046_v10, 0.0  ;;  %v4554_v28 = vsub.f32 %v15963_v12, %v18585_v6  ;;  %v4199_v29 = vmin.f32 %v16054_v59, 0.0  ;;  %v16071_v60 = vsub.f32 %v4317_v37, %v16035_v25 }
 0x4d2   :  { %v4321_v35 = vsel %vm4161_vm7, %v15938_v36, %v8958_v52  ;;  %v4564_v56 = vsub.f32 %v15960_v63, %v18588_v18  ;;  %v16081_v50 = vadd.f32 %v15952_v42, %v15524_v8  ;;  %v13294_v26 = vpop.eup %13293  ;;  %v16083_v14 = vand.u32 4294901760, %v4319_v16 }
 0x4d3   :  { %19169 = vst [vmem:[#allocation50_spill] sm:$0xff] %v16071_v60  ;;  %vm4163_vm10 = vcmp.gt.f32.partialorder %v15985_v43, 0.0  ;;  %v4261_v15 = vmul.f32 1.442695, %v4200_v47  ;;  %v4555_v37 = vand.u32 4294901760, %v4554_v28  ;;  %v16087_v57 = vsub.f32 %v4320_v32, %v16057_v39 }
 0x4d4   :  { %19170 = vst [vmem:[#allocation49_spill] sm:$0xff] %v16083_v14  ;;  %v4259_v6 = vmul.f32 1.442695, %v4199_v29  ;;  %v4565_v36 = vand.u32 4294901760, %v4564_v56  ;;  %v4202_v52 = vmin.f32 %v16081_v50, 0.0  ;;  %v13296_v12 = vpop.eup %13295  ;;  %v4322_v42 = vsel %vm4162_vm8, %v15906_v7, %v8959_v38 }
 0x4d5   :  { %v16093_v18 = vand.u32 4294901760, %v4321_v35  ;;  %13301 = vpow2.f32 %v4261_v15  ;;  %10910 = vmatprep.mubr.f32.mxu0 %v4555_v37  ;;  %v18591_v63 = vand.u32 4294901760, %v15996_v33  ;;  %v8961_v47 = vadd.f32 -1.0, %v13294_v26 }
 0x4d6   :  { %v8960_v28 = vadd.f32 -1.0, %v13296_v12  ;;  %vm4166_vm11 = vcmp.gt.f32.partialorder %v15993_v46, 0.0  ;;  %13303 = vpow2.f32 %v4259_v6  ;;  %10911 = vmatmul.mubr.f32.gmra.mrb[44].mxu0 %v4565_v36  ;;  %v4265_v32 = vmul.f32 1.442695, %v4202_v52 }
 0x4d7   :  { %19171 = vst [vmem:[#allocation54_spill] sm:$0xff] %v16093_v18  ;;  %v13298_v29 = vpop.eup %13297  ;;  %v4574_v56 = vsub.f32 %v15996_v33, %v18591_v63  ;;  %v16102_v7 = vadd.f32 %v15957_v51, %v15524_v8  ;;  %v18596_v38 = vand.u32 4294901760, %v15971_v5  ;;  %v18597_v15 = vand.u32 4294901760, %v16027_v62 }
 0x4d8   :  { %v16107_v12 = vsub.f32 %v4319_v16, %v16083_v14  ;;  %v4323_v6 = vsel %vm4163_vm10, %v15985_v43, %v8960_v28  ;;  %vm4165_vm12 = vcmp.gt.f32.partialorder %v16021_v24, 0.0  ;;  %13305 = vpow2.f32 %v4265_v32 }
 0x4d9   :  { %v16113_v26 = vand.u32 4294901760, %v4322_v42  ;;  %v16116_v37 = vsub.f32 %v4321_v35, %v16093_v18  ;;  %v4575_v8 = vand.u32 4294901760, %v4574_v56  ;;  %v4201_v51 = vmin.f32 %v16102_v7, 0.0 }
 0x4da   :  { %19172 = vst [vmem:[#allocation51_spill] sm:$0xff] %v16107_v12  ;;  %v13300_v36 = vpop.eup %13299  ;;  %v4324_v16 = vsel %vm4164_vm9, %v15950_v41, %v8961_v47  ;;  %v4584_v43 = vsub.f32 %v15971_v5, %v18596_v38  ;;  %v4594_v52 = vsub.f32 %v16027_v62, %v18597_v15  ;;  %v18598_v28 = vand.u32 4294901760, %v15999_v20 }
 0x4db   :  { %19173 = vst [vmem:[#allocation58_spill] sm:$0xff] %v16113_v26  ;;  %19174 = vst [vmem:[#allocation57_spill] sm:$0xff] %v16116_v37  ;;  %v16129_v35 = vand.u32 4294901760, %v4323_v6  ;;  %v8963_v32 = vadd.f32 -1.0, %v13298_v29  ;;  %v8962_v56 = vadd.f32 -1.0, %v13300_v36  ;;  %10913 = vmatprep.mubr.f32.mxu0 %v4575_v8  ;;  %v18599_v47 = vand.u32 4294901760, %v16071_v60 }
 0x4dc   :  { %v4263_v63 = vmul.f32 1.442695, %v4201_v51  ;;  %v4585_v33 = vand.u32 4294901760, %v4584_v43  ;;  %v4595_v13 = vand.u32 4294901760, %v4594_v52  ;;  %v4604_v41 = vsub.f32 %v15999_v20, %v18598_v28 }
 0x4dd   :  { %19175 = vst [vmem:[#allocation59_spill] sm:$0xff] %v16129_v35  ;;  %v16136_v38 = vsub.f32 %v4322_v42, %v16113_v26  ;;  %v4325_v15 = vsel %vm4165_vm12, %v16021_v24, %v8962_v56  ;;  %v18604_v29 = vand.u32 4294901760, %v16050_v22  ;;  %v16142_v8 = vand.u32 4294901760, %v4324_v16 }
 0x4de   :  { %13307 = vpow2.f32 %v4263_v63  ;;  %v16144_v51 = vand.u32 4294901760, %v4325_v15  ;;  %10914 = vmatmul.mubr.f32.gmra.mrb[46].mxu0 %v4585_v33  ;;  %v4614_v36 = vsub.f32 %v16071_v60, %v18599_v47  ;;  %v18605_v43 = vand.u32 4294901760, %v16107_v12 }
 0x4df   :  { %19176 = vst [vmem:[#allocation61_spill] sm:$0xff] %v16142_v8  ;;  %v13302_v42 = vpop.eup %13301  ;;  %v16151_v52 = vsub.f32 %v4323_v6, %v16129_v35  ;;  %v4326_v63 = vsel %vm4166_vm11, %v15993_v46, %v8963_v32  ;;  %10916 = vmatprep.mubr.f32.mxu0 %v4595_v13  ;;  %v4605_v24 = vand.u32 4294901760, %v4604_v41  ;;  %v18608_v56 = vand.u32 4294901760, %v16116_v37 }
 0x4e0   :  { %19177 = vst [vmem:[#allocation62_spill] sm:$0xff] %v16144_v51  ;;  %v13304_v28 = vpop.eup %13303  ;;  %v4615_v33 = vand.u32 4294901760, %v4614_v36  ;;  %v4624_v47 = vsub.f32 %v16050_v22, %v18604_v29  ;;  %v4634_v60 = vsub.f32 %v16107_v12, %v18605_v43  ;;  %vm4168_vm13 = vcmp.gt.f32.partialorder %v16046_v10, 0.0 }
 0x4e1   :  { %19178 = vst [vmem:[#allocation63_spill] sm:$0xff] %v16151_v52  ;;  %v8965_v20 = vadd.f32 -1.0, %v13302_v42  ;;  %v8964_v46 = vadd.f32 -1.0, %v13304_v28  ;;  %v16165_v32 = vand.u32 4294901760, %v4326_v63  ;;  %v16168_v41 = vsub.f32 %v4325_v15, %v16144_v51 }
 0x4e2   :  { %v13306_v13 = vpop.eup %13305  ;;  %vm4167_vm14 = vcmp.gt.f32.partialorder %v16054_v59, 0.0  ;;  %10917 = vmatmul.mubr.f32.gmra.mrb[48].mxu0 %v4605_v24  ;;  %v4635_v43 = vand.u32 4294901760, %v4634_v60  ;;  %v4654_v42 = vsub.f32 %v16116_v37, %v18608_v56  ;;  %v18611_v28 = vand.u32 4294901760, %v16151_v52 }
 0x4e3   :  { %19179 = vst [vmem:[#allocation64_spill] sm:$0xff] %v16165_v32  ;;  %v4327_v29 = vsel %vm4167_vm14, %v16054_v59, %v8964_v46  ;;  %10919 = vmatprep.mubr.f32.mxu0 %v4615_v33  ;;  %v16178_v6 = vsub.f32 %v4324_v16, %v16142_v8  ;;  %v4625_v12 = vand.u32 4294901760, %v4624_v47  ;;  %v19181_v24 = vand.u32 4294901760, %v16087_v57 }
 0x4e4   :  { %v16180_v15 = vand.u32 4294901760, %v4327_v29  ;;  %v4328_v59 = vsel %vm4168_vm13, %v16046_v10, %v8965_v20  ;;  %v8967_v60 = vadd.f32 -1.0, %v13306_v13  ;;  %v16189_v33 = vsub.f32 %v4326_v63, %v16165_v32 }
 0x4e5   :  { %v4644_v36 = vsub.f32 %v16087_v57, %v19181_v24  ;;  %vm4170_vm15 = vcmp.gt.f32.partialorder %v16081_v50, 0.0  ;;  %v19182_v16 = vand.u32 4294901760, %v16136_v38  ;;  %v4655_v24 = vand.u32 4294901760, %v4654_v42 }
 0x4e6   :  { %19180 = vst [vmem:[#allocation65_spill] sm:$0xff] %v16180_v15  ;;  %10920 = vmatmul.mubr.f32.gmra.mrb[50].mxu0 %v4625_v12  ;;  %v16196_v56 = vsub.f32 %v4327_v29, %v16180_v15  ;;  %v4674_v20 = vsub.f32 %v16151_v52, %v18611_v28  ;;  %v18614_v10 = vand.u32 4294901760, %v16168_v41  ;;  %v16202_v63 = vand.u32 4294901760, %v4328_v59 }
 0x4e7   :  { %v4664_v46 = vsub.f32 %v16136_v38, %v19182_v16  ;;  %10922 = vmatprep.mubr.f32.mxu0 %v4635_v43  ;;  %v4645_v12 = vand.u32 4294901760, %v4644_v36  ;;  %v18620_v37 = vand.u32 4294901760, %v16178_v6  ;;  %v4330_v16 = vsel %vm4170_vm15, %v16081_v50, %v8967_v60 }
 0x4e8   :  { %v13308_v47 = vpop.eup %13307  ;;  %19183 = vst [vmem:[#allocation66_spill] sm:$0xff] %v16202_v63  ;;  %vm4169_vm0 = vcmp.gt.f32.partialorder %v16102_v7, 0.0  ;;  %v4675_v28 = vand.u32 4294901760, %v4674_v20  ;;  %v4694_v52 = vsub.f32 %v16168_v41, %v18614_v10  ;;  %v18615_v36 = vand.u32 4294901760, %v16196_v56 }
 0x4e9   :  { %v8966_v13 = vadd.f32 -1.0, %v13308_v47  ;;  %v4665_v43 = vand.u32 4294901760, %v4664_v46  ;;  %v16215_v47 = vsub.f32 %v4328_v59, %v16202_v63  ;;  %v16217_v50 = vand.u32 4294901760, %v4330_v16 }
 0x4ea   :  { %10923 = vmatmul.mubr.f32.gmra.mrb[52].mxu0 %v4645_v12  ;;  %v18616_v60 = vand.u32 4294901760, %v16189_v33  ;;  %v4714_v20 = vsub.f32 %v16196_v56, %v18615_v36 }
 0x4eb   :  { %v4329_v29 = vsel %vm4169_vm0, %v16102_v7, %v8966_v13  ;;  %10925 = vmatprep.mubr.f32.mxu0 %v4655_v24  ;;  %19185 = vst [vmem:[#allocation68_spill] sm:$0xff] %v16217_v50  ;;  %v4684_v7 = vsub.f32 %v16178_v6, %v18620_v37  ;;  %v4695_v24 = vand.u32 4294901760, %v4694_v52  ;;  %v16231_v13 = vsub.f32 %v4330_v16, %v16217_v50  ;;  %v19202_v37 = vld [vmem:[#allocation60_spill] sm:$0xff] }
 0x4ec   :  { %v16208_v42 = vand.u32 4294901760, %v4329_v29  ;;  %v4704_v10 = vsub.f32 %v16189_v33, %v18616_v60 }
 0x4ed   :  { %v4685_v12 = vand.u32 4294901760, %v4684_v7  ;;  %v18617_v7 = vand.u32 4294901760, %v16231_v13 }
 0x4ee   :  { %19184 = vst [vmem:[#allocation67_spill] sm:$0xff] %v16208_v42  ;;  %v16224_v46 = vsub.f32 %v4329_v29, %v16208_v42  ;;  %10926 = vmatmul.mubr.f32.gmra.mrb[54].mxu0 %v4665_v43  ;;  %v18619_v29 = vand.u32 4294901760, %v16215_v47  ;;  %v4705_v43 = vand.u32 4294901760, %v4704_v10  ;;  %v12088_v10 = vpack.c.bf16 %v15515_v11, %v15508_v0 }
 0x4ef   :  { %10928 = vmatprep.mubr.f32.mxu0 %v4675_v28  ;;  %v4715_v28 = vand.u32 4294901760, %v4714_v20 }
 0x4f0   :  { %v18618_v59 = vand.u32 4294901760, %v16224_v46  ;;  %v4724_v16 = vsub.f32 %v16215_v47, %v18619_v29  ;;  %v19201_v29 = vld [vmem:[#allocation52_spill] sm:$0xff] }
 0x4f2   :  { %10929 = vmatmul.mubr.f32.gmra.mrb[56].mxu0 %v4685_v12  ;;  %v4734_v52 = vsub.f32 %v16224_v46, %v18618_v59  ;;  %v4725_v60 = vand.u32 4294901760, %v4724_v16  ;;  %v19188_v12 = vld [vmem:[#allocation18_spill] sm:$0xff]  ;;  %v19192_v16 = vld [vmem:[#allocation8_spill] sm:$0xff]  ;;  %v19200_v59 = vld [vmem:[#allocation23_spill] sm:$0xff] }
 0x4f3   :  { %10931 = vmatprep.mubr.f32.mxu0 %v4695_v24  ;;  %v4744_v24 = vsub.f32 %v16231_v13, %v18617_v7  ;;  %v19195_v7 = vld [vmem:[#allocation9_spill] sm:$0xff] }
 0x4f4   :  { %v4735_v36 = vand.u32 4294901760, %v4734_v52  ;;  %v19191_v52 = vld [vmem:[#allocation40_spill] sm:$0xff] }
 0x4f5   :  { %v4745_v20 = vand.u32 4294901760, %v4744_v24  ;;  %v19193_v24 = vld [vmem:[#allocation44_spill] sm:$0xff] }
 0x4f6   :  { %10932 = vmatmul.mubr.f32.gmra.mrb[58].mxu0 %v4705_v43 }
 0x4f7   :  { %10934 = vmatprep.mubr.f32.mxu0 %v4715_v28  ;;  %v19189_v28 = vld [vmem:[#allocation31_spill] sm:$0xff] }
 0x4fa   :  { %10935 = vmatmul.mubr.f32.gmra.mrb[60].mxu0 %v4725_v60 }
 0x4fb   :  { %10937 = vmatprep.mubr.f32.mxu0 %v4735_v36  ;;  %v19187_v36 = vld [vmem:[#allocation33_spill] sm:$0xff] }
 0x4fe   :  { %10938 = vmatmul.mubr.f32.gmra.mrb[62].mxu0 %v4745_v20  ;;  %v19194_v20 = vld [vmem:[#allocation47_spill] sm:$0xff] }
 0x4ff   :  { %10972 = vmatprep.mubr.f32.mxu0 %v15735_v1 }
 0x502   :  { %10973 = vmatmul.mubr.f32.vlgmr.msra.gmra.mrb[32].mxu0 %v15691_v3 }
 0x503   :  { %12079 = vmatpush3.bf16.msra.mxu0 %v15519_v55  ;;  %10975 = vmatprep.mubr.f32.mxu0 %v15765_v4  ;;  %v12092_v55 = vpack.c.bf16 %v15557_v48, %v15547_v34 }
 0x504   :  { %12081 = vmatprep.subr.bf16.mxu0 %v15572_v58 }
 0x506   :  { %10976 = vmatmul.mubr.f32.gmra.mrb[34].mxu0 %v15746_v21 }
 0x507   :  { %10978 = vmatprep.mubr.f32.mxu0 %v15778_v49  ;;  %12083 = vmatpush3.bf16.msra.mxu0 %v15572_v58  ;;  %v19186_v58 = vld [vmem:[#allocation7_spill] sm:$0xff] }
 0x508   :  { %12085 = vmatprep.subr.bf16.mxu0 %v15641_v17  ;;  %v12096_v60 = vpack.c.bf16 %v19187_v36, %v19186_v58 }
 0x50a   :  { %10979 = vmatmul.mubr.f32.gmra.mrb[36].mxu0 %v15775_v45 }
 0x50b   :  { %10981 = vmatprep.mubr.f32.mxu0 %v15806_v53  ;;  %12087 = vmatpush3.bf16.msra.mxu0 %v15641_v17  ;;  %v19190_v17 = vld [vmem:[#allocation35_spill] sm:$0xff] }
 0x50c   :  { %12089 = vmatprep.subr.bf16.mxu0 %v12088_v10  ;;  %v12100_v43 = vpack.c.bf16 %v19191_v52, %v19190_v17 }
 0x50e   :  { %10982 = vmatmul.mubr.f32.gmra.mrb[38].mxu0 %v15804_v40 }
 0x50f   :  { %10984 = vmatprep.mubr.f32.mxu0 %v15846_v31  ;;  %12091 = vmatpush3.bf16.msra.mxu0 %v12088_v10  ;;  %v12104_v10 = vpack.c.bf16 %v19194_v20, %v19193_v24  ;;  %v19232_v31 = vld [vmem:[#allocation27_spill] sm:$0xff] }
 0x510   :  { %12093 = vmatprep.subr.bf16.mxu0 %v12092_v55  ;;  %v19233_v40 = vand.u32 4294901760, %v19232_v31 }
 0x512   :  { %10985 = vmatmul.mubr.f32.gmra.mrb[40].mxu0 %v19188_v12 }
 0x513   :  { %10987 = vmatprep.mubr.f32.mxu0 %v19189_v28  ;;  %12095 = vmatpush3.bf16.msra.mxu0 %v12092_v55  ;;  %v19196_v55 = vld [vmem:[#allocation20_spill] sm:$0xff] }
 0x514   :  { %12097 = vmatprep.subr.bf16.mxu0 %v12096_v60 }
 0x516   :  { %10988 = vmatmul.mubr.f32.gmra.mrb[42].mxu0 %v19192_v16  ;;  %v19228_v16 = vld [vmem:[#allocation6_spill] sm:$0xff] }
 0x517   :  { %10990 = vmatprep.mubr.f32.mxu0 %v15921_v2  ;;  %12099 = vmatpush3.bf16.msra.mxu0 %v12096_v60  ;;  %v19197_v60 = vld [vmem:[#allocation14_spill] sm:$0xff] }
 0x518   :  { %12101 = vmatprep.subr.bf16.mxu0 %v12100_v43  ;;  %v19221_v2 = vld [vmem:[#allocation50_spill] sm:$0xff] }
 0x51a   :  { %10991 = vmatmul.mubr.f32.gmra.mrb[44].mxu0 %v19195_v7  ;;  %v19220_v7 = vld [vmem:[#allocation45_spill] sm:$0xff] }
 0x51b   :  { %10993 = vmatprep.mubr.f32.mxu0 %v15965_v44  ;;  %12103 = vmatpush3.bf16.msra.mxu0 %v12100_v43  ;;  %v19198_v43 = vld [vmem:[#allocation13_spill] sm:$0xff] }
 0x51c   :  { %12105 = vmatprep.subr.bf16.mxu0 %v12104_v10  ;;  %v19230_v12 = vand.u32 4294901760, %v19198_v43 }
 0x51e   :  { %10994 = vmatmul.mubr.f32.gmra.mrb[46].mxu0 %v15926_v9 }
 0x51f   :  { %10996 = vmatprep.mubr.f32.mxu0 %v16007_v54  ;;  %12107 = vmatpush3.bf16.msra.mxu0 %v12104_v10  ;;  %v19199_v10 = vld [vmem:[#allocation56_spill] sm:$0xff]  ;;  %v19218_v54 = vld [vmem:[#allocation25_spill] sm:$0xff] }
 0x520   :  { %12109 = vmatprep.subr.bf16.mxu0 %v19196_v55  ;;  %v19219_v9 = vand.u32 4294901760, %v19218_v54  ;;  %v19226_v54 = vld [vmem:[#allocation28_spill] sm:$0xff] }
 0x522   :  { %10997 = vmatmul.mubr.f32.gmra.mrb[48].mxu0 %v15973_v30 }
 0x523   :  { %10999 = vmatprep.mubr.f32.mxu0 %v16035_v25  ;;  %v19216_v25 = vld [vmem:[#allocation29_spill] sm:$0xff] }
 0x524   :  { %v19217_v30 = vand.u32 4294901760, %v19216_v25  ;;  %v19223_v25 = vld [vmem:[#allocation57_spill] sm:$0xff] }
 0x526   :  { %11000 = vmatmul.mubr.f32.gmra.mrb[50].mxu0 %v16023_v27  ;;  %v19215_v27 = vld [vmem:[#allocation5_spill] sm:$0xff]  ;;  %v12140_v44 = vpack.c.bf16 %v19219_v9, %v19217_v30  ;;  %v19224_v9 = vld [vmem:[#allocation63_spill] sm:$0xff]  ;;  %v19225_v30 = vand.u32 4294901760, %v19197_v60 }
 0x527   :  { %11002 = vmatprep.mubr.f32.mxu0 %v16083_v14  ;;  %v19214_v14 = vld [vmem:[#allocation41_spill] sm:$0xff] }
 0x52a   :  { %11003 = vmatmul.mubr.f32.gmra.mrb[52].mxu0 %v16057_v39  ;;  %v19213_v39 = vld [vmem:[#allocation10_spill] sm:$0xff] }
 0x52b   :  { %11005 = vmatprep.mubr.f32.mxu0 %v16093_v18  ;;  %v19212_v18 = vld [vmem:[#allocation24_spill] sm:$0xff] }
 0x52e   :  { %11006 = vmatmul.mubr.f32.gmra.mrb[54].mxu0 %v16113_v26  ;;  %v19211_v26 = vld [vmem:[#allocation38_spill] sm:$0xff] }
 0x52f   :  { %11008 = vmatprep.mubr.f32.mxu0 %v16129_v35  ;;  %v19210_v35 = vld [vmem:[#allocation37_spill] sm:$0xff] }
 0x532   :  { %11009 = vmatmul.mubr.f32.gmra.mrb[56].mxu0 %v16142_v8  ;;  %v19209_v8 = vld [vmem:[#allocation22_spill] sm:$0xff] }
 0x533   :  { %11011 = vmatprep.mubr.f32.mxu0 %v16144_v51  ;;  %v19208_v51 = vld [vmem:[#allocation21_spill] sm:$0xff] }
 0x536   :  { %11012 = vmatmul.mubr.f32.gmra.mrb[58].mxu0 %v16165_v32  ;;  %v19207_v32 = vld [vmem:[#allocation32_spill] sm:$0xff] }
 0x537   :  { %11014 = vmatprep.mubr.f32.mxu0 %v16180_v15  ;;  %v19206_v15 = vld [vmem:[#allocation19_spill] sm:$0xff] }
 0x53a   :  { %11015 = vmatmul.mubr.f32.gmra.mrb[60].mxu0 %v16202_v63  ;;  %v19203_v63 = vld [vmem:[#allocation26_spill] sm:$0xff] }
 0x53b   :  { %11017 = vmatprep.mubr.f32.mxu0 %v16208_v42  ;;  %v19204_v42 = vld [vmem:[#allocation55_spill] sm:$0xff] }
 0x53e   :  { %11018 = vmatmul.mubr.f32.gmra.mrb[62].mxu0 %v16217_v50  ;;  %v19205_v50 = vld [vmem:[#allocation17_spill] sm:$0xff] }
 0x53f   :  { %11052 = vmatprep.mubr.f32.mxu0 %v19197_v60  ;;  %v19236_v60 = vand.u32 4294901760, %v19201_v29  ;;  %v19241_v31 = vand.u32 4294901760, %v19205_v50 }
 0x542   :  { %11053 = vmatmul.mubr.f32.vlgmr.msra.gmra.mrb[32].mxu0 %v19198_v43 }
 0x543   :  { %12111 = vmatpush3.bf16.msra.mxu0 %v19196_v55  ;;  %11055 = vmatprep.mubr.f32.mxu0 %v19199_v10 }
 0x544   :  { %12113 = vmatprep.subr.bf16.mxu0 %v19200_v59 }
 0x546   :  { %11056 = vmatmul.mubr.f32.gmra.mrb[34].mxu0 %v19201_v29  ;;  %v19252_v29 = vand.u32 4294901760, %v19210_v35 }
 0x547   :  { %11058 = vmatprep.mubr.f32.mxu0 %v19202_v37  ;;  %12115 = vmatpush3.bf16.msra.mxu0 %v19200_v59 }
 0x548   :  { %12117 = vmatprep.subr.bf16.mxu0 %v19203_v63 }
 0x54a   :  { %11059 = vmatmul.mubr.f32.gmra.mrb[36].mxu0 %v19204_v42 }
 0x54b   :  { %11061 = vmatprep.mubr.f32.mxu0 %v19205_v50  ;;  %12119 = vmatpush3.bf16.msra.mxu0 %v19203_v63 }
 0x54c   :  { %12121 = vmatprep.subr.bf16.mxu0 %v19206_v15 }
 0x54e   :  { %11062 = vmatmul.mubr.f32.gmra.mrb[38].mxu0 %v15830_v19 }
 0x54f   :  { %11064 = vmatprep.mubr.f32.mxu0 %v19207_v32  ;;  %12123 = vmatpush3.bf16.msra.mxu0 %v19206_v15  ;;  %v19234_v15 = vld [vmem:[#allocation34_spill] sm:$0xff] }
 0x550   :  { %12125 = vmatprep.subr.bf16.mxu0 %v19208_v51  ;;  %v19235_v53 = vand.u32 4294901760, %v19234_v15  ;;  %v19244_v15 = vand.u32 4294901760, %v15830_v19  ;;  %v19251_v19 = vand.u32 4294901760, %v19191_v52 }
 0x552   :  { %11065 = vmatmul.mubr.f32.gmra.mrb[40].mxu0 %v15873_v23  ;;  %v12148_v45 = vpack.c.bf16 %v19235_v53, %v19233_v40  ;;  %v19242_v40 = vand.u32 4294901760, %v15547_v34  ;;  %v19243_v53 = vand.u32 4294901760, %v15557_v48  ;;  %v19249_v34 = vand.u32 4294901760, %v15943_v61 }
 0x553   :  { %11067 = vmatprep.mubr.f32.mxu0 %v15943_v61  ;;  %12127 = vmatpush3.bf16.msra.mxu0 %v19208_v51  ;;  %v19231_v51 = vand.u32 4294901760, %v19199_v10  ;;  %v19250_v48 = vand.u32 4294901760, %v19190_v17  ;;  %v19255_v61 = vand.u32 4294901760, %v19194_v20  ;;  %v19260_v17 = vand.u32 4294901760, %v19220_v7  ;;  %v16467_v10 = vld [vmem:[%s18254_s5 + $0x20] sm:$0xff] }
 0x554   :  { %12129 = vmatprep.subr.bf16.mxu0 %v19209_v8  ;;  %v19274_v20 = vand.u32 4294901760, %v16231_v13 }
 0x556   :  { %11068 = vmatmul.mubr.f32.gmra.mrb[42].mxu0 %v19210_v35  ;;  %v19258_v35 = vand.u32 4294901760, %v15971_v5 }
 0x557   :  { %11070 = vmatprep.mubr.f32.mxu0 %v19211_v26  ;;  %12131 = vmatpush3.bf16.msra.mxu0 %v19209_v8  ;;  %v19229_v8 = vand.u32 4294901760, %v19228_v16  ;;  %v19266_v16 = vand.u32 4294901760, %v16136_v38 }
 0x558   :  { %12133 = vmatprep.subr.bf16.mxu0 %v19212_v18 }
 0x55a   :  { %11071 = vmatmul.mubr.f32.gmra.mrb[44].mxu0 %v19213_v39 }
 0x55b   :  { %11073 = vmatprep.mubr.f32.mxu0 %v19214_v14  ;;  %12135 = vmatpush3.bf16.msra.mxu0 %v19212_v18  ;;  %v19222_v18 = vld [vmem:[#allocation51_spill] sm:$0xff] }
 0x55c   :  { %12137 = vmatprep.subr.bf16.mxu0 %v19215_v27  ;;  %v19263_v52 = vand.u32 4294901760, %v19222_v18 }
 0x55e   :  { %11074 = vmatmul.mubr.f32.gmra.mrb[46].mxu0 %v15971_v5  ;;  %v19264_v5 = vand.u32 4294901760, %v16087_v57 }
 0x55f   :  { %11076 = vmatprep.mubr.f32.mxu0 %v16027_v62  ;;  %12139 = vmatpush3.bf16.msra.mxu0 %v19215_v27  ;;  %v19227_v27 = vand.u32 4294901760, %v19226_v54 }
 0x560   :  { %12141 = vmatprep.subr.bf16.mxu0 %v12140_v44 }
 0x561   :  { %v12144_v28 = vpack.c.bf16 %v19229_v8, %v19227_v27  ;;  %v19238_v27 = vand.u32 4294901760, %v15508_v0  ;;  %v19245_v0 = vand.u32 4294901760, %v19207_v32  ;;  %v12164_v32 = vpack.c.bf16 %v19251_v19, %v19250_v48  ;;  %v19295_v48 = vld [vmem:[#allocation11_spill] sm:$0xff]  ;;  %v19296_v19 = vld [vmem:[#allocation48_spill] sm:$0xff] }
 0x562   :  { %11077 = vmatmul.mubr.f32.gmra.mrb[48].mxu0 %v19220_v7  ;;  %v19267_v7 = vand.u32 4294901760, %v19224_v9 }
 0x563   :  { %11079 = vmatprep.mubr.f32.mxu0 %v19221_v2 }
 0x566   :  { %11080 = vmatmul.mubr.f32.gmra.mrb[50].mxu0 %v16050_v22 }
 0x567   :  { %11082 = vmatprep.mubr.f32.mxu0 %v19222_v18  ;;  %v19270_v18 = vand.u32 4294901760, %v16189_v33 }
 0x56a   :  { %11083 = vmatmul.mubr.f32.gmra.mrb[52].mxu0 %v16087_v57  ;;  %v19271_v57 = vand.u32 4294901760, %v16196_v56 }
 0x56b   :  { %11085 = vmatprep.mubr.f32.mxu0 %v19223_v25 }
 0x56e   :  { %11086 = vmatmul.mubr.f32.gmra.mrb[54].mxu0 %v16136_v38  ;;  %v19273_v38 = vand.u32 4294901760, %v16224_v46 }
 0x56f   :  { %11088 = vmatprep.mubr.f32.mxu0 %v19224_v9 }
 0x572   :  { %11089 = vmatmul.mubr.f32.gmra.mrb[56].mxu0 %v16178_v6 }
 0x573   :  { %11091 = vmatprep.mubr.f32.mxu0 %v16168_v41 }
 0x576   :  { %11092 = vmatmul.mubr.f32.gmra.mrb[58].mxu0 %v16189_v33 }
 0x577   :  { %11094 = vmatprep.mubr.f32.mxu0 %v16196_v56  ;;  %v16452_v56 = vld [vmem:[%s18254_s5 + $0x10] sm:$0xff] }
 0x57a   :  { %11095 = vmatmul.mubr.f32.gmra.mrb[60].mxu0 %v16215_v47 }
 0x57b   :  { %11097 = vmatprep.mubr.f32.mxu0 %v16224_v46  ;;  %v16460_v46 = vld [vmem:[%s18254_s5 + $0x18] sm:$0xff] }
 0x57c   :  { %v6549_v43 = vand.u32 4294901760, %v16460_v46 }
 0x57e   :  { %11098 = vmatmul.mubr.f32.gmra.mrb[62].mxu0 %v16231_v13  ;;  %v6546_v13 = vand.u32 4294901760, %v16452_v56 }
 0x57f   :  { %11132 = vmatprep.mubr.f32.mxu0 %v19225_v30  ;;  %v19237_v30 = vand.u32 4294901760, %v19202_v37  ;;  %v12156_v37 = vpack.c.bf16 %v19243_v53, %v19242_v40  ;;  %v19284_v40 = vld [vmem:[#allocation18_spill] sm:$0xff]  ;;  %v19285_v53 = vld [vmem:[#allocation31_spill] sm:$0xff] }
 0x580   :  { %v16489_v54 = vpack.c.bf16 %v6549_v43, %v6546_v13 }
 0x582   :  { %11133 = vmatmul.mubr.f32.vlgmr.msra.gmra.mrb[32].mxu0 %v19230_v12  ;;  %v19256_v12 = vand.u32 4294901760, %v19213_v39  ;;  %v19261_v39 = vand.u32 4294901760, %v19221_v2  ;;  %v19268_v2 = vand.u32 4294901760, %v16178_v6  ;;  %v16442_v6 = vld [vmem:[%s18254_s5] sm:$0xff]  ;;  %19276 = vst [vmem:[#allocation33_spill] sm:$0xff] %v16489_v54 }
 0x583   :  { %12143 = vmatpush3.bf16.msra.mxu0 %v12140_v44  ;;  %11135 = vmatprep.mubr.f32.mxu0 %v19231_v51  ;;  %v19239_v44 = vand.u32 4294901760, %v15515_v11  ;;  %v19240_v51 = vand.u32 4294901760, %v19204_v42  ;;  %v19246_v11 = vand.u32 4294901760, %v19186_v58  ;;  %v19247_v42 = vand.u32 4294901760, %v19187_v36 }
 0x584   :  { %12145 = vmatprep.subr.bf16.mxu0 %v12144_v28  ;;  %v19253_v58 = vand.u32 4294901760, %v19211_v26  ;;  %v19259_v26 = vand.u32 4294901760, %v16027_v62  ;;  %v19265_v62 = vand.u32 4294901760, %v19223_v25  ;;  %v6540_v33 = vand.u32 4294901760, %v16442_v6  ;;  %v16472_v25 = vld [vmem:[%s18254_s5 + $0x28] sm:$0xff] }
 0x585   :  { %v12152_v8 = vpack.c.bf16 %v19239_v44, %v19238_v27  ;;  %v12160_v50 = vpack.c.bf16 %v19247_v42, %v19246_v11  ;;  %v19278_v27 = vld [vmem:[#allocation53_spill] sm:$0xff]  ;;  %v19279_v44 = vld [vmem:[#allocation16_spill] sm:$0xff]  ;;  %v19291_v42 = vld [vmem:[#allocation42_spill] sm:$0xff] }
 0x586   :  { %11136 = vmatmul.mubr.f32.gmra.mrb[34].mxu0 %v19236_v60  ;;  %v6552_v60 = vand.u32 4294901760, %v16467_v10  ;;  %v19290_v11 = vld [vmem:[#allocation9_spill] sm:$0xff] }
 0x587   :  { %11138 = vmatprep.mubr.f32.mxu0 %v19237_v30  ;;  %12147 = vmatpush3.bf16.msra.mxu0 %v12144_v28  ;;  %v19257_v28 = vand.u32 4294901760, %v19214_v14  ;;  %v19262_v14 = vand.u32 4294901760, %v16050_v22  ;;  %v19269_v22 = vand.u32 4294901760, %v16168_v41  ;;  %v16447_v41 = vld [vmem:[%s18254_s5 + $0x8] sm:$0xff]  ;;  %v6555_v30 = vand.u32 4294901760, %v16472_v25 }
 0x588   :  { %12149 = vmatprep.subr.bf16.mxu0 %v12148_v45 }
 0x58a   :  { %11139 = vmatmul.mubr.f32.gmra.mrb[36].mxu0 %v19240_v51  ;;  %v19282_v51 = vld [vmem:[#allocation30_spill] sm:$0xff] }
 0x58b   :  { %11141 = vmatprep.mubr.f32.mxu0 %v19241_v31  ;;  %12151 = vmatpush3.bf16.msra.mxu0 %v12148_v45  ;;  %v19248_v45 = vand.u32 4294901760, %v15873_v23  ;;  %v19254_v23 = vand.u32 4294901760, %v19193_v24  ;;  %v19272_v24 = vand.u32 4294901760, %v16215_v47  ;;  %v6543_v47 = vand.u32 4294901760, %v16447_v41  ;;  %v19283_v31 = vld [vmem:[#allocation21_spill] sm:$0xff] }
 0x58c   :  { %12153 = vmatprep.subr.bf16.mxu0 %v12152_v8 }
 0x58d   :  { %v12168_v36 = vpack.c.bf16 %v19255_v61, %v19254_v23  ;;  %v16479_v9 = vpack.c.bf16 %v6543_v47, %v6540_v33  ;;  %v19300_v23 = vld [vmem:[#allocation54_spill] sm:$0xff] }
 0x58e   :  { %11142 = vmatmul.mubr.f32.gmra.mrb[38].mxu0 %v19244_v15  ;;  %v19288_v15 = vld [vmem:[#allocation36_spill] sm:$0xff]  ;;  %v19301_v61 = vld [vmem:[#allocation58_spill] sm:$0xff] }
 0x58f   :  { %11144 = vmatprep.mubr.f32.mxu0 %v19245_v0  ;;  %12155 = vmatpush3.bf16.msra.mxu0 %v12152_v8  ;;  %19275 = vst [vmem:[#allocation7_spill] sm:$0xff] %v16479_v9  ;;  %v19280_v8 = vld [vmem:[#allocation19_spill] sm:$0xff]  ;;  %v19289_v0 = vld [vmem:[#allocation24_spill] sm:$0xff] }
 0x590   :  { %12157 = vmatprep.subr.bf16.mxu0 %v12156_v37  ;;  %12396 = vmatprep.subr.bf16.mxu1 %v16479_v9 }
 0x591   :  { %12404 = vmatpush3.bf16.msra.mxu1 %v16479_v9 }
 0x592   :  { %11145 = vmatmul.mubr.f32.gmra.mrb[40].mxu0 %v19248_v45  ;;  %12397 = vmatprep.subr.bf16.mxu1 %v16489_v54  ;;  %v19293_v45 = vld [vmem:[#allocation39_spill] sm:$0xff] }
 0x593   :  { %11147 = vmatprep.mubr.f32.mxu0 %v19249_v34  ;;  %12159 = vmatpush3.bf16.msra.mxu0 %v12156_v37  ;;  %v19286_v37 = vld [vmem:[#allocation22_spill] sm:$0xff]  ;;  %v19294_v34 = vld [vmem:[#allocation12_spill] sm:$0xff] }
 0x594   :  { %12161 = vmatprep.subr.bf16.mxu0 %v12160_v50 }
 0x595   :  { %12405 = vmatpush3.bf16.msra.mxu1 %v16489_v54 }
 0x596   :  { %11148 = vmatmul.mubr.f32.gmra.mrb[42].mxu0 %v19252_v29  ;;  %v19298_v29 = vld [vmem:[#allocation49_spill] sm:$0xff] }
 0x597   :  { %11150 = vmatprep.mubr.f32.mxu0 %v19253_v58  ;;  %12163 = vmatpush3.bf16.msra.mxu0 %v12160_v50  ;;  %v19292_v50 = vld [vmem:[#allocation5_spill] sm:$0xff]  ;;  %v19299_v58 = vld [vmem:[#allocation46_spill] sm:$0xff] }
 0x598   :  { %12165 = vmatprep.subr.bf16.mxu0 %v12164_v32 }
 0x59a   :  { %11151 = vmatmul.mubr.f32.gmra.mrb[44].mxu0 %v19256_v12  ;;  %v19303_v12 = vld [vmem:[#allocation61_spill] sm:$0xff] }
 0x59b   :  { %11153 = vmatprep.mubr.f32.mxu0 %v19257_v28  ;;  %12167 = vmatpush3.bf16.msra.mxu0 %v12164_v32  ;;  %v19297_v32 = vld [vmem:[#allocation43_spill] sm:$0xff]  ;;  %v19304_v28 = vld [vmem:[#allocation62_spill] sm:$0xff] }
 0x59c   :  { %12169 = vmatprep.subr.bf16.mxu0 %v12168_v36 }
 0x59e   :  { %11154 = vmatmul.mubr.f32.gmra.mrb[46].mxu0 %v19258_v35  ;;  %v19305_v35 = vld [vmem:[#allocation64_spill] sm:$0xff] }
 0x59f   :  { %11156 = vmatprep.mubr.f32.mxu0 %v19259_v26  ;;  %12171 = vmatpush3.bf16.msra.mxu0 %v12168_v36  ;;  %v19302_v36 = vld [vmem:[#allocation59_spill] sm:$0xff]  ;;  %v19306_v26 = vld [vmem:[#allocation65_spill] sm:$0xff] }
 0x5a0   :  { %12173 = vmatprep.subr.bf16.mxu0 %v19196_v55 }
 0x5a2   :  { %11157 = vmatmul.mubr.f32.gmra.mrb[48].mxu0 %v19260_v17  ;;  %v19307_v17 = vld [vmem:[#allocation66_spill] sm:$0xff] }
 0x5a3   :  { %11159 = vmatprep.mubr.f32.mxu0 %v19261_v39  ;;  %v19308_v39 = vld [vmem:[#allocation67_spill] sm:$0xff] }
 0x5a6   :  { %11160 = vmatmul.mubr.f32.gmra.mrb[50].mxu0 %v19262_v14  ;;  %v19309_v14 = vld [vmem:[#allocation68_spill] sm:$0xff] }
 0x5a7   :  { %11162 = vmatprep.mubr.f32.mxu0 %v19263_v52  ;;  %v16595_v52 = vld [vmem:[%s18254_s5 + $0x40] sm:$0xff] }
 0x5aa   :  { %11163 = vmatmul.mubr.f32.gmra.mrb[52].mxu0 %v19264_v5  ;;  %v16600_v5 = vld [vmem:[%s18254_s5 + $0x48] sm:$0xff] }
 0x5ab   :  { %11165 = vmatprep.mubr.f32.mxu0 %v19265_v62  ;;  %v6564_v62 = vand.u32 4294901760, %v16595_v52 }
 0x5ae   :  { %11166 = vmatmul.mubr.f32.gmra.mrb[54].mxu0 %v19266_v16  ;;  %v6567_v16 = vand.u32 4294901760, %v16600_v5 }
 0x5af   :  { %11168 = vmatprep.mubr.f32.mxu0 %v19267_v7 }
 0x5b0   :  { %v16612_v7 = vpack.c.bf16 %v6567_v16, %v6564_v62 }
 0x5b2   :  { %11169 = vmatmul.mubr.f32.gmra.mrb[56].mxu0 %v19268_v2  ;;  %19311 = vst [vmem:[#allocation44_spill] sm:$0xff] %v16612_v7  ;;  %v16617_v2 = vld [vmem:[%s18254_s5 + $0x50] sm:$0xff] }
 0x5b3   :  { %11171 = vmatprep.mubr.f32.mxu0 %v19269_v22  ;;  %v16622_v22 = vld [vmem:[%s18254_s5 + $0x58] sm:$0xff] }
 0x5b6   :  { %11172 = vmatmul.mubr.f32.gmra.mrb[58].mxu0 %v19270_v18  ;;  %v6570_v18 = vand.u32 4294901760, %v16617_v2 }
 0x5b7   :  { %11174 = vmatprep.mubr.f32.mxu0 %v19271_v57  ;;  %v6573_v57 = vand.u32 4294901760, %v16622_v22 }
 0x5ba   :  { %11175 = vmatmul.mubr.f32.gmra.mrb[60].mxu0 %v19272_v24  ;;  %v16634_v24 = vpack.c.bf16 %v6573_v57, %v6570_v18 }
 0x5bb   :  { %11177 = vmatprep.mubr.f32.mxu0 %v19273_v38  ;;  %v16643_v38 = vld [vmem:[%s18254_s5 + $0x60] sm:$0xff] }
 0x5bc   :  { %19312 = vst [vmem:[#allocation47_spill] sm:$0xff] %v16634_v24 }
 0x5be   :  { %11178 = vmatmul.mubr.f32.gmra.mrb[62].mxu0 %v19274_v20  ;;  %v16648_v20 = vld [vmem:[%s18254_s5 + $0x68] sm:$0xff] }
 0x5bf   :  { %11212 = vmatprep.mubr.f32.mxu0 %v15735_v1 }
 0x5c2   :  { %11213 = vmatmul.mubr.f32.vlgmr.msra.gmra.mrb[32].mxu0 %v15691_v3 }
 0x5c3   :  { %12175 = vmatpush3.bf16.msra.mxu0 %v19196_v55  ;;  %11215 = vmatprep.mubr.f32.mxu0 %v15765_v4  ;;  %v16503_v55 = vpack.c.bf16 %v6555_v30, %v6552_v60 }
 0x5c4   :  { %12177 = vmatprep.subr.bf16.mxu0 %v19200_v59 }
 0x5c5   :  { %19277 = vst [vmem:[#allocation35_spill] sm:$0xff] %v16503_v55  ;;  %12398 = vmatprep.subr.bf16.mxu1 %v16503_v55 }
 0x5c6   :  { %11216 = vmatmul.mubr.f32.gmra.mrb[34].mxu0 %v15746_v21  ;;  %12406 = vmatpush3.bf16.msra.mxu1 %v16503_v55 }
 0x5c7   :  { %11218 = vmatprep.mubr.f32.mxu0 %v15778_v49  ;;  %12179 = vmatpush3.bf16.msra.mxu0 %v19200_v59  ;;  %v19281_v59 = vld [vmem:[#allocation15_spill] sm:$0xff] }
 0x5c8   :  { %12181 = vmatprep.subr.bf16.mxu0 %v19203_v63 }
 0x5ca   :  { %11219 = vmatmul.mubr.f32.gmra.mrb[36].mxu0 %v19278_v27 }
 0x5cb   :  { %11221 = vmatprep.mubr.f32.mxu0 %v19279_v44  ;;  %12183 = vmatpush3.bf16.msra.mxu0 %v19203_v63  ;;  %v19287_v63 = vld [vmem:[#allocation8_spill] sm:$0xff] }
 0x5cc   :  { %12185 = vmatprep.subr.bf16.mxu0 %v19280_v8 }
 0x5ce   :  { %11222 = vmatmul.mubr.f32.gmra.mrb[38].mxu0 %v19281_v59 }
 0x5cf   :  { %11224 = vmatprep.mubr.f32.mxu0 %v19282_v51  ;;  %12187 = vmatpush3.bf16.msra.mxu0 %v19280_v8 }
 0x5d0   :  { %12189 = vmatprep.subr.bf16.mxu0 %v19283_v31 }
 0x5d2   :  { %11225 = vmatmul.mubr.f32.gmra.mrb[40].mxu0 %v19284_v40 }
 0x5d3   :  { %11227 = vmatprep.mubr.f32.mxu0 %v19285_v53  ;;  %12191 = vmatpush3.bf16.msra.mxu0 %v19283_v31 }
 0x5d4   :  { %12193 = vmatprep.subr.bf16.mxu0 %v19286_v37 }
 0x5d6   :  { %11228 = vmatmul.mubr.f32.gmra.mrb[42].mxu0 %v19287_v63 }
 0x5d7   :  { %11230 = vmatprep.mubr.f32.mxu0 %v19288_v15  ;;  %12195 = vmatpush3.bf16.msra.mxu0 %v19286_v37  ;;  %v16687_v37 = vsub.f32 %v16442_v6, %v6540_v33 }
 0x5d8   :  { %12197 = vmatprep.subr.bf16.mxu0 %v19289_v0 }
 0x5d9   :  { %19315 = vst [vmem:[#allocation13_spill] sm:$0xff] %v16687_v37 }
 0x5da   :  { %11231 = vmatmul.mubr.f32.gmra.mrb[44].mxu0 %v19290_v11 }
 0x5db   :  { %11233 = vmatprep.mubr.f32.mxu0 %v19291_v42  ;;  %12199 = vmatpush3.bf16.msra.mxu0 %v19289_v0 }
 0x5dc   :  { %12201 = vmatprep.subr.bf16.mxu0 %v19292_v50 }
 0x5de   :  { %11234 = vmatmul.mubr.f32.gmra.mrb[46].mxu0 %v19293_v45 }
 0x5df   :  { %11236 = vmatprep.mubr.f32.mxu0 %v19294_v34  ;;  %12203 = vmatpush3.bf16.msra.mxu0 %v19292_v50 }
 0x5e0   :  { %12205 = vmatprep.subr.bf16.mxu0 %v16479_v9 }
 0x5e2   :  { %11237 = vmatmul.mubr.f32.gmra.mrb[48].mxu0 %v19295_v48 }
 0x5e3   :  { %11239 = vmatprep.mubr.f32.mxu0 %v19296_v19 }
 0x5e6   :  { %11240 = vmatmul.mubr.f32.gmra.mrb[50].mxu0 %v19297_v32 }
 0x5e7   :  { %11242 = vmatprep.mubr.f32.mxu0 %v19298_v29 }
 0x5ea   :  { %11243 = vmatmul.mubr.f32.gmra.mrb[52].mxu0 %v19299_v58 }
 0x5eb   :  { %11245 = vmatprep.mubr.f32.mxu0 %v19300_v23 }
 0x5ee   :  { %11246 = vmatmul.mubr.f32.gmra.mrb[54].mxu0 %v19301_v61 }
 0x5ef   :  { %11248 = vmatprep.mubr.f32.mxu0 %v19302_v36 }
 0x5f2   :  { %11249 = vmatmul.mubr.f32.gmra.mrb[56].mxu0 %v19303_v12 }
 0x5f3   :  { %11251 = vmatprep.mubr.f32.mxu0 %v19304_v28 }
 0x5f6   :  { %11252 = vmatmul.mubr.f32.gmra.mrb[58].mxu0 %v19305_v35 }
 0x5f7   :  { %11254 = vmatprep.mubr.f32.mxu0 %v19306_v26 }
 0x5fa   :  { %11255 = vmatmul.mubr.f32.gmra.mrb[60].mxu0 %v19307_v17 }
 0x5fb   :  { %11257 = vmatprep.mubr.f32.mxu0 %v19308_v39 }
 0x5fe   :  { %11258 = vmatmul.mubr.f32.gmra.mrb[62].mxu0 %v19309_v14 }
 0x5ff   :  { %11292 = vmatprep.mubr.f32.mxu0 %v15735_v1 }
 0x602   :  { %11293 = vmatmul.mubr.f32.vlgmr.msra.gmra.mrb[32].mxu0 %v15691_v3  ;;  %v6523_v3 = vld [vmem:[%s18254_s5 + $0x38] sm:$0xff] }
 0x603   :  { %11295 = vmatprep.mubr.f32.mxu0 %v15765_v4  ;;  %12207 = vmatpush3.bf16.msra.mxu0 %v16479_v9 }
 0x604   :  { %12209 = vmatprep.subr.bf16.mxu0 %v16489_v54 }
 0x606   :  { %11296 = vmatmul.mubr.f32.gmra.mrb[34].mxu0 %v15746_v21  ;;  %v6561_v21 = vand.u32 4294901760, %v6523_v3 }
 0x607   :  { %11298 = vmatprep.mubr.f32.mxu0 %v15778_v49  ;;  %12211 = vmatpush3.bf16.msra.mxu0 %v16489_v54  ;;  %v6522_v49 = vld [vmem:[%s18254_s5 + $0x30] sm:$0xff] }
 0x608   :  { %12213 = vmatprep.subr.bf16.mxu0 %v16503_v55  ;;  %v6558_v1 = vand.u32 4294901760, %v6522_v49 }
 0x60a   :  { %11299 = vmatmul.mubr.f32.gmra.mrb[36].mxu0 %v19278_v27  ;;  %v16590_v4 = vpack.c.bf16 %v6561_v21, %v6558_v1  ;;  %v6576_v27 = vand.u32 4294901760, %v16643_v38 }
 0x60b   :  { %11301 = vmatprep.mubr.f32.mxu0 %v19279_v44  ;;  %12215 = vmatpush3.bf16.msra.mxu0 %v16503_v55  ;;  %v6579_v44 = vand.u32 4294901760, %v16648_v20 }
 0x60c   :  { %19310 = vst [vmem:[#allocation40_spill] sm:$0xff] %v16590_v4  ;;  %12399 = vmatprep.subr.bf16.mxu1 %v16590_v4  ;;  %12217 = vmatprep.subr.bf16.mxu0 %v16590_v4 }
 0x60d   :  { %12407 = vmatpush3.bf16.msra.mxu1 %v16590_v4  ;;  %v16656_v8 = vpack.c.bf16 %v6579_v44, %v6576_v27 }
 0x60e   :  { %11302 = vmatmul.mubr.f32.gmra.mrb[38].mxu0 %v19281_v59  ;;  %12400 = vmatprep.subr.bf16.mxu1 %v16612_v7  ;;  %v16661_v59 = vld [vmem:[%s18254_s5 + $0x70] sm:$0xff] }
 0x60f   :  { %11304 = vmatprep.mubr.f32.mxu0 %v19282_v51  ;;  %12219 = vmatpush3.bf16.msra.mxu0 %v16590_v4  ;;  %19313 = vst [vmem:[#allocation20_spill] sm:$0xff] %v16656_v8  ;;  %v16666_v51 = vld [vmem:[%s18254_s5 + $0x78] sm:$0xff]  ;;  %v6582_v31 = vand.u32 4294901760, %v16661_v59  ;;  %s8984_s5 = sld [smem:[#allocation2 + $0x1]] }
 0x610   :  { %12221 = vmatprep.subr.bf16.mxu0 %v16612_v7 }
 0x611   :  { %12408 = vmatpush3.bf16.msra.mxu1 %v16612_v7 }
 0x612   :  { %11305 = vmatmul.mubr.f32.gmra.mrb[40].mxu0 %v19284_v40  ;;  %12401 = vmatprep.subr.bf16.mxu1 %v16634_v24  ;;  %v6585_v40 = vand.u32 4294901760, %v16666_v51 }
 0x613   :  { %11307 = vmatprep.mubr.f32.mxu0 %v19285_v53  ;;  %12223 = vmatpush3.bf16.msra.mxu0 %v16612_v7 }
 0x614   :  { %12225 = vmatprep.subr.bf16.mxu0 %v16634_v24  ;;  %v16678_v53 = vpack.c.bf16 %v6585_v40, %v6582_v31 }
 0x615   :  { %12409 = vmatpush3.bf16.msra.mxu1 %v16634_v24 }
 0x616   :  { %11308 = vmatmul.mubr.f32.gmra.mrb[42].mxu0 %v19287_v63  ;;  %12402 = vmatprep.subr.bf16.mxu1 %v16656_v8  ;;  %19314 = vst [vmem:[#allocation14_spill] sm:$0xff] %v16678_v53  ;;  %v16692_v63 = vsub.f32 %v16447_v41, %v6543_v47  ;;  %v16708_v41 = vsub.f32 %v16452_v56, %v6546_v13 }
 0x617   :  { %11310 = vmatprep.mubr.f32.mxu0 %v19288_v15  ;;  %12227 = vmatpush3.bf16.msra.mxu0 %v16634_v24  ;;  %v18681_v15 = vand.u32 4294901760, %v16687_v37  ;;  %v16713_v47 = vsub.f32 %v16460_v46, %v6549_v43  ;;  %v16732_v46 = vsub.f32 %v6523_v3, %v6561_v21 }
 0x618   :  { %12229 = vmatprep.subr.bf16.mxu0 %v16656_v8  ;;  %19316 = vst [vmem:[#allocation56_spill] sm:$0xff] %v16692_v63  ;;  %v18680_v0 = vand.u32 4294901760, %v16692_v63  ;;  %19317 = vst [vmem:[#allocation23_spill] sm:$0xff] %v16708_v41  ;;  %v16729_v56 = vpack.c.bf16 %v16692_v63, %v16687_v37  ;;  %v18678_v13 = vand.u32 4294901760, %v16708_v41 }
 0x619   :  { %12410 = vmatpush3.bf16.msra.mxu1 %v16656_v8  ;;  %19318 = vst [vmem:[#allocation52_spill] sm:$0xff] %v16713_v47  ;;  %19322 = vst [vmem:[#allocation17_spill] sm:$0xff] %v16732_v46  ;;  %v18676_v43 = vand.u32 4294901760, %v16713_v47 }
 0x61a   :  { %11311 = vmatmul.mubr.f32.gmra.mrb[44].mxu0 %v19290_v11  ;;  %12403 = vmatprep.subr.bf16.mxu1 %v16678_v53  ;;  %v6944_v11 = vsub.f32 %v16687_v37, %v18681_v15 }
 0x61b   :  { %11313 = vmatprep.mubr.f32.mxu0 %v19291_v42  ;;  %12231 = vmatpush3.bf16.msra.mxu0 %v16656_v8  ;;  %v6951_v42 = vsub.f32 %v16692_v63, %v18680_v0 }
 0x61c   :  { %12233 = vmatprep.subr.bf16.mxu0 %v16678_v53  ;;  %v6945_v50 = vand.u32 4294901760, %v6944_v11 }
 0x61d   :  { %12411 = vmatpush3.bf16.msra.mxu1 %v16678_v53  ;;  %v6952_v6 = vand.u32 4294901760, %v6951_v42 }
 0x61e   :  { %11314 = vmatmul.mubr.f32.gmra.mrb[46].mxu0 %v19293_v45  ;;  %v16718_v45 = vsub.f32 %v16467_v10, %v6552_v60 }
 0x61f   :  { %11316 = vmatprep.mubr.f32.mxu0 %v19294_v34  ;;  %12235 = vmatpush3.bf16.msra.mxu0 %v16678_v53  ;;  %v16702_v33 = vpack.c.bf16 %v6952_v6, %v6945_v50  ;;  %v16723_v34 = vsub.f32 %v16472_v25, %v6555_v30  ;;  %v16743_v30 = vsub.f32 %v16708_v41, %v18678_v13 }
 0x620   :  { %19319 = vst [vmem:[#allocation60_spill] sm:$0xff] %v16718_v45  ;;  %v18675_v10 = vand.u32 4294901760, %v16718_v45 }
 0x621   :  { %12237 = vmatprep.subr.bf16.mxu1 %v16702_v33  ;;  %19320 = vst [vmem:[#allocation26_spill] sm:$0xff] %v16723_v34  ;;  %v18674_v60 = vand.u32 4294901760, %v16723_v34 }
 0x622   :  { %11317 = vmatmul.mubr.f32.gmra.mrb[48].mxu0 %v19295_v48  ;;  %v16725_v48 = vsub.f32 %v6522_v49, %v6558_v1 }
 0x623   :  { %11319 = vmatprep.mubr.f32.mxu0 %v19296_v19  ;;  %v16737_v19 = vstv %s8984_s5 }
 0x624   :  { %19321 = vst [vmem:[#allocation55_spill] sm:$0xff] %v16725_v48  ;;  %v18673_v25 = vand.u32 4294901760, %v16725_v48 }
 0x626   :  { %11320 = vmatmul.mubr.f32.gmra.mrb[50].mxu0 %v19297_v32  ;;  %v18672_v32 = vand.u32 4294901760, %v16732_v46 }
 0x627   :  { %11322 = vmatprep.mubr.f32.mxu0 %v19298_v29 }
 0x628   :  { %v16791_v3 = vsub.f32 %v16732_v46, %v18672_v32 }
 0x62a   :  { %11323 = vmatmul.mubr.f32.gmra.mrb[52].mxu0 %v19299_v58  ;;  %v16749_v58 = vsub.f32 %v16713_v47, %v18676_v43  ;;  %v16836_v43 = vsub.f32 %v16648_v20, %v6579_v44  ;;  %v16855_v20 = vsub.f32 %v16661_v59, %v6582_v31  ;;  %v16860_v44 = vsub.f32 %v16666_v51, %v6585_v40 }
 0x62b   :  { %11325 = vmatprep.mubr.f32.mxu0 %v19300_v23  ;;  %v16754_v23 = vsub.f32 %v16595_v52, %v6564_v62  ;;  %v16799_v62 = vsub.f32 %v16617_v2, %v6570_v18 }
 0x62c   :  { %19326 = vst [vmem:[#allocation10_spill] sm:$0xff] %v16836_v43  ;;  %19327 = vst [vmem:[#allocation41_spill] sm:$0xff] %v16855_v20  ;;  %v18685_v51 = vand.u32 4294901760, %v16836_v43 }
 0x62d   :  { %19323 = vst [vmem:[#allocation32_spill] sm:$0xff] %v16799_v62  ;;  %19328 = vst [vmem:[#allocation29_spill] sm:$0xff] %v16860_v44 }
 0x62e   :  { %11326 = vmatmul.mubr.f32.gmra.mrb[54].mxu0 %v19301_v61 }
 0x62f   :  { %11328 = vmatprep.mubr.f32.mxu0 %v19302_v36 }
 0x632   :  { %11329 = vmatmul.mubr.f32.gmra.mrb[56].mxu0 %v19303_v12  ;;  %v16762_v12 = vsub.f32 %v16718_v45, %v18675_v10 }
 0x633   :  { %11331 = vmatprep.mubr.f32.mxu0 %v19304_v28  ;;  %v16767_v28 = vsub.f32 %v16723_v34, %v18674_v60  ;;  %v18682_v60 = vand.u32 4294901760, %v16799_v62 }
 0x636   :  { %11332 = vmatmul.mubr.f32.gmra.mrb[58].mxu0 %v19305_v35 }
 0x637   :  { %11334 = vmatprep.mubr.f32.mxu0 %v19306_v26  ;;  %v16775_v26 = vsub.f32 %v16725_v48, %v18673_v25 }
 0x63a   :  { %11335 = vmatmul.mubr.f32.gmra.mrb[60].mxu0 %v19307_v17  ;;  %v16780_v17 = vsub.f32 %v16600_v5, %v6567_v16  ;;  %v18677_v5 = vand.u32 4294901760, %v16754_v23 }
 0x63b   :  { %11337 = vmatprep.mubr.f32.mxu0 %v19308_v39  ;;  %v16784_v39 = vpack.c.bf16 %v16713_v47, %v16708_v41 }
 0x63c   :  { %v18679_v25 = vand.u32 4294901760, %v16780_v17 }
 0x63e   :  { %11338 = vmatmul.mubr.f32.gmra.mrb[62].mxu0 %v19309_v14 }
 0x6d5   :  { %v11294_v29 = vpop.f32.mrb[32].mxu0 }
 0x6d6   :  { %v16757_v61 = vadd.f32 %v11294_v29, %v16737_v19  ;;  %v6134_v36 = vpop.f32.mrb[33].mxu0 }
 0x6d7   :  { %v16770_v35 = vadd.f32 %v6134_v36, %v16737_v19 }
 0x6d8   :  { %v6357_v14 = vmin.f32 %v16757_v61, 0.0  ;;  %vm6325_vm1 = vcmp.gt.f32.partialorder %v16757_v61, 0.0 }
 0x6d9   :  { %v6356_v1 = vmin.f32 %v16770_v35, 0.0  ;;  %v11297_v21 = vpop.f32.mrb[34].mxu0  ;;  %vm6324_vm2 = vcmp.gt.f32.partialorder %v16770_v35, 0.0 }
 0x6da   :  { %v6390_v16 = vmul.f32 1.442695, %v6357_v14  ;;  %v16802_v11 = vadd.f32 %v11297_v21, %v16737_v19  ;;  %v6146_v42 = vpop.f32.mrb[35].mxu0  ;;  %v16816_v14 = vsub.f32 %v16622_v22, %v6573_v57 }
 0x6db   :  { %v6388_v29 = vmul.f32 1.442695, %v6356_v1  ;;  %v16807_v36 = vadd.f32 %v6146_v42, %v16737_v19  ;;  %v16822_v42 = vsub.f32 %v16754_v23, %v18677_v5 }
 0x6dc   :  { %13309 = vpow2.f32 %v6390_v16  ;;  %v6359_v2 = vmin.f32 %v16802_v11, 0.0  ;;  %19324 = vst [vmem:[#allocation37_spill] sm:$0xff] %v16816_v14  ;;  %v16828_v16 = vsub.f32 %v16643_v38, %v6576_v27  ;;  %v16844_v38 = vsub.f32 %v16780_v17, %v18679_v25 }
 0x6dd   :  { %v6358_v21 = vmin.f32 %v16807_v36, 0.0  ;;  %v11300_v1 = vpop.f32.mrb[36].mxu0  ;;  %13311 = vpow2.f32 %v6388_v29  ;;  %v16848_v27 = vpack.c.bf16 %v16723_v34, %v16718_v45  ;;  %v7001_v15 = vand.u32 4294901760, %v16822_v42 }
 0x6de   :  { %19325 = vst [vmem:[#allocation38_spill] sm:$0xff] %v16828_v16  ;;  %v6394_v10 = vmul.f32 1.442695, %v6359_v2  ;;  %v16831_v22 = vadd.f32 %v11300_v1, %v16737_v19  ;;  %v6158_v57 = vpop.f32.mrb[37].mxu0  ;;  %v18683_v2 = vand.u32 4294901760, %v16816_v14  ;;  %v18684_v25 = vand.u32 4294901760, %v16828_v16 }
 0x6df   :  { %v6392_v5 = vmul.f32 1.442695, %v6358_v21  ;;  %v16839_v13 = vadd.f32 %v6158_v57, %v16737_v19  ;;  %v16866_v57 = vsub.f32 %v16799_v62, %v18682_v60  ;;  %v7008_v18 = vand.u32 4294901760, %v16844_v38 }
 0x6e0   :  { %v6361_v29 = vmin.f32 %v16831_v22, 0.0  ;;  %13313 = vpow2.f32 %v6394_v10  ;;  %v7028_v42 = vsub.f32 %v16828_v16, %v18684_v25  ;;  %vm6327_vm3 = vcmp.gt.f32.partialorder %v16802_v11, 0.0 }
 0x6e1   :  { %v6360_v21 = vmin.f32 %v16839_v13, 0.0  ;;  %v11303_v1 = vpop.f32.mrb[38].mxu0  ;;  %13315 = vpow2.f32 %v6392_v5  ;;  %v7021_v5 = vsub.f32 %v16816_v14, %v18683_v2  ;;  %vm6326_vm4 = vcmp.gt.f32.partialorder %v16807_v36, 0.0 }
 0x6e2   :  { %v6398_v0 = vmul.f32 1.442695, %v6361_v29  ;;  %v16870_v59 = vadd.f32 %v11303_v1, %v16737_v19  ;;  %v6170_v31 = vpop.f32.mrb[39].mxu0  ;;  %v18691_v29 = vand.u32 4294901760, %v16855_v20  ;;  %v7029_v34 = vand.u32 4294901760, %v7028_v42 }
 0x6e3   :  { %v6396_v40 = vmul.f32 1.442695, %v6360_v21  ;;  %v16874_v10 = vadd.f32 %v6170_v31, %v16737_v19  ;;  %v7015_v31 = vand.u32 4294901760, %v16866_v57  ;;  %v16900_v57 = vpack.c.bf16 %v16732_v46, %v16725_v48 }
 0x6e4   :  { %v6363_v60 = vmin.f32 %v16870_v59, 0.0  ;;  %13317 = vpow2.f32 %v6398_v0  ;;  %v7035_v0 = vsub.f32 %v16836_v43, %v18685_v51  ;;  %v7022_v51 = vand.u32 4294901760, %v7021_v5 }
 0x6e5   :  { %v6362_v21 = vmin.f32 %v16874_v10, 0.0  ;;  %v11306_v32 = vpop.f32.mrb[40].mxu0  ;;  %13319 = vpow2.f32 %v6396_v40  ;;  %v19329_v40 = vand.u32 4294901760, %v16860_v44  ;;  %vm6329_vm5 = vcmp.gt.f32.partialorder %v16831_v22, 0.0 }
 0x6e6   :  { %v13310_v38 = vpop.eup %13309  ;;  %v6402_v6 = vmul.f32 1.442695, %v6363_v60  ;;  %v16890_v50 = vadd.f32 %v11306_v32, %v16737_v19  ;;  %v6182_v2 = vpop.f32.mrb[41].mxu0  ;;  %v7042_v32 = vsub.f32 %v16855_v20, %v18691_v29  ;;  %v7036_v45 = vand.u32 4294901760, %v7035_v0 }
 0x6e7   :  { %v8986_v52 = vadd.f32 -1.0, %v13310_v38  ;;  %v6400_v49 = vmul.f32 1.442695, %v6362_v21  ;;  %v16896_v1 = vadd.f32 %v6182_v2, %v16737_v19  ;;  %v13312_v25 = vpop.eup %13311  ;;  %v7049_v38 = vsub.f32 %v16860_v44, %v19329_v40 }
 0x6e8   :  { %13321 = vpow2.f32 %v6402_v6  ;;  %v6365_v60 = vmin.f32 %v16890_v50, 0.0  ;;  %v8985_v41 = vadd.f32 -1.0, %v13312_v25  ;;  %v19331_v40 = vand.u32 4294901760, %v16749_v58 }
 0x6e9   :  { %13323 = vpow2.f32 %v6400_v49  ;;  %v6364_v2 = vmin.f32 %v16896_v1, 0.0  ;;  %v11309_v21 = vpop.f32.mrb[42].mxu0  ;;  %v6485_v29 = vsel %vm6325_vm1, %v16757_v61, %v8986_v52  ;;  %v19330_v49 = vand.u32 4294901760, %v16743_v30 }
 0x6ea   :  { %v6406_v46 = vmul.f32 1.442695, %v6365_v60  ;;  %v16912_v6 = vadd.f32 %v11309_v21, %v16737_v19  ;;  %v6194_v48 = vpop.f32.mrb[43].mxu0  ;;  %v13314_v47 = vpop.eup %13313  ;;  %v19332_v60 = vand.u32 4294901760, %v16762_v12  ;;  %v19333_v21 = vand.u32 4294901760, %v16767_v28 }
 0x6eb   :  { %v6404_v63 = vmul.f32 1.442695, %v6364_v2  ;;  %v16919_v37 = vpack.c.bf16 %v19331_v40, %v19330_v49  ;;  %v13316_v5 = vpop.eup %13315  ;;  %v16922_v42 = vadd.f32 %v6194_v48, %v16737_v19  ;;  %v7043_v53 = vand.u32 4294901760, %v7042_v32 }
 0x6ec   :  { %v16928_v0 = vpack.c.bf16 %v19333_v21, %v19332_v60  ;;  %v7050_v61 = vand.u32 4294901760, %v7049_v38  ;;  %13325 = vpow2.f32 %v6406_v46  ;;  %v6367_v25 = vmin.f32 %v16912_v6, 0.0 }
 0x6ed   :  { %v11312_v30 = vpop.f32.mrb[44].mxu0  ;;  %v19334_v58 = vand.u32 4294901760, %v16775_v26  ;;  %v19335_v52 = vand.u32 4294901760, %v16791_v3  ;;  %v16937_v48 = vpack.c.bf16 %v7008_v18, %v7001_v15  ;;  %v16939_v49 = vand.u32 4294901760, %v6485_v29 }
 0x6ee   :  { %v6206_v12 = vpop.f32.mrb[45].mxu0  ;;  %v16942_v28 = vpack.c.bf16 %v7022_v51, %v7015_v31  ;;  %v16944_v32 = vpack.c.bf16 %v7036_v45, %v7029_v34  ;;  %v13318_v46 = vpop.eup %13317  ;;  %v6484_v38 = vsel %vm6324_vm2, %v16770_v35, %v8985_v41  ;;  %v8988_v40 = vadd.f32 -1.0, %v13314_v47 }
 0x6ef   :  { %v16935_v2 = vpack.c.bf16 %v19335_v52, %v19334_v58  ;;  %v8987_v26 = vadd.f32 -1.0, %v13316_v5  ;;  %13327 = vpow2.f32 %v6404_v63  ;;  %v13320_v3 = vpop.eup %13319  ;;  %v6410_v60 = vmul.f32 1.442695, %v6367_v25 }
 0x6f0   :  { %v6366_v15 = vmin.f32 %v16922_v42, 0.0  ;;  %v16949_v18 = vadd.f32 %v11312_v30, %v16737_v19  ;;  %v16951_v21 = vpack.c.bf16 %v7050_v61, %v7043_v53  ;;  %vm6328_vm6 = vcmp.gt.f32.partialorder %v16839_v13, 0.0 }
 0x6f1   :  { %v11315_v41 = vpop.f32.mrb[46].mxu0  ;;  %v16958_v63 = vsub.f32 %v6485_v29, %v16939_v49  ;;  %v16960_v45 = vand.u32 4294901760, %v6484_v38  ;;  %vm6331_vm7 = vcmp.gt.f32.partialorder %v16870_v59, 0.0  ;;  %vm6330_vm8 = vcmp.gt.f32.partialorder %v16874_v10, 0.0 }
 0x6f2   :  { %v13322_v47 = vpop.eup %13321  ;;  %v6218_v53 = vpop.f32.mrb[47].mxu0  ;;  %v6487_v35 = vsel %vm6327_vm3, %v16802_v11, %v8988_v40  ;;  %v6486_v51 = vsel %vm6326_vm4, %v16807_v36, %v8987_v26  ;;  %v6369_v5 = vmin.f32 %v16949_v18, 0.0  ;;  %13329 = vpow2.f32 %v6410_v60 }
 0x6f3   :  { %19336 = vst [vmem:[#allocation25_spill] sm:$0xff] %v16958_v63  ;;  %v13324_v34 = vpop.eup %13323  ;;  %v8992_v31 = vadd.f32 -1.0, %v13322_v47  ;;  %v6408_v61 = vmul.f32 1.442695, %v6366_v15  ;;  %v16968_v29 = vadd.f32 %v6206_v12, %v16737_v19  ;;  %v16971_v25 = vadd.f32 %v11315_v41, %v16737_v19 }
 0x6f4   :  { %v8990_v30 = vadd.f32 -1.0, %v13318_v46  ;;  %v8989_v58 = vadd.f32 -1.0, %v13320_v3  ;;  %v16975_v8 = vadd.f32 %v6218_v53, %v16737_v19  ;;  %v8991_v40 = vadd.f32 -1.0, %v13324_v34 }
 0x6f5   :  { %v6491_v52 = vsel %vm6331_vm7, %v16870_v59, %v8992_v31  ;;  %v11318_v11 = vpop.f32.mrb[48].mxu0  ;;  %v6414_v26 = vmul.f32 1.442695, %v6369_v5  ;;  %v6368_v60 = vmin.f32 %v16968_v29, 0.0  ;;  %v16982_v41 = vsub.f32 %v6484_v38, %v16960_v45 }
 0x6f6   :  { %v16977_v36 = vand.u32 4294901760, %v6491_v52  ;;  %v6230_v15 = vpop.f32.mrb[49].mxu0  ;;  %v13326_v12 = vpop.eup %13325  ;;  %vm6333_vm9 = vcmp.gt.f32.partialorder %v16890_v50, 0.0  ;;  %vm6332_vm10 = vcmp.gt.f32.partialorder %v16896_v1, 0.0  ;;  %v16986_v59 = vand.u32 4294901760, %v6486_v51 }
 0x6f7   :  { %19338 = vst [vmem:[#allocation50_spill] sm:$0xff] %v16982_v41  ;;  %13331 = vpow2.f32 %v6408_v61  ;;  %v6412_v46 = vmul.f32 1.442695, %v6368_v60  ;;  %v6371_v3 = vmin.f32 %v16971_v25, 0.0  ;;  %v16989_v34 = vand.u32 4294901760, %v6487_v35 }
 0x6f8   :  { %19337 = vst [vmem:[#allocation45_spill] sm:$0xff] %v16977_v36  ;;  %v6489_v31 = vsel %vm6329_vm5, %v16831_v22, %v8990_v30  ;;  %v6488_v38 = vsel %vm6328_vm6, %v16839_v13, %v8989_v58  ;;  %v6370_v5 = vmin.f32 %v16975_v8, 0.0  ;;  %v16999_v24 = vsub.f32 %v6491_v52, %v16977_v36 }
 0x6f9   :  { %v13328_v53 = vpop.eup %13327  ;;  %v11321_v47 = vpop.f32.mrb[50].mxu0  ;;  %v6490_v61 = vsel %vm6330_vm8, %v16874_v10, %v8991_v40  ;;  %v8994_v60 = vadd.f32 -1.0, %v13326_v12  ;;  %13333 = vpow2.f32 %v6414_v26  ;;  %v6418_v4 = vmul.f32 1.442695, %v6371_v3 }
 0x6fa   :  { %19339 = vst [vmem:[#allocation51_spill] sm:$0xff] %v16999_v24  ;;  %v6242_v7 = vpop.f32.mrb[51].mxu0  ;;  %13335 = vpow2.f32 %v6412_v46  ;;  %v6416_v22 = vmul.f32 1.442695, %v6370_v5  ;;  %v17005_v30 = vadd.f32 %v11318_v11, %v16737_v19  ;;  %v19340_v13 = vand.u32 4294901760, %v16958_v63 }
 0x6fb   :  { %v17011_v52 = vsub.f32 %v6486_v51, %v16986_v59  ;;  %v8993_v55 = vadd.f32 -1.0, %v13328_v53  ;;  %vm6335_vm11 = vcmp.gt.f32.partialorder %v16912_v6, 0.0  ;;  %v18711_v10 = vand.u32 4294901760, %v16982_v41 }
 0x6fc   :  { %v6633_v58 = vsub.f32 %v16958_v63, %v19340_v13  ;;  %v17016_v40 = vsub.f32 %v6487_v35, %v16989_v34  ;;  %v17018_v26 = vand.u32 4294901760, %v6489_v31  ;;  %13337 = vpow2.f32 %v6418_v4  ;;  %v13330_v46 = vpop.eup %13329 }
 0x6fd   :  { %19341 = vst [vmem:[#allocation57_spill] sm:$0xff] %v17011_v52  ;;  %v6373_v11 = vmin.f32 %v17005_v30, 0.0  ;;  %v11324_v12 = vpop.f32.mrb[52].mxu0  ;;  %v17021_v3 = vand.u32 4294901760, %v6488_v38  ;;  %v17023_v5 = vand.u32 4294901760, %v6490_v61  ;;  %v6493_v51 = vsel %vm6333_vm9, %v16890_v50, %v8994_v60 }
 0x6fe   :  { %19342 = vst [vmem:[#allocation63_spill] sm:$0xff] %v17016_v40  ;;  %13339 = vpow2.f32 %v6416_v22  ;;  %v17028_v53 = vpop.f32.mrb[53].mxu0  ;;  %v6623_v4 = vsub.f32 %v16982_v41, %v18711_v10  ;;  %v17035_v54 = vadd.f32 %v6230_v15, %v16737_v19  ;;  %v6492_v63 = vsel %vm6332_vm10, %v16896_v1, %v8993_v55 }
 0x6ff   :  { %v6422_v13 = vmul.f32 1.442695, %v6373_v11  ;;  %vm6334_vm12 = vcmp.gt.f32.partialorder %v16922_v42, 0.0  ;;  %v17042_v50 = vadd.f32 %v11321_v47, %v16737_v19  ;;  %v18726_v60 = vand.u32 4294901760, %v17011_v52 }
 0x700   :  { %v17046_v22 = vadd.f32 %v6242_v7, %v16737_v19  ;;  %v6634_v11 = vand.u32 4294901760, %v6633_v58  ;;  %v8996_v35 = vadd.f32 -1.0, %v13330_v46  ;;  %v6624_v10 = vand.u32 4294901760, %v6623_v4 }
 0x701   :  { %13341 = vpow2.f32 %v6422_v13  ;;  %v17048_v15 = vpop.f32.mrb[54].mxu0  ;;  %v13332_v41 = vpop.eup %13331  ;;  %v17051_v9 = vsub.f32 %v6489_v31, %v17018_v26  ;;  %v17054_v55 = vsub.f32 %v6488_v38, %v17021_v3  ;;  %v17057_v1 = vsub.f32 %v6490_v61, %v17023_v5 }
 0x702   :  { %vm6337_vm13 = vcmp.gt.f32.partialorder %v16949_v18, 0.0  ;;  %v6372_v7 = vmin.f32 %v17035_v54, 0.0  ;;  %v17061_v47 = vpop.f32.mrb[55].mxu0  ;;  %v17063_v58 = vand.u32 4294901760, %v6493_v51  ;;  %v17065_v46 = vand.u32 4294901760, %v6492_v63  ;;  %11372 = vmatprep.mubr.f32.mxu0 %v6624_v10 }
 0x703   :  { %19343 = vst [vmem:[#allocation28_spill] sm:$0xff] %v17051_v9  ;;  %19344 = vst [vmem:[#allocation6_spill] sm:$0xff] %v17054_v55  ;;  %vm6336_vm14 = vcmp.gt.f32.partialorder %v16968_v29, 0.0  ;;  %v6375_v31 = vmin.f32 %v17042_v50, 0.0  ;;  %v6643_v38 = vsub.f32 %v17011_v52, %v18726_v60  ;;  %v13334_v61 = vpop.eup %13333  ;;  %v19348_v13 = vand.u32 4294901760, %v16999_v24  ;;  %11373 = vmatmul.mubr.f32.vlgmr.msra.gmra.mrb[64].mxu0 %v6634_v11 }
 0x704   :  { %19345 = vst [vmem:[#allocation27_spill] sm:$0xff] %v17057_v1  ;;  %19346 = vst [vmem:[#allocation34_spill] sm:$0xff] %v17063_v58  ;;  %v6420_v44 = vmul.f32 1.442695, %v6372_v7  ;;  %v6374_v20 = vmin.f32 %v17046_v22, 0.0  ;;  %v18733_v43 = vand.u32 4294901760, %v17016_v40  ;;  %v13336_v16 = vpop.eup %13335  ;;  %v6495_v10 = vsel %vm6335_vm11, %v16912_v6, %v8996_v35 }
 0x705   :  { %19347 = vst [vmem:[#allocation53_spill] sm:$0xff] %v17065_v46  ;;  %v17075_v4 = vsub.f32 %v16999_v24, %v19348_v13  ;;  %v8995_v14 = vadd.f32 -1.0, %v13332_v41  ;;  %vm6339_vm15 = vcmp.gt.f32.partialorder %v16971_v25, 0.0  ;;  %v6426_v60 = vmul.f32 1.442695, %v6375_v31  ;;  %v11330_v62 = vpop.f32.mrb[56].mxu0 }
 0x706   :  { %v6644_v52 = vand.u32 4294901760, %v6643_v38  ;;  %vm6338_vm0 = vcmp.gt.f32.partialorder %v16975_v8, 0.0  ;;  %13343 = vpow2.f32 %v6420_v44  ;;  %v6424_v7 = vmul.f32 1.442695, %v6374_v20  ;;  %v17090_v24 = vpop.f32.mrb[57].mxu0  ;;  %v13338_v6 = vpop.eup %13337 }
 0x707   :  { %v6653_v11 = vsub.f32 %v17016_v40, %v18733_v43  ;;  %v17088_v13 = vadd.f32 %v11324_v12, %v16737_v19  ;;  %v17093_v41 = vsub.f32 %v6493_v51, %v17063_v58  ;;  %v17096_v35 = vsub.f32 %v6492_v63, %v17065_v46 }
 0x708   :  { %v8998_v31 = vadd.f32 -1.0, %v13334_v61  ;;  %11375 = vmatprep.mubr.f32.mxu0 %v6644_v52  ;;  %v18738_v20 = vand.u32 4294901760, %v17054_v55  ;;  %v13340_v44 = vpop.eup %13339  ;;  %v17100_v43 = vand.u32 4294901760, %v6495_v10  ;;  %v8997_v12 = vadd.f32 -1.0, %v13336_v16 }
 0x709   :  { %19349 = vst [vmem:[#allocation16_spill] sm:$0xff] %v17093_v41  ;;  %19350 = vst [vmem:[#allocation19_spill] sm:$0xff] %v17096_v35  ;;  %vm6341_vm1 = vcmp.gt.f32.partialorder %v17005_v30, 0.0  ;;  %v6654_v40 = vand.u32 4294901760, %v6653_v11  ;;  %v6494_v51 = vsel %vm6334_vm12, %v16922_v42, %v8995_v14  ;;  %13345 = vpow2.f32 %v6426_v60  ;;  %v17110_v61 = vpop.f32.mrb[58].mxu0 }
 0x70a   :  { %19351 = vst [vmem:[#allocation15_spill] sm:$0xff] %v17100_v43  ;;  %v6377_v63 = vmin.f32 %v17088_v13, 0.0  ;;  %v6663_v52 = vsub.f32 %v17054_v55, %v18738_v20  ;;  %v9000_v38 = vadd.f32 -1.0, %v13338_v6  ;;  %13347 = vpow2.f32 %v6424_v7  ;;  %v17117_v58 = vpop.f32.mrb[59].mxu0 }
 0x70b   :  { %11376 = vmatmul.mubr.f32.gmra.mrb[66].mxu0 %v6654_v40  ;;  %v17114_v16 = vadd.f32 %v17028_v53, %v16737_v19  ;;  %v13342_v14 = vpop.eup %13341  ;;  %v6497_v42 = vsel %vm6337_vm13, %v16949_v18, %v8998_v31  ;;  %v8999_v60 = vadd.f32 -1.0, %v13340_v44  ;;  %v17123_v6 = vsub.f32 %v6495_v10, %v17100_v43 }
 0x70c   :  { %v6430_v20 = vmul.f32 1.442695, %v6377_v63  ;;  %v6664_v55 = vand.u32 4294901760, %v6663_v52  ;;  %v17125_v40 = vand.u32 4294901760, %v6494_v51  ;;  %v6496_v53 = vsel %vm6336_vm14, %v16968_v29, %v8997_v12 }
 0x70d   :  { %v6376_v7 = vmin.f32 %v17114_v16, 0.0  ;;  %v9002_v11 = vadd.f32 -1.0, %v13342_v14  ;;  %v19353_v46 = vand.u32 4294901760, %v17051_v9  ;;  %v17136_v31 = vadd.f32 %v17048_v15, %v16737_v19  ;;  %v17138_v10 = vpop.f32.mrb[60].mxu0 }
 0x70e   :  { %19352 = vst [vmem:[#allocation30_spill] sm:$0xff] %v17125_v40  ;;  %13349 = vpow2.f32 %v6430_v20  ;;  %11378 = vmatprep.mubr.f32.mxu0 %v6664_v55  ;;  %v17140_v44 = vand.u32 4294901760, %v6497_v42  ;;  %v6499_v29 = vsel %vm6339_vm15, %v16971_v25, %v9000_v38  ;;  %vm6340_vm2 = vcmp.gt.f32.partialorder %v17035_v54, 0.0  ;;  %v17147_v12 = vpop.f32.mrb[61].mxu0 }
 0x70f   :  { %v6673_v18 = vsub.f32 %v17051_v9, %v19353_v46  ;;  %v6428_v20 = vmul.f32 1.442695, %v6376_v7  ;;  %v18745_v55 = vand.u32 4294901760, %v17057_v1  ;;  %v17149_v46 = vand.u32 4294901760, %v6496_v53 }
 0x710   :  { %19354 = vst [vmem:[#allocation21_spill] sm:$0xff] %v17140_v44  ;;  %v6498_v15 = vsel %vm6338_vm0, %v16975_v8, %v8999_v60  ;;  %v6379_v52 = vmin.f32 %v17136_v31, 0.0  ;;  %v13344_v14 = vpop.eup %13343  ;;  %v17160_v38 = vadd.f32 %v17061_v47, %v16737_v19  ;;  %v17163_v7 = vadd.f32 %v11330_v62, %v16737_v19 }
 0x711   :  { %19355 = vst [vmem:[#allocation18_spill] sm:$0xff] %v17149_v46  ;;  %v6674_v63 = vand.u32 4294901760, %v6673_v18  ;;  %13351 = vpow2.f32 %v6428_v20  ;;  %v6683_v25 = vsub.f32 %v17057_v1, %v18745_v55  ;;  %v17165_v9 = vand.u32 4294901760, %v6499_v29  ;;  %v17172_v20 = vpop.f32.mrb[62].mxu0 }
 0x712   :  { %v6501_v8 = vsel %vm6341_vm1, %v17005_v30, %v9002_v11  ;;  %vm6343_vm3 = vcmp.gt.f32.partialorder %v17042_v50, 0.0  ;;  %v6434_v60 = vmul.f32 1.442695, %v6379_v52  ;;  %v17175_v47 = vsub.f32 %v6494_v51, %v17125_v40  ;;  %v17180_v43 = vpop.f32.mrb[63].mxu0 }
 0x713   :  { %19356 = vst [vmem:[#allocation31_spill] sm:$0xff] %v17165_v9  ;;  %11379 = vmatmul.mubr.f32.gmra.mrb[68].mxu0 %v6674_v63  ;;  %v17177_v55 = vand.u32 4294901760, %v6498_v15  ;;  %v6684_v62 = vand.u32 4294901760, %v6683_v25  ;;  %v6378_v1 = vmin.f32 %v17160_v38, 0.0  ;;  %v13346_v36 = vpop.eup %13345  ;;  %v17183_v30 = vsub.f32 %v6497_v42, %v17140_v44 }
 0x714   :  { %19357 = vst [vmem:[#allocation22_spill] sm:$0xff] %v17175_v47  ;;  %v9001_v11 = vadd.f32 -1.0, %v13344_v14  ;;  %vm6342_vm4 = vcmp.gt.f32.partialorder %v17046_v22, 0.0  ;;  %13353 = vpow2.f32 %v6434_v60  ;;  %v13348_v63 = vpop.eup %13347  ;;  %v17186_v52 = vand.u32 4294901760, %v6501_v8 }
 0x715   :  { %19358 = vst [vmem:[#allocation8_spill] sm:$0xff] %v17177_v55  ;;  %vm6345_vm5 = vcmp.gt.f32.partialorder %v17088_v13, 0.0  ;;  %11381 = vmatprep.mubr.f32.mxu1 %v6684_v62  ;;  %v6432_v51 = vmul.f32 1.442695, %v6378_v1  ;;  %v6381_v25 = vmin.f32 %v17163_v7, 0.0  ;;  %v17191_v18 = vsub.f32 %v6496_v53, %v17149_v46 }
 0x716   :  { %19359 = vst [vmem:[#allocation36_spill] sm:$0xff] %v17186_v52  ;;  %v17194_v40 = vsub.f32 %v6499_v29, %v17165_v9  ;;  %v19360_v42 = vand.u32 4294901760, %v17075_v4  ;;  %v19361_v14 = vand.u32 4294901760, %v17096_v35  ;;  %v17203_v44 = vadd.f32 %v17090_v24, %v16737_v19 }
 0x717   :  { %v17206_v1 = vsub.f32 %v6498_v15, %v17177_v55  ;;  %v9004_v62 = vadd.f32 -1.0, %v13346_v36  ;;  %13355 = vpow2.f32 %v6432_v51  ;;  %v6438_v53 = vmul.f32 1.442695, %v6381_v25 }
 0x718   :  { %11382 = vmatmul.mubr.f32.vlgmr.msra.gmra.mrb[32].mxu1 %v19360_v42  ;;  %v6703_v60 = vsub.f32 %v17096_v35, %v19361_v14  ;;  %v13350_v29 = vpop.eup %13349  ;;  %v6500_v4 = vsel %vm6340_vm2, %v17035_v54, %v9001_v11  ;;  %v9003_v42 = vadd.f32 -1.0, %v13348_v63  ;;  %vm6344_vm6 = vcmp.gt.f32.partialorder %v17114_v16, 0.0 }
 0x719   :  { %12239 = vmatpush3.bf16.msra.mxu1 %v16702_v33  ;;  %v6380_v24 = vmin.f32 %v17203_v44, 0.0  ;;  %v17216_v15 = vsub.f32 %v6501_v8, %v17186_v52  ;;  %v9006_v36 = vadd.f32 -1.0, %v13350_v29  ;;  %vm6347_vm7 = vcmp.gt.f32.partialorder %v17136_v31, 0.0 }
 0x71a   :  { %v6704_v14 = vand.u32 4294901760, %v6703_v60  ;;  %12241 = vmatprep.subr.bf16.mxu1 %v16919_v37  ;;  %13357 = vpow2.f32 %v6438_v53  ;;  %v18756_v33 = vand.u32 4294901760, %v17093_v41  ;;  %v17222_v54 = vadd.f32 %v17110_v61, %v16737_v19 }
 0x71b   :  { %19362 = vst [vmem:[#allocation24_spill] sm:$0xff] %v17216_v15  ;;  %v6436_v51 = vmul.f32 1.442695, %v6380_v24  ;;  %v18757_v11 = vand.u32 4294901760, %v17175_v47  ;;  %v17227_v63 = vadd.f32 %v17117_v58, %v16737_v19  ;;  %v13352_v8 = vpop.eup %13351  ;;  %v17229_v25 = vand.u32 4294901760, %v6500_v4 }
 0x71c   :  { %11384 = vmatprep.mubr.f32.mxu1 %v6704_v14  ;;  %v6503_v60 = vsel %vm6343_vm3, %v17042_v50, %v9004_v62  ;;  %v6713_v53 = vsub.f32 %v17093_v41, %v18756_v33  ;;  %v18764_v61 = vand.u32 4294901760, %v17123_v6  ;;  %v6502_v58 = vsel %vm6342_vm4, %v17046_v22, %v9003_v42 }
 0x71d   :  { %19363 = vst [vmem:[#allocation9_spill] sm:$0xff] %v17229_v25  ;;  %12243 = vmatpush3.bf16.msra.mxu1 %v16919_v37  ;;  %v6505_v29 = vsel %vm6345_vm5, %v17088_v13, %v9006_v36  ;;  %13359 = vpow2.f32 %v6436_v51  ;;  %v17247_v50 = vadd.f32 %v17138_v10, %v16737_v19  ;;  %v9005_v62 = vadd.f32 -1.0, %v13352_v8 }
 0x71e   :  { %12245 = vmatprep.subr.bf16.mxu1 %v16928_v0  ;;  %v6714_v14 = vand.u32 4294901760, %v6713_v53  ;;  %v6383_v37 = vmin.f32 %v17222_v54, 0.0  ;;  %v6723_v24 = vsub.f32 %v17175_v47, %v18757_v11  ;;  %v13354_v22 = vpop.eup %13353  ;;  %v17254_v42 = vand.u32 4294901760, %v6503_v60 }
 0x71f   :  { %vm6346_vm8 = vcmp.gt.f32.partialorder %v17160_v38, 0.0  ;;  %v6382_v13 = vmin.f32 %v17227_v63, 0.0  ;;  %v6733_v10 = vsub.f32 %v17123_v6, %v18764_v61  ;;  %v17262_v36 = vsub.f32 %v6500_v4, %v17229_v25 }
 0x720   :  { %19364 = vst [vmem:[#allocation42_spill] sm:$0xff] %v17254_v42  ;;  %v9008_v51 = vadd.f32 -1.0, %v13354_v22  ;;  %11385 = vmatmul.mubr.f32.gmra.mrb[34].mxu1 %v6714_v14  ;;  %v6442_v8 = vmul.f32 1.442695, %v6383_v37  ;;  %v6724_v53 = vand.u32 4294901760, %v6723_v24  ;;  %v17264_v33 = vand.u32 4294901760, %v6502_v58 }
 0x721   :  { %v17266_v11 = vand.u32 4294901760, %v6505_v29  ;;  %v6440_v47 = vmul.f32 1.442695, %v6382_v13  ;;  %v6385_v41 = vmin.f32 %v17247_v50, 0.0  ;;  %12247 = vmatpush3.bf16.msra.mxu1 %v16928_v0  ;;  %v13356_v35 = vpop.eup %13355  ;;  %v6504_v61 = vsel %vm6344_vm6, %v17114_v16, %v9005_v62 }
 0x722   :  { %19365 = vst [vmem:[#allocation5_spill] sm:$0xff] %v17264_v33  ;;  %vm6349_vm9 = vcmp.gt.f32.partialorder %v17163_v7, 0.0  ;;  %13361 = vpow2.f32 %v6442_v8  ;;  %11387 = vmatprep.mubr.f32.mxu1 %v6724_v53  ;;  %v6734_v4 = vand.u32 4294901760, %v6733_v10  ;;  %v18765_v14 = vand.u32 4294901760, %v17191_v18  ;;  %12249 = vmatprep.subr.bf16.mxu1 %v16935_v2 }
 0x723   :  { %19366 = vst [vmem:[#allocation39_spill] sm:$0xff] %v17266_v11  ;;  %v6507_v37 = vsel %vm6347_vm7, %v17136_v31, %v9008_v51  ;;  %v9007_v24 = vadd.f32 -1.0, %v13356_v35  ;;  %13363 = vpow2.f32 %v6440_v47  ;;  %v6446_v0 = vmul.f32 1.442695, %v6385_v41 }
 0x724   :  { %v13358_v22 = vpop.eup %13357  ;;  %11388 = vmatmul.mubr.f32.gmra.mrb[36].mxu1 %v6734_v4  ;;  %v6743_v16 = vsub.f32 %v17191_v18, %v18765_v14  ;;  %v17284_v62 = vadd.f32 %v17147_v12, %v16737_v19  ;;  %v18766_v13 = vand.u32 4294901760, %v17183_v30  ;;  %v17289_v10 = vadd.f32 %v17172_v20, %v16737_v19 }
 0x725   :  { %v17292_v35 = vsub.f32 %v6503_v60, %v17254_v42  ;;  %v6506_v41 = vsel %vm6346_vm8, %v17160_v38, %v9007_v24  ;;  %vm6348_vm10 = vcmp.gt.f32.partialorder %v17203_v44, 0.0  ;;  %13365 = vpow2.f32 %v6446_v0  ;;  %12251 = vmatpush3.bf16.msra.mxu1 %v16935_v2 }
 0x726   :  { %v17300_v31 = vsub.f32 %v6502_v58, %v17264_v33  ;;  %v17302_v12 = vand.u32 4294901760, %v6504_v61  ;;  %v6744_v47 = vand.u32 4294901760, %v6743_v16  ;;  %v6384_v20 = vmin.f32 %v17284_v62, 0.0  ;;  %12253 = vmatprep.subr.bf16.mxu1 %v16937_v48 }
 0x727   :  { %v13360_v60 = vpop.eup %13359  ;;  %v17306_v51 = vand.u32 4294901760, %v6507_v37  ;;  %v9010_v8 = vadd.f32 -1.0, %v13358_v22  ;;  %vm6350_vm11 = vcmp.gt.f32.partialorder %v17227_v63, 0.0  ;;  %v6753_v2 = vsub.f32 %v17183_v30, %v18766_v13 }
 0x728   :  { %19367 = vst [vmem:[#allocation12_spill] sm:$0xff] %v17300_v31  ;;  %19368 = vst [vmem:[#allocation11_spill] sm:$0xff] %v17302_v12  ;;  %v6387_v38 = vmin.f32 %v17289_v10, 0.0  ;;  %v17314_v58 = vsub.f32 %v6505_v29, %v17266_v11  ;;  %v17316_v53 = vand.u32 4294901760, %v6506_v41  ;;  %v9009_v4 = vadd.f32 -1.0, %v13360_v60  ;;  %11390 = vmatprep.mubr.f32.mxu1 %v6744_v47 }
 0x729   :  { %19369 = vst [vmem:[#allocation48_spill] sm:$0xff] %v17306_v51  ;;  %v6444_v24 = vmul.f32 1.442695, %v6384_v20  ;;  %v6754_v0 = vand.u32 4294901760, %v6753_v2  ;;  %v18768_v22 = vand.u32 4294901760, %v17206_v1  ;;  %v17321_v14 = vadd.f32 %v17180_v43, %v16737_v19  ;;  %12255 = vmatpush3.bf16.msra.mxu1 %v16937_v48 }
 0x72a   :  { %19370 = vst [vmem:[#allocation43_spill] sm:$0xff] %v17316_v53  ;;  %v6450_v16 = vmul.f32 1.442695, %v6387_v38  ;;  %v17325_v13 = vsub.f32 %v6504_v61, %v17302_v12  ;;  %v6508_v29 = vsel %vm6348_vm10, %v17203_v44, %v9009_v4  ;;  %vm6351_vm12 = vcmp.gt.f32.partialorder %v17222_v54, 0.0  ;;  %12257 = vmatprep.subr.bf16.mxu1 %v16942_v28 }
 0x72b   :  { %13367 = vpow2.f32 %v6444_v24  ;;  %v18767_v47 = vand.u32 4294901760, %v17194_v40  ;;  %v17334_v20 = vsub.f32 %v6507_v37, %v17306_v51  ;;  %v6509_v43 = vsel %vm6349_vm9, %v17163_v7, %v9010_v8  ;;  %11391 = vmatmul.mubr.f32.gmra.mrb[38].mxu1 %v6754_v0 }
 0x72c   :  { %13369 = vpow2.f32 %v6450_v16  ;;  %v6763_v19 = vsub.f32 %v17206_v1, %v18768_v22  ;;  %v13362_v48 = vpop.eup %13361  ;;  %v6386_v44 = vmin.f32 %v17321_v14, 0.0  ;;  %v18769_v37 = vand.u32 4294901760, %v17262_v36 }
 0x72d   :  { %v6773_v61 = vsub.f32 %v17194_v40, %v18767_v47  ;;  %v13364_v2 = vpop.eup %13363  ;;  %v17349_v7 = vsub.f32 %v6506_v41, %v17316_v53  ;;  %v17351_v8 = vand.u32 4294901760, %v6508_v29  ;;  %v18772_v4 = vand.u32 4294901760, %v17300_v31  ;;  %12259 = vmatpush3.bf16.msra.mxu1 %v16942_v28 }
 0x72e   :  { %v6764_v38 = vand.u32 4294901760, %v6763_v19  ;;  %v9011_v24 = vadd.f32 -1.0, %v13364_v2  ;;  %v6448_v0 = vmul.f32 1.442695, %v6386_v44  ;;  %v6783_v47 = vsub.f32 %v17262_v36, %v18769_v37  ;;  %12261 = vmatprep.subr.bf16.mxu1 %v16944_v32 }
 0x72f   :  { %19371 = vst [vmem:[#allocation49_spill] sm:$0xff] %v17351_v8  ;;  %v6774_v16 = vand.u32 4294901760, %v6773_v61  ;;  %v13366_v22 = vpop.eup %13365  ;;  %v9012_v60 = vadd.f32 -1.0, %v13362_v48  ;;  %v19372_v41 = vand.u32 4294901760, %v17216_v15  ;;  %v6803_v28 = vsub.f32 %v17300_v31, %v18772_v4 }
 0x730   :  { %11393 = vmatprep.mubr.f32.mxu1 %v6764_v38  ;;  %v18779_v44 = vand.u32 4294901760, %v17292_v35  ;;  %v17366_v61 = vand.u32 4294901760, %v6509_v43  ;;  %v6510_v2 = vsel %vm6350_vm11, %v17227_v63, %v9011_v24  ;;  %v9014_v37 = vadd.f32 -1.0, %v13366_v22 }
 0x731   :  { %v6793_v19 = vsub.f32 %v17216_v15, %v19372_v41  ;;  %13371 = vpow2.f32 %v6448_v0  ;;  %11394 = vmatmul.mubr.f32.gmra.mrb[40].mxu1 %v6774_v16  ;;  %v17372_v48 = vsub.f32 %v6508_v29, %v17351_v8  ;;  %v17374_v38 = vand.u32 4294901760, %v6510_v2 }
 0x732   :  { %19373 = vst [vmem:[#allocation46_spill] sm:$0xff] %v17366_v61  ;;  %v6784_v41 = vand.u32 4294901760, %v6783_v47  ;;  %v6804_v15 = vand.u32 4294901760, %v6803_v28  ;;  %12263 = vmatpush3.bf16.msra.mxu1 %v16944_v32  ;;  %vm6353_vm13 = vcmp.gt.f32.partialorder %v17247_v50, 0.0  ;;  %v6813_v31 = vsub.f32 %v17292_v35, %v18779_v44 }
 0x733   :  { %19374 = vst [vmem:[#allocation54_spill] sm:$0xff] %v17372_v48  ;;  %19375 = vst [vmem:[#allocation58_spill] sm:$0xff] %v17374_v38  ;;  %v6794_v4 = vand.u32 4294901760, %v6793_v19  ;;  %v18775_v63 = vand.u32 4294901760, %v17325_v13  ;;  %12265 = vmatprep.subr.bf16.mxu1 %v16951_v21  ;;  %v6511_v22 = vsel %vm6351_vm12, %v17222_v54, %v9012_v60  ;;  %vm6352_vm14 = vcmp.gt.f32.partialorder %v17284_v62, 0.0 }
 0x734   :  { %11396 = vmatprep.mubr.f32.mxu1 %v6784_v41  ;;  %v18777_v32 = vand.u32 4294901760, %v17314_v58  ;;  %v18776_v29 = vand.u32 4294901760, %v17349_v7  ;;  %v17390_v24 = vsub.f32 %v6509_v43, %v17366_v61  ;;  %v6513_v0 = vsel %vm6353_vm13, %v17247_v50, %v9014_v37 }
 0x735   :  { %v13368_v47 = vpop.eup %13367  ;;  %11397 = vmatmul.mubr.f32.gmra.mrb[42].mxu1 %v6794_v4  ;;  %v6823_v16 = vsub.f32 %v17325_v13, %v18775_v63  ;;  %v18778_v54 = vand.u32 4294901760, %v17334_v20  ;;  %v17398_v19 = vsub.f32 %v6510_v2, %v17374_v38  ;;  %v18780_v41 = vand.u32 4294901760, %v17372_v48 }
 0x736   :  { %v13370_v60 = vpop.eup %13369  ;;  %v9013_v28 = vadd.f32 -1.0, %v13368_v47  ;;  %11399 = vmatprep.mubr.f32.mxu1 %v6804_v15  ;;  %v6843_v43 = vsub.f32 %v17349_v7, %v18776_v29  ;;  %12267 = vmatpush3.bf16.msra.mxu1 %v16951_v21  ;;  %v17405_v50 = vand.u32 4294901760, %v6511_v22  ;;  %v6814_v37 = vand.u32 4294901760, %v6813_v31 }
 0x737   :  { %v6824_v4 = vand.u32 4294901760, %v6823_v16  ;;  %v6833_v63 = vsub.f32 %v17314_v58, %v18777_v32  ;;  %12269 = vmatprep.subr.bf16.mxu1 %v16729_v56  ;;  %v9016_v2 = vadd.f32 -1.0, %v13370_v60  ;;  %v17414_v47 = vand.u32 4294901760, %v6513_v0 }
 0x738   :  { %19376 = vst [vmem:[#allocation59_spill] sm:$0xff] %v17405_v50  ;;  %v6512_v15 = vsel %vm6352_vm14, %v17284_v62, %v9013_v28  ;;  %v6853_v21 = vsub.f32 %v17334_v20, %v18778_v54  ;;  %vm6355_vm15 = vcmp.gt.f32.partialorder %v17289_v10, 0.0  ;;  %v6844_v31 = vand.u32 4294901760, %v6843_v43 }
 0x739   :  { %19377 = vst [vmem:[#allocation61_spill] sm:$0xff] %v17414_v47  ;;  %v17416_v29 = vand.u32 4294901760, %v6512_v15  ;;  %11400 = vmatmul.mubr.f32.gmra.mrb[44].mxu1 %v6814_v37  ;;  %v6863_v16 = vsub.f32 %v17372_v48, %v18780_v41  ;;  %v17427_v28 = vsub.f32 %v6511_v22, %v17405_v50  ;;  %v6834_v32 = vand.u32 4294901760, %v6833_v63 }
 0x73a   :  { %11402 = vmatprep.mubr.f32.mxu1 %v6824_v4  ;;  %v6515_v44 = vsel %vm6355_vm15, %v17289_v10, %v9016_v2  ;;  %v17435_v43 = vsub.f32 %v6513_v0, %v17414_v47  ;;  %vm6354_vm0 = vcmp.gt.f32.partialorder %v17321_v14, 0.0  ;;  %v6854_v41 = vand.u32 4294901760, %v6853_v21 }
 0x73b   :  { %19378 = vst [vmem:[#allocation62_spill] sm:$0xff] %v17416_v29  ;;  %v13372_v60 = vpop.eup %13371  ;;  %v17430_v37 = vsub.f32 %v6512_v15, %v17416_v29  ;;  %v6864_v22 = vand.u32 4294901760, %v6863_v16  ;;  %v19379_v15 = vand.u32 4294901760, %v17398_v19  ;;  %v17443_v48 = vand.u32 4294901760, %v6515_v44 }
 0x73c   :  { %v9015_v4 = vadd.f32 -1.0, %v13372_v60  ;;  %v19382_v0 = vand.u32 4294901760, %v17390_v24  ;;  %v18786_v16 = vand.u32 4294901760, %v17435_v43  ;;  %vm8513_vm1 = vcmask 130048  }
 0x73d   :  { %11403 = vmatmul.mubr.f32.gmra.mrb[46].mxu1 %v6834_v32  ;;  %v6883_v63 = vsub.f32 %v17398_v19, %v19379_v15  ;;  %v18783_v54 = vand.u32 4294901760, %v17430_v37  ;;  %19380 = vst [vmem:[#allocation64_spill] sm:$0xff] %v17443_v48  ;;  %v18787_v32 = vand.u32 4294901760, %v17427_v28  ;;  %v17459_v60 = vsub.f32 %v6515_v44, %v17443_v48 }
 0x73e   :  { %v6514_v62 = vsel %vm6354_vm0, %v17321_v14, %v9015_v4  ;;  %11405 = vmatprep.mubr.f32.mxu1 %v6844_v31  ;;  %v6873_v2 = vsub.f32 %v17390_v24, %v19382_v0  ;;  %v6913_v44 = vsub.f32 %v17435_v43, %v18786_v16  ;;  %v19399_v16 = vld [vmem:[#allocation33_spill] sm:$0xff] }
 0x73f   :  { %v17445_v10 = vand.u32 4294901760, %v6514_v62  ;;  %v6884_v21 = vand.u32 4294901760, %v6883_v63  ;;  %v6903_v31 = vsub.f32 %v17430_v37, %v18783_v54  ;;  %v6893_v15 = vsub.f32 %v17427_v28, %v18787_v32  ;;  %v19400_v32 = vld [vmem:[#allocation63_spill] sm:$0xff] }
 0x740   :  { %v6874_v4 = vand.u32 4294901760, %v6873_v2  ;;  %v18784_v0 = vand.u32 4294901760, %v17459_v60  ;;  %v6914_v54 = vand.u32 4294901760, %v6913_v44  ;;  %v19390_v44 = vld [vmem:[#allocation10_spill] sm:$0xff] }
 0x741   :  { %19381 = vst [vmem:[#allocation65_spill] sm:$0xff] %v17445_v10  ;;  %v17452_v14 = vsub.f32 %v6514_v62, %v17445_v10  ;;  %11406 = vmatmul.mubr.f32.gmra.mrb[48].mxu1 %v6854_v41  ;;  %v6904_v41 = vand.u32 4294901760, %v6903_v31  ;;  %v6894_v63 = vand.u32 4294901760, %v6893_v15  ;;  %v19386_v15 = vld [vmem:[#allocation37_spill] sm:$0xff] }
 0x742   :  { %11408 = vmatprep.mubr.f32.mxu1 %v6864_v22 }
 0x743   :  { %v18785_v62 = vand.u32 4294901760, %v17452_v14 }
 0x745   :  { %11409 = vmatmul.mubr.f32.gmra.mrb[50].mxu1 %v6874_v4  ;;  %v6923_v22 = vsub.f32 %v17452_v14, %v18785_v62  ;;  %v19384_v4 = vld [vmem:[#allocation53_spill] sm:$0xff] }
 0x746   :  { %11411 = vmatprep.mubr.f32.mxu1 %v6884_v21  ;;  %v6933_v21 = vsub.f32 %v17459_v60, %v18784_v0  ;;  %v19394_v62 = vld [vmem:[#allocation21_spill] sm:$0xff] }
 0x747   :  { %v6924_v2 = vand.u32 4294901760, %v6923_v22  ;;  %v19387_v22 = vld [vmem:[#allocation34_spill] sm:$0xff] }
 0x748   :  { %v6934_v31 = vand.u32 4294901760, %v6933_v21  ;;  %v19391_v21 = vld [vmem:[#allocation15_spill] sm:$0xff] }
 0x749   :  { %11412 = vmatmul.mubr.f32.gmra.mrb[52].mxu1 %v6894_v63  ;;  %v19388_v63 = vld [vmem:[#allocation30_spill] sm:$0xff] }
 0x74a   :  { %11414 = vmatprep.mubr.f32.mxu1 %v6904_v41 }
 0x74d   :  { %11415 = vmatmul.mubr.f32.gmra.mrb[54].mxu1 %v6914_v54  ;;  %v19383_v54 = vld [vmem:[#allocation45_spill] sm:$0xff] }
 0x74e   :  { %11417 = vmatprep.mubr.f32.mxu1 %v6924_v2 }
 0x751   :  { %11418 = vmatmul.mubr.f32.gmra.mrb[56].mxu1 %v6934_v31  ;;  %v19393_v31 = vld [vmem:[#allocation29_spill] sm:$0xff] }
 0x752   :  { %11452 = vmatprep.mubr.f32.mxu1 %v16960_v45 }
 0x755   :  { %11453 = vmatmul.mubr.f32.vlgmr.msra.gmra.mrb[58].mxu1 %v16939_v49 }
 0x756   :  { %12271 = vmatpush3.bf16.msra.mxu1 %v16729_v56  ;;  %11455 = vmatprep.mubr.f32.mxu1 %v16986_v59  ;;  %v12284_v56 = vpack.c.bf16 %v16780_v17, %v16754_v23 }
 0x757   :  { %12273 = vmatprep.subr.bf16.mxu1 %v16784_v39 }
 0x759   :  { %11456 = vmatmul.mubr.f32.gmra.mrb[60].mxu1 %v16989_v34 }
 0x75a   :  { %11458 = vmatprep.mubr.f32.mxu1 %v17021_v3  ;;  %12275 = vmatpush3.bf16.msra.mxu1 %v16784_v39  ;;  %v19385_v39 = vld [vmem:[#allocation32_spill] sm:$0xff] }
 0x75b   :  { %12277 = vmatprep.subr.bf16.mxu1 %v16848_v27  ;;  %v12288_v41 = vpack.c.bf16 %v19386_v15, %v19385_v39 }
 0x75d   :  { %11459 = vmatmul.mubr.f32.gmra.mrb[62].mxu1 %v17018_v26 }
 0x75e   :  { %11461 = vmatprep.mubr.f32.mxu1 %v17023_v5  ;;  %12279 = vmatpush3.bf16.msra.mxu1 %v16848_v27  ;;  %v19389_v27 = vld [vmem:[#allocation38_spill] sm:$0xff] }
 0x75f   :  { %12281 = vmatprep.subr.bf16.mxu1 %v16900_v57  ;;  %v12292_v2 = vpack.c.bf16 %v19390_v44, %v19389_v27 }
 0x761   :  { %11462 = vmatmul.mubr.f32.gmra.mrb[32].mxu1 %v19383_v54 }
 0x762   :  { %11464 = vmatprep.mubr.f32.mxu1 %v19384_v4  ;;  %12283 = vmatpush3.bf16.msra.mxu1 %v16900_v57  ;;  %v19392_v57 = vld [vmem:[#allocation41_spill] sm:$0xff]  ;;  %v19430_v4 = vld [vmem:[#allocation26_spill] sm:$0xff] }
 0x763   :  { %12285 = vmatprep.subr.bf16.mxu1 %v12284_v56  ;;  %v12296_v0 = vpack.c.bf16 %v19393_v31, %v19392_v57  ;;  %v19431_v54 = vand.u32 4294901760, %v19430_v4 }
 0x765   :  { %11465 = vmatmul.mubr.f32.gmra.mrb[34].mxu1 %v19387_v22  ;;  %v19428_v22 = vld [vmem:[#allocation60_spill] sm:$0xff] }
 0x766   :  { %11467 = vmatprep.mubr.f32.mxu1 %v19388_v63  ;;  %12287 = vmatpush3.bf16.msra.mxu1 %v12284_v56  ;;  %v19395_v56 = vld [vmem:[#allocation7_spill] sm:$0xff] }
 0x767   :  { %12289 = vmatprep.subr.bf16.mxu1 %v12288_v41 }
 0x769   :  { %11468 = vmatmul.mubr.f32.gmra.mrb[36].mxu1 %v19391_v21 }
 0x76a   :  { %11470 = vmatprep.mubr.f32.mxu1 %v17149_v46  ;;  %12291 = vmatpush3.bf16.msra.mxu1 %v12288_v41  ;;  %v19397_v41 = vld [vmem:[#allocation25_spill] sm:$0xff]  ;;  %v19419_v46 = vld [vmem:[#allocation12_spill] sm:$0xff] }
 0x76b   :  { %12293 = vmatprep.subr.bf16.mxu1 %v12292_v2 }
 0x76d   :  { %11471 = vmatmul.mubr.f32.gmra.mrb[38].mxu1 %v19394_v62  ;;  %v19418_v62 = vld [vmem:[#allocation24_spill] sm:$0xff] }
 0x76e   :  { %11473 = vmatprep.mubr.f32.mxu1 %v17177_v55  ;;  %12295 = vmatpush3.bf16.msra.mxu1 %v12292_v2  ;;  %v19398_v2 = vld [vmem:[#allocation57_spill] sm:$0xff] }
 0x76f   :  { %12297 = vmatprep.subr.bf16.mxu1 %v12296_v0  ;;  %v19427_v63 = vand.u32 4294901760, %v19398_v2 }
 0x771   :  { %11474 = vmatmul.mubr.f32.gmra.mrb[40].mxu1 %v17165_v9 }
 0x772   :  { %11476 = vmatprep.mubr.f32.mxu1 %v17229_v25  ;;  %12299 = vmatpush3.bf16.msra.mxu1 %v12296_v0  ;;  %v19396_v0 = vld [vmem:[#allocation50_spill] sm:$0xff]  ;;  %v19416_v25 = vld [vmem:[#allocation56_spill] sm:$0xff] }
 0x773   :  { %12301 = vmatprep.subr.bf16.mxu1 %v19395_v56  ;;  %v19417_v9 = vand.u32 4294901760, %v19416_v25 }
 0x775   :  { %11477 = vmatmul.mubr.f32.gmra.mrb[42].mxu1 %v17186_v52 }
 0x776   :  { %11479 = vmatprep.mubr.f32.mxu1 %v17264_v33  ;;  %v19414_v33 = vld [vmem:[#allocation13_spill] sm:$0xff] }
 0x777   :  { %v19415_v52 = vand.u32 4294901760, %v19414_v33  ;;  %v19422_v33 = vld [vmem:[#allocation23_spill] sm:$0xff] }
 0x778   :  { %v19423_v25 = vand.u32 4294901760, %v19422_v33 }
 0x779   :  { %11480 = vmatmul.mubr.f32.gmra.mrb[44].mxu1 %v17254_v42  ;;  %v19413_v42 = vld [vmem:[#allocation14_spill] sm:$0xff]  ;;  %v12332_v55 = vpack.c.bf16 %v19417_v9, %v19415_v52  ;;  %v19421_v52 = vand.u32 4294901760, %v19396_v0 }
 0x77a   :  { %11482 = vmatprep.mubr.f32.mxu1 %v17302_v12  ;;  %v19412_v12 = vld [vmem:[#allocation20_spill] sm:$0xff]  ;;  %v19420_v9 = vld [vmem:[#allocation54_spill] sm:$0xff] }
 0x77d   :  { %11483 = vmatmul.mubr.f32.gmra.mrb[46].mxu1 %v17266_v11  ;;  %v19411_v11 = vld [vmem:[#allocation47_spill] sm:$0xff] }
 0x77e   :  { %11485 = vmatprep.mubr.f32.mxu1 %v17316_v53  ;;  %v19410_v53 = vld [vmem:[#allocation22_spill] sm:$0xff] }
 0x781   :  { %11486 = vmatmul.mubr.f32.gmra.mrb[48].mxu1 %v17306_v51  ;;  %v19409_v51 = vld [vmem:[#allocation16_spill] sm:$0xff] }
 0x782   :  { %11488 = vmatprep.mubr.f32.mxu1 %v17351_v8  ;;  %v19408_v8 = vld [vmem:[#allocation44_spill] sm:$0xff] }
 0x785   :  { %11489 = vmatmul.mubr.f32.gmra.mrb[50].mxu1 %v17366_v61  ;;  %v19407_v61 = vld [vmem:[#allocation19_spill] sm:$0xff] }
 0x786   :  { %11491 = vmatprep.mubr.f32.mxu1 %v17374_v38  ;;  %v19406_v38 = vld [vmem:[#allocation51_spill] sm:$0xff] }
 0x789   :  { %11492 = vmatmul.mubr.f32.gmra.mrb[52].mxu1 %v17405_v50  ;;  %v19401_v50 = vld [vmem:[#allocation6_spill] sm:$0xff] }
 0x78a   :  { %11494 = vmatprep.mubr.f32.mxu1 %v17416_v29  ;;  %v19405_v29 = vld [vmem:[#allocation40_spill] sm:$0xff] }
 0x78d   :  { %11495 = vmatmul.mubr.f32.gmra.mrb[54].mxu1 %v17414_v47  ;;  %v19402_v47 = vld [vmem:[#allocation35_spill] sm:$0xff] }
 0x78e   :  { %11497 = vmatprep.mubr.f32.mxu1 %v17445_v10  ;;  %v19403_v10 = vld [vmem:[#allocation28_spill] sm:$0xff] }
 0x78f   :  { %v19438_v4 = vand.u32 4294901760, %v19403_v10 }
 0x791   :  { %11498 = vmatmul.mubr.f32.gmra.mrb[56].mxu1 %v17443_v48  ;;  %v19404_v48 = vld [vmem:[#allocation27_spill] sm:$0xff] }
 0x792   :  { %11532 = vmatprep.mubr.f32.mxu1 %v19396_v0  ;;  %v19432_v0 = vand.u32 4294901760, %v19400_v32 }
 0x795   :  { %11533 = vmatmul.mubr.f32.vlgmr.msra.gmra.mrb[58].mxu1 %v19397_v41 }
 0x796   :  { %12303 = vmatpush3.bf16.msra.mxu1 %v19395_v56  ;;  %11535 = vmatprep.mubr.f32.mxu1 %v19398_v2  ;;  %v19442_v2 = vand.u32 4294901760, %v19406_v38 }
 0x797   :  { %12305 = vmatprep.subr.bf16.mxu1 %v19399_v16 }
 0x799   :  { %11536 = vmatmul.mubr.f32.gmra.mrb[60].mxu1 %v19400_v32  ;;  %v19441_v32 = vand.u32 4294901760, %v16780_v17  ;;  %v19446_v17 = vand.u32 4294901760, %v19409_v51 }
 0x79a   :  { %11538 = vmatprep.mubr.f32.mxu1 %v19401_v50  ;;  %12307 = vmatpush3.bf16.msra.mxu1 %v19399_v16 }
 0x79b   :  { %12309 = vmatprep.subr.bf16.mxu1 %v19402_v47 }
 0x79d   :  { %11539 = vmatmul.mubr.f32.gmra.mrb[62].mxu1 %v19403_v10  ;;  %v19443_v10 = vand.u32 4294901760, %v19407_v61 }
 0x79e   :  { %11541 = vmatprep.mubr.f32.mxu1 %v19404_v48  ;;  %12311 = vmatpush3.bf16.msra.mxu1 %v19402_v47 }
 0x79f   :  { %12313 = vmatprep.subr.bf16.mxu1 %v19405_v29 }
 0x7a1   :  { %11542 = vmatmul.mubr.f32.gmra.mrb[32].mxu1 %v19406_v38 }
 0x7a2   :  { %11544 = vmatprep.mubr.f32.mxu1 %v19407_v61  ;;  %12315 = vmatpush3.bf16.msra.mxu1 %v19405_v29  ;;  %v19448_v61 = vand.u32 4294901760, %v19389_v27  ;;  %v19454_v27 = vand.u32 4294901760, %v17183_v30 }
 0x7a3   :  { %12317 = vmatprep.subr.bf16.mxu1 %v19408_v8 }
 0x7a5   :  { %11545 = vmatmul.mubr.f32.gmra.mrb[34].mxu1 %v19409_v51  ;;  %v19451_v51 = vand.u32 4294901760, %v17191_v18 }
 0x7a6   :  { %11547 = vmatprep.mubr.f32.mxu1 %v19410_v53  ;;  %12319 = vmatpush3.bf16.msra.mxu1 %v19408_v8  ;;  %v19429_v8 = vand.u32 4294901760, %v19428_v22 }
 0x7a7   :  { %12321 = vmatprep.subr.bf16.mxu1 %v19411_v11 }
 0x7a8   :  { %v12340_v29 = vpack.c.bf16 %v19431_v54, %v19429_v8  ;;  %v19439_v8 = vand.u32 4294901760, %v19404_v48  ;;  %v19444_v48 = vand.u32 4294901760, %v19385_v39  ;;  %v19450_v39 = vand.u32 4294901760, %v17123_v6 }
 0x7a9   :  { %11548 = vmatmul.mubr.f32.gmra.mrb[36].mxu1 %v17123_v6  ;;  %v19456_v6 = vand.u32 4294901760, %v17194_v40 }
 0x7aa   :  { %11550 = vmatprep.mubr.f32.mxu1 %v17191_v18  ;;  %12323 = vmatpush3.bf16.msra.mxu1 %v19411_v11  ;;  %v19426_v11 = vand.u32 4294901760, %v19397_v41  ;;  %v19457_v18 = vand.u32 4294901760, %v17262_v36 }
 0x7ab   :  { %12325 = vmatprep.subr.bf16.mxu1 %v19412_v12 }
 0x7ad   :  { %11551 = vmatmul.mubr.f32.gmra.mrb[38].mxu1 %v17183_v30  ;;  %v19459_v30 = vand.u32 4294901760, %v19419_v46 }
 0x7ae   :  { %11553 = vmatprep.mubr.f32.mxu1 %v17206_v1  ;;  %12327 = vmatpush3.bf16.msra.mxu1 %v19412_v12 }
 0x7af   :  { %12329 = vmatprep.subr.bf16.mxu1 %v19413_v42 }
 0x7b1   :  { %11554 = vmatmul.mubr.f32.gmra.mrb[40].mxu1 %v17194_v40  ;;  %v19462_v40 = vand.u32 4294901760, %v17314_v58 }
 0x7b2   :  { %11556 = vmatprep.mubr.f32.mxu1 %v17262_v36  ;;  %12331 = vmatpush3.bf16.msra.mxu1 %v19413_v42  ;;  %v19424_v42 = vld [vmem:[#allocation52_spill] sm:$0xff]  ;;  %v19463_v36 = vand.u32 4294901760, %v17349_v7 }
 0x7b3   :  { %12333 = vmatprep.subr.bf16.mxu1 %v12332_v55  ;;  %v19425_v12 = vand.u32 4294901760, %v19424_v42 }
 0x7b5   :  { %11557 = vmatmul.mubr.f32.gmra.mrb[42].mxu1 %v19418_v62  ;;  %v12336_v21 = vpack.c.bf16 %v19425_v12, %v19423_v25  ;;  %v19447_v25 = vand.u32 4294901760, %v19410_v53  ;;  %v19452_v53 = vand.u32 4294901760, %v19392_v57  ;;  %v19458_v57 = vand.u32 4294901760, %v19418_v62 }
 0x7b6   :  { %11559 = vmatprep.mubr.f32.mxu1 %v19419_v46  ;;  %v19465_v62 = vand.u32 4294901760, %v19420_v9  ;;  %v19466_v46 = vand.u32 4294901760, %v17390_v24 }
 0x7b9   :  { %11560 = vmatmul.mubr.f32.gmra.mrb[44].mxu1 %v17292_v35 }
 0x7ba   :  { %11562 = vmatprep.mubr.f32.mxu1 %v17325_v13 }
 0x7bd   :  { %11563 = vmatmul.mubr.f32.gmra.mrb[46].mxu1 %v17314_v58  ;;  %v19469_v58 = vand.u32 4294901760, %v17430_v37 }
 0x7be   :  { %11565 = vmatprep.mubr.f32.mxu1 %v17349_v7  ;;  %v19470_v7 = vand.u32 4294901760, %v17435_v43 }
 0x7c1   :  { %11566 = vmatmul.mubr.f32.gmra.mrb[48].mxu1 %v17334_v20 }
 0x7c2   :  { %11568 = vmatprep.mubr.f32.mxu1 %v19420_v9  ;;  %v19472_v9 = vand.u32 4294901760, %v17459_v60 }
 0x7c5   :  { %11569 = vmatmul.mubr.f32.gmra.mrb[50].mxu1 %v17390_v24  ;;  %v19473_v24 = vld [vmem:[#allocation40_spill] sm:$0xff] }
 0x7c6   :  { %11571 = vmatprep.mubr.f32.mxu1 %v17398_v19 }
 0x7c9   :  { %11572 = vmatmul.mubr.f32.gmra.mrb[52].mxu1 %v17427_v28 }
 0x7ca   :  { %11574 = vmatprep.mubr.f32.mxu1 %v17430_v37  ;;  %v19476_v37 = vld [vmem:[#allocation44_spill] sm:$0xff] }
 0x7cd   :  { %11575 = vmatmul.mubr.f32.gmra.mrb[54].mxu1 %v17435_v43  ;;  %v19477_v43 = vld [vmem:[#allocation34_spill] sm:$0xff] }
 0x7ce   :  { %11577 = vmatprep.mubr.f32.mxu1 %v17452_v14 }
 0x7d1   :  { %11578 = vmatmul.mubr.f32.gmra.mrb[56].mxu1 %v17459_v60  ;;  %v19480_v60 = vld [vmem:[#allocation15_spill] sm:$0xff] }
 0x7d2   :  { %11612 = vmatprep.mubr.f32.mxu1 %v19421_v52  ;;  %v19433_v52 = vand.u32 4294901760, %v19401_v50  ;;  %v19440_v50 = vand.u32 4294901760, %v16754_v23 }
 0x7d4   :  { %v12348_v54 = vpack.c.bf16 %v19441_v32, %v19440_v50  ;;  %v19487_v50 = vld [vmem:[#allocation9_spill] sm:$0xff]  ;;  %v19488_v32 = vld [vmem:[#allocation36_spill] sm:$0xff] }
 0x7d5   :  { %11613 = vmatmul.mubr.f32.vlgmr.msra.gmra.mrb[58].mxu1 %v19426_v11  ;;  %v19434_v11 = vld [vmem:[#allocation55_spill] sm:$0xff] }
 0x7d6   :  { %12335 = vmatpush3.bf16.msra.mxu1 %v12332_v55  ;;  %11615 = vmatprep.mubr.f32.mxu1 %v19427_v63  ;;  %v17592_v42 = vpop.f32.mrb[64].mxu0  ;;  %v19435_v12 = vand.u32 4294901760, %v19434_v11  ;;  %v19436_v63 = vld [vmem:[#allocation17_spill] sm:$0xff] }
 0x7d7   :  { %12337 = vmatprep.subr.bf16.mxu1 %v12336_v21  ;;  %v17594_v55 = vpop.f32.mrb[65].mxu0  ;;  %v19437_v41 = vand.u32 4294901760, %v19436_v63  ;;  %v19464_v63 = vand.u32 4294901760, %v17334_v20  ;;  %v19471_v20 = vand.u32 4294901760, %v17452_v14  ;;  %v19478_v14 = vld [vmem:[#allocation30_spill] sm:$0xff] }
 0x7d9   :  { %11616 = vmatmul.mubr.f32.gmra.mrb[60].mxu1 %v19432_v0  ;;  %v12344_v22 = vpack.c.bf16 %v19437_v41, %v19435_v12  ;;  %v19449_v0 = vand.u32 4294901760, %v19390_v44  ;;  %v19455_v44 = vand.u32 4294901760, %v17206_v1  ;;  %v19460_v1 = vand.u32 4294901760, %v17292_v35  ;;  %v19483_v41 = vld [vmem:[#allocation21_spill] sm:$0xff] }
 0x7da   :  { %11618 = vmatprep.mubr.f32.mxu1 %v19433_v52  ;;  %12339 = vmatpush3.bf16.msra.mxu1 %v12336_v21  ;;  %v19467_v35 = vand.u32 4294901760, %v17398_v19  ;;  %v19474_v19 = vld [vmem:[#allocation45_spill] sm:$0xff] }
 0x7db   :  { %12341 = vmatprep.subr.bf16.mxu1 %v12340_v29  ;;  %v12356_v52 = vpack.c.bf16 %v19449_v0, %v19448_v61  ;;  %v19497_v61 = vld [vmem:[#allocation58_spill] sm:$0xff]  ;;  %v19498_v0 = vld [vmem:[#allocation59_spill] sm:$0xff] }
 0x7dd   :  { %11619 = vmatmul.mubr.f32.gmra.mrb[62].mxu1 %v19438_v4  ;;  %v19485_v4 = vld [vmem:[#allocation14_spill] sm:$0xff] }
 0x7de   :  { %11621 = vmatprep.mubr.f32.mxu1 %v19439_v8  ;;  %12343 = vmatpush3.bf16.msra.mxu1 %v12340_v29  ;;  %v17608_v21 = vpop.f32.mrb[66].mxu0  ;;  %v19445_v29 = vand.u32 4294901760, %v19386_v15  ;;  %v19453_v15 = vand.u32 4294901760, %v19393_v31  ;;  %v19461_v31 = vand.u32 4294901760, %v17325_v13  ;;  %v19468_v13 = vand.u32 4294901760, %v17427_v28  ;;  %v19475_v28 = vld [vmem:[#allocation53_spill] sm:$0xff] }
 0x7df   :  { %12345 = vmatprep.subr.bf16.mxu1 %v12344_v22  ;;  %v17612_v33 = vpop.f32.mrb[67].mxu0  ;;  %v19486_v8 = vld [vmem:[#allocation31_spill] sm:$0xff] }
 0x7e0   :  { %v12352_v23 = vpack.c.bf16 %v19445_v29, %v19444_v48  ;;  %v12360_v12 = vpack.c.bf16 %v19453_v15, %v19452_v53  ;;  %v19492_v48 = vld [vmem:[#allocation39_spill] sm:$0xff]  ;;  %v19502_v53 = vld [vmem:[#allocation64_spill] sm:$0xff] }
 0x7e1   :  { %11622 = vmatmul.mubr.f32.gmra.mrb[32].mxu1 %v19442_v2  ;;  %v19490_v2 = vld [vmem:[#allocation42_spill] sm:$0xff]  ;;  %v19493_v29 = vld [vmem:[#allocation43_spill] sm:$0xff] }
 0x7e2   :  { %11624 = vmatprep.mubr.f32.mxu1 %v19443_v10  ;;  %12347 = vmatpush3.bf16.msra.mxu1 %v12344_v22  ;;  %v19484_v22 = vld [vmem:[#allocation8_spill] sm:$0xff]  ;;  %v19491_v10 = vld [vmem:[#allocation11_spill] sm:$0xff] }
 0x7e3   :  { %12349 = vmatprep.subr.bf16.mxu1 %v12348_v54 }
 0x7e5   :  { %11625 = vmatmul.mubr.f32.gmra.mrb[34].mxu1 %v19446_v17  ;;  %v19495_v17 = vld [vmem:[#allocation49_spill] sm:$0xff] }
 0x7e6   :  { %11627 = vmatprep.mubr.f32.mxu1 %v19447_v25  ;;  %12351 = vmatpush3.bf16.msra.mxu1 %v12348_v54  ;;  %v17624_v38 = vpop.f32.mrb[68].mxu0  ;;  %v19489_v54 = vld [vmem:[#allocation5_spill] sm:$0xff]  ;;  %v19496_v25 = vld [vmem:[#allocation46_spill] sm:$0xff] }
 0x7e7   :  { %12353 = vmatprep.subr.bf16.mxu1 %v12352_v23  ;;  %v17630_v11 = vpop.f32.mrb[69].mxu0 }
 0x7e9   :  { %11628 = vmatmul.mubr.f32.gmra.mrb[36].mxu1 %v19450_v39  ;;  %v19500_v39 = vld [vmem:[#allocation61_spill] sm:$0xff] }
 0x7ea   :  { %11630 = vmatprep.mubr.f32.mxu1 %v19451_v51  ;;  %12355 = vmatpush3.bf16.msra.mxu1 %v12352_v23  ;;  %v19494_v23 = vld [vmem:[#allocation48_spill] sm:$0xff]  ;;  %v19501_v51 = vld [vmem:[#allocation65_spill] sm:$0xff] }
 0x7eb   :  { %12357 = vmatprep.subr.bf16.mxu1 %v12356_v52 }
 0x7ed   :  { %11631 = vmatmul.mubr.f32.gmra.mrb[38].mxu1 %v19454_v27 }
 0x7ee   :  { %11633 = vmatprep.mubr.f32.mxu1 %v19455_v44  ;;  %12359 = vmatpush3.bf16.msra.mxu1 %v12356_v52  ;;  %v19499_v52 = vld [vmem:[#allocation62_spill] sm:$0xff] }
 0x7ef   :  { %12361 = vmatprep.subr.bf16.mxu1 %v12360_v12 }
 0x7f1   :  { %11634 = vmatmul.mubr.f32.gmra.mrb[40].mxu1 %v19456_v6 }
 0x7f2   :  { %11636 = vmatprep.mubr.f32.mxu1 %v19457_v18  ;;  %12363 = vmatpush3.bf16.msra.mxu1 %v12360_v12 }
 0x7f3   :  { %12365 = vmatprep.subr.bf16.mxu1 %v19395_v56 }
 0x7f5   :  { %11637 = vmatmul.mubr.f32.gmra.mrb[42].mxu1 %v19458_v57 }
 0x7f6   :  { %11639 = vmatprep.mubr.f32.mxu1 %v19459_v30 }
 0x7f9   :  { %11640 = vmatmul.mubr.f32.gmra.mrb[44].mxu1 %v19460_v1 }
 0x7fa   :  { %11642 = vmatprep.mubr.f32.mxu1 %v19461_v31 }
 0x7fd   :  { %11643 = vmatmul.mubr.f32.gmra.mrb[46].mxu1 %v19462_v40 }
 0x7fe   :  { %11645 = vmatprep.mubr.f32.mxu1 %v19463_v36 }
 0x801   :  { %11646 = vmatmul.mubr.f32.gmra.mrb[48].mxu1 %v19464_v63 }
 0x802   :  { %11648 = vmatprep.mubr.f32.mxu1 %v19465_v62 }
 0x805   :  { %11649 = vmatmul.mubr.f32.gmra.mrb[50].mxu1 %v19466_v46 }
 0x806   :  { %11651 = vmatprep.mubr.f32.mxu1 %v19467_v35 }
 0x809   :  { %11652 = vmatmul.mubr.f32.gmra.mrb[52].mxu1 %v19468_v13 }
 0x80a   :  { %11654 = vmatprep.mubr.f32.mxu1 %v19469_v58 }
 0x80d   :  { %11655 = vmatmul.mubr.f32.gmra.mrb[54].mxu1 %v19470_v7 }
 0x80e   :  { %11657 = vmatprep.mubr.f32.mxu1 %v19471_v20 }
 0x811   :  { %11658 = vmatmul.mubr.f32.gmra.mrb[56].mxu1 %v19472_v9 }
 0x812   :  { %11692 = vmatprep.mubr.f32.mxu1 %v16960_v45 }
 0x815   :  { %11693 = vmatmul.mubr.f32.vlgmr.msra.gmra.mrb[58].mxu1 %v16939_v49 }
 0x816   :  { %12367 = vmatpush3.bf16.msra.mxu1 %v19395_v56  ;;  %11695 = vmatprep.mubr.f32.mxu1 %v16986_v59  ;;  %v19482_v56 = vld [vmem:[#allocation20_spill] sm:$0xff] }
 0x817   :  { %12369 = vmatprep.subr.bf16.mxu1 %v19399_v16 }
 0x819   :  { %11696 = vmatmul.mubr.f32.gmra.mrb[60].mxu1 %v16989_v34 }
 0x81a   :  { %11698 = vmatprep.mubr.f32.mxu1 %v17021_v3  ;;  %12371 = vmatpush3.bf16.msra.mxu1 %v19399_v16  ;;  %v19479_v16 = vld [vmem:[#allocation47_spill] sm:$0xff] }
 0x81b   :  { %12373 = vmatprep.subr.bf16.mxu1 %v19402_v47 }
 0x81d   :  { %11699 = vmatmul.mubr.f32.gmra.mrb[62].mxu1 %v17018_v26 }
 0x81e   :  { %11701 = vmatprep.mubr.f32.mxu1 %v17023_v5  ;;  %12375 = vmatpush3.bf16.msra.mxu1 %v19402_v47  ;;  %v19481_v47 = vld [vmem:[#allocation18_spill] sm:$0xff] }
 0x81f   :  { %12377 = vmatprep.subr.bf16.mxu1 %v19473_v24 }
 0x821   :  { %11702 = vmatmul.mubr.f32.gmra.mrb[32].mxu1 %v19474_v19 }
 0x822   :  { %11704 = vmatprep.mubr.f32.mxu1 %v19475_v28  ;;  %12379 = vmatpush3.bf16.msra.mxu1 %v19473_v24 }
 0x823   :  { %12381 = vmatprep.subr.bf16.mxu1 %v19476_v37 }
 0x825   :  { %11705 = vmatmul.mubr.f32.gmra.mrb[34].mxu1 %v19477_v43 }
 0x826   :  { %11707 = vmatprep.mubr.f32.mxu1 %v19478_v14  ;;  %12383 = vmatpush3.bf16.msra.mxu1 %v19476_v37 }
 0x827   :  { %12385 = vmatprep.subr.bf16.mxu1 %v19479_v16 }
 0x829   :  { %11708 = vmatmul.mubr.f32.gmra.mrb[36].mxu1 %v19480_v60 }
 0x82a   :  { %11710 = vmatprep.mubr.f32.mxu1 %v19481_v47  ;;  %12387 = vmatpush3.bf16.msra.mxu1 %v19479_v16 }
 0x82b   :  { %12389 = vmatprep.subr.bf16.mxu1 %v19482_v56 }
 0x82d   :  { %11711 = vmatmul.mubr.f32.gmra.mrb[38].mxu1 %v19483_v41 }
 0x82e   :  { %11713 = vmatprep.mubr.f32.mxu1 %v19484_v22  ;;  %12391 = vmatpush3.bf16.msra.mxu1 %v19482_v56 }
 0x82f   :  { %12393 = vmatprep.subr.bf16.mxu1 %v19485_v4 }
 0x831   :  { %11714 = vmatmul.mubr.f32.gmra.mrb[40].mxu1 %v19486_v8 }
 0x832   :  { %11716 = vmatprep.mubr.f32.mxu1 %v19487_v50  ;;  %12395 = vmatpush3.bf16.msra.mxu1 %v19485_v4 }
 0x835   :  { %11717 = vmatmul.mubr.f32.gmra.mrb[42].mxu1 %v19488_v32 }
 0x836   :  { %11719 = vmatprep.mubr.f32.mxu1 %v19489_v54 }
 0x839   :  { %11720 = vmatmul.mubr.f32.gmra.mrb[44].mxu1 %v19490_v2 }
 0x83a   :  { %11722 = vmatprep.mubr.f32.mxu1 %v19491_v10 }
 0x83d   :  { %11723 = vmatmul.mubr.f32.gmra.mrb[46].mxu1 %v19492_v48 }
 0x83e   :  { %11725 = vmatprep.mubr.f32.mxu1 %v19493_v29 }
 0x841   :  { %11726 = vmatmul.mubr.f32.gmra.mrb[48].mxu1 %v19494_v23 }
 0x842   :  { %11728 = vmatprep.mubr.f32.mxu1 %v19495_v17 }
 0x845   :  { %11729 = vmatmul.mubr.f32.gmra.mrb[50].mxu1 %v19496_v25 }
 0x846   :  { %11731 = vmatprep.mubr.f32.mxu1 %v19497_v61 }
 0x849   :  { %11732 = vmatmul.mubr.f32.gmra.mrb[52].mxu1 %v19498_v0 }
 0x84a   :  { %11734 = vmatprep.mubr.f32.mxu1 %v19499_v52 }
 0x84d   :  { %11735 = vmatmul.mubr.f32.gmra.mrb[54].mxu1 %v19500_v39 }
 0x84e   :  { %11737 = vmatprep.mubr.f32.mxu1 %v19501_v51 }
 0x851   :  { %11738 = vmatmul.mubr.f32.gmra.mrb[56].mxu1 %v19502_v53 }
 0x852   :  { %11772 = vmatprep.mubr.f32.mxu1 %v16960_v45 }
 0x855   :  { %11773 = vmatmul.mubr.f32.vlgmr.msra.gmra.mrb[58].mxu1 %v16939_v49  ;;  %v17761_v49 = vld [vmem:[%s18255_s6] ss:$0 sm:$0xff] }
 0x856   :  { %11775 = vmatprep.mubr.f32.mxu1 %v16986_v59  ;;  %v6637_v45 = vadd.f32 %v17592_v42, %v17761_v49  ;;  %v6627_v59 = vadd.f32 %v17761_v49, %v17594_v55  ;;  %v6657_v15 = vadd.f32 %v17608_v21, %v17761_v49  ;;  %v6647_v27 = vadd.f32 %v17761_v49, %v17612_v33 }
 0x857   :  { %v6677_v18 = vadd.f32 %v17624_v38, %v17761_v49  ;;  %v6667_v30 = vadd.f32 %v17761_v49, %v17630_v11 }
 0x859   :  { %11776 = vmatmul.mubr.f32.gmra.mrb[60].mxu1 %v16989_v34 }
 0x85a   :  { %11778 = vmatprep.mubr.f32.mxu1 %v17021_v3 }
 0x85d   :  { %11779 = vmatmul.mubr.f32.gmra.mrb[62].mxu1 %v17018_v26 }
 0x85e   :  { %11781 = vmatprep.mubr.f32.mxu1 %v17023_v5 }
 0x861   :  { %11782 = vmatmul.mubr.f32.gmra.mrb[32].mxu1 %v19474_v19 }
 0x862   :  { %11784 = vmatprep.mubr.f32.mxu1 %v19475_v28 }
 0x865   :  { %11785 = vmatmul.mubr.f32.gmra.mrb[34].mxu1 %v19477_v43 }
 0x866   :  { %11787 = vmatprep.mubr.f32.mxu1 %v19478_v14 }
 0x869   :  { %11788 = vmatmul.mubr.f32.gmra.mrb[36].mxu1 %v19480_v60 }
 0x86a   :  { %11790 = vmatprep.mubr.f32.mxu1 %v19481_v47 }
 0x86d   :  { %11791 = vmatmul.mubr.f32.gmra.mrb[38].mxu1 %v19483_v41 }
 0x86e   :  { %11793 = vmatprep.mubr.f32.mxu1 %v19484_v22 }
 0x871   :  { %11794 = vmatmul.mubr.f32.gmra.mrb[40].mxu1 %v19486_v8 }
 0x872   :  { %11796 = vmatprep.mubr.f32.mxu1 %v19487_v50 }
 0x875   :  { %11797 = vmatmul.mubr.f32.gmra.mrb[42].mxu1 %v19488_v32 }
 0x876   :  { %11799 = vmatprep.mubr.f32.mxu1 %v19489_v54 }
 0x879   :  { %11800 = vmatmul.mubr.f32.gmra.mrb[44].mxu1 %v19490_v2 }
 0x87a   :  { %11802 = vmatprep.mubr.f32.mxu1 %v19491_v10 }
 0x87d   :  { %11803 = vmatmul.mubr.f32.gmra.mrb[46].mxu1 %v19492_v48 }
 0x87e   :  { %11805 = vmatprep.mubr.f32.mxu1 %v19493_v29 }
 0x881   :  { %11806 = vmatmul.mubr.f32.gmra.mrb[48].mxu1 %v19494_v23 }
 0x882   :  { %11808 = vmatprep.mubr.f32.mxu1 %v19495_v17 }
 0x885   :  { %11809 = vmatmul.mubr.f32.gmra.mrb[50].mxu1 %v19496_v25 }
 0x886   :  { %11811 = vmatprep.mubr.f32.mxu1 %v19497_v61 }
 0x889   :  { %11812 = vmatmul.mubr.f32.gmra.mrb[52].mxu1 %v19498_v0 }
 0x88a   :  { %11814 = vmatprep.mubr.f32.mxu1 %v19499_v52 }
 0x88d   :  { %11815 = vmatmul.mubr.f32.gmra.mrb[54].mxu1 %v19500_v39 }
 0x88e   :  { %11817 = vmatprep.mubr.f32.mxu1 %v19501_v51 }
 0x891   :  { %11818 = vmatmul.mubr.f32.gmra.mrb[56].mxu1 %v19502_v53 }
 0x928   :  { %v11774_v34 = vpop.f32.mrb[58].mxu1 }
 0x929   :  { %v17767_v26 = vadd.f32 %v11774_v34, %v6637_v45  ;;  %v8323_v3 = vpop.f32.mrb[59].mxu1 }
 0x92a   :  { %v17769_v5 = vadd.f32 %v8323_v3, %v6627_v59 }
 0x92b   :  { %v8517_v12 = vsel %vm8513_vm1, %v17767_v26, -inf }
 0x92c   :  { %v11777_v42 = vpop.f32.mrb[60].mxu1  ;;  %8518 = vmax.xlane.f32.xlu0 %v8517_v12  ;;  %v8514_v21 = vsel %vm8513_vm1, %v17769_v5, -inf }
 0x92d   :  { %v17777_v44 = vadd.f32 %v11777_v42, %v6657_v15  ;;  %v8335_v55 = vpop.f32.mrb[61].mxu1 }
 0x92e   :  { %v17779_v6 = vadd.f32 %v8335_v55, %v6647_v27 }
 0x92f   :  { %v8523_v57 = vsel %vm8513_vm1, %v17777_v44, -inf }
 0x930   :  { %v11780_v33 = vpop.f32.mrb[62].mxu1  ;;  %8524 = vmax.xlane.f32.xlu1 %v8523_v57  ;;  %8515 = vmax.xlane.f32.xlu0 %v8514_v21  ;;  %v8520_v38 = vsel %vm8513_vm1, %v17779_v6, -inf }
 0x931   :  { %v17789_v1 = vadd.f32 %v11780_v33, %v6677_v18  ;;  %v8347_v31 = vpop.f32.mrb[63].mxu1 }
 0x932   :  { %v17791_v40 = vadd.f32 %v8347_v31, %v6667_v30 }
 0x933   :  { %v8529_v35 = vsel %vm8513_vm1, %v17789_v1, -inf }
 0x934   :  { %v11783_v36 = vpop.f32.mrb[32].mxu1  ;;  %8521 = vmax.xlane.f32.xlu1 %v8520_v38  ;;  %v8526_v63 = vsel %vm8513_vm1, %v17791_v40, -inf }
 0x935   :  { %v8359_v62 = vpop.f32.mrb[33].mxu1  ;;  %8527 = vmax.xlane.f32.xlu0 %v8526_v63  ;;  %v17801_v46 = vadd.f32 %v11783_v36, %v17761_v49 }
 0x936   :  { %v17798_v11 = vadd.f32 %v17761_v49, %v8359_v62 }
 0x937   :  { %v8535_v24 = vsel %vm8513_vm1, %v17801_v46, -inf }
 0x938   :  { %v11786_v13 = vpop.f32.mrb[34].mxu1  ;;  %8530 = vmax.xlane.f32.xlu1 %v8529_v35  ;;  %v8532_v58 = vsel %vm8513_vm1, %v17798_v11, -inf }
 0x939   :  { %v8371_v7 = vpop.f32.mrb[35].mxu1  ;;  %8533 = vmax.xlane.f32.xlu0 %v8532_v58  ;;  %v17811_v9 = vadd.f32 %v11786_v13, %v17761_v49 }
 0x93a   :  { %v17808_v20 = vadd.f32 %v17761_v49, %v8371_v7 }
 0x93b   :  { %v8541_v16 = vsel %vm8513_vm1, %v17811_v9, -inf }
 0x93c   :  { %v11789_v19 = vpop.f32.mrb[36].mxu1  ;;  %8536 = vmax.xlane.f32.xlu1 %v8535_v24  ;;  %v8538_v28 = vsel %vm8513_vm1, %v17808_v20, -inf }
 0x93d   :  { %v8383_v37 = vpop.f32.mrb[37].mxu1  ;;  %8539 = vmax.xlane.f32.xlu0 %v8538_v28  ;;  %v17821_v14 = vadd.f32 %v11789_v19, %v17761_v49 }
 0x93e   :  { %v17818_v43 = vadd.f32 %v17761_v49, %v8383_v37 }
 0x93f   :  { %v8547_v4 = vsel %vm8513_vm1, %v17821_v14, -inf }
 0x940   :  { %v11792_v60 = vpop.f32.mrb[38].mxu1  ;;  %8542 = vmax.xlane.f32.xlu1 %v8541_v16  ;;  %v8544_v47 = vsel %vm8513_vm1, %v17818_v43, -inf }
 0x941   :  { %v8395_v56 = vpop.f32.mrb[39].mxu1  ;;  %8545 = vmax.xlane.f32.xlu0 %v8544_v47  ;;  %v17831_v22 = vadd.f32 %v11792_v60, %v17761_v49 }
 0x942   :  { %v17828_v41 = vadd.f32 %v17761_v49, %v8395_v56 }
 0x943   :  { %v8553_v10 = vsel %vm8513_vm1, %v17831_v22, -inf }
 0x944   :  { %v11795_v8 = vpop.f32.mrb[40].mxu1  ;;  %8548 = vmax.xlane.f32.xlu1 %v8547_v4  ;;  %v8550_v50 = vsel %vm8513_vm1, %v17828_v41, -inf }
 0x945   :  { %v8407_v32 = vpop.f32.mrb[41].mxu1  ;;  %8551 = vmax.xlane.f32.xlu0 %v8550_v50  ;;  %v17841_v2 = vadd.f32 %v11795_v8, %v17761_v49 }
 0x946   :  { %v17838_v54 = vadd.f32 %v17761_v49, %v8407_v32 }
 0x947   :  { %v8559_v61 = vsel %vm8513_vm1, %v17841_v2, -inf }
 0x948   :  { %v11798_v48 = vpop.f32.mrb[42].mxu1  ;;  %8554 = vmax.xlane.f32.xlu1 %v8553_v10  ;;  %v8556_v29 = vsel %vm8513_vm1, %v17838_v54, -inf }
 0x949   :  { %v8419_v23 = vpop.f32.mrb[43].mxu1  ;;  %8557 = vmax.xlane.f32.xlu0 %v8556_v29  ;;  %v17851_v25 = vadd.f32 %v11798_v48, %v17761_v49 }
 0x94a   :  { %v17848_v17 = vadd.f32 %v17761_v49, %v8419_v23 }
 0x94b   :  { %v8565_v45 = vsel %vm8513_vm1, %v17851_v25, -inf }
 0x94c   :  { %v11801_v0 = vpop.f32.mrb[44].mxu1  ;;  %8560 = vmax.xlane.f32.xlu1 %v8559_v61  ;;  %v8562_v52 = vsel %vm8513_vm1, %v17848_v17, -inf }
 0x94d   :  { %v8431_v39 = vpop.f32.mrb[45].mxu1  ;;  %8563 = vmax.xlane.f32.xlu0 %v8562_v52  ;;  %v17861_v53 = vadd.f32 %v11801_v0, %v17761_v49 }
 0x94e   :  { %v17858_v51 = vadd.f32 %v17761_v49, %v8431_v39 }
 0x94f   :  { %v8571_v27 = vsel %vm8513_vm1, %v17861_v53, -inf }
 0x950   :  { %v11804_v59 = vpop.f32.mrb[46].mxu1  ;;  %8566 = vmax.xlane.f32.xlu1 %v8565_v45  ;;  %v8568_v34 = vsel %vm8513_vm1, %v17858_v51, -inf }
 0x951   :  { %v8443_v3 = vpop.f32.mrb[47].mxu1  ;;  %8569 = vmax.xlane.f32.xlu0 %v8568_v34  ;;  %v17871_v12 = vadd.f32 %v11804_v59, %v17761_v49 }
 0x952   :  { %v17868_v15 = vadd.f32 %v17761_v49, %v8443_v3 }
 0x953   :  { %v8577_v30 = vsel %vm8513_vm1, %v17871_v12, -inf }
 0x954   :  { %v11807_v42 = vpop.f32.mrb[48].mxu1  ;;  %8572 = vmax.xlane.f32.xlu1 %v8571_v27  ;;  %v8574_v55 = vsel %vm8513_vm1, %v17868_v15, -inf }
 0x955   :  { %v8455_v18 = vpop.f32.mrb[49].mxu1  ;;  %8575 = vmax.xlane.f32.xlu0 %v8574_v55  ;;  %v17881_v21 = vadd.f32 %v11807_v42, %v17761_v49 }
 0x956   :  { %v17878_v57 = vadd.f32 %v17761_v49, %v8455_v18 }
 0x957   :  { %v8583_v62 = vsel %vm8513_vm1, %v17881_v21, -inf }
 0x958   :  { %v11810_v33 = vpop.f32.mrb[50].mxu1  ;;  %8578 = vmax.xlane.f32.xlu1 %v8577_v30  ;;  %v8580_v31 = vsel %vm8513_vm1, %v17878_v57, -inf }
 0x959   :  { %v8467_v38 = vpop.f32.mrb[51].mxu1  ;;  %8581 = vmax.xlane.f32.xlu0 %v8580_v31  ;;  %v17891_v63 = vadd.f32 %v11810_v33, %v17761_v49 }
 0x95a   :  { %v17888_v36 = vadd.f32 %v17761_v49, %v8467_v38 }
 0x95b   :  { %v8589_v19 = vsel %vm8513_vm1, %v17891_v63, -inf }
 0x95c   :  { %v11813_v35 = vpop.f32.mrb[52].mxu1  ;;  %8584 = vmax.xlane.f32.xlu1 %v8583_v62  ;;  %v8586_v13 = vsel %vm8513_vm1, %v17888_v36, -inf }
 0x95d   :  { %v8479_v58 = vpop.f32.mrb[53].mxu1  ;;  %8587 = vmax.xlane.f32.xlu0 %v8586_v13  ;;  %v17901_v24 = vadd.f32 %v11813_v35, %v17761_v49 }
 0x95e   :  { %v17898_v7 = vadd.f32 %v17761_v49, %v8479_v58 }
 0x95f   :  { %v8595_v56 = vsel %vm8513_vm1, %v17901_v24, -inf }
 0x960   :  { %v11816_v28 = vpop.f32.mrb[54].mxu1  ;;  %8590 = vmax.xlane.f32.xlu1 %v8589_v19  ;;  %v8592_v37 = vsel %vm8513_vm1, %v17898_v7, -inf }
 0x961   :  { %v8491_v16 = vpop.f32.mrb[55].mxu1  ;;  %8593 = vmax.xlane.f32.xlu0 %v8592_v37  ;;  %v17911_v47 = vadd.f32 %v11816_v28, %v17761_v49 }
 0x962   :  { %v17908_v60 = vadd.f32 %v17761_v49, %v8491_v16 }
 0x963   :  { %v8601_v48 = vsel %vm8513_vm1, %v17911_v47, -inf }
 0x964   :  { %v11819_v4 = vpop.f32.mrb[56].mxu1  ;;  %8596 = vmax.xlane.f32.xlu1 %v8595_v56  ;;  %v8598_v8 = vsel %vm8513_vm1, %v17908_v60, -inf }
 0x965   :  { %v8503_v50 = vpop.f32.mrb[57].mxu1  ;;  %8599 = vmax.xlane.f32.xlu0 %v8598_v8  ;;  %v17921_v10 = vadd.f32 %v11819_v4, %v17761_v49 }
 0x966   :  { %v17918_v32 = vadd.f32 %v17761_v49, %v8503_v50 }
 0x967   :  { %v8607_v23 = vsel %vm8513_vm1, %v17921_v10, -inf }
 0x968   :  { %8602 = vmax.xlane.f32.xlu1 %v8601_v48  ;;  %v8604_v29 = vsel %vm8513_vm1, %v17918_v32, -inf }
 0x969   :  { %8605 = vmax.xlane.f32.xlu0 %v8604_v29 }
 0x96c   :  { %8608 = vmax.xlane.f32.xlu1 %v8607_v23 }
 0x9b9   :  { %v8519_v61 = vpop.xlane.xlu0 %8518 }
 0x9ba   :  { %v8611_v0 = vsub.f32 %v17767_v26, %v8519_v61 }
 0x9bc   :  { %v8644_v52 = vmul.f32 1.442695, %v8611_v0 }
 0x9bd   :  { %v8525_v39 = vpop.xlane.xlu1 %8524  ;;  %v8516_v45 = vpop.xlane.xlu0 %8515 }
 0x9be   :  { %13373 = vpow2.f32 %v8644_v52  ;;  %v8613_v49 = vsub.f32 %v17777_v44, %v8525_v39  ;;  %v8610_v59 = vsub.f32 %v17769_v5, %v8516_v45 }
 0x9c0   :  { %v8648_v34 = vmul.f32 1.442695, %v8613_v49  ;;  %v8642_v3 = vmul.f32 1.442695, %v8610_v59 }
 0x9c1   :  { %v8522_v27 = vpop.xlane.xlu1 %8521 }
 0x9c2   :  { %13375 = vpow2.f32 %v8648_v34  ;;  %v8612_v42 = vsub.f32 %v17779_v6, %v8522_v27  ;;  %v8528_v55 = vpop.xlane.xlu0 %8527 }
 0x9c3   :  { %13377 = vpow2.f32 %v8642_v3  ;;  %v8614_v18 = vsub.f32 %v17791_v40, %v8528_v55 }
 0x9c4   :  { %v8646_v30 = vmul.f32 1.442695, %v8612_v42 }
 0x9c5   :  { %v8650_v26 = vmul.f32 1.442695, %v8614_v18  ;;  %v8531_v33 = vpop.xlane.xlu1 %8530 }
 0x9c6   :  { %13379 = vpow2.f32 %v8646_v30  ;;  %v8615_v31 = vsub.f32 %v17789_v1, %v8531_v33  ;;  %v8534_v38 = vpop.xlane.xlu0 %8533 }
 0x9c7   :  { %v8616_v44 = vsub.f32 %v17798_v11, %v8534_v38  ;;  %13381 = vpow2.f32 %v8650_v26 }
 0x9c8   :  { %v17936_v5 = vpop.eup %13373  ;;  %v8652_v62 = vmul.f32 1.442695, %v8615_v31 }
 0x9c9   :  { %v8654_v35 = vmul.f32 1.442695, %v8616_v44  ;;  %v8537_v13 = vpop.xlane.xlu1 %8536  ;;  %v8709_v6 = vsel %vm8513_vm1, %v17936_v5, 0.0 }
 0x9ca   :  { %13383 = vpow2.f32 %v8652_v62  ;;  %v8617_v40 = vsub.f32 %v17801_v46, %v8537_v13  ;;  %8710 = vadd.xlane.f32.xlu1 %v8709_v6  ;;  %v8540_v58 = vpop.xlane.xlu0 %8539 }
 0x9cb   :  { %v8618_v19 = vsub.f32 %v17808_v20, %v8540_v58  ;;  %13385 = vpow2.f32 %v8654_v35 }
 0x9cc   :  { %v17942_v1 = vpop.eup %13375  ;;  %v8656_v28 = vmul.f32 1.442695, %v8617_v40 }
 0x9cd   :  { %v17944_v11 = vpop.eup %13377  ;;  %v8658_v37 = vmul.f32 1.442695, %v8618_v19  ;;  %v8543_v16 = vpop.xlane.xlu1 %8542  ;;  %v8715_v56 = vsel %vm8513_vm1, %v17942_v1, 0.0 }
 0x9ce   :  { %13387 = vpow2.f32 %v8656_v28  ;;  %v8619_v4 = vsub.f32 %v17811_v9, %v8543_v16  ;;  %8716 = vadd.xlane.f32.xlu1 %v8715_v56  ;;  %v8706_v46 = vsel %vm8513_vm1, %v17944_v11, 0.0  ;;  %v8546_v8 = vpop.xlane.xlu0 %8545 }
 0x9cf   :  { %8707 = vadd.xlane.f32.xlu0 %v8706_v46  ;;  %v8620_v20 = vsub.f32 %v17818_v43, %v8546_v8  ;;  %13389 = vpow2.f32 %v8658_v37 }
 0x9d0   :  { %v17952_v50 = vpop.eup %13379  ;;  %v8660_v48 = vmul.f32 1.442695, %v8619_v4 }
 0x9d1   :  { %v8662_v29 = vmul.f32 1.442695, %v8620_v20  ;;  %v8549_v23 = vpop.xlane.xlu1 %8548  ;;  %v8712_v61 = vsel %vm8513_vm1, %v17952_v50, 0.0  ;;  %v17957_v52 = vpop.eup %13381 }
 0x9d2   :  { %13391 = vpow2.f32 %v8660_v48  ;;  %v8621_v9 = vsub.f32 %v17821_v14, %v8549_v23  ;;  %v8552_v0 = vpop.xlane.xlu0 %8551  ;;  %v8718_v14 = vsel %vm8513_vm1, %v17957_v52, 0.0 }
 0x9d3   :  { %8713 = vadd.xlane.f32.xlu0 %v8712_v61  ;;  %v8622_v39 = vsub.f32 %v17828_v41, %v8552_v0  ;;  %13393 = vpow2.f32 %v8662_v29 }
 0x9d4   :  { %v17960_v45 = vpop.eup %13383  ;;  %v8664_v43 = vmul.f32 1.442695, %v8621_v9 }
 0x9d5   :  { %v8666_v49 = vmul.f32 1.442695, %v8622_v39  ;;  %v8555_v59 = vpop.xlane.xlu1 %8554  ;;  %v8721_v34 = vsel %vm8513_vm1, %v17960_v45, 0.0  ;;  %v17967_v42 = vpop.eup %13385 }
 0x9d6   :  { %13395 = vpow2.f32 %v8664_v43  ;;  %v8623_v3 = vsub.f32 %v17831_v22, %v8555_v59  ;;  %8722 = vadd.xlane.f32.xlu1 %v8721_v34  ;;  %v8558_v27 = vpop.xlane.xlu0 %8557  ;;  %v8724_v31 = vsel %vm8513_vm1, %v17967_v42, 0.0 }
 0x9d7   :  { %8719 = vadd.xlane.f32.xlu0 %v8718_v14  ;;  %v8624_v41 = vsub.f32 %v17838_v54, %v8558_v27  ;;  %13397 = vpow2.f32 %v8666_v49 }
 0x9d8   :  { %v17970_v55 = vpop.eup %13387  ;;  %v8668_v18 = vmul.f32 1.442695, %v8623_v3 }
 0x9d9   :  { %v8670_v30 = vmul.f32 1.442695, %v8624_v41  ;;  %v8561_v26 = vpop.xlane.xlu1 %8560  ;;  %v8727_v33 = vsel %vm8513_vm1, %v17970_v55, 0.0  ;;  %v17977_v44 = vpop.eup %13389 }
 0x9da   :  { %13399 = vpow2.f32 %v8668_v18  ;;  %v8625_v22 = vsub.f32 %v17841_v2, %v8561_v26  ;;  %8728 = vadd.xlane.f32.xlu1 %v8727_v33  ;;  %v8564_v38 = vpop.xlane.xlu0 %8563  ;;  %v8730_v58 = vsel %vm8513_vm1, %v17977_v44, 0.0 }
 0x9db   :  { %8725 = vadd.xlane.f32.xlu0 %v8724_v31  ;;  %v8626_v54 = vsub.f32 %v17848_v17, %v8564_v38  ;;  %13401 = vpow2.f32 %v8670_v30 }
 0x9dc   :  { %v17980_v62 = vpop.eup %13391  ;;  %v8672_v35 = vmul.f32 1.442695, %v8625_v22 }
 0x9dd   :  { %v8674_v13 = vmul.f32 1.442695, %v8626_v54  ;;  %v8567_v6 = vpop.xlane.xlu1 %8566  ;;  %v8733_v40 = vsel %vm8513_vm1, %v17980_v62, 0.0  ;;  %v17987_v28 = vpop.eup %13393 }
 0x9de   :  { %13403 = vpow2.f32 %v8672_v35  ;;  %v8627_v2 = vsub.f32 %v17851_v25, %v8567_v6  ;;  %8734 = vadd.xlane.f32.xlu1 %v8733_v40  ;;  %v8570_v19 = vpop.xlane.xlu0 %8569  ;;  %v8736_v8 = vsel %vm8513_vm1, %v17987_v28, 0.0 }
 0x9df   :  { %8731 = vadd.xlane.f32.xlu0 %v8730_v58  ;;  %v8628_v17 = vsub.f32 %v17858_v51, %v8570_v19  ;;  %13405 = vpow2.f32 %v8674_v13 }
 0x9e0   :  { %v17990_v37 = vpop.eup %13395  ;;  %v8676_v16 = vmul.f32 1.442695, %v8627_v2 }
 0x9e1   :  { %v8678_v56 = vmul.f32 1.442695, %v8628_v17  ;;  %v8573_v4 = vpop.xlane.xlu1 %8572  ;;  %v8739_v46 = vsel %vm8513_vm1, %v17990_v37, 0.0  ;;  %v17997_v48 = vpop.eup %13397 }
 0x9e2   :  { %13407 = vpow2.f32 %v8676_v16  ;;  %v8629_v25 = vsub.f32 %v17861_v53, %v8573_v4  ;;  %8740 = vadd.xlane.f32.xlu1 %v8739_v46  ;;  %v8576_v20 = vpop.xlane.xlu0 %8575  ;;  %v8742_v39 = vsel %vm8513_vm1, %v17997_v48, 0.0 }
 0x9e3   :  { %8737 = vadd.xlane.f32.xlu0 %v8736_v8  ;;  %v8630_v51 = vsub.f32 %v17868_v15, %v8576_v20  ;;  %13409 = vpow2.f32 %v8678_v56 }
 0x9e4   :  { %v18000_v29 = vpop.eup %13399  ;;  %v8680_v23 = vmul.f32 1.442695, %v8629_v25 }
 0x9e5   :  { %v8682_v61 = vmul.f32 1.442695, %v8630_v51  ;;  %v8579_v9 = vpop.xlane.xlu1 %8578  ;;  %v8745_v0 = vsel %vm8513_vm1, %v18000_v29, 0.0  ;;  %v18007_v49 = vpop.eup %13401 }
 0x9e6   :  { %13411 = vpow2.f32 %v8680_v23  ;;  %v8631_v53 = vsub.f32 %v17871_v12, %v8579_v9  ;;  %8746 = vadd.xlane.f32.xlu1 %v8745_v0  ;;  %v8582_v43 = vpop.xlane.xlu0 %8581  ;;  %v8748_v41 = vsel %vm8513_vm1, %v18007_v49, 0.0 }
 0x9e7   :  { %8743 = vadd.xlane.f32.xlu0 %v8742_v39  ;;  %v8632_v15 = vsub.f32 %v17878_v57, %v8582_v43  ;;  %13413 = vpow2.f32 %v8682_v61 }
 0x9e8   :  { %v18010_v59 = vpop.eup %13403  ;;  %v8684_v34 = vmul.f32 1.442695, %v8631_v53 }
 0x9e9   :  { %v8686_v3 = vmul.f32 1.442695, %v8632_v15  ;;  %v8585_v14 = vpop.xlane.xlu1 %8584  ;;  %v8751_v27 = vsel %vm8513_vm1, %v18010_v59, 0.0  ;;  %v18017_v30 = vpop.eup %13405 }
 0x9ea   :  { %13415 = vpow2.f32 %v8684_v34  ;;  %v8633_v12 = vsub.f32 %v17881_v21, %v8585_v14  ;;  %8752 = vadd.xlane.f32.xlu1 %v8751_v27  ;;  %v8588_v18 = vpop.xlane.xlu0 %8587  ;;  %v8754_v54 = vsel %vm8513_vm1, %v18017_v30, 0.0 }
 0x9eb   :  { %8749 = vadd.xlane.f32.xlu0 %v8748_v41  ;;  %v8634_v57 = vsub.f32 %v17888_v36, %v8588_v18  ;;  %13417 = vpow2.f32 %v8686_v3 }
 0x9ec   :  { %v18020_v26 = vpop.eup %13407  ;;  %v8688_v33 = vmul.f32 1.442695, %v8633_v12 }
 0x9ed   :  { %v8690_v22 = vmul.f32 1.442695, %v8634_v57  ;;  %v8591_v31 = vpop.xlane.xlu1 %8590  ;;  %v8757_v38 = vsel %vm8513_vm1, %v18020_v26, 0.0  ;;  %v18027_v13 = vpop.eup %13409 }
 0x9ee   :  { %13419 = vpow2.f32 %v8688_v33  ;;  %v8635_v21 = vsub.f32 %v17891_v63, %v8591_v31  ;;  %8758 = vadd.xlane.f32.xlu1 %v8757_v38  ;;  %v8594_v35 = vpop.xlane.xlu0 %8593  ;;  %v8760_v17 = vsel %vm8513_vm1, %v18027_v13, 0.0 }
 0x9ef   :  { %8755 = vadd.xlane.f32.xlu0 %v8754_v54  ;;  %v8636_v36 = vsub.f32 %v17898_v7, %v8594_v35  ;;  %13421 = vpow2.f32 %v8690_v22 }
 0x9f0   :  { %v18030_v6 = vpop.eup %13411  ;;  %v8692_v40 = vmul.f32 1.442695, %v8635_v21 }
 0x9f1   :  { %v8694_v2 = vmul.f32 1.442695, %v8636_v36  ;;  %v8597_v58 = vpop.xlane.xlu1 %8596  ;;  %v8763_v19 = vsel %vm8513_vm1, %v18030_v6, 0.0  ;;  %v18037_v56 = vpop.eup %13413 }
 0x9f2   :  { %13423 = vpow2.f32 %v8692_v40  ;;  %v8637_v63 = vsub.f32 %v17901_v24, %v8597_v58  ;;  %8764 = vadd.xlane.f32.xlu1 %v8763_v19  ;;  %v8600_v16 = vpop.xlane.xlu0 %8599  ;;  %v8766_v51 = vsel %vm8513_vm1, %v18037_v56, 0.0 }
 0x9f3   :  { %8761 = vadd.xlane.f32.xlu0 %v8760_v17  ;;  %v8638_v7 = vsub.f32 %v17908_v60, %v8600_v16  ;;  %13425 = vpow2.f32 %v8694_v2 }
 0x9f4   :  { %v18040_v4 = vpop.eup %13415  ;;  %v8696_v46 = vmul.f32 1.442695, %v8637_v63 }
 0x9f5   :  { %v8698_v25 = vmul.f32 1.442695, %v8638_v7  ;;  %v8603_v8 = vpop.xlane.xlu1 %8602  ;;  %v8769_v20 = vsel %vm8513_vm1, %v18040_v4, 0.0  ;;  %v18047_v61 = vpop.eup %13417 }
 0x9f6   :  { %13427 = vpow2.f32 %v8696_v46  ;;  %v8639_v24 = vsub.f32 %v17911_v47, %v8603_v8  ;;  %8770 = vadd.xlane.f32.xlu1 %v8769_v20  ;;  %v8606_v23 = vpop.xlane.xlu0 %8605  ;;  %v8772_v15 = vsel %vm8513_vm1, %v18047_v61, 0.0 }
 0x9f7   :  { %8767 = vadd.xlane.f32.xlu0 %v8766_v51  ;;  %v8640_v60 = vsub.f32 %v17918_v32, %v8606_v23  ;;  %13429 = vpow2.f32 %v8698_v25 }
 0x9f8   :  { %v18050_v9 = vpop.eup %13419  ;;  %v8700_v0 = vmul.f32 1.442695, %v8639_v24 }
 0x9f9   :  { %v8702_v53 = vmul.f32 1.442695, %v8640_v60  ;;  %v8609_v39 = vpop.xlane.xlu1 %8608  ;;  %v8775_v43 = vsel %vm8513_vm1, %v18050_v9, 0.0  ;;  %v18057_v34 = vpop.eup %13421 }
 0x9fa   :  { %13431 = vpow2.f32 %v8700_v0  ;;  %v8641_v47 = vsub.f32 %v17921_v10, %v8609_v39  ;;  %8776 = vadd.xlane.f32.xlu1 %v8775_v43  ;;  %v8778_v27 = vsel %vm8513_vm1, %v18057_v34, 0.0 }
 0x9fb   :  { %8773 = vadd.xlane.f32.xlu0 %v8772_v15  ;;  %13433 = vpow2.f32 %v8702_v53 }
 0x9fc   :  { %v18059_v32 = vpop.eup %13423  ;;  %v8704_v3 = vmul.f32 1.442695, %v8641_v47 }
 0x9fd   :  { %v8781_v14 = vsel %vm8513_vm1, %v18059_v32, 0.0  ;;  %v18065_v10 = vpop.eup %13425 }
 0x9fe   :  { %13435 = vpow2.f32 %v8704_v3  ;;  %8782 = vadd.xlane.f32.xlu1 %v8781_v14  ;;  %v8784_v18 = vsel %vm8513_vm1, %v18065_v10, 0.0 }
 0x9ff   :  { %8779 = vadd.xlane.f32.xlu0 %v8778_v27 }
 0xa00   :  { %v18067_v12 = vpop.eup %13427 }
 0xa01   :  { %v8787_v41 = vsel %vm8513_vm1, %v18067_v12, 0.0  ;;  %v18073_v57 = vpop.eup %13429 }
 0xa02   :  { %8788 = vadd.xlane.f32.xlu1 %v8787_v41  ;;  %v8790_v31 = vsel %vm8513_vm1, %v18073_v57, 0.0 }
 0xa03   :  { %8785 = vadd.xlane.f32.xlu0 %v8784_v18 }
 0xa04   :  { %v18075_v33 = vpop.eup %13431 }
 0xa05   :  { %v8793_v22 = vsel %vm8513_vm1, %v18075_v33, 0.0  ;;  %v18081_v38 = vpop.eup %13433 }
 0xa06   :  { %8794 = vadd.xlane.f32.xlu1 %v8793_v22  ;;  %v8796_v35 = vsel %vm8513_vm1, %v18081_v38, 0.0 }
 0xa07   :  { %8791 = vadd.xlane.f32.xlu0 %v8790_v31 }
 0xa08   :  { %v18083_v21 = vpop.eup %13435 }
 0xa09   :  { %v8799_v54 = vsel %vm8513_vm1, %v18083_v21, 0.0 }
 0xa0a   :  { %8800 = vadd.xlane.f32.xlu1 %v8799_v54 }
 0xa0b   :  { %8797 = vadd.xlane.f32.xlu0 %v8796_v35 }
 0xa57   :  { %v8711_v36 = vpop.xlane.xlu1 %8710 }
 0xa58   :  { %13437 = vrcp.f32 %v8711_v36 }
 0xa5b   :  { %v8717_v40 = vpop.xlane.xlu1 %8716 }
 0xa5c   :  { %13439 = vrcp.f32 %v8717_v40  ;;  %v8708_v2 = vpop.xlane.xlu0 %8707 }
 0xa5d   :  { %13441 = vrcp.f32 %v8708_v2 }
 0xa60   :  { %v8714_v58 = vpop.xlane.xlu0 %8713 }
 0xa61   :  { %13443 = vrcp.f32 %v8714_v58 }
 0xa62   :  { %v13438_v19 = vpop.eup %13437 }
 0xa63   :  { %v8805_v63 = vmul.f32 %v13438_v19, %v17936_v5  ;;  %v8723_v17 = vpop.xlane.xlu1 %8722 }
 0xa64   :  { %13445 = vrcp.f32 %v8723_v17  ;;  %v8720_v16 = vpop.xlane.xlu0 %8719 }
 0xa65   :  { %8867 = vst.msk [vmem:[%s18256_s7 + $0x8] sm:$0xff] %vm8513_vm1, %v8805_v63  ;;  %13447 = vrcp.f32 %v8720_v16 }
 0xa66   :  { %v13440_v7 = vpop.eup %13439 }
 0xa67   :  { %v13442_v46 = vpop.eup %13441  ;;  %v8809_v25 = vmul.f32 %v13440_v7, %v17942_v1  ;;  %v8729_v8 = vpop.xlane.xlu1 %8728 }
 0xa68   :  { %v8803_v20 = vmul.f32 %v13442_v46, %v17944_v11  ;;  %13449 = vrcp.f32 %v8729_v8  ;;  %v8726_v24 = vpop.xlane.xlu0 %8725 }
 0xa69   :  { %8869 = vst.msk [vmem:[%s18256_s7 + $0x18] sm:$0xff] %vm8513_vm1, %v8809_v25  ;;  %13451 = vrcp.f32 %v8726_v24 }
 0xa6a   :  { %8866 = vst.msk [vmem:[%s18256_s7] sm:$0xff] %vm8513_vm1, %v8803_v20 }
 0xa6b   :  { %v13444_v5 = vpop.eup %13443  ;;  %v8735_v51 = vpop.xlane.xlu1 %8734 }
 0xa6c   :  { %v8807_v1 = vmul.f32 %v13444_v5, %v17952_v50  ;;  %13453 = vrcp.f32 %v8735_v51  ;;  %v8732_v23 = vpop.xlane.xlu0 %8731 }
 0xa6d   :  { %13455 = vrcp.f32 %v8732_v23 }
 0xa6e   :  { %v13446_v11 = vpop.eup %13445  ;;  %8868 = vst.msk [vmem:[%s18256_s7 + $0x10] sm:$0xff] %vm8513_vm1, %v8807_v1 }
 0xa6f   :  { %v13448_v60 = vpop.eup %13447  ;;  %v8813_v0 = vmul.f32 %v13446_v11, %v17960_v45  ;;  %v8741_v53 = vpop.xlane.xlu1 %8740 }
 0xa70   :  { %v8811_v39 = vmul.f32 %v13448_v60, %v17957_v52  ;;  %13457 = vrcp.f32 %v8741_v53  ;;  %v8738_v43 = vpop.xlane.xlu0 %8737 }
 0xa71   :  { %8871 = vst.msk [vmem:[%s18256_s7 + $0x28] sm:$0xff] %vm8513_vm1, %v8813_v0  ;;  %13459 = vrcp.f32 %v8738_v43 }
 0xa72   :  { %v13450_v50 = vpop.eup %13449  ;;  %8870 = vst.msk [vmem:[%s18256_s7 + $0x20] sm:$0xff] %vm8513_vm1, %v8811_v39 }
 0xa73   :  { %v13452_v47 = vpop.eup %13451  ;;  %v8817_v45 = vmul.f32 %v13450_v50, %v17970_v55  ;;  %v8747_v15 = vpop.xlane.xlu1 %8746 }
 0xa74   :  { %v8815_v52 = vmul.f32 %v13452_v47, %v17967_v42  ;;  %13461 = vrcp.f32 %v8747_v15  ;;  %v8744_v3 = vpop.xlane.xlu0 %8743 }
 0xa75   :  { %8873 = vst.msk [vmem:[%s18256_s7 + $0x38] sm:$0xff] %vm8513_vm1, %v8817_v45  ;;  %13463 = vrcp.f32 %v8744_v3 }
 0xa76   :  { %v13454_v14 = vpop.eup %13453  ;;  %8872 = vst.msk [vmem:[%s18256_s7 + $0x30] sm:$0xff] %vm8513_vm1, %v8815_v52 }
 0xa77   :  { %v13456_v27 = vpop.eup %13455  ;;  %v8821_v55 = vmul.f32 %v13454_v14, %v17980_v62  ;;  %v8753_v41 = vpop.xlane.xlu1 %8752 }
 0xa78   :  { %v8819_v42 = vmul.f32 %v13456_v27, %v17977_v44  ;;  %13465 = vrcp.f32 %v8753_v41  ;;  %v8750_v18 = vpop.xlane.xlu0 %8749 }
 0xa79   :  { %8875 = vst.msk [vmem:[%s18256_s7 + $0x48] sm:$0xff] %vm8513_vm1, %v8821_v55  ;;  %13467 = vrcp.f32 %v8750_v18 }
 0xa7a   :  { %v13458_v22 = vpop.eup %13457  ;;  %8874 = vst.msk [vmem:[%s18256_s7 + $0x40] sm:$0xff] %vm8513_vm1, %v8819_v42 }
 0xa7b   :  { %v13460_v31 = vpop.eup %13459  ;;  %v8825_v62 = vmul.f32 %v13458_v22, %v17990_v37  ;;  %v8759_v54 = vpop.xlane.xlu1 %8758 }
 0xa7c   :  { %v8823_v44 = vmul.f32 %v13460_v31, %v17987_v28  ;;  %13469 = vrcp.f32 %v8759_v54  ;;  %v8756_v35 = vpop.xlane.xlu0 %8755 }
 0xa7d   :  { %8877 = vst.msk [vmem:[%s18256_s7 + $0x58] sm:$0xff] %vm8513_vm1, %v8825_v62  ;;  %13471 = vrcp.f32 %v8756_v35 }
 0xa7e   :  { %v13462_v36 = vpop.eup %13461  ;;  %8876 = vst.msk [vmem:[%s18256_s7 + $0x50] sm:$0xff] %vm8513_vm1, %v8823_v44 }
 0xa7f   :  { %v13464_v40 = vpop.eup %13463  ;;  %v8829_v37 = vmul.f32 %v13462_v36, %v18000_v29  ;;  %v8765_v2 = vpop.xlane.xlu1 %8764 }
 0xa80   :  { %v8827_v28 = vmul.f32 %v13464_v40, %v17997_v48  ;;  %13473 = vrcp.f32 %v8765_v2  ;;  %v8762_v58 = vpop.xlane.xlu0 %8761 }
 0xa81   :  { %8879 = vst.msk [vmem:[%s18256_s7 + $0x68] sm:$0xff] %vm8513_vm1, %v8829_v37  ;;  %13475 = vrcp.f32 %v8762_v58 }
 0xa82   :  { %v13466_v19 = vpop.eup %13465  ;;  %8878 = vst.msk [vmem:[%s18256_s7 + $0x60] sm:$0xff] %vm8513_vm1, %v8827_v28 }
 0xa83   :  { %v13468_v63 = vpop.eup %13467  ;;  %v8833_v29 = vmul.f32 %v13466_v19, %v18010_v59  ;;  %v8771_v17 = vpop.xlane.xlu1 %8770 }
 0xa84   :  { %v8831_v48 = vmul.f32 %v13468_v63, %v18007_v49  ;;  %13477 = vrcp.f32 %v8771_v17  ;;  %v8768_v16 = vpop.xlane.xlu0 %8767 }
 0xa85   :  { %8881 = vst.msk [vmem:[%s18256_s7 + $0x78] sm:$0xff] %vm8513_vm1, %v8833_v29  ;;  %13479 = vrcp.f32 %v8768_v16 }
 0xa86   :  { %v13470_v7 = vpop.eup %13469  ;;  %8880 = vst.msk [vmem:[%s18256_s7 + $0x70] sm:$0xff] %vm8513_vm1, %v8831_v48 }
 0xa87   :  { %v13472_v46 = vpop.eup %13471  ;;  %v8837_v59 = vmul.f32 %v13470_v7, %v18020_v26  ;;  %v8777_v25 = vpop.xlane.xlu1 %8776 }
 0xa88   :  { %v8835_v49 = vmul.f32 %v13472_v46, %v18017_v30  ;;  %13481 = vrcp.f32 %v8777_v25  ;;  %v8774_v8 = vpop.xlane.xlu0 %8773 }
 0xa89   :  { %8883 = vst.msk [vmem:[%s18256_s7 + $0x88] sm:$0xff] %vm8513_vm1, %v8837_v59  ;;  %13483 = vrcp.f32 %v8774_v8 }
 0xa8a   :  { %v13474_v20 = vpop.eup %13473  ;;  %8882 = vst.msk [vmem:[%s18256_s7 + $0x80] sm:$0xff] %vm8513_vm1, %v8835_v49 }
 0xa8b   :  { %v13476_v24 = vpop.eup %13475  ;;  %v8841_v26 = vmul.f32 %v13474_v20, %v18030_v6  ;;  %v8783_v5 = vpop.xlane.xlu1 %8782 }
 0xa8c   :  { %v8839_v30 = vmul.f32 %v13476_v24, %v18027_v13  ;;  %13485 = vrcp.f32 %v8783_v5  ;;  %v8780_v51 = vpop.xlane.xlu0 %8779 }
 0xa8d   :  { %8885 = vst.msk [vmem:[%s18256_s7 + $0x98] sm:$0xff] %vm8513_vm1, %v8841_v26  ;;  %13487 = vrcp.f32 %v8780_v51 }
 0xa8e   :  { %v13478_v1 = vpop.eup %13477  ;;  %8884 = vst.msk [vmem:[%s18256_s7 + $0x90] sm:$0xff] %vm8513_vm1, %v8839_v30 }
 0xa8f   :  { %v13480_v23 = vpop.eup %13479  ;;  %v8845_v6 = vmul.f32 %v13478_v1, %v18040_v4  ;;  %v8789_v11 = vpop.xlane.xlu1 %8788 }
 0xa90   :  { %v8843_v13 = vmul.f32 %v13480_v23, %v18037_v56  ;;  %13489 = vrcp.f32 %v8789_v11  ;;  %v8786_v60 = vpop.xlane.xlu0 %8785 }
 0xa91   :  { %8887 = vst.msk [vmem:[%s18256_s7 + $0xa8] sm:$0xff] %vm8513_vm1, %v8845_v6  ;;  %13491 = vrcp.f32 %v8786_v60 }
 0xa92   :  { %v13482_v0 = vpop.eup %13481  ;;  %8886 = vst.msk [vmem:[%s18256_s7 + $0xa0] sm:$0xff] %vm8513_vm1, %v8843_v13 }
 0xa93   :  { %v13484_v53 = vpop.eup %13483  ;;  %v8849_v4 = vmul.f32 %v13482_v0, %v18050_v9  ;;  %v8795_v39 = vpop.xlane.xlu1 %8794 }
 0xa94   :  { %v8847_v56 = vmul.f32 %v13484_v53, %v18047_v61  ;;  %13493 = vrcp.f32 %v8795_v39  ;;  %v8792_v43 = vpop.xlane.xlu0 %8791 }
 0xa95   :  { %8889 = vst.msk [vmem:[%s18256_s7 + $0xb8] sm:$0xff] %vm8513_vm1, %v8849_v4  ;;  %13495 = vrcp.f32 %v8792_v43 }
 0xa96   :  { %v13486_v50 = vpop.eup %13485  ;;  %8888 = vst.msk [vmem:[%s18256_s7 + $0xb0] sm:$0xff] %vm8513_vm1, %v8847_v56 }
 0xa97   :  { %v13488_v47 = vpop.eup %13487  ;;  %v8853_v9 = vmul.f32 %v13486_v50, %v18059_v32  ;;  %v8801_v45 = vpop.xlane.xlu1 %8800 }
 0xa98   :  { %v8851_v61 = vmul.f32 %v13488_v47, %v18057_v34  ;;  %13497 = vrcp.f32 %v8801_v45  ;;  %v8798_v15 = vpop.xlane.xlu0 %8797 }
 0xa99   :  { %8891 = vst.msk [vmem:[%s18256_s7 + $0xc8] sm:$0xff] %vm8513_vm1, %v8853_v9  ;;  %13499 = vrcp.f32 %v8798_v15 }
 0xa9a   :  { %v13490_v52 = vpop.eup %13489  ;;  %8890 = vst.msk [vmem:[%s18256_s7 + $0xc0] sm:$0xff] %vm8513_vm1, %v8851_v61 }
 0xa9b   :  { %v13492_v3 = vpop.eup %13491  ;;  %v8857_v32 = vmul.f32 %v13490_v52, %v18067_v12 }
 0xa9c   :  { %v8855_v14 = vmul.f32 %v13492_v3, %v18065_v10 }
 0xa9d   :  { %8893 = vst.msk [vmem:[%s18256_s7 + $0xd8] sm:$0xff] %vm8513_vm1, %v8857_v32 }
 0xa9e   :  { %v13494_v34 = vpop.eup %13493  ;;  %8892 = vst.msk [vmem:[%s18256_s7 + $0xd0] sm:$0xff] %vm8513_vm1, %v8855_v14 }
 0xa9f   :  { %v13496_v27 = vpop.eup %13495  ;;  %v8861_v55 = vmul.f32 %v13494_v34, %v18075_v33 }
 0xaa0   :  { %v8859_v41 = vmul.f32 %v13496_v27, %v18073_v57 }
 0xaa1   :  { %8895 = vst.msk [vmem:[%s18256_s7 + $0xe8] sm:$0xff] %vm8513_vm1, %v8861_v55 }
 0xaa2   :  { %v13498_v10 = vpop.eup %13497  ;;  %8894 = vst.msk [vmem:[%s18256_s7 + $0xe0] sm:$0xff] %vm8513_vm1, %v8859_v41 }
 0xaa3   :  { %v13500_v12 = vpop.eup %13499  ;;  %v8865_v42 = vmul.f32 %v13498_v10, %v18083_v21 }
 0xaa4   :  { %v8863_v18 = vmul.f32 %v13500_v12, %v18081_v38 }
 0xaa5   :  { %8897 = vst.msk [vmem:[%s18256_s7 + $0xf8] sm:$0xff] %vm8513_vm1, %v8865_v42 }
 0xaa6   :  { %8896 = vst.msk [vmem:[%s18256_s7 + $0xf0] sm:$0xff] %vm8513_vm1, %v8863_v18 }
 0xaa7   :  { %8902 = vsyncpa [#allocation3], 1 }

</bundles_post_ra>
